<compile_context>
chip_gen: v5e
topology: v5e:2x2
jax: 0.10.0
libtpu: 0.0.40
codegen_flags: <defaults>
</compile_context>

<pallas_src>
import functools
import math
from types import SimpleNamespace

import jax
import jax.numpy as jnp
from jax.experimental import pallas as pl
from jax.experimental.pallas import tpu as pltpu


# ------------------------------ tiling helpers ------------------------------

_M_TILES = (512, 256, 128, 64, 32, 16, 8)    # sublane axis: multiples of 8
_NK_TILES = (512, 256, 128)                  # lane axis: prefer >=256 (v6e/v7x MXU)


def _pick_tile(dim, candidates):
    for c in candidates:
        if c <= dim and dim % c == 0:
            return c
    return dim                               # fall back to the full dimension


@functools.lru_cache(maxsize=None)
def _vmem_limit_bytes():
    """Per-generation VMEM budget: ~3/4 of physical, clamped to [32, 96] MiB."""
    try:
        info = pltpu.get_tpu_info()
        cap = int(getattr(info, "vmem_capacity_bytes", 0) or 0)
        if cap > 0:
            return int(min(96 << 20, max(32 << 20, (cap * 3) // 4)))
    except Exception:
        pass
    return 48 << 20                          # safe on every generation (v7x: 64 MiB)


def _cparams(semantics):
    return pltpu.CompilerParams(dimension_semantics=semantics,
                                vmem_limit_bytes=_vmem_limit_bytes())


# --------------------------- in-kernel math helpers --------------------------

def _layernorm(x, g, b, eps):
    mu = jnp.mean(x, axis=-1, keepdims=True)
    var = jnp.mean(jnp.square(x - mu), axis=-1, keepdims=True)
    return (x - mu) * jax.lax.rsqrt(var + eps) * g + b


def _gelu(x):                                 # exact erf GELU (torch default)
    return 0.5 * x * (1.0 + jax.lax.erf(x * (1.0 / math.sqrt(2.0))))


def _mha_heads(qsrc, q_base, kvsrc, k_base, v_base, nhead, dh, scale, store):
    """Sequential per-head softmax attention: only one (Lq, Lk) score slab is
    live at a time; each head's (Lq, dh) f32 result is handed to `store(h, o_h)`
    and written straight into its lane slice (no concatenates)."""
    for h in range(nhead):
        q_h = qsrc[:, q_base + h * dh:q_base + (h + 1) * dh].astype(jnp.bfloat16)
        k_h = kvsrc[:, k_base + h * dh:k_base + (h + 1) * dh].astype(jnp.bfloat16)
        v_h = kvsrc[:, v_base + h * dh:v_base + (h + 1) * dh].astype(jnp.bfloat16)
        s = jax.lax.dot_general(q_h, k_h, (((1,), (1,)), ((), ())),
                                preferred_element_type=jnp.float32) * scale
        s = s - jnp.max(s, axis=-1, keepdims=True)
        p = jnp.exp(s)
        p = p * pl.reciprocal(jnp.sum(p, axis=-1, keepdims=True), approx=True)
        o_h = jnp.dot(p.astype(jnp.bfloat16), v_h,
                      preferred_element_type=jnp.float32)
        store(h, o_h)


# ------------------------------ fused matmul ---------------------------------

def _fused_matmul_kernel(*refs, nk, has_ln, has_bias, has_residual, has_out_ln,
                         activation, ln_eps, use_acc):
    """[optional pre-LN ->] x @ w (+bias) (+GELU) (+residual) [-> optional LN]."""
    it = iter(refs)
    x_ref = next(it)
    g_ref = next(it) if has_ln else None
    be_ref = next(it) if has_ln else None
    w_ref = next(it)
    b_ref = next(it) if has_bias else None
    r_ref = next(it) if has_residual else None
    og_ref = next(it) if has_out_ln else None
    ob_ref = next(it) if has_out_ln else None
    o_ref = next(it)
    oln_ref = next(it) if has_out_ln else None
    acc_ref = next(it) if use_acc else None

    x = x_ref[...]
    if has_ln:                                # pre-norm fused (block covers full K)
        x = _layernorm(x.astype(jnp.float32), g_ref[...], be_ref[...],
                       ln_eps).astype(jnp.bfloat16)
    elif x.dtype != jnp.bfloat16:
        x = x.astype(jnp.bfloat16)            # bf16 MXU inputs, f32 accumulation
    part = jnp.dot(x, w_ref[...], preferred_element_type=jnp.float32)

    if use_acc:
        @pl.when(pl.program_id(2) == 0)
        def _init():
            acc_ref[...] = jnp.zeros_like(acc_ref)
        acc_ref[...] += part

    def _epilogue():
        h = acc_ref[...] if use_acc else part
        if has_bias:
            h = h + b_ref[...]
        if activation == "gelu":
            h = _gelu(h)
        if has_residual:
            h = h + r_ref[...].astype(jnp.float32)
        o_ref[...] = h.astype(o_ref.dtype)
        if has_out_ln:                        # post-norm LN fused (tn == N)
            oln_ref[...] = _layernorm(h, og_ref[...], ob_ref[...],
                                      ln_eps).astype(oln_ref.dtype)

    if use_acc:
        pl.when(pl.program_id(2) == nk - 1)(_epilogue)
    else:
        _epilogue()


def fused_matmul(x, w, b=None, *, ln=None, out_ln=None, ln_eps=1e-5,
                 residual=None, activation=None, out_dtype=jnp.bfloat16):
    """y = act(LN?(x) @ w + b) + residual; optionally also returns LayerNorm(y).

    bf16 MXU inputs / bf16 activations in HBM, f32 accumulation & statistics."""
    M, K = x.shape
    _, N = w.shape
    tn = N if out_ln is not None else _pick_tile(N, _NK_TILES)
    tk = K if ln is not None else _pick_tile(K, _NK_TILES)     # pre-LN needs full row
    m_tiles = _M_TILES
    if ln is not None and K > 1024:           # tk == K: bound working set (v7x 64 MiB)
        m_tiles = tuple(t for t in _M_TILES if t <= 256)
    tm = _pick_tile(M, m_tiles)
    if (M // tm) * (N // tn) < 2 and tm % 16 == 0:             # >=2 parallel steps (v7x)
        tm //= 2
    nk = K // tk
    use_acc = nk > 1                          # skip f32 accumulator when single K step

    inputs = [x]
    in_specs = [pl.BlockSpec((tm, tk), lambda i, j, k: (i, k))]
    if ln is not None:
        inputs += [ln['g'], ln['b']]
        in_specs += [pl.BlockSpec((1, K), lambda i, j, k: (0, 0)),
                     pl.BlockSpec((1, K), lambda i, j, k: (0, 0))]
    inputs.append(w)
    in_specs.append(pl.BlockSpec((tk, tn), lambda i, j, k: (k, j)))
    if b is not None:
        inputs.append(b)
        in_specs.append(pl.BlockSpec((1, tn), lambda i, j, k: (0, j)))
    if residual is not None:
        inputs.append(residual)
        in_specs.append(pl.BlockSpec((tm, tn), lambda i, j, k: (i, j)))
    if out_ln is not None:
        inputs += [out_ln['g'], out_ln['b']]
        in_specs += [pl.BlockSpec((1, N), lambda i, j, k: (0, 0)),
                     pl.BlockSpec((1, N), lambda i, j, k: (0, 0))]

    out_spec = pl.BlockSpec((tm, tn), lambda i, j, k: (i, j))
    if out_ln is not None:
        out_specs = [out_spec, pl.BlockSpec((tm, tn), lambda i, j, k: (i, j))]
        out_shape = (jax.ShapeDtypeStruct((M, N), out_dtype),
                     jax.ShapeDtypeStruct((M, N), out_dtype))
    else:
        out_specs = out_spec
        out_shape = jax.ShapeDtypeStruct((M, N), out_dtype)

    kern = functools.partial(
        _fused_matmul_kernel, nk=nk, has_ln=ln is not None, has_bias=b is not None,
        has_residual=residual is not None, has_out_ln=out_ln is not None,
        activation=activation, ln_eps=ln_eps, use_acc=use_acc)
    return pl.pallas_call(
        kern,
        grid=(M // tm, N // tn, nk),
        in_specs=in_specs,
        out_specs=out_specs,
        out_shape=out_shape,
        scratch_shapes=[pltpu.VMEM((tm, tn), jnp.float32)] if use_acc else [],
        compiler_params=_cparams(("parallel", "parallel", "arbitrary")),
    )(*inputs)


# ------------------------------ attention kernels ----------------------------

def _enc_batch_attn_kernel(qkv_ref, o_ref, *, nhead, dh, scale):
    """Reference quirk: batch_first=False MHA fed (B, L, E) attends over the
    batch axis, independently for every position l and head.  B (the effective
    sequence) is tiny, so scores use VPU multiply + lane-reduce: no transposes,
    no concatenates, per-head results stored straight into their lane slices."""
    B = qkv_ref.shape[0]
    E = o_ref.shape[2]
    qkv = qkv_ref[...].astype(jnp.float32)                 # (B, tl, 3E)
    for h in range(nhead):
        q0, k0, v0 = h * dh, E + h * dh, 2 * E + h * dh
        q_h = [qkv[b, :, q0:q0 + dh] * scale for b in range(B)]   # (tl, dh)
        k_h = [qkv[b, :, k0:k0 + dh] for b in range(B)]
        v_h = [qkv[b, :, v0:v0 + dh] for b in range(B)]
        for b in range(B):
            s = [jnp.sum(q_h[b] * k_h[c], axis=-1, keepdims=True)  # (tl, 1)
                 for c in range(B)]
            m = s[0]
            for c in range(1, B):
                m = jnp.maximum(m, s[c])
            p = [jnp.exp(s[c] - m) for c in range(B)]
            denom = p[0]
            for c in range(1, B):
                denom = denom + p[c]
            inv = pl.reciprocal(denom, approx=True)
            o_bh = p[0] * v_h[0]
            for c in range(1, B):
                o_bh = o_bh + p[c] * v_h[c]
            o_bh = o_bh * inv                               # (tl, dh)
            o_ref[b:b + 1, :, h * dh:(h + 1) * dh] = (
                o_bh[None].astype(o_ref.dtype))


def encoder_batch_attention(qkv, nhead):
    """qkv: (B, L, 3E) packed.  Grid over L tiles (no wrapper transposes)."""
    B, L, threeE = qkv.shape
    E = threeE // 3
    dh = E // nhead
    scale = 1.0 / math.sqrt(dh)
    tl = 8 if L % 8 == 0 else L
    return pl.pallas_call(
        functools.partial(_enc_batch_attn_kernel, nhead=nhead, dh=dh, scale=scale),
        grid=(L // tl,),
        in_specs=[pl.BlockSpec((B, tl, threeE), lambda i: (0, i, 0))],
        out_specs=pl.BlockSpec((B, tl, E), lambda i: (0, i, 0)),
        out_shape=jax.ShapeDtypeStruct((B, L, E), jnp.bfloat16),
        compiler_params=_cparams(("parallel",)),
    )(qkv)


def _cross_attn_kernel(q_ref, kv_ref, o_ref, *, nhead, dh, scale):
    E = o_ref.shape[2]
    q = q_ref[0]                                            # (Lq, E)
    kv = kv_ref[0]                                          # (Lk, 2E) packed K|V

    def store(h, o_h):
        o_ref[0:1, :, h * dh:(h + 1) * dh] = o_h[None].astype(o_ref.dtype)

    _mha_heads(q, 0, kv, 0, E, nhead, dh, scale, store)


def cross_attention(q, kv, nhead):
    """q: (B, Lq, E), kv: (B, Lk, 2E) packed -> (B, Lq, E) bf16."""
    B, Lq, E = q.shape
    Lk = kv.shape[1]
    dh = E // nhead
    scale = 1.0 / math.sqrt(dh)
    return pl.pallas_call(
        functools.partial(_cross_attn_kernel, nhead=nhead, dh=dh, scale=scale),
        grid=(B,),
        in_specs=[pl.BlockSpec((1, Lq, E), lambda i: (i, 0, 0)),
                  pl.BlockSpec((1, Lk, 2 * E), lambda i: (i, 0, 0))],
        out_specs=pl.BlockSpec((1, Lq, E), lambda i: (i, 0, 0)),
        out_shape=jax.ShapeDtypeStruct((B, Lq, E), jnp.bfloat16),
        compiler_params=_cparams(("parallel",)),
    )(q, kv)


# ------------------------- fused transformer decoder layer -------------------

def _decoder_layer_kernel(x_ref, kv_ref, wq, bq, woc, boc, g1, be1,
                          wqkv, bqkv, wos, bos, g2, be2,
                          w1, b1, w2, b2, g3, be3, o_ref, attn_buf,
                          *, nhead, dh, eps):
    """Whole TransformerDecoderLayer (norm_first=False, short_cut=True, GELU)
    for one batch element: cross-attn, self-attn, FFN, all three LayerNorms."""
    Dd = o_ref.shape[2]
    scale = 1.0 / math.sqrt(dh)
    x = x_ref[0].astype(jnp.float32)                        # (l, Dd)
    kv = kv_ref[0]                                          # (L, 2*Dd) bf16

    def store(h, o_h):
        attn_buf[:, h * dh:(h + 1) * dh] = o_h

    # --- cross-attention + residual + norm1 ---
    q = jnp.dot(x.astype(jnp.bfloat16), wq[...],
                preferred_element_type=jnp.float32) + bq[...]
    _mha_heads(q.astype(jnp.bfloat16), 0, kv, 0, Dd, nhead, dh, scale, store)
    x = x + jnp.dot(attn_buf[...].astype(jnp.bfloat16), woc[...],
                    preferred_element_type=jnp.float32) + boc[...]
    x = _layernorm(x, g1[...], be1[...], eps)

    # --- self-attention + residual + norm2 ---
    qkv = (jnp.dot(x.astype(jnp.bfloat16), wqkv[...],
                   preferred_element_type=jnp.float32) + bqkv[...]
           ).astype(jnp.bfloat16)
    _mha_heads(qkv, 0, qkv, Dd, 2 * Dd, nhead, dh, scale, store)
    x = x + jnp.dot(attn_buf[...].astype(jnp.bfloat16), wos[...],
                    preferred_element_type=jnp.float32) + bos[...]
    x = _layernorm(x, g2[...], be2[...], eps)

    # --- feed-forward + residual + norm3 ---
    h = _gelu(jnp.dot(x.astype(jnp.bfloat16), w1[...],
                      preferred_element_type=jnp.float32) + b1[...])
    x = x + jnp.dot(h.astype(jnp.bfloat16), w2[...],
                    preferred_element_type=jnp.float32) + b2[...]
    x = _layernorm(x, g3[...], be3[...], eps)
    o_ref[...] = x[None].astype(o_ref.dtype)


def decoder_layer(p, tgt, mem_kv, cfg):
    """One fused decoder layer; grid over the batch.  M = num_queries is tiny,
    so running the ~8 sub-ops as separate pallas_calls is pure launch overhead."""
    B, l, Dd = tgt.shape
    L = mem_kv.shape[1]
    dh = Dd // cfg.dec_nhead
    ca, sa = p['cross_attn'], p['self_attn']
    weights = [ca['wq'], ca['bq'], ca['wo'], ca['bo'],
               p['norm1']['g'], p['norm1']['b'],
               sa['w_qkv'], sa['b_qkv'], sa['wo'], sa['bo'],
               p['norm2']['g'], p['norm2']['b'],
               p['lin1_w'], p['lin1_b'], p['lin2_w'], p['lin2_b'],
               p['norm3']['g'], p['norm3']['b']]
    in_specs = ([pl.BlockSpec((1, l, Dd), lambda i: (i, 0, 0)),
                 pl.BlockSpec((1, L, 2 * Dd), lambda i: (i, 0, 0))]
                + [pl.BlockSpec(w.shape, lambda i: (0, 0)) for w in weights])
    return pl.pallas_call(
        functools.partial(_decoder_layer_kernel, nhead=cfg.dec_nhead, dh=dh,
                          eps=cfg.layer_norm_eps),
        grid=(B,),
        in_specs=in_specs,
        out_specs=pl.BlockSpec((1, l, Dd), lambda i: (i, 0, 0)),
        out_shape=jax.ShapeDtypeStruct((B, l, Dd), jnp.bfloat16),
        scratch_shapes=[pltpu.VMEM((l, Dd), jnp.float32)],
        compiler_params=_cparams(("parallel",)),
    )(tgt, mem_kv, *weights)


# ------------------------------- final head ----------------------------------

def _final_head_kernel(x_ref, g_ref, b_ref, w_ref, cb_ref, o_ref, acc_ref, *,
                       eps, n_steps, inv_l):
    step = pl.program_id(0)

    @pl.when(step == 0)
    def _init():
        acc_ref[...] = jnp.zeros_like(acc_ref)

    x = x_ref[...].astype(jnp.float32)                      # (B, tl, D)
    xn = _layernorm(x, g_ref[...], b_ref[...], eps)
    acc_ref[...] += jnp.sum(xn, axis=1)                     # running patch sum

    @pl.when(step == n_steps - 1)
    def _fin():
        avg = acc_ref[...] * inv_l                          # mean over patches
        o_ref[...] = (jnp.dot(avg.astype(jnp.bfloat16), w_ref[...],
                              preferred_element_type=jnp.float32) + cb_ref[...])


def final_head(x, ln_p, w, b, eps):
    """Final LayerNorm + mean pool over patches + classifier, blocked over L."""
    B, L, D = x.shape
    C = w.shape[1]
    tl = 8 if L % 8 == 0 else L
    n_steps = L // tl
    return pl.pallas_call(
        functools.partial(_final_head_kernel, eps=eps, n_steps=n_steps,
                          inv_l=1.0 / L),
        grid=(n_steps,),
        in_specs=[pl.BlockSpec((B, tl, D), lambda i: (0, i, 0)),
                  pl.BlockSpec((1, D), lambda i: (0, 0)),
                  pl.BlockSpec((1, D), lambda i: (0, 0)),
                  pl.BlockSpec((D, C), lambda i: (0, 0)),
                  pl.BlockSpec((1, C), lambda i: (0, 0))],
        out_specs=pl.BlockSpec((B, C), lambda i: (0, 0)),
        out_shape=jax.ShapeDtypeStruct((B, C), jnp.float32),
        scratch_shapes=[pltpu.VMEM((B, D), jnp.float32)],
        compiler_params=_cparams(("arbitrary",)),
    )(x, ln_p['g'], ln_p['b'], w, b)


# --------------------------- model building blocks ---------------------------

def block_forward(p, patch_emb, query, cfg):
    B, L, E = patch_emb.shape
    eps = cfg.layer_norm_eps
    x2d = patch_emb.reshape(B * L, E)

    # --- self-attention: pre-norm1 fused into QKV, residual fused into out-proj ---
    sa = p['self_attn']
    qkv = fused_matmul(x2d, sa['w_qkv'], sa['b_qkv'], ln=p['norm1'],
                       ln_eps=eps).reshape(B, L, 3 * E)
    attn = encoder_batch_attention(qkv, cfg.enc_nhead)      # attends over the batch axis (quirk)
    x2d = fused_matmul(attn.reshape(B * L, E), sa['wo'], sa['bo'], residual=x2d)

    # --- FFN: pre-norm2 fused into lin1; residual + norm3 fused into lin2 epilogue ---
    h = fused_matmul(x2d, p['ffn1_w'], p['ffn1_b'], ln=p['norm2'], ln_eps=eps,
                     activation="gelu")
    x2d, xn2d = fused_matmul(h, p['ffn2_w'], p['ffn2_b'], residual=x2d,
                             out_ln=p['norm3'], ln_eps=eps)

    # --- transformer decoder over the queries (one fused kernel per layer) ---
    q = query
    for lp in p['dec_layers']:
        mem_kv = fused_matmul(xn2d, lp['cross_attn']['w_kv'],
                              lp['cross_attn']['b_kv']
                              ).reshape(B, L, 2 * cfg.dec_dim)
        q = decoder_layer(lp, q, mem_kv, cfg)
    # TODO(synk): per-layer attention-weight maps are not materialized (they do
    # not feed the final logits).

    # --- block cross-attention: norm3(x) attends to decoder output; residual = x ---
    ca = p['cross_attn']
    qx = fused_matmul(xn2d, ca['wq'], ca['bq']).reshape(B, L, E)
    kv = fused_matmul(q.reshape(B * cfg.num_queries, cfg.dec_dim), ca['w_kv'],
                      ca['b_kv']).reshape(B, cfg.num_queries, 2 * E)
    o = cross_attention(qx, kv, cfg.enc_nhead)
    patch_emb = fused_matmul(o.reshape(B * L, E), ca['wo'], ca['bo'],
                             residual=x2d).reshape(B, L, E)
    return patch_emb, q


def decoder_vit_forward(params, img, cfg):
    B, C, H, W = img.shape
    psz = cfg.patch_size
    nH, nW = H // psz, W // psz
    L, E = nH * nW, cfg.enc_dim
    # patch unfold (== Conv2d stride=kernel, NCHW, flatten(2).transpose(1,2))
    x = img.reshape(B, C, nH, psz, nW, psz).transpose(0, 2, 4, 1, 3, 5)
    x = x.reshape(B * L, C * psz * psz)
    pos = jnp.broadcast_to(params['pos_emb'][None], (B, L, E)).reshape(B * L, E)
    patch_emb = fused_matmul(x, params['patch_w'], None,
                             residual=pos).reshape(B, L, E)
    query = jnp.broadcast_to(params['query_emb'][None],
                             (B, cfg.num_queries, cfg.dec_dim))
    for bp in params['blocks']:
        patch_emb, query = block_forward(bp, patch_emb, query, cfg)
    return final_head(patch_emb, params['final_ln'], params['cls_w'],
                      params['cls_b'], cfg.layer_norm_eps)


# ------------------------------------ init -----------------------------------

def init_params(cfg, key):
    std = cfg.initializer_range
    keys = iter(jax.random.split(key, 512))

    def nrm(shape, dtype=jnp.bfloat16):       # matmul weights / embeddings in bf16
        return (std * jax.random.normal(next(keys), shape, jnp.float32)).astype(dtype)

    def zeros(shape):                          # biases stay f32, stored (1, N)
        return jnp.zeros(shape, jnp.float32)

    def ln(d):
        return {'g': jnp.ones((1, d), jnp.float32), 'b': jnp.zeros((1, d), jnp.float32)}

    def mha_self(embed):                       # fused QKV weight (D, 3E)
        return {'w_qkv': nrm((embed, 3 * embed)), 'b_qkv': zeros((1, 3 * embed)),
                'wo': nrm((embed, embed)), 'bo': zeros((1, embed))}

    def mha_cross(embed, kvdim):               # fused KV weight (Dkv, 2E)
        return {'wq': nrm((embed, embed)), 'bq': zeros((1, embed)),
                'w_kv': nrm((kvdim, 2 * embed)), 'b_kv': zeros((1, 2 * embed)),
                'wo': nrm((embed, embed)), 'bo': zeros((1, embed))}

    def dec_layer_p():
        return {'self_attn': mha_self(cfg.dec_dim),
                'cross_attn': mha_cross(cfg.dec_dim, cfg.enc_dim),
                'lin1_w': nrm((cfg.dec_dim, cfg.dec_ffn_dim)),
                'lin1_b': zeros((1, cfg.dec_ffn_dim)),
                'lin2_w': nrm((cfg.dec_ffn_dim, cfg.dec_dim)),
                'lin2_b': zeros((1, cfg.dec_dim)),
                'norm1': ln(cfg.dec_dim), 'norm2': ln(cfg.dec_dim),
                'norm3': ln(cfg.dec_dim)}

    def block_p():
        return {'self_attn': mha_self(cfg.enc_dim),
                'cross_attn': mha_cross(cfg.enc_dim, cfg.dec_dim),
                'ffn1_w': nrm((cfg.enc_dim, cfg.enc_ffndim)),
                'ffn1_b': zeros((1, cfg.enc_ffndim)),
                'ffn2_w': nrm((cfg.enc_ffndim, cfg.enc_dim)),
                'ffn2_b': zeros((1, cfg.enc_dim)),
                'norm1': ln(cfg.enc_dim), 'norm2': ln(cfg.enc_dim),
                'norm3': ln(cfg.enc_dim),
                'dec_layers': [dec_layer_p() for _ in range(cfg.num_layers_per_block)]}

    num_patches = (cfg.image_size // cfg.patch_size) ** 2
    return {'patch_w': nrm((3 * cfg.patch_size * cfg.patch_size, cfg.enc_dim)),
            'pos_emb': nrm((num_patches, cfg.enc_dim)),
            'query_emb': nrm((cfg.num_queries, cfg.dec_dim)),
            'blocks': [block_p() for _ in range(cfg.num_blocks)],
            'final_ln': ln(cfg.enc_dim),
            'cls_w': nrm((cfg.enc_dim, cfg.num_classes)),
            'cls_b': zeros((1, cfg.num_classes))}


# ------------------------------------ main ------------------------------------

if __name__ == "__main__":
    cfg = SimpleNamespace(
        image_size=16, patch_size=4,
        enc_dim=32, enc_nhead=4, enc_ffndim=64, enc_dropout=0.0,
        dec_dim=32, dec_nhead=4, dec_ffn_dim=64, dec_dropout=0.0,
        num_queries=8, num_layers_per_block=1, num_blocks=2,
        num_classes=10, layer_norm_eps=1e-5, initializer_range=0.02,
    )
    key = jax.random.PRNGKey(0)
    pkey, xkey = jax.random.split(key)
    params = init_params(cfg, pkey)
    img = jax.random.normal(xkey, (2, 3, cfg.image_size, cfg.image_size), jnp.float32)

    fwd = jax.jit(functools.partial(decoder_vit_forward, cfg=cfg))
    logits = fwd(params, img)
    jax.block_until_ready(logits)
    assert logits.shape == (2, cfg.num_classes)
    assert bool(jnp.all(jnp.isfinite(logits)))
    print("KERNEL_OK")
</pallas_src>

<mosaic_0001>
module attributes {stable_mosaic.version = 11 : i64} {
  func.func @_fused_matmul_kernel(%arg0: i32, %arg1: i32, %arg2: i32, %arg3: memref<16x32xbf16, #tpu.memory_space<vmem>>, %arg4: memref<1x32xf32, #tpu.memory_space<vmem>>, %arg5: memref<1x32xf32, #tpu.memory_space<vmem>>, %arg6: memref<32x96xbf16, #tpu.memory_space<vmem>>, %arg7: memref<1x96xf32, #tpu.memory_space<vmem>>, %arg8: memref<16x96xbf16, #tpu.memory_space<vmem>>) attributes {dimension_semantics = [#tpu.dimension_semantics<parallel>, #tpu.dimension_semantics<parallel>, #tpu.dimension_semantics<arbitrary>], iteration_bounds = array<i64: 2, 1, 1>, scalar_prefetch = 0 : i64, scratch_operands = 0 : i64, tpu.core_type = #tpu.core_type<tc>, window_params = [{transform_indices = @transform_0, window_bounds = array<i64: 16, 32>}, {pipeline_mode = #tpu.pipeline_mode<synchronous>, transform_indices = @transform_1, window_bounds = array<i64: 1, 32>}, {pipeline_mode = #tpu.pipeline_mode<synchronous>, transform_indices = @transform_2, window_bounds = array<i64: 1, 32>}, {transform_indices = @transform_3, window_bounds = array<i64: 32, 96>}, {transform_indices = @transform_4, window_bounds = array<i64: 1, 96>}, {transform_indices = @transform_5, window_bounds = array<i64: 16, 96>}]} {
    %c0 = arith.constant 0 : index
    %c0_0 = arith.constant 0 : index
    %0 = vector.load %arg3[%c0, %c0_0] : memref<16x32xbf16, #tpu.memory_space<vmem>>, vector<16x32xbf16>
    %1 = arith.extf %0 : vector<16x32xbf16> to vector<16x32xf32>
    %c0_1 = arith.constant 0 : index
    %c0_2 = arith.constant 0 : index
    %2 = vector.load %arg4[%c0_1, %c0_2] : memref<1x32xf32, #tpu.memory_space<vmem>>, vector<1x32xf32>
    %c0_3 = arith.constant 0 : index
    %c0_4 = arith.constant 0 : index
    %3 = vector.load %arg5[%c0_3, %c0_4] : memref<1x32xf32, #tpu.memory_space<vmem>>, vector<1x32xf32>
    %cst = arith.constant dense<0.000000e+00> : vector<16xf32>
    %4 = vector.multi_reduction <add>, %1, %cst [1] : vector<16x32xf32> to vector<16xf32>
    %5 = vector.shape_cast %4 : vector<16xf32> to vector<16x1xf32>
    %cst_5 = arith.constant 3.200000e+01 : f32
    %6 = vector.broadcast %cst_5 : f32 to vector<16x1xf32>
    %7 = arith.divf %5, %6 : vector<16x1xf32>
    %8 = vector.broadcast %7 : vector<16x1xf32> to vector<16x32xf32>
    %9 = arith.subf %1, %8 : vector<16x32xf32>
    %10 = arith.mulf %9, %9 : vector<16x32xf32>
    %cst_6 = arith.constant dense<0.000000e+00> : vector<16xf32>
    %11 = vector.multi_reduction <add>, %10, %cst_6 [1] : vector<16x32xf32> to vector<16xf32>
    %12 = vector.shape_cast %11 : vector<16xf32> to vector<16x1xf32>
    %cst_7 = arith.constant 3.200000e+01 : f32
    %13 = vector.broadcast %cst_7 : f32 to vector<16x1xf32>
    %14 = arith.divf %12, %13 : vector<16x1xf32>
    %15 = vector.broadcast %7 : vector<16x1xf32> to vector<16x32xf32>
    %16 = arith.subf %1, %15 : vector<16x32xf32>
    %cst_8 = arith.constant 9.99999974E-6 : f32
    %17 = vector.broadcast %cst_8 : f32 to vector<16x1xf32>
    %18 = arith.addf %14, %17 : vector<16x1xf32>
    %19 = math.rsqrt %18 : vector<16x1xf32>
    %20 = vector.broadcast %19 : vector<16x1xf32> to vector<16x32xf32>
    %21 = arith.mulf %16, %20 : vector<16x32xf32>
    %22 = vector.broadcast %2 : vector<1x32xf32> to vector<16x32xf32>
    %23 = arith.mulf %21, %22 : vector<16x32xf32>
    %24 = vector.broadcast %3 : vector<1x32xf32> to vector<16x32xf32>
    %25 = arith.addf %23, %24 : vector<16x32xf32>
    %26 = arith.truncf %25 : vector<16x32xf32> to vector<16x32xbf16>
    %c0_9 = arith.constant 0 : index
    %c0_10 = arith.constant 0 : index
    %27 = vector.load %arg6[%c0_9, %c0_10] : memref<32x96xbf16, #tpu.memory_space<vmem>>, vector<32x96xbf16>
    %cst_11 = arith.constant dense<0.000000e+00> : vector<16x96xf32>
    %28 = tpu.matmul %26, %27, %cst_11 {dimension_numbers = #tpu.dot_dimension_numbers<[1], [0], [0], [1], [0, 0, 1, 1], [], []>} : vector<16x32xbf16>, vector<32x96xbf16>, vector<16x96xf32> -> vector<16x96xf32>
    %c0_12 = arith.constant 0 : index
    %c0_13 = arith.constant 0 : index
    %29 = vector.load %arg7[%c0_12, %c0_13] : memref<1x96xf32, #tpu.memory_space<vmem>>, vector<1x96xf32>
    %30 = vector.broadcast %29 : vector<1x96xf32> to vector<16x96xf32>
    %31 = arith.addf %28, %30 : vector<16x96xf32>
    %32 = arith.truncf %31 : vector<16x96xf32> to vector<16x96xbf16>
    %c0_14 = arith.constant 0 : index
    %c0_15 = arith.constant 0 : index
    %33 = vector.load %arg8[%c0_14, %c0_15] : memref<16x96xbf16, #tpu.memory_space<vmem>>, vector<16x96xbf16>
    tpu.vector_store %arg8[%c0_14, %c0_15], %32 {strides = array<i32>} : memref<16x96xbf16, #tpu.memory_space<vmem>>, vector<16x96xbf16>,
    return
  }
  func.func @transform_0(%arg0: i32, %arg1: i32, %arg2: i32) -> (i32, i32) {
    %c0_i32 = arith.constant 0 : i32
    return %arg0, %arg2 : i32, i32
  }
  func.func @transform_1(%arg0: i32, %arg1: i32, %arg2: i32) -> (i32, i32) {
    %c0_i32 = arith.constant 0 : i32
    %c0_i32_0 = arith.constant 0 : i32
    %c0_i32_1 = arith.constant 0 : i32
    return %c0_i32, %c0_i32_0 : i32, i32
  }
  func.func @transform_2(%arg0: i32, %arg1: i32, %arg2: i32) -> (i32, i32) {
    %c0_i32 = arith.constant 0 : i32
    %c0_i32_0 = arith.constant 0 : i32
    %c0_i32_1 = arith.constant 0 : i32
    return %c0_i32, %c0_i32_0 : i32, i32
  }
  func.func @transform_3(%arg0: i32, %arg1: i32, %arg2: i32) -> (i32, i32) {
    %c0_i32 = arith.constant 0 : i32
    return %arg2, %arg1 : i32, i32
  }
  func.func @transform_4(%arg0: i32, %arg1: i32, %arg2: i32) -> (i32, i32) {
    %c0_i32 = arith.constant 0 : i32
    %c0_i32_0 = arith.constant 0 : i32
    return %c0_i32, %arg1 : i32, i32
  }
  func.func @transform_5(%arg0: i32, %arg1: i32, %arg2: i32) -> (i32, i32) {
    %c0_i32 = arith.constant 0 : i32
    return %arg0, %arg1 : i32, i32
  }
}

module attributes {stable_mosaic.version = 11 : i64} {
  func.func @_fused_matmul_kernel(%arg0: i32, %arg1: i32, %arg2: i32, %arg3: memref<16x32xbf16, #tpu.memory_space<vmem>>, %arg4: memref<32x32xbf16, #tpu.memory_space<vmem>>, %arg5: memref<1x32xf32, #tpu.memory_space<vmem>>, %arg6: memref<16x32xbf16, #tpu.memory_space<vmem>>, %arg7: memref<16x32xbf16, #tpu.memory_space<vmem>>) attributes {dimension_semantics = [#tpu.dimension_semantics<parallel>, #tpu.dimension_semantics<parallel>, #tpu.dimension_semantics<arbitrary>], iteration_bounds = array<i64: 2, 1, 1>, scalar_prefetch = 0 : i64, scratch_operands = 0 : i64, tpu.core_type = #tpu.core_type<tc>, window_params = [{transform_indices = @transform_0, window_bounds = array<i64: 16, 32>}, {transform_indices = @transform_1, window_bounds = array<i64: 32, 32>}, {transform_indices = @transform_2, window_bounds = array<i64: 1, 32>}, {transform_indices = @transform_3, window_bounds = array<i64: 16, 32>}, {transform_indices = @transform_4, window_bounds = array<i64: 16, 32>}]} {
    %c0 = arith.constant 0 : index
    %c0_0 = arith.constant 0 : index
    %0 = vector.load %arg3[%c0, %c0_0] : memref<16x32xbf16, #tpu.memory_space<vmem>>, vector<16x32xbf16>
    %c0_1 = arith.constant 0 : index
    %c0_2 = arith.constant 0 : index
    %1 = vector.load %arg4[%c0_1, %c0_2] : memref<32x32xbf16, #tpu.memory_space<vmem>>, vector<32x32xbf16>
    %cst = arith.constant dense<0.000000e+00> : vector<16x32xf32>
    %2 = tpu.matmul %0, %1, %cst {dimension_numbers = #tpu.dot_dimension_numbers<[1], [0], [0], [1], [0, 0, 1, 1], [], []>} : vector<16x32xbf16>, vector<32x32xbf16>, vector<16x32xf32> -> vector<16x32xf32>
    %c0_3 = arith.constant 0 : index
    %c0_4 = arith.constant 0 : index
    %3 = vector.load %arg5[%c0_3, %c0_4] : memref<1x32xf32, #tpu.memory_space<vmem>>, vector<1x32xf32>
    %4 = vector.broadcast %3 : vector<1x32xf32> to vector<16x32xf32>
    %5 = arith.addf %2, %4 : vector<16x32xf32>
    %c0_5 = arith.constant 0 : index
    %c0_6 = arith.constant 0 : index
    %6 = vector.load %arg6[%c0_5, %c0_6] : memref<16x32xbf16, #tpu.memory_space<vmem>>, vector<16x32xbf16>
    %7 = arith.extf %6 : vector<16x32xbf16> to vector<16x32xf32>
    %8 = arith.addf %5, %7 : vector<16x32xf32>
    %9 = arith.truncf %8 : vector<16x32xf32> to vector<16x32xbf16>
    %c0_7 = arith.constant 0 : index
    %c0_8 = arith.constant 0 : index
    %10 = vector.load %arg7[%c0_7, %c0_8] : memref<16x32xbf16, #tpu.memory_space<vmem>>, vector<16x32xbf16>
    tpu.vector_store %arg7[%c0_7, %c0_8], %9 {strides = array<i32>} : memref<16x32xbf16, #tpu.memory_space<vmem>>, vector<16x32xbf16>,
    return
  }
  func.func @transform_0(%arg0: i32, %arg1: i32, %arg2: i32) -> (i32, i32) {
    %c0_i32 = arith.constant 0 : i32
    return %arg0, %arg2 : i32, i32
  }
  func.func @transform_1(%arg0: i32, %arg1: i32, %arg2: i32) -> (i32, i32) {
    %c0_i32 = arith.constant 0 : i32
    return %arg2, %arg1 : i32, i32
  }
  func.func @transform_2(%arg0: i32, %arg1: i32, %arg2: i32) -> (i32, i32) {
    %c0_i32 = arith.constant 0 : i32
    %c0_i32_0 = arith.constant 0 : i32
    return %c0_i32, %arg1 : i32, i32
  }
  func.func @transform_3(%arg0: i32, %arg1: i32, %arg2: i32) -> (i32, i32) {
    %c0_i32 = arith.constant 0 : i32
    return %arg0, %arg1 : i32, i32
  }
  func.func @transform_4(%arg0: i32, %arg1: i32, %arg2: i32) -> (i32, i32) {
    %c0_i32 = arith.constant 0 : i32
    return %arg0, %arg1 : i32, i32
  }
}

module attributes {stable_mosaic.version = 11 : i64} {
  func.func @_fused_matmul_kernel(%arg0: i32, %arg1: i32, %arg2: i32, %arg3: memref<16x48xf32, #tpu.memory_space<vmem>>, %arg4: memref<48x32xbf16, #tpu.memory_space<vmem>>, %arg5: memref<16x32xbf16, #tpu.memory_space<vmem>>, %arg6: memref<16x32xbf16, #tpu.memory_space<vmem>>) attributes {dimension_semantics = [#tpu.dimension_semantics<parallel>, #tpu.dimension_semantics<parallel>, #tpu.dimension_semantics<arbitrary>], iteration_bounds = array<i64: 2, 1, 1>, scalar_prefetch = 0 : i64, scratch_operands = 0 : i64, tpu.core_type = #tpu.core_type<tc>, window_params = [{transform_indices = @transform_0, window_bounds = array<i64: 16, 48>}, {transform_indices = @transform_1, window_bounds = array<i64: 48, 32>}, {transform_indices = @transform_2, window_bounds = array<i64: 16, 32>}, {transform_indices = @transform_3, window_bounds = array<i64: 16, 32>}]} {
    %c0 = arith.constant 0 : index
    %c0_0 = arith.constant 0 : index
    %0 = vector.load %arg3[%c0, %c0_0] : memref<16x48xf32, #tpu.memory_space<vmem>>, vector<16x48xf32>
    %1 = arith.truncf %0 : vector<16x48xf32> to vector<16x48xbf16>
    %c0_1 = arith.constant 0 : index
    %c0_2 = arith.constant 0 : index
    %2 = vector.load %arg4[%c0_1, %c0_2] : memref<48x32xbf16, #tpu.memory_space<vmem>>, vector<48x32xbf16>
    %cst = arith.constant dense<0.000000e+00> : vector<16x32xf32>
    %3 = tpu.matmul %1, %2, %cst {dimension_numbers = #tpu.dot_dimension_numbers<[1], [0], [0], [1], [0, 0, 1, 1], [], []>} : vector<16x48xbf16>, vector<48x32xbf16>, vector<16x32xf32> -> vector<16x32xf32>
    %c0_3 = arith.constant 0 : index
    %c0_4 = arith.constant 0 : index
    %4 = vector.load %arg5[%c0_3, %c0_4] : memref<16x32xbf16, #tpu.memory_space<vmem>>, vector<16x32xbf16>
    %5 = arith.extf %4 : vector<16x32xbf16> to vector<16x32xf32>
    %6 = arith.addf %3, %5 : vector<16x32xf32>
    %7 = arith.truncf %6 : vector<16x32xf32> to vector<16x32xbf16>
    %c0_5 = arith.constant 0 : index
    %c0_6 = arith.constant 0 : index
    %8 = vector.load %arg6[%c0_5, %c0_6] : memref<16x32xbf16, #tpu.memory_space<vmem>>, vector<16x32xbf16>
    tpu.vector_store %arg6[%c0_5, %c0_6], %7 {strides = array<i32>} : memref<16x32xbf16, #tpu.memory_space<vmem>>, vector<16x32xbf16>,
    return
  }
  func.func @transform_0(%arg0: i32, %arg1: i32, %arg2: i32) -> (i32, i32) {
    %c0_i32 = arith.constant 0 : i32
    return %arg0, %arg2 : i32, i32
  }
  func.func @transform_1(%arg0: i32, %arg1: i32, %arg2: i32) -> (i32, i32) {
    %c0_i32 = arith.constant 0 : i32
    return %arg2, %arg1 : i32, i32
  }
  func.func @transform_2(%arg0: i32, %arg1: i32, %arg2: i32) -> (i32, i32) {
    %c0_i32 = arith.constant 0 : i32
    return %arg0, %arg1 : i32, i32
  }
  func.func @transform_3(%arg0: i32, %arg1: i32, %arg2: i32) -> (i32, i32) {
    %c0_i32 = arith.constant 0 : i32
    return %arg0, %arg1 : i32, i32
  }
}

module attributes {stable_mosaic.version = 11 : i64} {
  func.func @_enc_batch_attn_kernel(%arg0: i32, %arg1: memref<2x8x96xbf16, #tpu.memory_space<vmem>>, %arg2: memref<2x8x32xbf16, #tpu.memory_space<vmem>>) attributes {dimension_semantics = [#tpu.dimension_semantics<parallel>], iteration_bounds = array<i64: 2>, scalar_prefetch = 0 : i64, scratch_operands = 0 : i64, tpu.core_type = #tpu.core_type<tc>, window_params = [{transform_indices = @transform_0, window_bounds = array<i64: 2, 8, 96>}, {transform_indices = @transform_1, window_bounds = array<i64: 2, 8, 32>}]} {
    %c0 = arith.constant 0 : index
    %c0_0 = arith.constant 0 : index
    %c0_1 = arith.constant 0 : index
    %0 = vector.load %arg1[%c0, %c0_0, %c0_1] : memref<2x8x96xbf16, #tpu.memory_space<vmem>>, vector<2x8x96xbf16>
    %1 = arith.extf %0 : vector<2x8x96xbf16> to vector<2x8x96xf32>
    %2 = vector.extract_strided_slice %1 {offsets = [0, 0, 0], sizes = [1, 8, 8], strides = [1, 1, 1]} : vector<2x8x96xf32> to vector<1x8x8xf32>
    %3 = vector.shape_cast %2 : vector<1x8x8xf32> to vector<8x8xf32>
    %cst = arith.constant 0.353553385 : f32
    %4 = vector.broadcast %cst : f32 to vector<8x8xf32>
    %5 = arith.mulf %3, %4 : vector<8x8xf32>
    %6 = vector.extract_strided_slice %1 {offsets = [1, 0, 0], sizes = [1, 8, 8], strides = [1, 1, 1]} : vector<2x8x96xf32> to vector<1x8x8xf32>
    %7 = vector.shape_cast %6 : vector<1x8x8xf32> to vector<8x8xf32>
    %cst_2 = arith.constant 0.353553385 : f32
    %8 = vector.broadcast %cst_2 : f32 to vector<8x8xf32>
    %9 = arith.mulf %7, %8 : vector<8x8xf32>
    %10 = vector.extract_strided_slice %1 {offsets = [0, 0, 32], sizes = [1, 8, 8], strides = [1, 1, 1]} : vector<2x8x96xf32> to vector<1x8x8xf32>
    %11 = vector.shape_cast %10 : vector<1x8x8xf32> to vector<8x8xf32>
    %12 = vector.extract_strided_slice %1 {offsets = [1, 0, 32], sizes = [1, 8, 8], strides = [1, 1, 1]} : vector<2x8x96xf32> to vector<1x8x8xf32>
    %13 = vector.shape_cast %12 : vector<1x8x8xf32> to vector<8x8xf32>
    %14 = vector.extract_strided_slice %1 {offsets = [0, 0, 64], sizes = [1, 8, 8], strides = [1, 1, 1]} : vector<2x8x96xf32> to vector<1x8x8xf32>
    %15 = vector.shape_cast %14 : vector<1x8x8xf32> to vector<8x8xf32>
    %16 = vector.extract_strided_slice %1 {offsets = [1, 0, 64], sizes = [1, 8, 8], strides = [1, 1, 1]} : vector<2x8x96xf32> to vector<1x8x8xf32>
    %17 = vector.shape_cast %16 : vector<1x8x8xf32> to vector<8x8xf32>
    %18 = arith.mulf %5, %11 : vector<8x8xf32>
    %cst_3 = arith.constant dense<0.000000e+00> : vector<8xf32>
    %19 = vector.multi_reduction <add>, %18, %cst_3 [1] : vector<8x8xf32> to vector<8xf32>
    %20 = vector.shape_cast %19 : vector<8xf32> to vector<8x1xf32>
    %21 = arith.mulf %5, %13 : vector<8x8xf32>
    %cst_4 = arith.constant dense<0.000000e+00> : vector<8xf32>
    %22 = vector.multi_reduction <add>, %21, %cst_4 [1] : vector<8x8xf32> to vector<8xf32>
    %23 = vector.shape_cast %22 : vector<8xf32> to vector<8x1xf32>
    %24 = arith.maximumf %20, %23 : vector<8x1xf32>
    %25 = arith.subf %20, %24 : vector<8x1xf32>
    %26 = math.exp %25 : vector<8x1xf32>
    %27 = arith.subf %23, %24 : vector<8x1xf32>
    %28 = math.exp %27 : vector<8x1xf32>
    %29 = arith.addf %26, %28 : vector<8x1xf32>
    %30 = tpu.reciprocal %29 {approx = true} : vector<8x1xf32> -> vector<8x1xf32>
    %31 = vector.broadcast %26 : vector<8x1xf32> to vector<8x8xf32>
    %32 = arith.mulf %31, %15 : vector<8x8xf32>
    %33 = vector.broadcast %28 : vector<8x1xf32> to vector<8x8xf32>
    %34 = arith.mulf %33, %17 : vector<8x8xf32>
    %35 = arith.addf %32, %34 : vector<8x8xf32>
    %36 = vector.broadcast %30 : vector<8x1xf32> to vector<8x8xf32>
    %37 = arith.mulf %35, %36 : vector<8x8xf32>
    %38 = vector.shape_cast %37 : vector<8x8xf32> to vector<1x8x8xf32>
    %39 = arith.truncf %38 : vector<1x8x8xf32> to vector<1x8x8xbf16>
    %c0_5 = arith.constant 0 : index
    %c0_6 = arith.constant 0 : index
    %c0_7 = arith.constant 0 : index
    %40 = vector.load %arg2[%c0_5, %c0_6, %c0_7] : memref<2x8x32xbf16, #tpu.memory_space<vmem>>, vector<1x8x8xbf16>
    tpu.vector_store %arg2[%c0_5, %c0_6, %c0_7], %39 {strides = array<i32>} : memref<2x8x32xbf16, #tpu.memory_space<vmem>>, vector<1x8x8xbf16>,
    %41 = arith.mulf %9, %11 : vector<8x8xf32>
    %cst_8 = arith.constant dense<0.000000e+00> : vector<8xf32>
    %42 = vector.multi_reduction <add>, %41, %cst_8 [1] : vector<8x8xf32> to vector<8xf32>
    %43 = vector.shape_cast %42 : vector<8xf32> to vector<8x1xf32>
    %44 = arith.mulf %9, %13 : vector<8x8xf32>
    %cst_9 = arith.constant dense<0.000000e+00> : vector<8xf32>
    %45 = vector.multi_reduction <add>, %44, %cst_9 [1] : vector<8x8xf32> to vector<8xf32>
    %46 = vector.shape_cast %45 : vector<8xf32> to vector<8x1xf32>
    %47 = arith.maximumf %43, %46 : vector<8x1xf32>
    %48 = arith.subf %43, %47 : vector<8x1xf32>
    %49 = math.exp %48 : vector<8x1xf32>
    %50 = arith.subf %46, %47 : vector<8x1xf32>
    %51 = math.exp %50 : vector<8x1xf32>
    %52 = arith.addf %49, %51 : vector<8x1xf32>
    %53 = tpu.reciprocal %52 {approx = true} : vector<8x1xf32> -> vector<8x1xf32>
    %54 = vector.broadcast %49 : vector<8x1xf32> to vector<8x8xf32>
    %55 = arith.mulf %54, %15 : vector<8x8xf32>
    %56 = vector.broadcast %51 : vector<8x1xf32> to vector<8x8xf32>
    %57 = arith.mulf %56, %17 : vector<8x8xf32>
    %58 = arith.addf %55, %57 : vector<8x8xf32>
    %59 = vector.broadcast %53 : vector<8x1xf32> to vector<8x8xf32>
    %60 = arith.mulf %58, %59 : vector<8x8xf32>
    %61 = vector.shape_cast %60 : vector<8x8xf32> to vector<1x8x8xf32>
    %62 = arith.truncf %61 : vector<1x8x8xf32> to vector<1x8x8xbf16>
    %c1 = arith.constant 1 : index
    %c0_10 = arith.constant 0 : index
    %c0_11 = arith.constant 0 : index
    %63 = vector.load %arg2[%c1, %c0_10, %c0_11] : memref<2x8x32xbf16, #tpu.memory_space<vmem>>, vector<1x8x8xbf16>
    tpu.vector_store %arg2[%c1, %c0_10, %c0_11], %62 {strides = array<i32>} : memref<2x8x32xbf16, #tpu.memory_space<vmem>>, vector<1x8x8xbf16>,
    %64 = vector.extract_strided_slice %1 {offsets = [0, 0, 8], sizes = [1, 8, 8], strides = [1, 1, 1]} : vector<2x8x96xf32> to vector<1x8x8xf32>
    %65 = vector.shape_cast %64 : vector<1x8x8xf32> to vector<8x8xf32>
    %cst_12 = arith.constant 0.353553385 : f32
    %66 = vector.broadcast %cst_12 : f32 to vector<8x8xf32>
    %67 = arith.mulf %65, %66 : vector<8x8xf32>
    %68 = vector.extract_strided_slice %1 {offsets = [1, 0, 8], sizes = [1, 8, 8], strides = [1, 1, 1]} : vector<2x8x96xf32> to vector<1x8x8xf32>
    %69 = vector.shape_cast %68 : vector<1x8x8xf32> to vector<8x8xf32>
    %cst_13 = arith.constant 0.353553385 : f32
    %70 = vector.broadcast %cst_13 : f32 to vector<8x8xf32>
    %71 = arith.mulf %69, %70 : vector<8x8xf32>
    %72 = vector.extract_strided_slice %1 {offsets = [0, 0, 40], sizes = [1, 8, 8], strides = [1, 1, 1]} : vector<2x8x96xf32> to vector<1x8x8xf32>
    %73 = vector.shape_cast %72 : vector<1x8x8xf32> to vector<8x8xf32>
    %74 = vector.extract_strided_slice %1 {offsets = [1, 0, 40], sizes = [1, 8, 8], strides = [1, 1, 1]} : vector<2x8x96xf32> to vector<1x8x8xf32>
    %75 = vector.shape_cast %74 : vector<1x8x8xf32> to vector<8x8xf32>
    %76 = vector.extract_strided_slice %1 {offsets = [0, 0, 72], sizes = [1, 8, 8], strides = [1, 1, 1]} : vector<2x8x96xf32> to vector<1x8x8xf32>
    %77 = vector.shape_cast %76 : vector<1x8x8xf32> to vector<8x8xf32>
    %78 = vector.extract_strided_slice %1 {offsets = [1, 0, 72], sizes = [1, 8, 8], strides = [1, 1, 1]} : vector<2x8x96xf32> to vector<1x8x8xf32>
    %79 = vector.shape_cast %78 : vector<1x8x8xf32> to vector<8x8xf32>
    %80 = arith.mulf %67, %73 : vector<8x8xf32>
    %cst_14 = arith.constant dense<0.000000e+00> : vector<8xf32>
    %81 = vector.multi_reduction <add>, %80, %cst_14 [1] : vector<8x8xf32> to vector<8xf32>
    %82 = vector.shape_cast %81 : vector<8xf32> to vector<8x1xf32>
    %83 = arith.mulf %67, %75 : vector<8x8xf32>
    %cst_15 = arith.constant dense<0.000000e+00> : vector<8xf32>
    %84 = vector.multi_reduction <add>, %83, %cst_15 [1] : vector<8x8xf32> to vector<8xf32>
    %85 = vector.shape_cast %84 : vector<8xf32> to vector<8x1xf32>
    %86 = arith.maximumf %82, %85 : vector<8x1xf32>
    %87 = arith.subf %82, %86 : vector<8x1xf32>
    %88 = math.exp %87 : vector<8x1xf32>
    %89 = arith.subf %85, %86 : vector<8x1xf32>
    %90 = math.exp %89 : vector<8x1xf32>
    %91 = arith.addf %88, %90 : vector<8x1xf32>
    %92 = tpu.reciprocal %91 {approx = true} : vector<8x1xf32> -> vector<8x1xf32>
    %93 = vector.broadcast %88 : vector<8x1xf32> to vector<8x8xf32>
    %94 = arith.mulf %93, %77 : vector<8x8xf32>
    %95 = vector.broadcast %90 : vector<8x1xf32> to vector<8x8xf32>
    %96 = arith.mulf %95, %79 : vector<8x8xf32>
    %97 = arith.addf %94, %96 : vector<8x8xf32>
    %98 = vector.broadcast %92 : vector<8x1xf32> to vector<8x8xf32>
    %99 = arith.mulf %97, %98 : vector<8x8xf32>
    %100 = vector.shape_cast %99 : vector<8x8xf32> to vector<1x8x8xf32>
    %101 = arith.truncf %100 : vector<1x8x8xf32> to vector<1x8x8xbf16>
    %c0_16 = arith.constant 0 : index
    %c0_17 = arith.constant 0 : index
    %c8 = arith.constant 8 : index
    %102 = vector.load %arg2[%c0_16, %c0_17, %c8] : memref<2x8x32xbf16, #tpu.memory_space<vmem>>, vector<1x8x8xbf16>
    tpu.vector_store %arg2[%c0_16, %c0_17, %c8], %101 {strides = array<i32>} : memref<2x8x32xbf16, #tpu.memory_space<vmem>>, vector<1x8x8xbf16>,
    %103 = arith.mulf %71, %73 : vector<8x8xf32>
    %cst_18 = arith.constant dense<0.000000e+00> : vector<8xf32>
    %104 = vector.multi_reduction <add>, %103, %cst_18 [1] : vector<8x8xf32> to vector<8xf32>
    %105 = vector.shape_cast %104 : vector<8xf32> to vector<8x1xf32>
    %106 = arith.mulf %71, %75 : vector<8x8xf32>
    %cst_19 = arith.constant dense<0.000000e+00> : vector<8xf32>
    %107 = vector.multi_reduction <add>, %106, %cst_19 [1] : vector<8x8xf32> to vector<8xf32>
    %108 = vector.shape_cast %107 : vector<8xf32> to vector<8x1xf32>
    %109 = arith.maximumf %105, %108 : vector<8x1xf32>
    %110 = arith.subf %105, %109 : vector<8x1xf32>
    %111 = math.exp %110 : vector<8x1xf32>
    %112 = arith.subf %108, %109 : vector<8x1xf32>
    %113 = math.exp %112 : vector<8x1xf32>
    %114 = arith.addf %111, %113 : vector<8x1xf32>
    %115 = tpu.reciprocal %114 {approx = true} : vector<8x1xf32> -> vector<8x1xf32>
    %116 = vector.broadcast %111 : vector<8x1xf32> to vector<8x8xf32>
    %117 = arith.mulf %116, %77 : vector<8x8xf32>
    %118 = vector.broadcast %113 : vector<8x1xf32> to vector<8x8xf32>
    %119 = arith.mulf %118, %79 : vector<8x8xf32>
    %120 = arith.addf %117, %119 : vector<8x8xf32>
    %121 = vector.broadcast %115 : vector<8x1xf32> to vector<8x8xf32>
    %122 = arith.mulf %120, %121 : vector<8x8xf32>
    %123 = vector.shape_cast %122 : vector<8x8xf32> to vector<1x8x8xf32>
    %124 = arith.truncf %123 : vector<1x8x8xf32> to vector<1x8x8xbf16>
    %c1_20 = arith.constant 1 : index
    %c0_21 = arith.constant 0 : index
    %c8_22 = arith.constant 8 : index
    %125 = vector.load %arg2[%c1_20, %c0_21, %c8_22] : memref<2x8x32xbf16, #tpu.memory_space<vmem>>, vector<1x8x8xbf16>
    tpu.vector_store %arg2[%c1_20, %c0_21, %c8_22], %124 {strides = array<i32>} : memref<2x8x32xbf16, #tpu.memory_space<vmem>>, vector<1x8x8xbf16>,
    %126 = vector.extract_strided_slice %1 {offsets = [0, 0, 16], sizes = [1, 8, 8], strides = [1, 1, 1]} : vector<2x8x96xf32> to vector<1x8x8xf32>
    %127 = vector.shape_cast %126 : vector<1x8x8xf32> to vector<8x8xf32>
    %cst_23 = arith.constant 0.353553385 : f32
    %128 = vector.broadcast %cst_23 : f32 to vector<8x8xf32>
    %129 = arith.mulf %127, %128 : vector<8x8xf32>
    %130 = vector.extract_strided_slice %1 {offsets = [1, 0, 16], sizes = [1, 8, 8], strides = [1, 1, 1]} : vector<2x8x96xf32> to vector<1x8x8xf32>
    %131 = vector.shape_cast %130 : vector<1x8x8xf32> to vector<8x8xf32>
    %cst_24 = arith.constant 0.353553385 : f32
    %132 = vector.broadcast %cst_24 : f32 to vector<8x8xf32>
    %133 = arith.mulf %131, %132 : vector<8x8xf32>
    %134 = vector.extract_strided_slice %1 {offsets = [0, 0, 48], sizes = [1, 8, 8], strides = [1, 1, 1]} : vector<2x8x96xf32> to vector<1x8x8xf32>
    %135 = vector.shape_cast %134 : vector<1x8x8xf32> to vector<8x8xf32>
    %136 = vector.extract_strided_slice %1 {offsets = [1, 0, 48], sizes = [1, 8, 8], strides = [1, 1, 1]} : vector<2x8x96xf32> to vector<1x8x8xf32>
    %137 = vector.shape_cast %136 : vector<1x8x8xf32> to vector<8x8xf32>
    %138 = vector.extract_strided_slice %1 {offsets = [0, 0, 80], sizes = [1, 8, 8], strides = [1, 1, 1]} : vector<2x8x96xf32> to vector<1x8x8xf32>
    %139 = vector.shape_cast %138 : vector<1x8x8xf32> to vector<8x8xf32>
    %140 = vector.extract_strided_slice %1 {offsets = [1, 0, 80], sizes = [1, 8, 8], strides = [1, 1, 1]} : vector<2x8x96xf32> to vector<1x8x8xf32>
    %141 = vector.shape_cast %140 : vector<1x8x8xf32> to vector<8x8xf32>
    %142 = arith.mulf %129, %135 : vector<8x8xf32>
    %cst_25 = arith.constant dense<0.000000e+00> : vector<8xf32>
    %143 = vector.multi_reduction <add>, %142, %cst_25 [1] : vector<8x8xf32> to vector<8xf32>
    %144 = vector.shape_cast %143 : vector<8xf32> to vector<8x1xf32>
    %145 = arith.mulf %129, %137 : vector<8x8xf32>
    %cst_26 = arith.constant dense<0.000000e+00> : vector<8xf32>
    %146 = vector.multi_reduction <add>, %145, %cst_26 [1] : vector<8x8xf32> to vector<8xf32>
    %147 = vector.shape_cast %146 : vector<8xf32> to vector<8x1xf32>
    %148 = arith.maximumf %144, %147 : vector<8x1xf32>
    %149 = arith.subf %144, %148 : vector<8x1xf32>
    %150 = math.exp %149 : vector<8x1xf32>
    %151 = arith.subf %147, %148 : vector<8x1xf32>
    %152 = math.exp %151 : vector<8x1xf32>
    %153 = arith.addf %150, %152 : vector<8x1xf32>
    %154 = tpu.reciprocal %153 {approx = true} : vector<8x1xf32> -> vector<8x1xf32>
    %155 = vector.broadcast %150 : vector<8x1xf32> to vector<8x8xf32>
    %156 = arith.mulf %155, %139 : vector<8x8xf32>
    %157 = vector.broadcast %152 : vector<8x1xf32> to vector<8x8xf32>
    %158 = arith.mulf %157, %141 : vector<8x8xf32>
    %159 = arith.addf %156, %158 : vector<8x8xf32>
    %160 = vector.broadcast %154 : vector<8x1xf32> to vector<8x8xf32>
    %161 = arith.mulf %159, %160 : vector<8x8xf32>
    %162 = vector.shape_cast %161 : vector<8x8xf32> to vector<1x8x8xf32>
    %163 = arith.truncf %162 : vector<1x8x8xf32> to vector<1x8x8xbf16>
    %c0_27 = arith.constant 0 : index
    %c0_28 = arith.constant 0 : index
    %c16 = arith.constant 16 : index
    %164 = vector.load %arg2[%c0_27, %c0_28, %c16] : memref<2x8x32xbf16, #tpu.memory_space<vmem>>, vector<1x8x8xbf16>
    tpu.vector_store %arg2[%c0_27, %c0_28, %c16], %163 {strides = array<i32>} : memref<2x8x32xbf16, #tpu.memory_space<vmem>>, vector<1x8x8xbf16>,
    %165 = arith.mulf %133, %135 : vector<8x8xf32>
    %cst_29 = arith.constant dense<0.000000e+00> : vector<8xf32>
    %166 = vector.multi_reduction <add>, %165, %cst_29 [1] : vector<8x8xf32> to vector<8xf32>
    %167 = vector.shape_cast %166 : vector<8xf32> to vector<8x1xf32>
    %168 = arith.mulf %133, %137 : vector<8x8xf32>
    %cst_30 = arith.constant dense<0.000000e+00> : vector<8xf32>
    %169 = vector.multi_reduction <add>, %168, %cst_30 [1] : vector<8x8xf32> to vector<8xf32>
    %170 = vector.shape_cast %169 : vector<8xf32> to vector<8x1xf32>
    %171 = arith.maximumf %167, %170 : vector<8x1xf32>
    %172 = arith.subf %167, %171 : vector<8x1xf32>
    %173 = math.exp %172 : vector<8x1xf32>
    %174 = arith.subf %170, %171 : vector<8x1xf32>
    %175 = math.exp %174 : vector<8x1xf32>
    %176 = arith.addf %173, %175 : vector<8x1xf32>
    %177 = tpu.reciprocal %176 {approx = true} : vector<8x1xf32> -> vector<8x1xf32>
    %178 = vector.broadcast %173 : vector<8x1xf32> to vector<8x8xf32>
    %179 = arith.mulf %178, %139 : vector<8x8xf32>
    %180 = vector.broadcast %175 : vector<8x1xf32> to vector<8x8xf32>
    %181 = arith.mulf %180, %141 : vector<8x8xf32>
    %182 = arith.addf %179, %181 : vector<8x8xf32>
    %183 = vector.broadcast %177 : vector<8x1xf32> to vector<8x8xf32>
    %184 = arith.mulf %182, %183 : vector<8x8xf32>
    %185 = vector.shape_cast %184 : vector<8x8xf32> to vector<1x8x8xf32>
    %186 = arith.truncf %185 : vector<1x8x8xf32> to vector<1x8x8xbf16>
    %c1_31 = arith.constant 1 : index
    %c0_32 = arith.constant 0 : index
    %c16_33 = arith.constant 16 : index
    %187 = vector.load %arg2[%c1_31, %c0_32, %c16_33] : memref<2x8x32xbf16, #tpu.memory_space<vmem>>, vector<1x8x8xbf16>
    tpu.vector_store %arg2[%c1_31, %c0_32, %c16_33], %186 {strides = array<i32>} : memref<2x8x32xbf16, #tpu.memory_space<vmem>>, vector<1x8x8xbf16>,
    %188 = vector.extract_strided_slice %1 {offsets = [0, 0, 24], sizes = [1, 8, 8], strides = [1, 1, 1]} : vector<2x8x96xf32> to vector<1x8x8xf32>
    %189 = vector.shape_cast %188 : vector<1x8x8xf32> to vector<8x8xf32>
    %cst_34 = arith.constant 0.353553385 : f32
    %190 = vector.broadcast %cst_34 : f32 to vector<8x8xf32>
    %191 = arith.mulf %189, %190 : vector<8x8xf32>
    %192 = vector.extract_strided_slice %1 {offsets = [1, 0, 24], sizes = [1, 8, 8], strides = [1, 1, 1]} : vector<2x8x96xf32> to vector<1x8x8xf32>
    %193 = vector.shape_cast %192 : vector<1x8x8xf32> to vector<8x8xf32>
    %cst_35 = arith.constant 0.353553385 : f32
    %194 = vector.broadcast %cst_35 : f32 to vector<8x8xf32>
    %195 = arith.mulf %193, %194 : vector<8x8xf32>
    %196 = vector.extract_strided_slice %1 {offsets = [0, 0, 56], sizes = [1, 8, 8], strides = [1, 1, 1]} : vector<2x8x96xf32> to vector<1x8x8xf32>
    %197 = vector.shape_cast %196 : vector<1x8x8xf32> to vector<8x8xf32>
    %198 = vector.extract_strided_slice %1 {offsets = [1, 0, 56], sizes = [1, 8, 8], strides = [1, 1, 1]} : vector<2x8x96xf32> to vector<1x8x8xf32>
    %199 = vector.shape_cast %198 : vector<1x8x8xf32> to vector<8x8xf32>
    %200 = vector.extract_strided_slice %1 {offsets = [0, 0, 88], sizes = [1, 8, 8], strides = [1, 1, 1]} : vector<2x8x96xf32> to vector<1x8x8xf32>
    %201 = vector.shape_cast %200 : vector<1x8x8xf32> to vector<8x8xf32>
    %202 = vector.extract_strided_slice %1 {offsets = [1, 0, 88], sizes = [1, 8, 8], strides = [1, 1, 1]} : vector<2x8x96xf32> to vector<1x8x8xf32>
    %203 = vector.shape_cast %202 : vector<1x8x8xf32> to vector<8x8xf32>
    %204 = arith.mulf %191, %197 : vector<8x8xf32>
    %cst_36 = arith.constant dense<0.000000e+00> : vector<8xf32>
    %205 = vector.multi_reduction <add>, %204, %cst_36 [1] : vector<8x8xf32> to vector<8xf32>
    %206 = vector.shape_cast %205 : vector<8xf32> to vector<8x1xf32>
    %207 = arith.mulf %191, %199 : vector<8x8xf32>
    %cst_37 = arith.constant dense<0.000000e+00> : vector<8xf32>
    %208 = vector.multi_reduction <add>, %207, %cst_37 [1] : vector<8x8xf32> to vector<8xf32>
    %209 = vector.shape_cast %208 : vector<8xf32> to vector<8x1xf32>
    %210 = arith.maximumf %206, %209 : vector<8x1xf32>
    %211 = arith.subf %206, %210 : vector<8x1xf32>
    %212 = math.exp %211 : vector<8x1xf32>
    %213 = arith.subf %209, %210 : vector<8x1xf32>
    %214 = math.exp %213 : vector<8x1xf32>
    %215 = arith.addf %212, %214 : vector<8x1xf32>
    %216 = tpu.reciprocal %215 {approx = true} : vector<8x1xf32> -> vector<8x1xf32>
    %217 = vector.broadcast %212 : vector<8x1xf32> to vector<8x8xf32>
    %218 = arith.mulf %217, %201 : vector<8x8xf32>
    %219 = vector.broadcast %214 : vector<8x1xf32> to vector<8x8xf32>
    %220 = arith.mulf %219, %203 : vector<8x8xf32>
    %221 = arith.addf %218, %220 : vector<8x8xf32>
    %222 = vector.broadcast %216 : vector<8x1xf32> to vector<8x8xf32>
    %223 = arith.mulf %221, %222 : vector<8x8xf32>
    %224 = vector.shape_cast %223 : vector<8x8xf32> to vector<1x8x8xf32>
    %225 = arith.truncf %224 : vector<1x8x8xf32> to vector<1x8x8xbf16>
    %c0_38 = arith.constant 0 : index
    %c0_39 = arith.constant 0 : index
    %c24 = arith.constant 24 : index
    %226 = vector.load %arg2[%c0_38, %c0_39, %c24] : memref<2x8x32xbf16, #tpu.memory_space<vmem>>, vector<1x8x8xbf16>
    tpu.vector_store %arg2[%c0_38, %c0_39, %c24], %225 {strides = array<i32>} : memref<2x8x32xbf16, #tpu.memory_space<vmem>>, vector<1x8x8xbf16>,
    %227 = arith.mulf %195, %197 : vector<8x8xf32>
    %cst_40 = arith.constant dense<0.000000e+00> : vector<8xf32>
    %228 = vector.multi_reduction <add>, %227, %cst_40 [1] : vector<8x8xf32> to vector<8xf32>
    %229 = vector.shape_cast %228 : vector<8xf32> to vector<8x1xf32>
    %230 = arith.mulf %195, %199 : vector<8x8xf32>
    %cst_41 = arith.constant dense<0.000000e+00> : vector<8xf32>
    %231 = vector.multi_reduction <add>, %230, %cst_41 [1] : vector<8x8xf32> to vector<8xf32>
    %232 = vector.shape_cast %231 : vector<8xf32> to vector<8x1xf32>
    %233 = arith.maximumf %229, %232 : vector<8x1xf32>
    %234 = arith.subf %229, %233 : vector<8x1xf32>
    %235 = math.exp %234 : vector<8x1xf32>
    %236 = arith.subf %232, %233 : vector<8x1xf32>
    %237 = math.exp %236 : vector<8x1xf32>
    %238 = arith.addf %235, %237 : vector<8x1xf32>
    %239 = tpu.reciprocal %238 {approx = true} : vector<8x1xf32> -> vector<8x1xf32>
    %240 = vector.broadcast %235 : vector<8x1xf32> to vector<8x8xf32>
    %241 = arith.mulf %240, %201 : vector<8x8xf32>
    %242 = vector.broadcast %237 : vector<8x1xf32> to vector<8x8xf32>
    %243 = arith.mulf %242, %203 : vector<8x8xf32>
    %244 = arith.addf %241, %243 : vector<8x8xf32>
    %245 = vector.broadcast %239 : vector<8x1xf32> to vector<8x8xf32>
    %246 = arith.mulf %244, %245 : vector<8x8xf32>
    %247 = vector.shape_cast %246 : vector<8x8xf32> to vector<1x8x8xf32>
    %248 = arith.truncf %247 : vector<1x8x8xf32> to vector<1x8x8xbf16>
    %c1_42 = arith.constant 1 : index
    %c0_43 = arith.constant 0 : index
    %c24_44 = arith.constant 24 : index
    %249 = vector.load %arg2[%c1_42, %c0_43, %c24_44] : memref<2x8x32xbf16, #tpu.memory_space<vmem>>, vector<1x8x8xbf16>
    tpu.vector_store %arg2[%c1_42, %c0_43, %c24_44], %248 {strides = array<i32>} : memref<2x8x32xbf16, #tpu.memory_space<vmem>>, vector<1x8x8xbf16>,
    return
  }
  func.func @transform_0(%arg0: i32) -> (i32, i32, i32) {
    %c0_i32 = arith.constant 0 : i32
    %c0_i32_0 = arith.constant 0 : i32
    %c0_i32_1 = arith.constant 0 : i32
    return %c0_i32, %arg0, %c0_i32_0 : i32, i32, i32
  }
  func.func @transform_1(%arg0: i32) -> (i32, i32, i32) {
    %c0_i32 = arith.constant 0 : i32
    %c0_i32_0 = arith.constant 0 : i32
    %c0_i32_1 = arith.constant 0 : i32
    return %c0_i32, %arg0, %c0_i32_0 : i32, i32, i32
  }
}

module attributes {stable_mosaic.version = 11 : i64} {
  func.func @_fused_matmul_kernel(%arg0: i32, %arg1: i32, %arg2: i32, %arg3: memref<16x32xbf16, #tpu.memory_space<vmem>>, %arg4: memref<1x32xf32, #tpu.memory_space<vmem>>, %arg5: memref<1x32xf32, #tpu.memory_space<vmem>>, %arg6: memref<32x64xbf16, #tpu.memory_space<vmem>>, %arg7: memref<1x64xf32, #tpu.memory_space<vmem>>, %arg8: memref<16x64xbf16, #tpu.memory_space<vmem>>) attributes {dimension_semantics = [#tpu.dimension_semantics<parallel>, #tpu.dimension_semantics<parallel>, #tpu.dimension_semantics<arbitrary>], iteration_bounds = array<i64: 2, 1, 1>, scalar_prefetch = 0 : i64, scratch_operands = 0 : i64, tpu.core_type = #tpu.core_type<tc>, window_params = [{transform_indices = @transform_0, window_bounds = array<i64: 16, 32>}, {pipeline_mode = #tpu.pipeline_mode<synchronous>, transform_indices = @transform_1, window_bounds = array<i64: 1, 32>}, {pipeline_mode = #tpu.pipeline_mode<synchronous>, transform_indices = @transform_2, window_bounds = array<i64: 1, 32>}, {transform_indices = @transform_3, window_bounds = array<i64: 32, 64>}, {transform_indices = @transform_4, window_bounds = array<i64: 1, 64>}, {transform_indices = @transform_5, window_bounds = array<i64: 16, 64>}]} {
    %c0 = arith.constant 0 : index
    %c0_0 = arith.constant 0 : index
    %0 = vector.load %arg3[%c0, %c0_0] : memref<16x32xbf16, #tpu.memory_space<vmem>>, vector<16x32xbf16>
    %1 = arith.extf %0 : vector<16x32xbf16> to vector<16x32xf32>
    %c0_1 = arith.constant 0 : index
    %c0_2 = arith.constant 0 : index
    %2 = vector.load %arg4[%c0_1, %c0_2] : memref<1x32xf32, #tpu.memory_space<vmem>>, vector<1x32xf32>
    %c0_3 = arith.constant 0 : index
    %c0_4 = arith.constant 0 : index
    %3 = vector.load %arg5[%c0_3, %c0_4] : memref<1x32xf32, #tpu.memory_space<vmem>>, vector<1x32xf32>
    %cst = arith.constant dense<0.000000e+00> : vector<16xf32>
    %4 = vector.multi_reduction <add>, %1, %cst [1] : vector<16x32xf32> to vector<16xf32>
    %5 = vector.shape_cast %4 : vector<16xf32> to vector<16x1xf32>
    %cst_5 = arith.constant 3.200000e+01 : f32
    %6 = vector.broadcast %cst_5 : f32 to vector<16x1xf32>
    %7 = arith.divf %5, %6 : vector<16x1xf32>
    %8 = vector.broadcast %7 : vector<16x1xf32> to vector<16x32xf32>
    %9 = arith.subf %1, %8 : vector<16x32xf32>
    %10 = arith.mulf %9, %9 : vector<16x32xf32>
    %cst_6 = arith.constant dense<0.000000e+00> : vector<16xf32>
    %11 = vector.multi_reduction <add>, %10, %cst_6 [1] : vector<16x32xf32> to vector<16xf32>
    %12 = vector.shape_cast %11 : vector<16xf32> to vector<16x1xf32>
    %cst_7 = arith.constant 3.200000e+01 : f32
    %13 = vector.broadcast %cst_7 : f32 to vector<16x1xf32>
    %14 = arith.divf %12, %13 : vector<16x1xf32>
    %15 = vector.broadcast %7 : vector<16x1xf32> to vector<16x32xf32>
    %16 = arith.subf %1, %15 : vector<16x32xf32>
    %cst_8 = arith.constant 9.99999974E-6 : f32
    %17 = vector.broadcast %cst_8 : f32 to vector<16x1xf32>
    %18 = arith.addf %14, %17 : vector<16x1xf32>
    %19 = math.rsqrt %18 : vector<16x1xf32>
    %20 = vector.broadcast %19 : vector<16x1xf32> to vector<16x32xf32>
    %21 = arith.mulf %16, %20 : vector<16x32xf32>
    %22 = vector.broadcast %2 : vector<1x32xf32> to vector<16x32xf32>
    %23 = arith.mulf %21, %22 : vector<16x32xf32>
    %24 = vector.broadcast %3 : vector<1x32xf32> to vector<16x32xf32>
    %25 = arith.addf %23, %24 : vector<16x32xf32>
    %26 = arith.truncf %25 : vector<16x32xf32> to vector<16x32xbf16>
    %c0_9 = arith.constant 0 : index
    %c0_10 = arith.constant 0 : index
    %27 = vector.load %arg6[%c0_9, %c0_10] : memref<32x64xbf16, #tpu.memory_space<vmem>>, vector<32x64xbf16>
    %cst_11 = arith.constant dense<0.000000e+00> : vector<16x64xf32>
    %28 = tpu.matmul %26, %27, %cst_11 {dimension_numbers = #tpu.dot_dimension_numbers<[1], [0], [0], [1], [0, 0, 1, 1], [], []>} : vector<16x32xbf16>, vector<32x64xbf16>, vector<16x64xf32> -> vector<16x64xf32>
    %c0_12 = arith.constant 0 : index
    %c0_13 = arith.constant 0 : index
    %29 = vector.load %arg7[%c0_12, %c0_13] : memref<1x64xf32, #tpu.memory_space<vmem>>, vector<1x64xf32>
    %30 = vector.broadcast %29 : vector<1x64xf32> to vector<16x64xf32>
    %31 = arith.addf %28, %30 : vector<16x64xf32>
    %cst_14 = arith.constant 5.000000e-01 : f32
    %32 = vector.broadcast %cst_14 : f32 to vector<16x64xf32>
    %33 = arith.mulf %32, %31 : vector<16x64xf32>
    %cst_15 = arith.constant 0.707106769 : f32
    %34 = vector.broadcast %cst_15 : f32 to vector<16x64xf32>
    %35 = arith.mulf %31, %34 : vector<16x64xf32>
    %36 = math.erf %35 : vector<16x64xf32>
    %cst_16 = arith.constant 1.000000e+00 : f32
    %37 = vector.broadcast %cst_16 : f32 to vector<16x64xf32>
    %38 = arith.addf %37, %36 : vector<16x64xf32>
    %39 = arith.mulf %33, %38 : vector<16x64xf32>
    %40 = arith.truncf %39 : vector<16x64xf32> to vector<16x64xbf16>
    %c0_17 = arith.constant 0 : index
    %c0_18 = arith.constant 0 : index
    %41 = vector.load %arg8[%c0_17, %c0_18] : memref<16x64xbf16, #tpu.memory_space<vmem>>, vector<16x64xbf16>
    tpu.vector_store %arg8[%c0_17, %c0_18], %40 {strides = array<i32>} : memref<16x64xbf16, #tpu.memory_space<vmem>>, vector<16x64xbf16>,
    return
  }
  func.func @transform_0(%arg0: i32, %arg1: i32, %arg2: i32) -> (i32, i32) {
    %c0_i32 = arith.constant 0 : i32
    return %arg0, %arg2 : i32, i32
  }
  func.func @transform_1(%arg0: i32, %arg1: i32, %arg2: i32) -> (i32, i32) {
    %c0_i32 = arith.constant 0 : i32
    %c0_i32_0 = arith.constant 0 : i32
    %c0_i32_1 = arith.constant 0 : i32
    return %c0_i32, %c0_i32_0 : i32, i32
  }
  func.func @transform_2(%arg0: i32, %arg1: i32, %arg2: i32) -> (i32, i32) {
    %c0_i32 = arith.constant 0 : i32
    %c0_i32_0 = arith.constant 0 : i32
    %c0_i32_1 = arith.constant 0 : i32
    return %c0_i32, %c0_i32_0 : i32, i32
  }
  func.func @transform_3(%arg0: i32, %arg1: i32, %arg2: i32) -> (i32, i32) {
    %c0_i32 = arith.constant 0 : i32
    return %arg2, %arg1 : i32, i32
  }
  func.func @transform_4(%arg0: i32, %arg1: i32, %arg2: i32) -> (i32, i32) {
    %c0_i32 = arith.constant 0 : i32
    %c0_i32_0 = arith.constant 0 : i32
    return %c0_i32, %arg1 : i32, i32
  }
  func.func @transform_5(%arg0: i32, %arg1: i32, %arg2: i32) -> (i32, i32) {
    %c0_i32 = arith.constant 0 : i32
    return %arg0, %arg1 : i32, i32
  }
}

module attributes {stable_mosaic.version = 11 : i64} {
  func.func @_fused_matmul_kernel(%arg0: i32, %arg1: i32, %arg2: i32, %arg3: memref<16x64xbf16, #tpu.memory_space<vmem>>, %arg4: memref<64x32xbf16, #tpu.memory_space<vmem>>, %arg5: memref<1x32xf32, #tpu.memory_space<vmem>>, %arg6: memref<16x32xbf16, #tpu.memory_space<vmem>>, %arg7: memref<1x32xf32, #tpu.memory_space<vmem>>, %arg8: memref<1x32xf32, #tpu.memory_space<vmem>>, %arg9: memref<16x32xbf16, #tpu.memory_space<vmem>>, %arg10: memref<16x32xbf16, #tpu.memory_space<vmem>>) attributes {dimension_semantics = [#tpu.dimension_semantics<parallel>, #tpu.dimension_semantics<parallel>, #tpu.dimension_semantics<arbitrary>], iteration_bounds = array<i64: 2, 1, 1>, scalar_prefetch = 0 : i64, scratch_operands = 0 : i64, tpu.core_type = #tpu.core_type<tc>, window_params = [{transform_indices = @transform_0, window_bounds = array<i64: 16, 64>}, {transform_indices = @transform_1, window_bounds = array<i64: 64, 32>}, {transform_indices = @transform_2, window_bounds = array<i64: 1, 32>}, {transform_indices = @transform_3, window_bounds = array<i64: 16, 32>}, {pipeline_mode = #tpu.pipeline_mode<synchronous>, transform_indices = @transform_4, window_bounds = array<i64: 1, 32>}, {pipeline_mode = #tpu.pipeline_mode<synchronous>, transform_indices = @transform_5, window_bounds = array<i64: 1, 32>}, {transform_indices = @transform_6, window_bounds = array<i64: 16, 32>}, {transform_indices = @transform_7, window_bounds = array<i64: 16, 32>}]} {
    %c0 = arith.constant 0 : index
    %c0_0 = arith.constant 0 : index
    %0 = vector.load %arg3[%c0, %c0_0] : memref<16x64xbf16, #tpu.memory_space<vmem>>, vector<16x64xbf16>
    %c0_1 = arith.constant 0 : index
    %c0_2 = arith.constant 0 : index
    %1 = vector.load %arg4[%c0_1, %c0_2] : memref<64x32xbf16, #tpu.memory_space<vmem>>, vector<64x32xbf16>
    %cst = arith.constant dense<0.000000e+00> : vector<16x32xf32>
    %2 = tpu.matmul %0, %1, %cst {dimension_numbers = #tpu.dot_dimension_numbers<[1], [0], [0], [1], [0, 0, 1, 1], [], []>} : vector<16x64xbf16>, vector<64x32xbf16>, vector<16x32xf32> -> vector<16x32xf32>
    %c0_3 = arith.constant 0 : index
    %c0_4 = arith.constant 0 : index
    %3 = vector.load %arg5[%c0_3, %c0_4] : memref<1x32xf32, #tpu.memory_space<vmem>>, vector<1x32xf32>
    %4 = vector.broadcast %3 : vector<1x32xf32> to vector<16x32xf32>
    %5 = arith.addf %2, %4 : vector<16x32xf32>
    %c0_5 = arith.constant 0 : index
    %c0_6 = arith.constant 0 : index
    %6 = vector.load %arg6[%c0_5, %c0_6] : memref<16x32xbf16, #tpu.memory_space<vmem>>, vector<16x32xbf16>
    %7 = arith.extf %6 : vector<16x32xbf16> to vector<16x32xf32>
    %8 = arith.addf %5, %7 : vector<16x32xf32>
    %9 = arith.truncf %8 : vector<16x32xf32> to vector<16x32xbf16>
    %c0_7 = arith.constant 0 : index
    %c0_8 = arith.constant 0 : index
    %10 = vector.load %arg9[%c0_7, %c0_8] : memref<16x32xbf16, #tpu.memory_space<vmem>>, vector<16x32xbf16>
    tpu.vector_store %arg9[%c0_7, %c0_8], %9 {strides = array<i32>} : memref<16x32xbf16, #tpu.memory_space<vmem>>, vector<16x32xbf16>,
    %c0_9 = arith.constant 0 : index
    %c0_10 = arith.constant 0 : index
    %11 = vector.load %arg7[%c0_9, %c0_10] : memref<1x32xf32, #tpu.memory_space<vmem>>, vector<1x32xf32>
    %c0_11 = arith.constant 0 : index
    %c0_12 = arith.constant 0 : index
    %12 = vector.load %arg8[%c0_11, %c0_12] : memref<1x32xf32, #tpu.memory_space<vmem>>, vector<1x32xf32>
    %cst_13 = arith.constant dense<0.000000e+00> : vector<16xf32>
    %13 = vector.multi_reduction <add>, %8, %cst_13 [1] : vector<16x32xf32> to vector<16xf32>
    %14 = vector.shape_cast %13 : vector<16xf32> to vector<16x1xf32>
    %cst_14 = arith.constant 3.200000e+01 : f32
    %15 = vector.broadcast %cst_14 : f32 to vector<16x1xf32>
    %16 = arith.divf %14, %15 : vector<16x1xf32>
    %17 = vector.broadcast %16 : vector<16x1xf32> to vector<16x32xf32>
    %18 = arith.subf %8, %17 : vector<16x32xf32>
    %19 = arith.mulf %18, %18 : vector<16x32xf32>
    %cst_15 = arith.constant dense<0.000000e+00> : vector<16xf32>
    %20 = vector.multi_reduction <add>, %19, %cst_15 [1] : vector<16x32xf32> to vector<16xf32>
    %21 = vector.shape_cast %20 : vector<16xf32> to vector<16x1xf32>
    %cst_16 = arith.constant 3.200000e+01 : f32
    %22 = vector.broadcast %cst_16 : f32 to vector<16x1xf32>
    %23 = arith.divf %21, %22 : vector<16x1xf32>
    %24 = vector.broadcast %16 : vector<16x1xf32> to vector<16x32xf32>
    %25 = arith.subf %8, %24 : vector<16x32xf32>
    %cst_17 = arith.constant 9.99999974E-6 : f32
    %26 = vector.broadcast %cst_17 : f32 to vector<16x1xf32>
    %27 = arith.addf %23, %26 : vector<16x1xf32>
    %28 = math.rsqrt %27 : vector<16x1xf32>
    %29 = vector.broadcast %28 : vector<16x1xf32> to vector<16x32xf32>
    %30 = arith.mulf %25, %29 : vector<16x32xf32>
    %31 = vector.broadcast %11 : vector<1x32xf32> to vector<16x32xf32>
    %32 = arith.mulf %30, %31 : vector<16x32xf32>
    %33 = vector.broadcast %12 : vector<1x32xf32> to vector<16x32xf32>
    %34 = arith.addf %32, %33 : vector<16x32xf32>
    %35 = arith.truncf %34 : vector<16x32xf32> to vector<16x32xbf16>
    %c0_18 = arith.constant 0 : index
    %c0_19 = arith.constant 0 : index
    %36 = vector.load %arg10[%c0_18, %c0_19] : memref<16x32xbf16, #tpu.memory_space<vmem>>, vector<16x32xbf16>
    tpu.vector_store %arg10[%c0_18, %c0_19], %35 {strides = array<i32>} : memref<16x32xbf16, #tpu.memory_space<vmem>>, vector<16x32xbf16>,
    return
  }
  func.func @transform_0(%arg0: i32, %arg1: i32, %arg2: i32) -> (i32, i32) {
    %c0_i32 = arith.constant 0 : i32
    return %arg0, %arg2 : i32, i32
  }
  func.func @transform_1(%arg0: i32, %arg1: i32, %arg2: i32) -> (i32, i32) {
    %c0_i32 = arith.constant 0 : i32
    return %arg2, %arg1 : i32, i32
  }
  func.func @transform_2(%arg0: i32, %arg1: i32, %arg2: i32) -> (i32, i32) {
    %c0_i32 = arith.constant 0 : i32
    %c0_i32_0 = arith.constant 0 : i32
    return %c0_i32, %arg1 : i32, i32
  }
  func.func @transform_3(%arg0: i32, %arg1: i32, %arg2: i32) -> (i32, i32) {
    %c0_i32 = arith.constant 0 : i32
    return %arg0, %arg1 : i32, i32
  }
  func.func @transform_4(%arg0: i32, %arg1: i32, %arg2: i32) -> (i32, i32) {
    %c0_i32 = arith.constant 0 : i32
    %c0_i32_0 = arith.constant 0 : i32
    %c0_i32_1 = arith.constant 0 : i32
    return %c0_i32, %c0_i32_0 : i32, i32
  }
  func.func @transform_5(%arg0: i32, %arg1: i32, %arg2: i32) -> (i32, i32) {
    %c0_i32 = arith.constant 0 : i32
    %c0_i32_0 = arith.constant 0 : i32
    %c0_i32_1 = arith.constant 0 : i32
    return %c0_i32, %c0_i32_0 : i32, i32
  }
  func.func @transform_6(%arg0: i32, %arg1: i32, %arg2: i32) -> (i32, i32) {
    %c0_i32 = arith.constant 0 : i32
    return %arg0, %arg1 : i32, i32
  }
  func.func @transform_7(%arg0: i32, %arg1: i32, %arg2: i32) -> (i32, i32) {
    %c0_i32 = arith.constant 0 : i32
    return %arg0, %arg1 : i32, i32
  }
}

module attributes {stable_mosaic.version = 11 : i64} {
  func.func @_fused_matmul_kernel(%arg0: i32, %arg1: i32, %arg2: i32, %arg3: memref<16x32xbf16, #tpu.memory_space<vmem>>, %arg4: memref<32x64xbf16, #tpu.memory_space<vmem>>, %arg5: memref<1x64xf32, #tpu.memory_space<vmem>>, %arg6: memref<16x64xbf16, #tpu.memory_space<vmem>>) attributes {dimension_semantics = [#tpu.dimension_semantics<parallel>, #tpu.dimension_semantics<parallel>, #tpu.dimension_semantics<arbitrary>], iteration_bounds = array<i64: 2, 1, 1>, scalar_prefetch = 0 : i64, scratch_operands = 0 : i64, tpu.core_type = #tpu.core_type<tc>, window_params = [{transform_indices = @transform_0, window_bounds = array<i64: 16, 32>}, {transform_indices = @transform_1, window_bounds = array<i64: 32, 64>}, {transform_indices = @transform_2, window_bounds = array<i64: 1, 64>}, {transform_indices = @transform_3, window_bounds = array<i64: 16, 64>}]} {
    %c0 = arith.constant 0 : index
    %c0_0 = arith.constant 0 : index
    %0 = vector.load %arg3[%c0, %c0_0] : memref<16x32xbf16, #tpu.memory_space<vmem>>, vector<16x32xbf16>
    %c0_1 = arith.constant 0 : index
    %c0_2 = arith.constant 0 : index
    %1 = vector.load %arg4[%c0_1, %c0_2] : memref<32x64xbf16, #tpu.memory_space<vmem>>, vector<32x64xbf16>
    %cst = arith.constant dense<0.000000e+00> : vector<16x64xf32>
    %2 = tpu.matmul %0, %1, %cst {dimension_numbers = #tpu.dot_dimension_numbers<[1], [0], [0], [1], [0, 0, 1, 1], [], []>} : vector<16x32xbf16>, vector<32x64xbf16>, vector<16x64xf32> -> vector<16x64xf32>
    %c0_3 = arith.constant 0 : index
    %c0_4 = arith.constant 0 : index
    %3 = vector.load %arg5[%c0_3, %c0_4] : memref<1x64xf32, #tpu.memory_space<vmem>>, vector<1x64xf32>
    %4 = vector.broadcast %3 : vector<1x64xf32> to vector<16x64xf32>
    %5 = arith.addf %2, %4 : vector<16x64xf32>
    %6 = arith.truncf %5 : vector<16x64xf32> to vector<16x64xbf16>
    %c0_5 = arith.constant 0 : index
    %c0_6 = arith.constant 0 : index
    %7 = vector.load %arg6[%c0_5, %c0_6] : memref<16x64xbf16, #tpu.memory_space<vmem>>, vector<16x64xbf16>
    tpu.vector_store %arg6[%c0_5, %c0_6], %6 {strides = array<i32>} : memref<16x64xbf16, #tpu.memory_space<vmem>>, vector<16x64xbf16>,
    return
  }
  func.func @transform_0(%arg0: i32, %arg1: i32, %arg2: i32) -> (i32, i32) {
    %c0_i32 = arith.constant 0 : i32
    return %arg0, %arg2 : i32, i32
  }
  func.func @transform_1(%arg0: i32, %arg1: i32, %arg2: i32) -> (i32, i32) {
    %c0_i32 = arith.constant 0 : i32
    return %arg2, %arg1 : i32, i32
  }
  func.func @transform_2(%arg0: i32, %arg1: i32, %arg2: i32) -> (i32, i32) {
    %c0_i32 = arith.constant 0 : i32
    %c0_i32_0 = arith.constant 0 : i32
    return %c0_i32, %arg1 : i32, i32
  }
  func.func @transform_3(%arg0: i32, %arg1: i32, %arg2: i32) -> (i32, i32) {
    %c0_i32 = arith.constant 0 : i32
    return %arg0, %arg1 : i32, i32
  }
}

module attributes {stable_mosaic.version = 11 : i64} {
  func.func @_decoder_layer_kernel(%arg0: i32, %arg1: memref<1x8x32xbf16, #tpu.memory_space<vmem>>, %arg2: memref<1x16x64xbf16, #tpu.memory_space<vmem>>, %arg3: memref<32x32xbf16, #tpu.memory_space<vmem>>, %arg4: memref<1x32xf32, #tpu.memory_space<vmem>>, %arg5: memref<32x32xbf16, #tpu.memory_space<vmem>>, %arg6: memref<1x32xf32, #tpu.memory_space<vmem>>, %arg7: memref<1x32xf32, #tpu.memory_space<vmem>>, %arg8: memref<1x32xf32, #tpu.memory_space<vmem>>, %arg9: memref<32x96xbf16, #tpu.memory_space<vmem>>, %arg10: memref<1x96xf32, #tpu.memory_space<vmem>>, %arg11: memref<32x32xbf16, #tpu.memory_space<vmem>>, %arg12: memref<1x32xf32, #tpu.memory_space<vmem>>, %arg13: memref<1x32xf32, #tpu.memory_space<vmem>>, %arg14: memref<1x32xf32, #tpu.memory_space<vmem>>, %arg15: memref<32x64xbf16, #tpu.memory_space<vmem>>, %arg16: memref<1x64xf32, #tpu.memory_space<vmem>>, %arg17: memref<64x32xbf16, #tpu.memory_space<vmem>>, %arg18: memref<1x32xf32, #tpu.memory_space<vmem>>, %arg19: memref<1x32xf32, #tpu.memory_space<vmem>>, %arg20: memref<1x32xf32, #tpu.memory_space<vmem>>, %arg21: memref<1x8x32xbf16, #tpu.memory_space<vmem>>, %arg22: memref<8x32xf32, #tpu.memory_space<vmem>>) attributes {dimension_semantics = [#tpu.dimension_semantics<parallel>], iteration_bounds = array<i64: 2>, scalar_prefetch = 0 : i64, scratch_operands = 1 : i64, tpu.core_type = #tpu.core_type<tc>, window_params = [{transform_indices = @transform_0, window_bounds = array<i64: 1, 8, 32>}, {transform_indices = @transform_1, window_bounds = array<i64: 1, 16, 64>}, {pipeline_mode = #tpu.pipeline_mode<synchronous>, transform_indices = @transform_2, window_bounds = array<i64: 32, 32>}, {pipeline_mode = #tpu.pipeline_mode<synchronous>, transform_indices = @transform_3, window_bounds = array<i64: 1, 32>}, {pipeline_mode = #tpu.pipeline_mode<synchronous>, transform_indices = @transform_4, window_bounds = array<i64: 32, 32>}, {pipeline_mode = #tpu.pipeline_mode<synchronous>, transform_indices = @transform_5, window_bounds = array<i64: 1, 32>}, {pipeline_mode = #tpu.pipeline_mode<synchronous>, transform_indices = @transform_6, window_bounds = array<i64: 1, 32>}, {pipeline_mode = #tpu.pipeline_mode<synchronous>, transform_indices = @transform_7, window_bounds = array<i64: 1, 32>}, {pipeline_mode = #tpu.pipeline_mode<synchronous>, transform_indices = @transform_8, window_bounds = array<i64: 32, 96>}, {pipeline_mode = #tpu.pipeline_mode<synchronous>, transform_indices = @transform_9, window_bounds = array<i64: 1, 96>}, {pipeline_mode = #tpu.pipeline_mode<synchronous>, transform_indices = @transform_10, window_bounds = array<i64: 32, 32>}, {pipeline_mode = #tpu.pipeline_mode<synchronous>, transform_indices = @transform_11, window_bounds = array<i64: 1, 32>}, {pipeline_mode = #tpu.pipeline_mode<synchronous>, transform_indices = @transform_12, window_bounds = array<i64: 1, 32>}, {pipeline_mode = #tpu.pipeline_mode<synchronous>, transform_indices = @transform_13, window_bounds = array<i64: 1, 32>}, {pipeline_mode = #tpu.pipeline_mode<synchronous>, transform_indices = @transform_14, window_bounds = array<i64: 32, 64>}, {pipeline_mode = #tpu.pipeline_mode<synchronous>, transform_indices = @transform_15, window_bounds = array<i64: 1, 64>}, {pipeline_mode = #tpu.pipeline_mode<synchronous>, transform_indices = @transform_16, window_bounds = array<i64: 64, 32>}, {pipeline_mode = #tpu.pipeline_mode<synchronous>, transform_indices = @transform_17, window_bounds = array<i64: 1, 32>}, {pipeline_mode = #tpu.pipeline_mode<synchronous>, transform_indices = @transform_18, window_bounds = array<i64: 1, 32>}, {pipeline_mode = #tpu.pipeline_mode<synchronous>, transform_indices = @transform_19, window_bounds = array<i64: 1, 32>}, {transform_indices = @transform_20, window_bounds = array<i64: 1, 8, 32>}]} {
    %c0 = arith.constant 0 : index
    %c0_0 = arith.constant 0 : index
    %c0_1 = arith.constant 0 : index
    %0 = vector.load %arg1[%c0, %c0_0, %c0_1] : memref<1x8x32xbf16, #tpu.memory_space<vmem>>, vector<1x8x32xbf16>
    %1 = vector.shape_cast %0 : vector<1x8x32xbf16> to vector<8x32xbf16>
    %2 = arith.extf %1 : vector<8x32xbf16> to vector<8x32xf32>
    %c0_2 = arith.constant 0 : index
    %c0_3 = arith.constant 0 : index
    %c0_4 = arith.constant 0 : index
    %3 = vector.load %arg2[%c0_2, %c0_3, %c0_4] : memref<1x16x64xbf16, #tpu.memory_space<vmem>>, vector<1x16x64xbf16>
    %4 = vector.shape_cast %3 : vector<1x16x64xbf16> to vector<16x64xbf16>
    %5 = arith.truncf %2 : vector<8x32xf32> to vector<8x32xbf16>
    %c0_5 = arith.constant 0 : index
    %c0_6 = arith.constant 0 : index
    %6 = vector.load %arg3[%c0_5, %c0_6] : memref<32x32xbf16, #tpu.memory_space<vmem>>, vector<32x32xbf16>
    %cst = arith.constant dense<0.000000e+00> : vector<8x32xf32>
    %7 = tpu.matmul %5, %6, %cst {dimension_numbers = #tpu.dot_dimension_numbers<[1], [0], [0], [1], [0, 0, 1, 1], [], []>} : vector<8x32xbf16>, vector<32x32xbf16>, vector<8x32xf32> -> vector<8x32xf32>
    %c0_7 = arith.constant 0 : index
    %c0_8 = arith.constant 0 : index
    %8 = vector.load %arg4[%c0_7, %c0_8] : memref<1x32xf32, #tpu.memory_space<vmem>>, vector<1x32xf32>
    %9 = vector.broadcast %8 : vector<1x32xf32> to vector<8x32xf32>
    %10 = arith.addf %7, %9 : vector<8x32xf32>
    %11 = arith.truncf %10 : vector<8x32xf32> to vector<8x32xbf16>
    %12 = vector.extract_strided_slice %11 {offsets = [0, 0], sizes = [8, 8], strides = [1, 1]} : vector<8x32xbf16> to vector<8x8xbf16>
    %13 = vector.extract_strided_slice %4 {offsets = [0, 0], sizes = [16, 8], strides = [1, 1]} : vector<16x64xbf16> to vector<16x8xbf16>
    %14 = vector.extract_strided_slice %4 {offsets = [0, 32], sizes = [16, 8], strides = [1, 1]} : vector<16x64xbf16> to vector<16x8xbf16>
    %cst_9 = arith.constant dense<0.000000e+00> : vector<8x16xf32>
    %15 = tpu.matmul %12, %13, %cst_9 {dimension_numbers = #tpu.dot_dimension_numbers<[1], [1], [0], [0], [0, 0, 1, 0], [], []>} : vector<8x8xbf16>, vector<16x8xbf16>, vector<8x16xf32> -> vector<8x16xf32>
    %cst_10 = arith.constant 0.353553385 : f32
    %16 = vector.broadcast %cst_10 : f32 to vector<8x16xf32>
    %17 = arith.mulf %15, %16 : vector<8x16xf32>
    %cst_11 = arith.constant dense<0xFF800000> : vector<8xf32>
    %18 = vector.multi_reduction <maximumf>, %17, %cst_11 [1] : vector<8x16xf32> to vector<8xf32>
    %19 = vector.shape_cast %18 : vector<8xf32> to vector<8x1xf32>
    %20 = vector.broadcast %19 : vector<8x1xf32> to vector<8x16xf32>
    %21 = arith.subf %17, %20 : vector<8x16xf32>
    %22 = math.exp %21 : vector<8x16xf32>
    %cst_12 = arith.constant dense<0.000000e+00> : vector<8xf32>
    %23 = vector.multi_reduction <add>, %22, %cst_12 [1] : vector<8x16xf32> to vector<8xf32>
    %24 = vector.shape_cast %23 : vector<8xf32> to vector<8x1xf32>
    %25 = tpu.reciprocal %24 {approx = true} : vector<8x1xf32> -> vector<8x1xf32>
    %26 = vector.broadcast %25 : vector<8x1xf32> to vector<8x16xf32>
    %27 = arith.mulf %22, %26 : vector<8x16xf32>
    %28 = arith.truncf %27 : vector<8x16xf32> to vector<8x16xbf16>
    %cst_13 = arith.constant dense<0.000000e+00> : vector<8x8xf32>
    %29 = tpu.matmul %28, %14, %cst_13 {dimension_numbers = #tpu.dot_dimension_numbers<[1], [0], [0], [1], [0, 0, 1, 1], [], []>} : vector<8x16xbf16>, vector<16x8xbf16>, vector<8x8xf32> -> vector<8x8xf32>
    %c0_14 = arith.constant 0 : index
    %c0_15 = arith.constant 0 : index
    %30 = vector.load %arg22[%c0_14, %c0_15] : memref<8x32xf32, #tpu.memory_space<vmem>>, vector<8x8xf32>
    tpu.vector_store %arg22[%c0_14, %c0_15], %29 {strides = array<i32>} : memref<8x32xf32, #tpu.memory_space<vmem>>, vector<8x8xf32>,
    %31 = vector.extract_strided_slice %11 {offsets = [0, 8], sizes = [8, 8], strides = [1, 1]} : vector<8x32xbf16> to vector<8x8xbf16>
    %32 = vector.extract_strided_slice %4 {offsets = [0, 8], sizes = [16, 8], strides = [1, 1]} : vector<16x64xbf16> to vector<16x8xbf16>
    %33 = vector.extract_strided_slice %4 {offsets = [0, 40], sizes = [16, 8], strides = [1, 1]} : vector<16x64xbf16> to vector<16x8xbf16>
    %cst_16 = arith.constant dense<0.000000e+00> : vector<8x16xf32>
    %34 = tpu.matmul %31, %32, %cst_16 {dimension_numbers = #tpu.dot_dimension_numbers<[1], [1], [0], [0], [0, 0, 1, 0], [], []>} : vector<8x8xbf16>, vector<16x8xbf16>, vector<8x16xf32> -> vector<8x16xf32>
    %cst_17 = arith.constant 0.353553385 : f32
    %35 = vector.broadcast %cst_17 : f32 to vector<8x16xf32>
    %36 = arith.mulf %34, %35 : vector<8x16xf32>
    %cst_18 = arith.constant dense<0xFF800000> : vector<8xf32>
    %37 = vector.multi_reduction <maximumf>, %36, %cst_18 [1] : vector<8x16xf32> to vector<8xf32>
    %38 = vector.shape_cast %37 : vector<8xf32> to vector<8x1xf32>
    %39 = vector.broadcast %38 : vector<8x1xf32> to vector<8x16xf32>
    %40 = arith.subf %36, %39 : vector<8x16xf32>
    %41 = math.exp %40 : vector<8x16xf32>
    %cst_19 = arith.constant dense<0.000000e+00> : vector<8xf32>
    %42 = vector.multi_reduction <add>, %41, %cst_19 [1] : vector<8x16xf32> to vector<8xf32>
    %43 = vector.shape_cast %42 : vector<8xf32> to vector<8x1xf32>
    %44 = tpu.reciprocal %43 {approx = true} : vector<8x1xf32> -> vector<8x1xf32>
    %45 = vector.broadcast %44 : vector<8x1xf32> to vector<8x16xf32>
    %46 = arith.mulf %41, %45 : vector<8x16xf32>
    %47 = arith.truncf %46 : vector<8x16xf32> to vector<8x16xbf16>
    %cst_20 = arith.constant dense<0.000000e+00> : vector<8x8xf32>
    %48 = tpu.matmul %47, %33, %cst_20 {dimension_numbers = #tpu.dot_dimension_numbers<[1], [0], [0], [1], [0, 0, 1, 1], [], []>} : vector<8x16xbf16>, vector<16x8xbf16>, vector<8x8xf32> -> vector<8x8xf32>
    %c0_21 = arith.constant 0 : index
    %c8 = arith.constant 8 : index
    %49 = vector.load %arg22[%c0_21, %c8] : memref<8x32xf32, #tpu.memory_space<vmem>>, vector<8x8xf32>
    tpu.vector_store %arg22[%c0_21, %c8], %48 {strides = array<i32>} : memref<8x32xf32, #tpu.memory_space<vmem>>, vector<8x8xf32>,
    %50 = vector.extract_strided_slice %11 {offsets = [0, 16], sizes = [8, 8], strides = [1, 1]} : vector<8x32xbf16> to vector<8x8xbf16>
    %51 = vector.extract_strided_slice %4 {offsets = [0, 16], sizes = [16, 8], strides = [1, 1]} : vector<16x64xbf16> to vector<16x8xbf16>
    %52 = vector.extract_strided_slice %4 {offsets = [0, 48], sizes = [16, 8], strides = [1, 1]} : vector<16x64xbf16> to vector<16x8xbf16>
    %cst_22 = arith.constant dense<0.000000e+00> : vector<8x16xf32>
    %53 = tpu.matmul %50, %51, %cst_22 {dimension_numbers = #tpu.dot_dimension_numbers<[1], [1], [0], [0], [0, 0, 1, 0], [], []>} : vector<8x8xbf16>, vector<16x8xbf16>, vector<8x16xf32> -> vector<8x16xf32>
    %cst_23 = arith.constant 0.353553385 : f32
    %54 = vector.broadcast %cst_23 : f32 to vector<8x16xf32>
    %55 = arith.mulf %53, %54 : vector<8x16xf32>
    %cst_24 = arith.constant dense<0xFF800000> : vector<8xf32>
    %56 = vector.multi_reduction <maximumf>, %55, %cst_24 [1] : vector<8x16xf32> to vector<8xf32>
    %57 = vector.shape_cast %56 : vector<8xf32> to vector<8x1xf32>
    %58 = vector.broadcast %57 : vector<8x1xf32> to vector<8x16xf32>
    %59 = arith.subf %55, %58 : vector<8x16xf32>
    %60 = math.exp %59 : vector<8x16xf32>
    %cst_25 = arith.constant dense<0.000000e+00> : vector<8xf32>
    %61 = vector.multi_reduction <add>, %60, %cst_25 [1] : vector<8x16xf32> to vector<8xf32>
    %62 = vector.shape_cast %61 : vector<8xf32> to vector<8x1xf32>
    %63 = tpu.reciprocal %62 {approx = true} : vector<8x1xf32> -> vector<8x1xf32>
    %64 = vector.broadcast %63 : vector<8x1xf32> to vector<8x16xf32>
    %65 = arith.mulf %60, %64 : vector<8x16xf32>
    %66 = arith.truncf %65 : vector<8x16xf32> to vector<8x16xbf16>
    %cst_26 = arith.constant dense<0.000000e+00> : vector<8x8xf32>
    %67 = tpu.matmul %66, %52, %cst_26 {dimension_numbers = #tpu.dot_dimension_numbers<[1], [0], [0], [1], [0, 0, 1, 1], [], []>} : vector<8x16xbf16>, vector<16x8xbf16>, vector<8x8xf32> -> vector<8x8xf32>
    %c0_27 = arith.constant 0 : index
    %c16 = arith.constant 16 : index
    %68 = vector.load %arg22[%c0_27, %c16] : memref<8x32xf32, #tpu.memory_space<vmem>>, vector<8x8xf32>
    tpu.vector_store %arg22[%c0_27, %c16], %67 {strides = array<i32>} : memref<8x32xf32, #tpu.memory_space<vmem>>, vector<8x8xf32>,
    %69 = vector.extract_strided_slice %11 {offsets = [0, 24], sizes = [8, 8], strides = [1, 1]} : vector<8x32xbf16> to vector<8x8xbf16>
    %70 = vector.extract_strided_slice %4 {offsets = [0, 24], sizes = [16, 8], strides = [1, 1]} : vector<16x64xbf16> to vector<16x8xbf16>
    %71 = vector.extract_strided_slice %4 {offsets = [0, 56], sizes = [16, 8], strides = [1, 1]} : vector<16x64xbf16> to vector<16x8xbf16>
    %cst_28 = arith.constant dense<0.000000e+00> : vector<8x16xf32>
    %72 = tpu.matmul %69, %70, %cst_28 {dimension_numbers = #tpu.dot_dimension_numbers<[1], [1], [0], [0], [0, 0, 1, 0], [], []>} : vector<8x8xbf16>, vector<16x8xbf16>, vector<8x16xf32> -> vector<8x16xf32>
    %cst_29 = arith.constant 0.353553385 : f32
    %73 = vector.broadcast %cst_29 : f32 to vector<8x16xf32>
    %74 = arith.mulf %72, %73 : vector<8x16xf32>
    %cst_30 = arith.constant dense<0xFF800000> : vector<8xf32>
    %75 = vector.multi_reduction <maximumf>, %74, %cst_30 [1] : vector<8x16xf32> to vector<8xf32>
    %76 = vector.shape_cast %75 : vector<8xf32> to vector<8x1xf32>
    %77 = vector.broadcast %76 : vector<8x1xf32> to vector<8x16xf32>
    %78 = arith.subf %74, %77 : vector<8x16xf32>
    %79 = math.exp %78 : vector<8x16xf32>
    %cst_31 = arith.constant dense<0.000000e+00> : vector<8xf32>
    %80 = vector.multi_reduction <add>, %79, %cst_31 [1] : vector<8x16xf32> to vector<8xf32>
    %81 = vector.shape_cast %80 : vector<8xf32> to vector<8x1xf32>
    %82 = tpu.reciprocal %81 {approx = true} : vector<8x1xf32> -> vector<8x1xf32>
    %83 = vector.broadcast %82 : vector<8x1xf32> to vector<8x16xf32>
    %84 = arith.mulf %79, %83 : vector<8x16xf32>
    %85 = arith.truncf %84 : vector<8x16xf32> to vector<8x16xbf16>
    %cst_32 = arith.constant dense<0.000000e+00> : vector<8x8xf32>
    %86 = tpu.matmul %85, %71, %cst_32 {dimension_numbers = #tpu.dot_dimension_numbers<[1], [0], [0], [1], [0, 0, 1, 1], [], []>} : vector<8x16xbf16>, vector<16x8xbf16>, vector<8x8xf32> -> vector<8x8xf32>
    %c0_33 = arith.constant 0 : index
    %c24 = arith.constant 24 : index
    %87 = vector.load %arg22[%c0_33, %c24] : memref<8x32xf32, #tpu.memory_space<vmem>>, vector<8x8xf32>
    tpu.vector_store %arg22[%c0_33, %c24], %86 {strides = array<i32>} : memref<8x32xf32, #tpu.memory_space<vmem>>, vector<8x8xf32>,
    %c0_34 = arith.constant 0 : index
    %c0_35 = arith.constant 0 : index
    %88 = vector.load %arg22[%c0_34, %c0_35] : memref<8x32xf32, #tpu.memory_space<vmem>>, vector<8x32xf32>
    %89 = arith.truncf %88 : vector<8x32xf32> to vector<8x32xbf16>
    %c0_36 = arith.constant 0 : index
    %c0_37 = arith.constant 0 : index
    %90 = vector.load %arg5[%c0_36, %c0_37] : memref<32x32xbf16, #tpu.memory_space<vmem>>, vector<32x32xbf16>
    %cst_38 = arith.constant dense<0.000000e+00> : vector<8x32xf32>
    %91 = tpu.matmul %89, %90, %cst_38 {dimension_numbers = #tpu.dot_dimension_numbers<[1], [0], [0], [1], [0, 0, 1, 1], [], []>} : vector<8x32xbf16>, vector<32x32xbf16>, vector<8x32xf32> -> vector<8x32xf32>
    %92 = arith.addf %2, %91 : vector<8x32xf32>
    %c0_39 = arith.constant 0 : index
    %c0_40 = arith.constant 0 : index
    %93 = vector.load %arg6[%c0_39, %c0_40] : memref<1x32xf32, #tpu.memory_space<vmem>>, vector<1x32xf32>
    %94 = vector.broadcast %93 : vector<1x32xf32> to vector<8x32xf32>
    %95 = arith.addf %92, %94 : vector<8x32xf32>
    %c0_41 = arith.constant 0 : index
    %c0_42 = arith.constant 0 : index
    %96 = vector.load %arg7[%c0_41, %c0_42] : memref<1x32xf32, #tpu.memory_space<vmem>>, vector<1x32xf32>
    %c0_43 = arith.constant 0 : index
    %c0_44 = arith.constant 0 : index
    %97 = vector.load %arg8[%c0_43, %c0_44] : memref<1x32xf32, #tpu.memory_space<vmem>>, vector<1x32xf32>
    %cst_45 = arith.constant dense<0.000000e+00> : vector<8xf32>
    %98 = vector.multi_reduction <add>, %95, %cst_45 [1] : vector<8x32xf32> to vector<8xf32>
    %99 = vector.shape_cast %98 : vector<8xf32> to vector<8x1xf32>
    %cst_46 = arith.constant 3.200000e+01 : f32
    %100 = vector.broadcast %cst_46 : f32 to vector<8x1xf32>
    %101 = arith.divf %99, %100 : vector<8x1xf32>
    %102 = vector.broadcast %101 : vector<8x1xf32> to vector<8x32xf32>
    %103 = arith.subf %95, %102 : vector<8x32xf32>
    %104 = arith.mulf %103, %103 : vector<8x32xf32>
    %cst_47 = arith.constant dense<0.000000e+00> : vector<8xf32>
    %105 = vector.multi_reduction <add>, %104, %cst_47 [1] : vector<8x32xf32> to vector<8xf32>
    %106 = vector.shape_cast %105 : vector<8xf32> to vector<8x1xf32>
    %cst_48 = arith.constant 3.200000e+01 : f32
    %107 = vector.broadcast %cst_48 : f32 to vector<8x1xf32>
    %108 = arith.divf %106, %107 : vector<8x1xf32>
    %109 = vector.broadcast %101 : vector<8x1xf32> to vector<8x32xf32>
    %110 = arith.subf %95, %109 : vector<8x32xf32>
    %cst_49 = arith.constant 9.99999974E-6 : f32
    %111 = vector.broadcast %cst_49 : f32 to vector<8x1xf32>
    %112 = arith.addf %108, %111 : vector<8x1xf32>
    %113 = math.rsqrt %112 : vector<8x1xf32>
    %114 = vector.broadcast %113 : vector<8x1xf32> to vector<8x32xf32>
    %115 = arith.mulf %110, %114 : vector<8x32xf32>
    %116 = vector.broadcast %96 : vector<1x32xf32> to vector<8x32xf32>
    %117 = arith.mulf %115, %116 : vector<8x32xf32>
    %118 = vector.broadcast %97 : vector<1x32xf32> to vector<8x32xf32>
    %119 = arith.addf %117, %118 : vector<8x32xf32>
    %120 = arith.truncf %119 : vector<8x32xf32> to vector<8x32xbf16>
    %c0_50 = arith.constant 0 : index
    %c0_51 = arith.constant 0 : index
    %121 = vector.load %arg9[%c0_50, %c0_51] : memref<32x96xbf16, #tpu.memory_space<vmem>>, vector<32x96xbf16>
    %cst_52 = arith.constant dense<0.000000e+00> : vector<8x96xf32>
    %122 = tpu.matmul %120, %121, %cst_52 {dimension_numbers = #tpu.dot_dimension_numbers<[1], [0], [0], [1], [0, 0, 1, 1], [], []>} : vector<8x32xbf16>, vector<32x96xbf16>, vector<8x96xf32> -> vector<8x96xf32>
    %c0_53 = arith.constant 0 : index
    %c0_54 = arith.constant 0 : index
    %123 = vector.load %arg10[%c0_53, %c0_54] : memref<1x96xf32, #tpu.memory_space<vmem>>, vector<1x96xf32>
    %124 = vector.broadcast %123 : vector<1x96xf32> to vector<8x96xf32>
    %125 = arith.addf %122, %124 : vector<8x96xf32>
    %126 = arith.truncf %125 : vector<8x96xf32> to vector<8x96xbf16>
    %127 = vector.extract_strided_slice %126 {offsets = [0, 0], sizes = [8, 8], strides = [1, 1]} : vector<8x96xbf16> to vector<8x8xbf16>
    %128 = vector.extract_strided_slice %126 {offsets = [0, 32], sizes = [8, 8], strides = [1, 1]} : vector<8x96xbf16> to vector<8x8xbf16>
    %129 = vector.extract_strided_slice %126 {offsets = [0, 64], sizes = [8, 8], strides = [1, 1]} : vector<8x96xbf16> to vector<8x8xbf16>
    %cst_55 = arith.constant dense<0.000000e+00> : vector<8x8xf32>
    %130 = tpu.matmul %127, %128, %cst_55 {dimension_numbers = #tpu.dot_dimension_numbers<[1], [1], [0], [0], [0, 0, 1, 0], [], []>} : vector<8x8xbf16>, vector<8x8xbf16>, vector<8x8xf32> -> vector<8x8xf32>
    %cst_56 = arith.constant 0.353553385 : f32
    %131 = vector.broadcast %cst_56 : f32 to vector<8x8xf32>
    %132 = arith.mulf %130, %131 : vector<8x8xf32>
    %cst_57 = arith.constant dense<0xFF800000> : vector<8xf32>
    %133 = vector.multi_reduction <maximumf>, %132, %cst_57 [1] : vector<8x8xf32> to vector<8xf32>
    %134 = vector.shape_cast %133 : vector<8xf32> to vector<8x1xf32>
    %135 = vector.broadcast %134 : vector<8x1xf32> to vector<8x8xf32>
    %136 = arith.subf %132, %135 : vector<8x8xf32>
    %137 = math.exp %136 : vector<8x8xf32>
    %cst_58 = arith.constant dense<0.000000e+00> : vector<8xf32>
    %138 = vector.multi_reduction <add>, %137, %cst_58 [1] : vector<8x8xf32> to vector<8xf32>
    %139 = vector.shape_cast %138 : vector<8xf32> to vector<8x1xf32>
    %140 = tpu.reciprocal %139 {approx = true} : vector<8x1xf32> -> vector<8x1xf32>
    %141 = vector.broadcast %140 : vector<8x1xf32> to vector<8x8xf32>
    %142 = arith.mulf %137, %141 : vector<8x8xf32>
    %143 = arith.truncf %142 : vector<8x8xf32> to vector<8x8xbf16>
    %cst_59 = arith.constant dense<0.000000e+00> : vector<8x8xf32>
    %144 = tpu.matmul %143, %129, %cst_59 {dimension_numbers = #tpu.dot_dimension_numbers<[1], [0], [0], [1], [0, 0, 1, 1], [], []>} : vector<8x8xbf16>, vector<8x8xbf16>, vector<8x8xf32> -> vector<8x8xf32>
    %c0_60 = arith.constant 0 : index
    %c0_61 = arith.constant 0 : index
    %145 = vector.load %arg22[%c0_60, %c0_61] : memref<8x32xf32, #tpu.memory_space<vmem>>, vector<8x8xf32>
    tpu.vector_store %arg22[%c0_60, %c0_61], %144 {strides = array<i32>} : memref<8x32xf32, #tpu.memory_space<vmem>>, vector<8x8xf32>,
    %146 = vector.extract_strided_slice %126 {offsets = [0, 8], sizes = [8, 8], strides = [1, 1]} : vector<8x96xbf16> to vector<8x8xbf16>
    %147 = vector.extract_strided_slice %126 {offsets = [0, 40], sizes = [8, 8], strides = [1, 1]} : vector<8x96xbf16> to vector<8x8xbf16>
    %148 = vector.extract_strided_slice %126 {offsets = [0, 72], sizes = [8, 8], strides = [1, 1]} : vector<8x96xbf16> to vector<8x8xbf16>
    %cst_62 = arith.constant dense<0.000000e+00> : vector<8x8xf32>
    %149 = tpu.matmul %146, %147, %cst_62 {dimension_numbers = #tpu.dot_dimension_numbers<[1], [1], [0], [0], [0, 0, 1, 0], [], []>} : vector<8x8xbf16>, vector<8x8xbf16>, vector<8x8xf32> -> vector<8x8xf32>
    %cst_63 = arith.constant 0.353553385 : f32
    %150 = vector.broadcast %cst_63 : f32 to vector<8x8xf32>
    %151 = arith.mulf %149, %150 : vector<8x8xf32>
    %cst_64 = arith.constant dense<0xFF800000> : vector<8xf32>
    %152 = vector.multi_reduction <maximumf>, %151, %cst_64 [1] : vector<8x8xf32> to vector<8xf32>
    %153 = vector.shape_cast %152 : vector<8xf32> to vector<8x1xf32>
    %154 = vector.broadcast %153 : vector<8x1xf32> to vector<8x8xf32>
    %155 = arith.subf %151, %154 : vector<8x8xf32>
    %156 = math.exp %155 : vector<8x8xf32>
    %cst_65 = arith.constant dense<0.000000e+00> : vector<8xf32>
    %157 = vector.multi_reduction <add>, %156, %cst_65 [1] : vector<8x8xf32> to vector<8xf32>
    %158 = vector.shape_cast %157 : vector<8xf32> to vector<8x1xf32>
    %159 = tpu.reciprocal %158 {approx = true} : vector<8x1xf32> -> vector<8x1xf32>
    %160 = vector.broadcast %159 : vector<8x1xf32> to vector<8x8xf32>
    %161 = arith.mulf %156, %160 : vector<8x8xf32>
    %162 = arith.truncf %161 : vector<8x8xf32> to vector<8x8xbf16>
    %cst_66 = arith.constant dense<0.000000e+00> : vector<8x8xf32>
    %163 = tpu.matmul %162, %148, %cst_66 {dimension_numbers = #tpu.dot_dimension_numbers<[1], [0], [0], [1], [0, 0, 1, 1], [], []>} : vector<8x8xbf16>, vector<8x8xbf16>, vector<8x8xf32> -> vector<8x8xf32>
    %c0_67 = arith.constant 0 : index
    %c8_68 = arith.constant 8 : index
    %164 = vector.load %arg22[%c0_67, %c8_68] : memref<8x32xf32, #tpu.memory_space<vmem>>, vector<8x8xf32>
    tpu.vector_store %arg22[%c0_67, %c8_68], %163 {strides = array<i32>} : memref<8x32xf32, #tpu.memory_space<vmem>>, vector<8x8xf32>,
    %165 = vector.extract_strided_slice %126 {offsets = [0, 16], sizes = [8, 8], strides = [1, 1]} : vector<8x96xbf16> to vector<8x8xbf16>
    %166 = vector.extract_strided_slice %126 {offsets = [0, 48], sizes = [8, 8], strides = [1, 1]} : vector<8x96xbf16> to vector<8x8xbf16>
    %167 = vector.extract_strided_slice %126 {offsets = [0, 80], sizes = [8, 8], strides = [1, 1]} : vector<8x96xbf16> to vector<8x8xbf16>
    %cst_69 = arith.constant dense<0.000000e+00> : vector<8x8xf32>
    %168 = tpu.matmul %165, %166, %cst_69 {dimension_numbers = #tpu.dot_dimension_numbers<[1], [1], [0], [0], [0, 0, 1, 0], [], []>} : vector<8x8xbf16>, vector<8x8xbf16>, vector<8x8xf32> -> vector<8x8xf32>
    %cst_70 = arith.constant 0.353553385 : f32
    %169 = vector.broadcast %cst_70 : f32 to vector<8x8xf32>
    %170 = arith.mulf %168, %169 : vector<8x8xf32>
    %cst_71 = arith.constant dense<0xFF800000> : vector<8xf32>
    %171 = vector.multi_reduction <maximumf>, %170, %cst_71 [1] : vector<8x8xf32> to vector<8xf32>
    %172 = vector.shape_cast %171 : vector<8xf32> to vector<8x1xf32>
    %173 = vector.broadcast %172 : vector<8x1xf32> to vector<8x8xf32>
    %174 = arith.subf %170, %173 : vector<8x8xf32>
    %175 = math.exp %174 : vector<8x8xf32>
    %cst_72 = arith.constant dense<0.000000e+00> : vector<8xf32>
    %176 = vector.multi_reduction <add>, %175, %cst_72 [1] : vector<8x8xf32> to vector<8xf32>
    %177 = vector.shape_cast %176 : vector<8xf32> to vector<8x1xf32>
    %178 = tpu.reciprocal %177 {approx = true} : vector<8x1xf32> -> vector<8x1xf32>
    %179 = vector.broadcast %178 : vector<8x1xf32> to vector<8x8xf32>
    %180 = arith.mulf %175, %179 : vector<8x8xf32>
    %181 = arith.truncf %180 : vector<8x8xf32> to vector<8x8xbf16>
    %cst_73 = arith.constant dense<0.000000e+00> : vector<8x8xf32>
    %182 = tpu.matmul %181, %167, %cst_73 {dimension_numbers = #tpu.dot_dimension_numbers<[1], [0], [0], [1], [0, 0, 1, 1], [], []>} : vector<8x8xbf16>, vector<8x8xbf16>, vector<8x8xf32> -> vector<8x8xf32>
    %c0_74 = arith.constant 0 : index
    %c16_75 = arith.constant 16 : index
    %183 = vector.load %arg22[%c0_74, %c16_75] : memref<8x32xf32, #tpu.memory_space<vmem>>, vector<8x8xf32>
    tpu.vector_store %arg22[%c0_74, %c16_75], %182 {strides = array<i32>} : memref<8x32xf32, #tpu.memory_space<vmem>>, vector<8x8xf32>,
    %184 = vector.extract_strided_slice %126 {offsets = [0, 24], sizes = [8, 8], strides = [1, 1]} : vector<8x96xbf16> to vector<8x8xbf16>
    %185 = vector.extract_strided_slice %126 {offsets = [0, 56], sizes = [8, 8], strides = [1, 1]} : vector<8x96xbf16> to vector<8x8xbf16>
    %186 = vector.extract_strided_slice %126 {offsets = [0, 88], sizes = [8, 8], strides = [1, 1]} : vector<8x96xbf16> to vector<8x8xbf16>
    %cst_76 = arith.constant dense<0.000000e+00> : vector<8x8xf32>
    %187 = tpu.matmul %184, %185, %cst_76 {dimension_numbers = #tpu.dot_dimension_numbers<[1], [1], [0], [0], [0, 0, 1, 0], [], []>} : vector<8x8xbf16>, vector<8x8xbf16>, vector<8x8xf32> -> vector<8x8xf32>
    %cst_77 = arith.constant 0.353553385 : f32
    %188 = vector.broadcast %cst_77 : f32 to vector<8x8xf32>
    %189 = arith.mulf %187, %188 : vector<8x8xf32>
    %cst_78 = arith.constant dense<0xFF800000> : vector<8xf32>
    %190 = vector.multi_reduction <maximumf>, %189, %cst_78 [1] : vector<8x8xf32> to vector<8xf32>
    %191 = vector.shape_cast %190 : vector<8xf32> to vector<8x1xf32>
    %192 = vector.broadcast %191 : vector<8x1xf32> to vector<8x8xf32>
    %193 = arith.subf %189, %192 : vector<8x8xf32>
    %194 = math.exp %193 : vector<8x8xf32>
    %cst_79 = arith.constant dense<0.000000e+00> : vector<8xf32>
    %195 = vector.multi_reduction <add>, %194, %cst_79 [1] : vector<8x8xf32> to vector<8xf32>
    %196 = vector.shape_cast %195 : vector<8xf32> to vector<8x1xf32>
    %197 = tpu.reciprocal %196 {approx = true} : vector<8x1xf32> -> vector<8x1xf32>
    %198 = vector.broadcast %197 : vector<8x1xf32> to vector<8x8xf32>
    %199 = arith.mulf %194, %198 : vector<8x8xf32>
    %200 = arith.truncf %199 : vector<8x8xf32> to vector<8x8xbf16>
    %cst_80 = arith.constant dense<0.000000e+00> : vector<8x8xf32>
    %201 = tpu.matmul %200, %186, %cst_80 {dimension_numbers = #tpu.dot_dimension_numbers<[1], [0], [0], [1], [0, 0, 1, 1], [], []>} : vector<8x8xbf16>, vector<8x8xbf16>, vector<8x8xf32> -> vector<8x8xf32>
    %c0_81 = arith.constant 0 : index
    %c24_82 = arith.constant 24 : index
    %202 = vector.load %arg22[%c0_81, %c24_82] : memref<8x32xf32, #tpu.memory_space<vmem>>, vector<8x8xf32>
    tpu.vector_store %arg22[%c0_81, %c24_82], %201 {strides = array<i32>} : memref<8x32xf32, #tpu.memory_space<vmem>>, vector<8x8xf32>,
    %c0_83 = arith.constant 0 : index
    %c0_84 = arith.constant 0 : index
    %203 = vector.load %arg22[%c0_83, %c0_84] : memref<8x32xf32, #tpu.memory_space<vmem>>, vector<8x32xf32>
    %204 = arith.truncf %203 : vector<8x32xf32> to vector<8x32xbf16>
    %c0_85 = arith.constant 0 : index
    %c0_86 = arith.constant 0 : index
    %205 = vector.load %arg11[%c0_85, %c0_86] : memref<32x32xbf16, #tpu.memory_space<vmem>>, vector<32x32xbf16>
    %cst_87 = arith.constant dense<0.000000e+00> : vector<8x32xf32>
    %206 = tpu.matmul %204, %205, %cst_87 {dimension_numbers = #tpu.dot_dimension_numbers<[1], [0], [0], [1], [0, 0, 1, 1], [], []>} : vector<8x32xbf16>, vector<32x32xbf16>, vector<8x32xf32> -> vector<8x32xf32>
    %207 = arith.addf %119, %206 : vector<8x32xf32>
    %c0_88 = arith.constant 0 : index
    %c0_89 = arith.constant 0 : index
    %208 = vector.load %arg12[%c0_88, %c0_89] : memref<1x32xf32, #tpu.memory_space<vmem>>, vector<1x32xf32>
    %209 = vector.broadcast %208 : vector<1x32xf32> to vector<8x32xf32>
    %210 = arith.addf %207, %209 : vector<8x32xf32>
    %c0_90 = arith.constant 0 : index
    %c0_91 = arith.constant 0 : index
    %211 = vector.load %arg13[%c0_90, %c0_91] : memref<1x32xf32, #tpu.memory_space<vmem>>, vector<1x32xf32>
    %c0_92 = arith.constant 0 : index
    %c0_93 = arith.constant 0 : index
    %212 = vector.load %arg14[%c0_92, %c0_93] : memref<1x32xf32, #tpu.memory_space<vmem>>, vector<1x32xf32>
    %cst_94 = arith.constant dense<0.000000e+00> : vector<8xf32>
    %213 = vector.multi_reduction <add>, %210, %cst_94 [1] : vector<8x32xf32> to vector<8xf32>
    %214 = vector.shape_cast %213 : vector<8xf32> to vector<8x1xf32>
    %cst_95 = arith.constant 3.200000e+01 : f32
    %215 = vector.broadcast %cst_95 : f32 to vector<8x1xf32>
    %216 = arith.divf %214, %215 : vector<8x1xf32>
    %217 = vector.broadcast %216 : vector<8x1xf32> to vector<8x32xf32>
    %218 = arith.subf %210, %217 : vector<8x32xf32>
    %219 = arith.mulf %218, %218 : vector<8x32xf32>
    %cst_96 = arith.constant dense<0.000000e+00> : vector<8xf32>
    %220 = vector.multi_reduction <add>, %219, %cst_96 [1] : vector<8x32xf32> to vector<8xf32>
    %221 = vector.shape_cast %220 : vector<8xf32> to vector<8x1xf32>
    %cst_97 = arith.constant 3.200000e+01 : f32
    %222 = vector.broadcast %cst_97 : f32 to vector<8x1xf32>
    %223 = arith.divf %221, %222 : vector<8x1xf32>
    %224 = vector.broadcast %216 : vector<8x1xf32> to vector<8x32xf32>
    %225 = arith.subf %210, %224 : vector<8x32xf32>
    %cst_98 = arith.constant 9.99999974E-6 : f32
    %226 = vector.broadcast %cst_98 : f32 to vector<8x1xf32>
    %227 = arith.addf %223, %226 : vector<8x1xf32>
    %228 = math.rsqrt %227 : vector<8x1xf32>
    %229 = vector.broadcast %228 : vector<8x1xf32> to vector<8x32xf32>
    %230 = arith.mulf %225, %229 : vector<8x32xf32>
    %231 = vector.broadcast %211 : vector<1x32xf32> to vector<8x32xf32>
    %232 = arith.mulf %230, %231 : vector<8x32xf32>
    %233 = vector.broadcast %212 : vector<1x32xf32> to vector<8x32xf32>
    %234 = arith.addf %232, %233 : vector<8x32xf32>
    %235 = arith.truncf %234 : vector<8x32xf32> to vector<8x32xbf16>
    %c0_99 = arith.constant 0 : index
    %c0_100 = arith.constant 0 : index
    %236 = vector.load %arg15[%c0_99, %c0_100] : memref<32x64xbf16, #tpu.memory_space<vmem>>, vector<32x64xbf16>
    %cst_101 = arith.constant dense<0.000000e+00> : vector<8x64xf32>
    %237 = tpu.matmul %235, %236, %cst_101 {dimension_numbers = #tpu.dot_dimension_numbers<[1], [0], [0], [1], [0, 0, 1, 1], [], []>} : vector<8x32xbf16>, vector<32x64xbf16>, vector<8x64xf32> -> vector<8x64xf32>
    %c0_102 = arith.constant 0 : index
    %c0_103 = arith.constant 0 : index
    %238 = vector.load %arg16[%c0_102, %c0_103] : memref<1x64xf32, #tpu.memory_space<vmem>>, vector<1x64xf32>
    %239 = vector.broadcast %238 : vector<1x64xf32> to vector<8x64xf32>
    %240 = arith.addf %237, %239 : vector<8x64xf32>
    %cst_104 = arith.constant 5.000000e-01 : f32
    %241 = vector.broadcast %cst_104 : f32 to vector<8x64xf32>
    %242 = arith.mulf %241, %240 : vector<8x64xf32>
    %cst_105 = arith.constant 0.707106769 : f32
    %243 = vector.broadcast %cst_105 : f32 to vector<8x64xf32>
    %244 = arith.mulf %240, %243 : vector<8x64xf32>
    %245 = math.erf %244 : vector<8x64xf32>
    %cst_106 = arith.constant 1.000000e+00 : f32
    %246 = vector.broadcast %cst_106 : f32 to vector<8x64xf32>
    %247 = arith.addf %246, %245 : vector<8x64xf32>
    %248 = arith.mulf %242, %247 : vector<8x64xf32>
    %249 = arith.truncf %248 : vector<8x64xf32> to vector<8x64xbf16>
    %c0_107 = arith.constant 0 : index
    %c0_108 = arith.constant 0 : index
    %250 = vector.load %arg17[%c0_107, %c0_108] : memref<64x32xbf16, #tpu.memory_space<vmem>>, vector<64x32xbf16>
    %cst_109 = arith.constant dense<0.000000e+00> : vector<8x32xf32>
    %251 = tpu.matmul %249, %250, %cst_109 {dimension_numbers = #tpu.dot_dimension_numbers<[1], [0], [0], [1], [0, 0, 1, 1], [], []>} : vector<8x64xbf16>, vector<64x32xbf16>, vector<8x32xf32> -> vector<8x32xf32>
    %252 = arith.addf %234, %251 : vector<8x32xf32>
    %c0_110 = arith.constant 0 : index
    %c0_111 = arith.constant 0 : index
    %253 = vector.load %arg18[%c0_110, %c0_111] : memref<1x32xf32, #tpu.memory_space<vmem>>, vector<1x32xf32>
    %254 = vector.broadcast %253 : vector<1x32xf32> to vector<8x32xf32>
    %255 = arith.addf %252, %254 : vector<8x32xf32>
    %c0_112 = arith.constant 0 : index
    %c0_113 = arith.constant 0 : index
    %256 = vector.load %arg19[%c0_112, %c0_113] : memref<1x32xf32, #tpu.memory_space<vmem>>, vector<1x32xf32>
    %c0_114 = arith.constant 0 : index
    %c0_115 = arith.constant 0 : index
    %257 = vector.load %arg20[%c0_114, %c0_115] : memref<1x32xf32, #tpu.memory_space<vmem>>, vector<1x32xf32>
    %cst_116 = arith.constant dense<0.000000e+00> : vector<8xf32>
    %258 = vector.multi_reduction <add>, %255, %cst_116 [1] : vector<8x32xf32> to vector<8xf32>
    %259 = vector.shape_cast %258 : vector<8xf32> to vector<8x1xf32>
    %cst_117 = arith.constant 3.200000e+01 : f32
    %260 = vector.broadcast %cst_117 : f32 to vector<8x1xf32>
    %261 = arith.divf %259, %260 : vector<8x1xf32>
    %262 = vector.broadcast %261 : vector<8x1xf32> to vector<8x32xf32>
    %263 = arith.subf %255, %262 : vector<8x32xf32>
    %264 = arith.mulf %263, %263 : vector<8x32xf32>
    %cst_118 = arith.constant dense<0.000000e+00> : vector<8xf32>
    %265 = vector.multi_reduction <add>, %264, %cst_118 [1] : vector<8x32xf32> to vector<8xf32>
    %266 = vector.shape_cast %265 : vector<8xf32> to vector<8x1xf32>
    %cst_119 = arith.constant 3.200000e+01 : f32
    %267 = vector.broadcast %cst_119 : f32 to vector<8x1xf32>
    %268 = arith.divf %266, %267 : vector<8x1xf32>
    %269 = vector.broadcast %261 : vector<8x1xf32> to vector<8x32xf32>
    %270 = arith.subf %255, %269 : vector<8x32xf32>
    %cst_120 = arith.constant 9.99999974E-6 : f32
    %271 = vector.broadcast %cst_120 : f32 to vector<8x1xf32>
    %272 = arith.addf %268, %271 : vector<8x1xf32>
    %273 = math.rsqrt %272 : vector<8x1xf32>
    %274 = vector.broadcast %273 : vector<8x1xf32> to vector<8x32xf32>
    %275 = arith.mulf %270, %274 : vector<8x32xf32>
    %276 = vector.broadcast %256 : vector<1x32xf32> to vector<8x32xf32>
    %277 = arith.mulf %275, %276 : vector<8x32xf32>
    %278 = vector.broadcast %257 : vector<1x32xf32> to vector<8x32xf32>
    %279 = arith.addf %277, %278 : vector<8x32xf32>
    %280 = vector.shape_cast %279 : vector<8x32xf32> to vector<1x8x32xf32>
    %281 = arith.truncf %280 : vector<1x8x32xf32> to vector<1x8x32xbf16>
    %c0_121 = arith.constant 0 : index
    %c0_122 = arith.constant 0 : index
    %c0_123 = arith.constant 0 : index
    %282 = vector.load %arg21[%c0_121, %c0_122, %c0_123] : memref<1x8x32xbf16, #tpu.memory_space<vmem>>, vector<1x8x32xbf16>
    tpu.vector_store %arg21[%c0_121, %c0_122, %c0_123], %281 {strides = array<i32>} : memref<1x8x32xbf16, #tpu.memory_space<vmem>>, vector<1x8x32xbf16>,
    return
  }
  func.func @transform_0(%arg0: i32) -> (i32, i32, i32) {
    %c0_i32 = arith.constant 0 : i32
    %c0_i32_0 = arith.constant 0 : i32
    %c0_i32_1 = arith.constant 0 : i32
    return %arg0, %c0_i32, %c0_i32_0 : i32, i32, i32
  }
  func.func @transform_1(%arg0: i32) -> (i32, i32, i32) {
    %c0_i32 = arith.constant 0 : i32
    %c0_i32_0 = arith.constant 0 : i32
    %c0_i32_1 = arith.constant 0 : i32
    return %arg0, %c0_i32, %c0_i32_0 : i32, i32, i32
  }
  func.func @transform_2(%arg0: i32) -> (i32, i32) {
    %c0_i32 = arith.constant 0 : i32
    %c0_i32_0 = arith.constant 0 : i32
    %c0_i32_1 = arith.constant 0 : i32
    return %c0_i32, %c0_i32_0 : i32, i32
  }
  func.func @transform_3(%arg0: i32) -> (i32, i32) {
    %c0_i32 = arith.constant 0 : i32
    %c0_i32_0 = arith.constant 0 : i32
    %c0_i32_1 = arith.constant 0 : i32
    return %c0_i32, %c0_i32_0 : i32, i32
  }
  func.func @transform_4(%arg0: i32) -> (i32, i32) {
    %c0_i32 = arith.constant 0 : i32
    %c0_i32_0 = arith.constant 0 : i32
    %c0_i32_1 = arith.constant 0 : i32
    return %c0_i32, %c0_i32_0 : i32, i32
  }
  func.func @transform_5(%arg0: i32) -> (i32, i32) {
    %c0_i32 = arith.constant 0 : i32
    %c0_i32_0 = arith.constant 0 : i32
    %c0_i32_1 = arith.constant 0 : i32
    return %c0_i32, %c0_i32_0 : i32, i32
  }
  func.func @transform_6(%arg0: i32) -> (i32, i32) {
    %c0_i32 = arith.constant 0 : i32
    %c0_i32_0 = arith.constant 0 : i32
    %c0_i32_1 = arith.constant 0 : i32
    return %c0_i32, %c0_i32_0 : i32, i32
  }
  func.func @transform_7(%arg0: i32) -> (i32, i32) {
    %c0_i32 = arith.constant 0 : i32
    %c0_i32_0 = arith.constant 0 : i32
    %c0_i32_1 = arith.constant 0 : i32
    return %c0_i32, %c0_i32_0 : i32, i32
  }
  func.func @transform_8(%arg0: i32) -> (i32, i32) {
    %c0_i32 = arith.constant 0 : i32
    %c0_i32_0 = arith.constant 0 : i32
    %c0_i32_1 = arith.constant 0 : i32
    return %c0_i32, %c0_i32_0 : i32, i32
  }
  func.func @transform_9(%arg0: i32) -> (i32, i32) {
    %c0_i32 = arith.constant 0 : i32
    %c0_i32_0 = arith.constant 0 : i32
    %c0_i32_1 = arith.constant 0 : i32
    return %c0_i32, %c0_i32_0 : i32, i32
  }
  func.func @transform_10(%arg0: i32) -> (i32, i32) {
    %c0_i32 = arith.constant 0 : i32
    %c0_i32_0 = arith.constant 0 : i32
    %c0_i32_1 = arith.constant 0 : i32
    return %c0_i32, %c0_i32_0 : i32, i32
  }
  func.func @transform_11(%arg0: i32) -> (i32, i32) {
    %c0_i32 = arith.constant 0 : i32
    %c0_i32_0 = arith.constant 0 : i32
    %c0_i32_1 = arith.constant 0 : i32
    return %c0_i32, %c0_i32_0 : i32, i32
  }
  func.func @transform_12(%arg0: i32) -> (i32, i32) {
    %c0_i32 = arith.constant 0 : i32
    %c0_i32_0 = arith.constant 0 : i32
    %c0_i32_1 = arith.constant 0 : i32
    return %c0_i32, %c0_i32_0 : i32, i32
  }
  func.func @transform_13(%arg0: i32) -> (i32, i32) {
    %c0_i32 = arith.constant 0 : i32
    %c0_i32_0 = arith.constant 0 : i32
    %c0_i32_1 = arith.constant 0 : i32
    return %c0_i32, %c0_i32_0 : i32, i32
  }
  func.func @transform_14(%arg0: i32) -> (i32, i32) {
    %c0_i32 = arith.constant 0 : i32
    %c0_i32_0 = arith.constant 0 : i32
    %c0_i32_1 = arith.constant 0 : i32
    return %c0_i32, %c0_i32_0 : i32, i32
  }
  func.func @transform_15(%arg0: i32) -> (i32, i32) {
    %c0_i32 = arith.constant 0 : i32
    %c0_i32_0 = arith.constant 0 : i32
    %c0_i32_1 = arith.constant 0 : i32
    return %c0_i32, %c0_i32_0 : i32, i32
  }
  func.func @transform_16(%arg0: i32) -> (i32, i32) {
    %c0_i32 = arith.constant 0 : i32
    %c0_i32_0 = arith.constant 0 : i32
    %c0_i32_1 = arith.constant 0 : i32
    return %c0_i32, %c0_i32_0 : i32, i32
  }
  func.func @transform_17(%arg0: i32) -> (i32, i32) {
    %c0_i32 = arith.constant 0 : i32
    %c0_i32_0 = arith.constant 0 : i32
    %c0_i32_1 = arith.constant 0 : i32
    return %c0_i32, %c0_i32_0 : i32, i32
  }
  func.func @transform_18(%arg0: i32) -> (i32, i32) {
    %c0_i32 = arith.constant 0 : i32
    %c0_i32_0 = arith.constant 0 : i32
    %c0_i32_1 = arith.constant 0 : i32
    return %c0_i32, %c0_i32_0 : i32, i32
  }
  func.func @transform_19(%arg0: i32) -> (i32, i32) {
    %c0_i32 = arith.constant 0 : i32
    %c0_i32_0 = arith.constant 0 : i32
    %c0_i32_1 = arith.constant 0 : i32
    return %c0_i32, %c0_i32_0 : i32, i32
  }
  func.func @transform_20(%arg0: i32) -> (i32, i32, i32) {
    %c0_i32 = arith.constant 0 : i32
    %c0_i32_0 = arith.constant 0 : i32
    %c0_i32_1 = arith.constant 0 : i32
    return %arg0, %c0_i32, %c0_i32_0 : i32, i32, i32
  }
}

module attributes {stable_mosaic.version = 11 : i64} {
  func.func @_fused_matmul_kernel(%arg0: i32, %arg1: i32, %arg2: i32, %arg3: memref<8x32xbf16, #tpu.memory_space<vmem>>, %arg4: memref<32x64xbf16, #tpu.memory_space<vmem>>, %arg5: memref<1x64xf32, #tpu.memory_space<vmem>>, %arg6: memref<8x64xbf16, #tpu.memory_space<vmem>>) attributes {dimension_semantics = [#tpu.dimension_semantics<parallel>, #tpu.dimension_semantics<parallel>, #tpu.dimension_semantics<arbitrary>], iteration_bounds = array<i64: 2, 1, 1>, scalar_prefetch = 0 : i64, scratch_operands = 0 : i64, tpu.core_type = #tpu.core_type<tc>, window_params = [{transform_indices = @transform_0, window_bounds = array<i64: 8, 32>}, {transform_indices = @transform_1, window_bounds = array<i64: 32, 64>}, {transform_indices = @transform_2, window_bounds = array<i64: 1, 64>}, {transform_indices = @transform_3, window_bounds = array<i64: 8, 64>}]} {
    %c0 = arith.constant 0 : index
    %c0_0 = arith.constant 0 : index
    %0 = vector.load %arg3[%c0, %c0_0] : memref<8x32xbf16, #tpu.memory_space<vmem>>, vector<8x32xbf16>
    %c0_1 = arith.constant 0 : index
    %c0_2 = arith.constant 0 : index
    %1 = vector.load %arg4[%c0_1, %c0_2] : memref<32x64xbf16, #tpu.memory_space<vmem>>, vector<32x64xbf16>
    %cst = arith.constant dense<0.000000e+00> : vector<8x64xf32>
    %2 = tpu.matmul %0, %1, %cst {dimension_numbers = #tpu.dot_dimension_numbers<[1], [0], [0], [1], [0, 0, 1, 1], [], []>} : vector<8x32xbf16>, vector<32x64xbf16>, vector<8x64xf32> -> vector<8x64xf32>
    %c0_3 = arith.constant 0 : index
    %c0_4 = arith.constant 0 : index
    %3 = vector.load %arg5[%c0_3, %c0_4] : memref<1x64xf32, #tpu.memory_space<vmem>>, vector<1x64xf32>
    %4 = vector.broadcast %3 : vector<1x64xf32> to vector<8x64xf32>
    %5 = arith.addf %2, %4 : vector<8x64xf32>
    %6 = arith.truncf %5 : vector<8x64xf32> to vector<8x64xbf16>
    %c0_5 = arith.constant 0 : index
    %c0_6 = arith.constant 0 : index
    %7 = vector.load %arg6[%c0_5, %c0_6] : memref<8x64xbf16, #tpu.memory_space<vmem>>, vector<8x64xbf16>
    tpu.vector_store %arg6[%c0_5, %c0_6], %6 {strides = array<i32>} : memref<8x64xbf16, #tpu.memory_space<vmem>>, vector<8x64xbf16>,
    return
  }
  func.func @transform_0(%arg0: i32, %arg1: i32, %arg2: i32) -> (i32, i32) {
    %c0_i32 = arith.constant 0 : i32
    return %arg0, %arg2 : i32, i32
  }
  func.func @transform_1(%arg0: i32, %arg1: i32, %arg2: i32) -> (i32, i32) {
    %c0_i32 = arith.constant 0 : i32
    return %arg2, %arg1 : i32, i32
  }
  func.func @transform_2(%arg0: i32, %arg1: i32, %arg2: i32) -> (i32, i32) {
    %c0_i32 = arith.constant 0 : i32
    %c0_i32_0 = arith.constant 0 : i32
    return %c0_i32, %arg1 : i32, i32
  }
  func.func @transform_3(%arg0: i32, %arg1: i32, %arg2: i32) -> (i32, i32) {
    %c0_i32 = arith.constant 0 : i32
    return %arg0, %arg1 : i32, i32
  }
}

module attributes {stable_mosaic.version = 11 : i64} {
  func.func @_fused_matmul_kernel(%arg0: i32, %arg1: i32, %arg2: i32, %arg3: memref<16x32xbf16, #tpu.memory_space<vmem>>, %arg4: memref<32x32xbf16, #tpu.memory_space<vmem>>, %arg5: memref<1x32xf32, #tpu.memory_space<vmem>>, %arg6: memref<16x32xbf16, #tpu.memory_space<vmem>>) attributes {dimension_semantics = [#tpu.dimension_semantics<parallel>, #tpu.dimension_semantics<parallel>, #tpu.dimension_semantics<arbitrary>], iteration_bounds = array<i64: 2, 1, 1>, scalar_prefetch = 0 : i64, scratch_operands = 0 : i64, tpu.core_type = #tpu.core_type<tc>, window_params = [{transform_indices = @transform_0, window_bounds = array<i64: 16, 32>}, {transform_indices = @transform_1, window_bounds = array<i64: 32, 32>}, {transform_indices = @transform_2, window_bounds = array<i64: 1, 32>}, {transform_indices = @transform_3, window_bounds = array<i64: 16, 32>}]} {
    %c0 = arith.constant 0 : index
    %c0_0 = arith.constant 0 : index
    %0 = vector.load %arg3[%c0, %c0_0] : memref<16x32xbf16, #tpu.memory_space<vmem>>, vector<16x32xbf16>
    %c0_1 = arith.constant 0 : index
    %c0_2 = arith.constant 0 : index
    %1 = vector.load %arg4[%c0_1, %c0_2] : memref<32x32xbf16, #tpu.memory_space<vmem>>, vector<32x32xbf16>
    %cst = arith.constant dense<0.000000e+00> : vector<16x32xf32>
    %2 = tpu.matmul %0, %1, %cst {dimension_numbers = #tpu.dot_dimension_numbers<[1], [0], [0], [1], [0, 0, 1, 1], [], []>} : vector<16x32xbf16>, vector<32x32xbf16>, vector<16x32xf32> -> vector<16x32xf32>
    %c0_3 = arith.constant 0 : index
    %c0_4 = arith.constant 0 : index
    %3 = vector.load %arg5[%c0_3, %c0_4] : memref<1x32xf32, #tpu.memory_space<vmem>>, vector<1x32xf32>
    %4 = vector.broadcast %3 : vector<1x32xf32> to vector<16x32xf32>
    %5 = arith.addf %2, %4 : vector<16x32xf32>
    %6 = arith.truncf %5 : vector<16x32xf32> to vector<16x32xbf16>
    %c0_5 = arith.constant 0 : index
    %c0_6 = arith.constant 0 : index
    %7 = vector.load %arg6[%c0_5, %c0_6] : memref<16x32xbf16, #tpu.memory_space<vmem>>, vector<16x32xbf16>
    tpu.vector_store %arg6[%c0_5, %c0_6], %6 {strides = array<i32>} : memref<16x32xbf16, #tpu.memory_space<vmem>>, vector<16x32xbf16>,
    return
  }
  func.func @transform_0(%arg0: i32, %arg1: i32, %arg2: i32) -> (i32, i32) {
    %c0_i32 = arith.constant 0 : i32
    return %arg0, %arg2 : i32, i32
  }
  func.func @transform_1(%arg0: i32, %arg1: i32, %arg2: i32) -> (i32, i32) {
    %c0_i32 = arith.constant 0 : i32
    return %arg2, %arg1 : i32, i32
  }
  func.func @transform_2(%arg0: i32, %arg1: i32, %arg2: i32) -> (i32, i32) {
    %c0_i32 = arith.constant 0 : i32
    %c0_i32_0 = arith.constant 0 : i32
    return %c0_i32, %arg1 : i32, i32
  }
  func.func @transform_3(%arg0: i32, %arg1: i32, %arg2: i32) -> (i32, i32) {
    %c0_i32 = arith.constant 0 : i32
    return %arg0, %arg1 : i32, i32
  }
}

module attributes {stable_mosaic.version = 11 : i64} {
  func.func @_cross_attn_kernel(%arg0: i32, %arg1: memref<1x16x32xbf16, #tpu.memory_space<vmem>>, %arg2: memref<1x8x64xbf16, #tpu.memory_space<vmem>>, %arg3: memref<1x16x32xbf16, #tpu.memory_space<vmem>>) attributes {dimension_semantics = [#tpu.dimension_semantics<parallel>], iteration_bounds = array<i64: 2>, scalar_prefetch = 0 : i64, scratch_operands = 0 : i64, tpu.core_type = #tpu.core_type<tc>, window_params = [{transform_indices = @transform_0, window_bounds = array<i64: 1, 16, 32>}, {transform_indices = @transform_1, window_bounds = array<i64: 1, 8, 64>}, {transform_indices = @transform_2, window_bounds = array<i64: 1, 16, 32>}]} {
    %c0 = arith.constant 0 : index
    %c0_0 = arith.constant 0 : index
    %c0_1 = arith.constant 0 : index
    %0 = vector.load %arg1[%c0, %c0_0, %c0_1] : memref<1x16x32xbf16, #tpu.memory_space<vmem>>, vector<1x16x32xbf16>
    %1 = vector.shape_cast %0 : vector<1x16x32xbf16> to vector<16x32xbf16>
    %c0_2 = arith.constant 0 : index
    %c0_3 = arith.constant 0 : index
    %c0_4 = arith.constant 0 : index
    %2 = vector.load %arg2[%c0_2, %c0_3, %c0_4] : memref<1x8x64xbf16, #tpu.memory_space<vmem>>, vector<1x8x64xbf16>
    %3 = vector.shape_cast %2 : vector<1x8x64xbf16> to vector<8x64xbf16>
    %4 = vector.extract_strided_slice %1 {offsets = [0, 0], sizes = [16, 8], strides = [1, 1]} : vector<16x32xbf16> to vector<16x8xbf16>
    %5 = vector.extract_strided_slice %3 {offsets = [0, 0], sizes = [8, 8], strides = [1, 1]} : vector<8x64xbf16> to vector<8x8xbf16>
    %6 = vector.extract_strided_slice %3 {offsets = [0, 32], sizes = [8, 8], strides = [1, 1]} : vector<8x64xbf16> to vector<8x8xbf16>
    %cst = arith.constant dense<0.000000e+00> : vector<16x8xf32>
    %7 = tpu.matmul %4, %5, %cst {dimension_numbers = #tpu.dot_dimension_numbers<[1], [1], [0], [0], [0, 0, 1, 0], [], []>} : vector<16x8xbf16>, vector<8x8xbf16>, vector<16x8xf32> -> vector<16x8xf32>
    %cst_5 = arith.constant 0.353553385 : f32
    %8 = vector.broadcast %cst_5 : f32 to vector<16x8xf32>
    %9 = arith.mulf %7, %8 : vector<16x8xf32>
    %cst_6 = arith.constant dense<0xFF800000> : vector<16xf32>
    %10 = vector.multi_reduction <maximumf>, %9, %cst_6 [1] : vector<16x8xf32> to vector<16xf32>
    %11 = vector.shape_cast %10 : vector<16xf32> to vector<16x1xf32>
    %12 = vector.broadcast %11 : vector<16x1xf32> to vector<16x8xf32>
    %13 = arith.subf %9, %12 : vector<16x8xf32>
    %14 = math.exp %13 : vector<16x8xf32>
    %cst_7 = arith.constant dense<0.000000e+00> : vector<16xf32>
    %15 = vector.multi_reduction <add>, %14, %cst_7 [1] : vector<16x8xf32> to vector<16xf32>
    %16 = vector.shape_cast %15 : vector<16xf32> to vector<16x1xf32>
    %17 = tpu.reciprocal %16 {approx = true} : vector<16x1xf32> -> vector<16x1xf32>
    %18 = vector.broadcast %17 : vector<16x1xf32> to vector<16x8xf32>
    %19 = arith.mulf %14, %18 : vector<16x8xf32>
    %20 = arith.truncf %19 : vector<16x8xf32> to vector<16x8xbf16>
    %cst_8 = arith.constant dense<0.000000e+00> : vector<16x8xf32>
    %21 = tpu.matmul %20, %6, %cst_8 {dimension_numbers = #tpu.dot_dimension_numbers<[1], [0], [0], [1], [0, 0, 1, 1], [], []>} : vector<16x8xbf16>, vector<8x8xbf16>, vector<16x8xf32> -> vector<16x8xf32>
    %22 = vector.shape_cast %21 : vector<16x8xf32> to vector<1x16x8xf32>
    %23 = arith.truncf %22 : vector<1x16x8xf32> to vector<1x16x8xbf16>
    %c0_9 = arith.constant 0 : index
    %c0_10 = arith.constant 0 : index
    %c0_11 = arith.constant 0 : index
    %24 = vector.load %arg3[%c0_9, %c0_10, %c0_11] : memref<1x16x32xbf16, #tpu.memory_space<vmem>>, vector<1x16x8xbf16>
    tpu.vector_store %arg3[%c0_9, %c0_10, %c0_11], %23 {strides = array<i32>} : memref<1x16x32xbf16, #tpu.memory_space<vmem>>, vector<1x16x8xbf16>,
    %25 = vector.extract_strided_slice %1 {offsets = [0, 8], sizes = [16, 8], strides = [1, 1]} : vector<16x32xbf16> to vector<16x8xbf16>
    %26 = vector.extract_strided_slice %3 {offsets = [0, 8], sizes = [8, 8], strides = [1, 1]} : vector<8x64xbf16> to vector<8x8xbf16>
    %27 = vector.extract_strided_slice %3 {offsets = [0, 40], sizes = [8, 8], strides = [1, 1]} : vector<8x64xbf16> to vector<8x8xbf16>
    %cst_12 = arith.constant dense<0.000000e+00> : vector<16x8xf32>
    %28 = tpu.matmul %25, %26, %cst_12 {dimension_numbers = #tpu.dot_dimension_numbers<[1], [1], [0], [0], [0, 0, 1, 0], [], []>} : vector<16x8xbf16>, vector<8x8xbf16>, vector<16x8xf32> -> vector<16x8xf32>
    %cst_13 = arith.constant 0.353553385 : f32
    %29 = vector.broadcast %cst_13 : f32 to vector<16x8xf32>
    %30 = arith.mulf %28, %29 : vector<16x8xf32>
    %cst_14 = arith.constant dense<0xFF800000> : vector<16xf32>
    %31 = vector.multi_reduction <maximumf>, %30, %cst_14 [1] : vector<16x8xf32> to vector<16xf32>
    %32 = vector.shape_cast %31 : vector<16xf32> to vector<16x1xf32>
    %33 = vector.broadcast %32 : vector<16x1xf32> to vector<16x8xf32>
    %34 = arith.subf %30, %33 : vector<16x8xf32>
    %35 = math.exp %34 : vector<16x8xf32>
    %cst_15 = arith.constant dense<0.000000e+00> : vector<16xf32>
    %36 = vector.multi_reduction <add>, %35, %cst_15 [1] : vector<16x8xf32> to vector<16xf32>
    %37 = vector.shape_cast %36 : vector<16xf32> to vector<16x1xf32>
    %38 = tpu.reciprocal %37 {approx = true} : vector<16x1xf32> -> vector<16x1xf32>
    %39 = vector.broadcast %38 : vector<16x1xf32> to vector<16x8xf32>
    %40 = arith.mulf %35, %39 : vector<16x8xf32>
    %41 = arith.truncf %40 : vector<16x8xf32> to vector<16x8xbf16>
    %cst_16 = arith.constant dense<0.000000e+00> : vector<16x8xf32>
    %42 = tpu.matmul %41, %27, %cst_16 {dimension_numbers = #tpu.dot_dimension_numbers<[1], [0], [0], [1], [0, 0, 1, 1], [], []>} : vector<16x8xbf16>, vector<8x8xbf16>, vector<16x8xf32> -> vector<16x8xf32>
    %43 = vector.shape_cast %42 : vector<16x8xf32> to vector<1x16x8xf32>
    %44 = arith.truncf %43 : vector<1x16x8xf32> to vector<1x16x8xbf16>
    %c0_17 = arith.constant 0 : index
    %c0_18 = arith.constant 0 : index
    %c8 = arith.constant 8 : index
    %45 = vector.load %arg3[%c0_17, %c0_18, %c8] : memref<1x16x32xbf16, #tpu.memory_space<vmem>>, vector<1x16x8xbf16>
    tpu.vector_store %arg3[%c0_17, %c0_18, %c8], %44 {strides = array<i32>} : memref<1x16x32xbf16, #tpu.memory_space<vmem>>, vector<1x16x8xbf16>,
    %46 = vector.extract_strided_slice %1 {offsets = [0, 16], sizes = [16, 8], strides = [1, 1]} : vector<16x32xbf16> to vector<16x8xbf16>
    %47 = vector.extract_strided_slice %3 {offsets = [0, 16], sizes = [8, 8], strides = [1, 1]} : vector<8x64xbf16> to vector<8x8xbf16>
    %48 = vector.extract_strided_slice %3 {offsets = [0, 48], sizes = [8, 8], strides = [1, 1]} : vector<8x64xbf16> to vector<8x8xbf16>
    %cst_19 = arith.constant dense<0.000000e+00> : vector<16x8xf32>
    %49 = tpu.matmul %46, %47, %cst_19 {dimension_numbers = #tpu.dot_dimension_numbers<[1], [1], [0], [0], [0, 0, 1, 0], [], []>} : vector<16x8xbf16>, vector<8x8xbf16>, vector<16x8xf32> -> vector<16x8xf32>
    %cst_20 = arith.constant 0.353553385 : f32
    %50 = vector.broadcast %cst_20 : f32 to vector<16x8xf32>
    %51 = arith.mulf %49, %50 : vector<16x8xf32>
    %cst_21 = arith.constant dense<0xFF800000> : vector<16xf32>
    %52 = vector.multi_reduction <maximumf>, %51, %cst_21 [1] : vector<16x8xf32> to vector<16xf32>
    %53 = vector.shape_cast %52 : vector<16xf32> to vector<16x1xf32>
    %54 = vector.broadcast %53 : vector<16x1xf32> to vector<16x8xf32>
    %55 = arith.subf %51, %54 : vector<16x8xf32>
    %56 = math.exp %55 : vector<16x8xf32>
    %cst_22 = arith.constant dense<0.000000e+00> : vector<16xf32>
    %57 = vector.multi_reduction <add>, %56, %cst_22 [1] : vector<16x8xf32> to vector<16xf32>
    %58 = vector.shape_cast %57 : vector<16xf32> to vector<16x1xf32>
    %59 = tpu.reciprocal %58 {approx = true} : vector<16x1xf32> -> vector<16x1xf32>
    %60 = vector.broadcast %59 : vector<16x1xf32> to vector<16x8xf32>
    %61 = arith.mulf %56, %60 : vector<16x8xf32>
    %62 = arith.truncf %61 : vector<16x8xf32> to vector<16x8xbf16>
    %cst_23 = arith.constant dense<0.000000e+00> : vector<16x8xf32>
    %63 = tpu.matmul %62, %48, %cst_23 {dimension_numbers = #tpu.dot_dimension_numbers<[1], [0], [0], [1], [0, 0, 1, 1], [], []>} : vector<16x8xbf16>, vector<8x8xbf16>, vector<16x8xf32> -> vector<16x8xf32>
    %64 = vector.shape_cast %63 : vector<16x8xf32> to vector<1x16x8xf32>
    %65 = arith.truncf %64 : vector<1x16x8xf32> to vector<1x16x8xbf16>
    %c0_24 = arith.constant 0 : index
    %c0_25 = arith.constant 0 : index
    %c16 = arith.constant 16 : index
    %66 = vector.load %arg3[%c0_24, %c0_25, %c16] : memref<1x16x32xbf16, #tpu.memory_space<vmem>>, vector<1x16x8xbf16>
    tpu.vector_store %arg3[%c0_24, %c0_25, %c16], %65 {strides = array<i32>} : memref<1x16x32xbf16, #tpu.memory_space<vmem>>, vector<1x16x8xbf16>,
    %67 = vector.extract_strided_slice %1 {offsets = [0, 24], sizes = [16, 8], strides = [1, 1]} : vector<16x32xbf16> to vector<16x8xbf16>
    %68 = vector.extract_strided_slice %3 {offsets = [0, 24], sizes = [8, 8], strides = [1, 1]} : vector<8x64xbf16> to vector<8x8xbf16>
    %69 = vector.extract_strided_slice %3 {offsets = [0, 56], sizes = [8, 8], strides = [1, 1]} : vector<8x64xbf16> to vector<8x8xbf16>
    %cst_26 = arith.constant dense<0.000000e+00> : vector<16x8xf32>
    %70 = tpu.matmul %67, %68, %cst_26 {dimension_numbers = #tpu.dot_dimension_numbers<[1], [1], [0], [0], [0, 0, 1, 0], [], []>} : vector<16x8xbf16>, vector<8x8xbf16>, vector<16x8xf32> -> vector<16x8xf32>
    %cst_27 = arith.constant 0.353553385 : f32
    %71 = vector.broadcast %cst_27 : f32 to vector<16x8xf32>
    %72 = arith.mulf %70, %71 : vector<16x8xf32>
    %cst_28 = arith.constant dense<0xFF800000> : vector<16xf32>
    %73 = vector.multi_reduction <maximumf>, %72, %cst_28 [1] : vector<16x8xf32> to vector<16xf32>
    %74 = vector.shape_cast %73 : vector<16xf32> to vector<16x1xf32>
    %75 = vector.broadcast %74 : vector<16x1xf32> to vector<16x8xf32>
    %76 = arith.subf %72, %75 : vector<16x8xf32>
    %77 = math.exp %76 : vector<16x8xf32>
    %cst_29 = arith.constant dense<0.000000e+00> : vector<16xf32>
    %78 = vector.multi_reduction <add>, %77, %cst_29 [1] : vector<16x8xf32> to vector<16xf32>
    %79 = vector.shape_cast %78 : vector<16xf32> to vector<16x1xf32>
    %80 = tpu.reciprocal %79 {approx = true} : vector<16x1xf32> -> vector<16x1xf32>
    %81 = vector.broadcast %80 : vector<16x1xf32> to vector<16x8xf32>
    %82 = arith.mulf %77, %81 : vector<16x8xf32>
    %83 = arith.truncf %82 : vector<16x8xf32> to vector<16x8xbf16>
    %cst_30 = arith.constant dense<0.000000e+00> : vector<16x8xf32>
    %84 = tpu.matmul %83, %69, %cst_30 {dimension_numbers = #tpu.dot_dimension_numbers<[1], [0], [0], [1], [0, 0, 1, 1], [], []>} : vector<16x8xbf16>, vector<8x8xbf16>, vector<16x8xf32> -> vector<16x8xf32>
    %85 = vector.shape_cast %84 : vector<16x8xf32> to vector<1x16x8xf32>
    %86 = arith.truncf %85 : vector<1x16x8xf32> to vector<1x16x8xbf16>
    %c0_31 = arith.constant 0 : index
    %c0_32 = arith.constant 0 : index
    %c24 = arith.constant 24 : index
    %87 = vector.load %arg3[%c0_31, %c0_32, %c24] : memref<1x16x32xbf16, #tpu.memory_space<vmem>>, vector<1x16x8xbf16>
    tpu.vector_store %arg3[%c0_31, %c0_32, %c24], %86 {strides = array<i32>} : memref<1x16x32xbf16, #tpu.memory_space<vmem>>, vector<1x16x8xbf16>,
    return
  }
  func.func @transform_0(%arg0: i32) -> (i32, i32, i32) {
    %c0_i32 = arith.constant 0 : i32
    %c0_i32_0 = arith.constant 0 : i32
    %c0_i32_1 = arith.constant 0 : i32
    return %arg0, %c0_i32, %c0_i32_0 : i32, i32, i32
  }
  func.func @transform_1(%arg0: i32) -> (i32, i32, i32) {
    %c0_i32 = arith.constant 0 : i32
    %c0_i32_0 = arith.constant 0 : i32
    %c0_i32_1 = arith.constant 0 : i32
    return %arg0, %c0_i32, %c0_i32_0 : i32, i32, i32
  }
  func.func @transform_2(%arg0: i32) -> (i32, i32, i32) {
    %c0_i32 = arith.constant 0 : i32
    %c0_i32_0 = arith.constant 0 : i32
    %c0_i32_1 = arith.constant 0 : i32
    return %arg0, %c0_i32, %c0_i32_0 : i32, i32, i32
  }
}

module attributes {stable_mosaic.version = 11 : i64} {
  func.func @_fused_matmul_kernel(%arg0: i32, %arg1: i32, %arg2: i32, %arg3: memref<16x32xbf16, #tpu.memory_space<vmem>>, %arg4: memref<32x32xbf16, #tpu.memory_space<vmem>>, %arg5: memref<1x32xf32, #tpu.memory_space<vmem>>, %arg6: memref<16x32xbf16, #tpu.memory_space<vmem>>, %arg7: memref<16x32xbf16, #tpu.memory_space<vmem>>) attributes {dimension_semantics = [#tpu.dimension_semantics<parallel>, #tpu.dimension_semantics<parallel>, #tpu.dimension_semantics<arbitrary>], iteration_bounds = array<i64: 2, 1, 1>, scalar_prefetch = 0 : i64, scratch_operands = 0 : i64, tpu.core_type = #tpu.core_type<tc>, window_params = [{transform_indices = @transform_0, window_bounds = array<i64: 16, 32>}, {transform_indices = @transform_1, window_bounds = array<i64: 32, 32>}, {transform_indices = @transform_2, window_bounds = array<i64: 1, 32>}, {transform_indices = @transform_3, window_bounds = array<i64: 16, 32>}, {transform_indices = @transform_4, window_bounds = array<i64: 16, 32>}]} {
    %c0 = arith.constant 0 : index
    %c0_0 = arith.constant 0 : index
    %0 = vector.load %arg3[%c0, %c0_0] : memref<16x32xbf16, #tpu.memory_space<vmem>>, vector<16x32xbf16>
    %c0_1 = arith.constant 0 : index
    %c0_2 = arith.constant 0 : index
    %1 = vector.load %arg4[%c0_1, %c0_2] : memref<32x32xbf16, #tpu.memory_space<vmem>>, vector<32x32xbf16>
    %cst = arith.constant dense<0.000000e+00> : vector<16x32xf32>
    %2 = tpu.matmul %0, %1, %cst {dimension_numbers = #tpu.dot_dimension_numbers<[1], [0], [0], [1], [0, 0, 1, 1], [], []>} : vector<16x32xbf16>, vector<32x32xbf16>, vector<16x32xf32> -> vector<16x32xf32>
    %c0_3 = arith.constant 0 : index
    %c0_4 = arith.constant 0 : index
    %3 = vector.load %arg5[%c0_3, %c0_4] : memref<1x32xf32, #tpu.memory_space<vmem>>, vector<1x32xf32>
    %4 = vector.broadcast %3 : vector<1x32xf32> to vector<16x32xf32>
    %5 = arith.addf %2, %4 : vector<16x32xf32>
    %c0_5 = arith.constant 0 : index
    %c0_6 = arith.constant 0 : index
    %6 = vector.load %arg6[%c0_5, %c0_6] : memref<16x32xbf16, #tpu.memory_space<vmem>>, vector<16x32xbf16>
    %7 = arith.extf %6 : vector<16x32xbf16> to vector<16x32xf32>
    %8 = arith.addf %5, %7 : vector<16x32xf32>
    %9 = arith.truncf %8 : vector<16x32xf32> to vector<16x32xbf16>
    %c0_7 = arith.constant 0 : index
    %c0_8 = arith.constant 0 : index
    %10 = vector.load %arg7[%c0_7, %c0_8] : memref<16x32xbf16, #tpu.memory_space<vmem>>, vector<16x32xbf16>
    tpu.vector_store %arg7[%c0_7, %c0_8], %9 {strides = array<i32>} : memref<16x32xbf16, #tpu.memory_space<vmem>>, vector<16x32xbf16>,
    return
  }
  func.func @transform_0(%arg0: i32, %arg1: i32, %arg2: i32) -> (i32, i32) {
    %c0_i32 = arith.constant 0 : i32
    return %arg0, %arg2 : i32, i32
  }
  func.func @transform_1(%arg0: i32, %arg1: i32, %arg2: i32) -> (i32, i32) {
    %c0_i32 = arith.constant 0 : i32
    return %arg2, %arg1 : i32, i32
  }
  func.func @transform_2(%arg0: i32, %arg1: i32, %arg2: i32) -> (i32, i32) {
    %c0_i32 = arith.constant 0 : i32
    %c0_i32_0 = arith.constant 0 : i32
    return %c0_i32, %arg1 : i32, i32
  }
  func.func @transform_3(%arg0: i32, %arg1: i32, %arg2: i32) -> (i32, i32) {
    %c0_i32 = arith.constant 0 : i32
    return %arg0, %arg1 : i32, i32
  }
  func.func @transform_4(%arg0: i32, %arg1: i32, %arg2: i32) -> (i32, i32) {
    %c0_i32 = arith.constant 0 : i32
    return %arg0, %arg1 : i32, i32
  }
}

module attributes {stable_mosaic.version = 11 : i64} {
  func.func @_fused_matmul_kernel(%arg0: i32, %arg1: i32, %arg2: i32, %arg3: memref<16x32xbf16, #tpu.memory_space<vmem>>, %arg4: memref<1x32xf32, #tpu.memory_space<vmem>>, %arg5: memref<1x32xf32, #tpu.memory_space<vmem>>, %arg6: memref<32x96xbf16, #tpu.memory_space<vmem>>, %arg7: memref<1x96xf32, #tpu.memory_space<vmem>>, %arg8: memref<16x96xbf16, #tpu.memory_space<vmem>>) attributes {dimension_semantics = [#tpu.dimension_semantics<parallel>, #tpu.dimension_semantics<parallel>, #tpu.dimension_semantics<arbitrary>], iteration_bounds = array<i64: 2, 1, 1>, scalar_prefetch = 0 : i64, scratch_operands = 0 : i64, tpu.core_type = #tpu.core_type<tc>, window_params = [{transform_indices = @transform_0, window_bounds = array<i64: 16, 32>}, {pipeline_mode = #tpu.pipeline_mode<synchronous>, transform_indices = @transform_1, window_bounds = array<i64: 1, 32>}, {pipeline_mode = #tpu.pipeline_mode<synchronous>, transform_indices = @transform_2, window_bounds = array<i64: 1, 32>}, {transform_indices = @transform_3, window_bounds = array<i64: 32, 96>}, {transform_indices = @transform_4, window_bounds = array<i64: 1, 96>}, {transform_indices = @transform_5, window_bounds = array<i64: 16, 96>}]} {
    %c0 = arith.constant 0 : index
    %c0_0 = arith.constant 0 : index
    %0 = vector.load %arg3[%c0, %c0_0] : memref<16x32xbf16, #tpu.memory_space<vmem>>, vector<16x32xbf16>
    %1 = arith.extf %0 : vector<16x32xbf16> to vector<16x32xf32>
    %c0_1 = arith.constant 0 : index
    %c0_2 = arith.constant 0 : index
    %2 = vector.load %arg4[%c0_1, %c0_2] : memref<1x32xf32, #tpu.memory_space<vmem>>, vector<1x32xf32>
    %c0_3 = arith.constant 0 : index
    %c0_4 = arith.constant 0 : index
    %3 = vector.load %arg5[%c0_3, %c0_4] : memref<1x32xf32, #tpu.memory_space<vmem>>, vector<1x32xf32>
    %cst = arith.constant dense<0.000000e+00> : vector<16xf32>
    %4 = vector.multi_reduction <add>, %1, %cst [1] : vector<16x32xf32> to vector<16xf32>
    %5 = vector.shape_cast %4 : vector<16xf32> to vector<16x1xf32>
    %cst_5 = arith.constant 3.200000e+01 : f32
    %6 = vector.broadcast %cst_5 : f32 to vector<16x1xf32>
    %7 = arith.divf %5, %6 : vector<16x1xf32>
    %8 = vector.broadcast %7 : vector<16x1xf32> to vector<16x32xf32>
    %9 = arith.subf %1, %8 : vector<16x32xf32>
    %10 = arith.mulf %9, %9 : vector<16x32xf32>
    %cst_6 = arith.constant dense<0.000000e+00> : vector<16xf32>
    %11 = vector.multi_reduction <add>, %10, %cst_6 [1] : vector<16x32xf32> to vector<16xf32>
    %12 = vector.shape_cast %11 : vector<16xf32> to vector<16x1xf32>
    %cst_7 = arith.constant 3.200000e+01 : f32
    %13 = vector.broadcast %cst_7 : f32 to vector<16x1xf32>
    %14 = arith.divf %12, %13 : vector<16x1xf32>
    %15 = vector.broadcast %7 : vector<16x1xf32> to vector<16x32xf32>
    %16 = arith.subf %1, %15 : vector<16x32xf32>
    %cst_8 = arith.constant 9.99999974E-6 : f32
    %17 = vector.broadcast %cst_8 : f32 to vector<16x1xf32>
    %18 = arith.addf %14, %17 : vector<16x1xf32>
    %19 = math.rsqrt %18 : vector<16x1xf32>
    %20 = vector.broadcast %19 : vector<16x1xf32> to vector<16x32xf32>
    %21 = arith.mulf %16, %20 : vector<16x32xf32>
    %22 = vector.broadcast %2 : vector<1x32xf32> to vector<16x32xf32>
    %23 = arith.mulf %21, %22 : vector<16x32xf32>
    %24 = vector.broadcast %3 : vector<1x32xf32> to vector<16x32xf32>
    %25 = arith.addf %23, %24 : vector<16x32xf32>
    %26 = arith.truncf %25 : vector<16x32xf32> to vector<16x32xbf16>
    %c0_9 = arith.constant 0 : index
    %c0_10 = arith.constant 0 : index
    %27 = vector.load %arg6[%c0_9, %c0_10] : memref<32x96xbf16, #tpu.memory_space<vmem>>, vector<32x96xbf16>
    %cst_11 = arith.constant dense<0.000000e+00> : vector<16x96xf32>
    %28 = tpu.matmul %26, %27, %cst_11 {dimension_numbers = #tpu.dot_dimension_numbers<[1], [0], [0], [1], [0, 0, 1, 1], [], []>} : vector<16x32xbf16>, vector<32x96xbf16>, vector<16x96xf32> -> vector<16x96xf32>
    %c0_12 = arith.constant 0 : index
    %c0_13 = arith.constant 0 : index
    %29 = vector.load %arg7[%c0_12, %c0_13] : memref<1x96xf32, #tpu.memory_space<vmem>>, vector<1x96xf32>
    %30 = vector.broadcast %29 : vector<1x96xf32> to vector<16x96xf32>
    %31 = arith.addf %28, %30 : vector<16x96xf32>
    %32 = arith.truncf %31 : vector<16x96xf32> to vector<16x96xbf16>
    %c0_14 = arith.constant 0 : index
    %c0_15 = arith.constant 0 : index
    %33 = vector.load %arg8[%c0_14, %c0_15] : memref<16x96xbf16, #tpu.memory_space<vmem>>, vector<16x96xbf16>
    tpu.vector_store %arg8[%c0_14, %c0_15], %32 {strides = array<i32>} : memref<16x96xbf16, #tpu.memory_space<vmem>>, vector<16x96xbf16>,
    return
  }
  func.func @transform_0(%arg0: i32, %arg1: i32, %arg2: i32) -> (i32, i32) {
    %c0_i32 = arith.constant 0 : i32
    return %arg0, %arg2 : i32, i32
  }
  func.func @transform_1(%arg0: i32, %arg1: i32, %arg2: i32) -> (i32, i32) {
    %c0_i32 = arith.constant 0 : i32
    %c0_i32_0 = arith.constant 0 : i32
    %c0_i32_1 = arith.constant 0 : i32
    return %c0_i32, %c0_i32_0 : i32, i32
  }
  func.func @transform_2(%arg0: i32, %arg1: i32, %arg2: i32) -> (i32, i32) {
    %c0_i32 = arith.constant 0 : i32
    %c0_i32_0 = arith.constant 0 : i32
    %c0_i32_1 = arith.constant 0 : i32
    return %c0_i32, %c0_i32_0 : i32, i32
  }
  func.func @transform_3(%arg0: i32, %arg1: i32, %arg2: i32) -> (i32, i32) {
    %c0_i32 = arith.constant 0 : i32
    return %arg2, %arg1 : i32, i32
  }
  func.func @transform_4(%arg0: i32, %arg1: i32, %arg2: i32) -> (i32, i32) {
    %c0_i32 = arith.constant 0 : i32
    %c0_i32_0 = arith.constant 0 : i32
    return %c0_i32, %arg1 : i32, i32
  }
  func.func @transform_5(%arg0: i32, %arg1: i32, %arg2: i32) -> (i32, i32) {
    %c0_i32 = arith.constant 0 : i32
    return %arg0, %arg1 : i32, i32
  }
}

module attributes {stable_mosaic.version = 11 : i64} {
  func.func @_fused_matmul_kernel(%arg0: i32, %arg1: i32, %arg2: i32, %arg3: memref<16x32xbf16, #tpu.memory_space<vmem>>, %arg4: memref<1x32xf32, #tpu.memory_space<vmem>>, %arg5: memref<1x32xf32, #tpu.memory_space<vmem>>, %arg6: memref<32x64xbf16, #tpu.memory_space<vmem>>, %arg7: memref<1x64xf32, #tpu.memory_space<vmem>>, %arg8: memref<16x64xbf16, #tpu.memory_space<vmem>>) attributes {dimension_semantics = [#tpu.dimension_semantics<parallel>, #tpu.dimension_semantics<parallel>, #tpu.dimension_semantics<arbitrary>], iteration_bounds = array<i64: 2, 1, 1>, scalar_prefetch = 0 : i64, scratch_operands = 0 : i64, tpu.core_type = #tpu.core_type<tc>, window_params = [{transform_indices = @transform_0, window_bounds = array<i64: 16, 32>}, {pipeline_mode = #tpu.pipeline_mode<synchronous>, transform_indices = @transform_1, window_bounds = array<i64: 1, 32>}, {pipeline_mode = #tpu.pipeline_mode<synchronous>, transform_indices = @transform_2, window_bounds = array<i64: 1, 32>}, {transform_indices = @transform_3, window_bounds = array<i64: 32, 64>}, {transform_indices = @transform_4, window_bounds = array<i64: 1, 64>}, {transform_indices = @transform_5, window_bounds = array<i64: 16, 64>}]} {
    %c0 = arith.constant 0 : index
    %c0_0 = arith.constant 0 : index
    %0 = vector.load %arg3[%c0, %c0_0] : memref<16x32xbf16, #tpu.memory_space<vmem>>, vector<16x32xbf16>
    %1 = arith.extf %0 : vector<16x32xbf16> to vector<16x32xf32>
    %c0_1 = arith.constant 0 : index
    %c0_2 = arith.constant 0 : index
    %2 = vector.load %arg4[%c0_1, %c0_2] : memref<1x32xf32, #tpu.memory_space<vmem>>, vector<1x32xf32>
    %c0_3 = arith.constant 0 : index
    %c0_4 = arith.constant 0 : index
    %3 = vector.load %arg5[%c0_3, %c0_4] : memref<1x32xf32, #tpu.memory_space<vmem>>, vector<1x32xf32>
    %cst = arith.constant dense<0.000000e+00> : vector<16xf32>
    %4 = vector.multi_reduction <add>, %1, %cst [1] : vector<16x32xf32> to vector<16xf32>
    %5 = vector.shape_cast %4 : vector<16xf32> to vector<16x1xf32>
    %cst_5 = arith.constant 3.200000e+01 : f32
    %6 = vector.broadcast %cst_5 : f32 to vector<16x1xf32>
    %7 = arith.divf %5, %6 : vector<16x1xf32>
    %8 = vector.broadcast %7 : vector<16x1xf32> to vector<16x32xf32>
    %9 = arith.subf %1, %8 : vector<16x32xf32>
    %10 = arith.mulf %9, %9 : vector<16x32xf32>
    %cst_6 = arith.constant dense<0.000000e+00> : vector<16xf32>
    %11 = vector.multi_reduction <add>, %10, %cst_6 [1] : vector<16x32xf32> to vector<16xf32>
    %12 = vector.shape_cast %11 : vector<16xf32> to vector<16x1xf32>
    %cst_7 = arith.constant 3.200000e+01 : f32
    %13 = vector.broadcast %cst_7 : f32 to vector<16x1xf32>
    %14 = arith.divf %12, %13 : vector<16x1xf32>
    %15 = vector.broadcast %7 : vector<16x1xf32> to vector<16x32xf32>
    %16 = arith.subf %1, %15 : vector<16x32xf32>
    %cst_8 = arith.constant 9.99999974E-6 : f32
    %17 = vector.broadcast %cst_8 : f32 to vector<16x1xf32>
    %18 = arith.addf %14, %17 : vector<16x1xf32>
    %19 = math.rsqrt %18 : vector<16x1xf32>
    %20 = vector.broadcast %19 : vector<16x1xf32> to vector<16x32xf32>
    %21 = arith.mulf %16, %20 : vector<16x32xf32>
    %22 = vector.broadcast %2 : vector<1x32xf32> to vector<16x32xf32>
    %23 = arith.mulf %21, %22 : vector<16x32xf32>
    %24 = vector.broadcast %3 : vector<1x32xf32> to vector<16x32xf32>
    %25 = arith.addf %23, %24 : vector<16x32xf32>
    %26 = arith.truncf %25 : vector<16x32xf32> to vector<16x32xbf16>
    %c0_9 = arith.constant 0 : index
    %c0_10 = arith.constant 0 : index
    %27 = vector.load %arg6[%c0_9, %c0_10] : memref<32x64xbf16, #tpu.memory_space<vmem>>, vector<32x64xbf16>
    %cst_11 = arith.constant dense<0.000000e+00> : vector<16x64xf32>
    %28 = tpu.matmul %26, %27, %cst_11 {dimension_numbers = #tpu.dot_dimension_numbers<[1], [0], [0], [1], [0, 0, 1, 1], [], []>} : vector<16x32xbf16>, vector<32x64xbf16>, vector<16x64xf32> -> vector<16x64xf32>
    %c0_12 = arith.constant 0 : index
    %c0_13 = arith.constant 0 : index
    %29 = vector.load %arg7[%c0_12, %c0_13] : memref<1x64xf32, #tpu.memory_space<vmem>>, vector<1x64xf32>
    %30 = vector.broadcast %29 : vector<1x64xf32> to vector<16x64xf32>
    %31 = arith.addf %28, %30 : vector<16x64xf32>
    %cst_14 = arith.constant 5.000000e-01 : f32
    %32 = vector.broadcast %cst_14 : f32 to vector<16x64xf32>
    %33 = arith.mulf %32, %31 : vector<16x64xf32>
    %cst_15 = arith.constant 0.707106769 : f32
    %34 = vector.broadcast %cst_15 : f32 to vector<16x64xf32>
    %35 = arith.mulf %31, %34 : vector<16x64xf32>
    %36 = math.erf %35 : vector<16x64xf32>
    %cst_16 = arith.constant 1.000000e+00 : f32
    %37 = vector.broadcast %cst_16 : f32 to vector<16x64xf32>
    %38 = arith.addf %37, %36 : vector<16x64xf32>
    %39 = arith.mulf %33, %38 : vector<16x64xf32>
    %40 = arith.truncf %39 : vector<16x64xf32> to vector<16x64xbf16>
    %c0_17 = arith.constant 0 : index
    %c0_18 = arith.constant 0 : index
    %41 = vector.load %arg8[%c0_17, %c0_18] : memref<16x64xbf16, #tpu.memory_space<vmem>>, vector<16x64xbf16>
    tpu.vector_store %arg8[%c0_17, %c0_18], %40 {strides = array<i32>} : memref<16x64xbf16, #tpu.memory_space<vmem>>, vector<16x64xbf16>,
    return
  }
  func.func @transform_0(%arg0: i32, %arg1: i32, %arg2: i32) -> (i32, i32) {
    %c0_i32 = arith.constant 0 : i32
    return %arg0, %arg2 : i32, i32
  }
  func.func @transform_1(%arg0: i32, %arg1: i32, %arg2: i32) -> (i32, i32) {
    %c0_i32 = arith.constant 0 : i32
    %c0_i32_0 = arith.constant 0 : i32
    %c0_i32_1 = arith.constant 0 : i32
    return %c0_i32, %c0_i32_0 : i32, i32
  }
  func.func @transform_2(%arg0: i32, %arg1: i32, %arg2: i32) -> (i32, i32) {
    %c0_i32 = arith.constant 0 : i32
    %c0_i32_0 = arith.constant 0 : i32
    %c0_i32_1 = arith.constant 0 : i32
    return %c0_i32, %c0_i32_0 : i32, i32
  }
  func.func @transform_3(%arg0: i32, %arg1: i32, %arg2: i32) -> (i32, i32) {
    %c0_i32 = arith.constant 0 : i32
    return %arg2, %arg1 : i32, i32
  }
  func.func @transform_4(%arg0: i32, %arg1: i32, %arg2: i32) -> (i32, i32) {
    %c0_i32 = arith.constant 0 : i32
    %c0_i32_0 = arith.constant 0 : i32
    return %c0_i32, %arg1 : i32, i32
  }
  func.func @transform_5(%arg0: i32, %arg1: i32, %arg2: i32) -> (i32, i32) {
    %c0_i32 = arith.constant 0 : i32
    return %arg0, %arg1 : i32, i32
  }
}

module attributes {stable_mosaic.version = 11 : i64} {
  func.func @_decoder_layer_kernel(%arg0: i32, %arg1: memref<1x8x32xbf16, #tpu.memory_space<vmem>>, %arg2: memref<1x16x64xbf16, #tpu.memory_space<vmem>>, %arg3: memref<32x32xbf16, #tpu.memory_space<vmem>>, %arg4: memref<1x32xf32, #tpu.memory_space<vmem>>, %arg5: memref<32x32xbf16, #tpu.memory_space<vmem>>, %arg6: memref<1x32xf32, #tpu.memory_space<vmem>>, %arg7: memref<1x32xf32, #tpu.memory_space<vmem>>, %arg8: memref<1x32xf32, #tpu.memory_space<vmem>>, %arg9: memref<32x96xbf16, #tpu.memory_space<vmem>>, %arg10: memref<1x96xf32, #tpu.memory_space<vmem>>, %arg11: memref<32x32xbf16, #tpu.memory_space<vmem>>, %arg12: memref<1x32xf32, #tpu.memory_space<vmem>>, %arg13: memref<1x32xf32, #tpu.memory_space<vmem>>, %arg14: memref<1x32xf32, #tpu.memory_space<vmem>>, %arg15: memref<32x64xbf16, #tpu.memory_space<vmem>>, %arg16: memref<1x64xf32, #tpu.memory_space<vmem>>, %arg17: memref<64x32xbf16, #tpu.memory_space<vmem>>, %arg18: memref<1x32xf32, #tpu.memory_space<vmem>>, %arg19: memref<1x32xf32, #tpu.memory_space<vmem>>, %arg20: memref<1x32xf32, #tpu.memory_space<vmem>>, %arg21: memref<1x8x32xbf16, #tpu.memory_space<vmem>>, %arg22: memref<8x32xf32, #tpu.memory_space<vmem>>) attributes {dimension_semantics = [#tpu.dimension_semantics<parallel>], iteration_bounds = array<i64: 2>, scalar_prefetch = 0 : i64, scratch_operands = 1 : i64, tpu.core_type = #tpu.core_type<tc>, window_params = [{transform_indices = @transform_0, window_bounds = array<i64: 1, 8, 32>}, {transform_indices = @transform_1, window_bounds = array<i64: 1, 16, 64>}, {pipeline_mode = #tpu.pipeline_mode<synchronous>, transform_indices = @transform_2, window_bounds = array<i64: 32, 32>}, {pipeline_mode = #tpu.pipeline_mode<synchronous>, transform_indices = @transform_3, window_bounds = array<i64: 1, 32>}, {pipeline_mode = #tpu.pipeline_mode<synchronous>, transform_indices = @transform_4, window_bounds = array<i64: 32, 32>}, {pipeline_mode = #tpu.pipeline_mode<synchronous>, transform_indices = @transform_5, window_bounds = array<i64: 1, 32>}, {pipeline_mode = #tpu.pipeline_mode<synchronous>, transform_indices = @transform_6, window_bounds = array<i64: 1, 32>}, {pipeline_mode = #tpu.pipeline_mode<synchronous>, transform_indices = @transform_7, window_bounds = array<i64: 1, 32>}, {pipeline_mode = #tpu.pipeline_mode<synchronous>, transform_indices = @transform_8, window_bounds = array<i64: 32, 96>}, {pipeline_mode = #tpu.pipeline_mode<synchronous>, transform_indices = @transform_9, window_bounds = array<i64: 1, 96>}, {pipeline_mode = #tpu.pipeline_mode<synchronous>, transform_indices = @transform_10, window_bounds = array<i64: 32, 32>}, {pipeline_mode = #tpu.pipeline_mode<synchronous>, transform_indices = @transform_11, window_bounds = array<i64: 1, 32>}, {pipeline_mode = #tpu.pipeline_mode<synchronous>, transform_indices = @transform_12, window_bounds = array<i64: 1, 32>}, {pipeline_mode = #tpu.pipeline_mode<synchronous>, transform_indices = @transform_13, window_bounds = array<i64: 1, 32>}, {pipeline_mode = #tpu.pipeline_mode<synchronous>, transform_indices = @transform_14, window_bounds = array<i64: 32, 64>}, {pipeline_mode = #tpu.pipeline_mode<synchronous>, transform_indices = @transform_15, window_bounds = array<i64: 1, 64>}, {pipeline_mode = #tpu.pipeline_mode<synchronous>, transform_indices = @transform_16, window_bounds = array<i64: 64, 32>}, {pipeline_mode = #tpu.pipeline_mode<synchronous>, transform_indices = @transform_17, window_bounds = array<i64: 1, 32>}, {pipeline_mode = #tpu.pipeline_mode<synchronous>, transform_indices = @transform_18, window_bounds = array<i64: 1, 32>}, {pipeline_mode = #tpu.pipeline_mode<synchronous>, transform_indices = @transform_19, window_bounds = array<i64: 1, 32>}, {transform_indices = @transform_20, window_bounds = array<i64: 1, 8, 32>}]} {
    %c0 = arith.constant 0 : index
    %c0_0 = arith.constant 0 : index
    %c0_1 = arith.constant 0 : index
    %0 = vector.load %arg1[%c0, %c0_0, %c0_1] : memref<1x8x32xbf16, #tpu.memory_space<vmem>>, vector<1x8x32xbf16>
    %1 = vector.shape_cast %0 : vector<1x8x32xbf16> to vector<8x32xbf16>
    %2 = arith.extf %1 : vector<8x32xbf16> to vector<8x32xf32>
    %c0_2 = arith.constant 0 : index
    %c0_3 = arith.constant 0 : index
    %c0_4 = arith.constant 0 : index
    %3 = vector.load %arg2[%c0_2, %c0_3, %c0_4] : memref<1x16x64xbf16, #tpu.memory_space<vmem>>, vector<1x16x64xbf16>
    %4 = vector.shape_cast %3 : vector<1x16x64xbf16> to vector<16x64xbf16>
    %5 = arith.truncf %2 : vector<8x32xf32> to vector<8x32xbf16>
    %c0_5 = arith.constant 0 : index
    %c0_6 = arith.constant 0 : index
    %6 = vector.load %arg3[%c0_5, %c0_6] : memref<32x32xbf16, #tpu.memory_space<vmem>>, vector<32x32xbf16>
    %cst = arith.constant dense<0.000000e+00> : vector<8x32xf32>
    %7 = tpu.matmul %5, %6, %cst {dimension_numbers = #tpu.dot_dimension_numbers<[1], [0], [0], [1], [0, 0, 1, 1], [], []>} : vector<8x32xbf16>, vector<32x32xbf16>, vector<8x32xf32> -> vector<8x32xf32>
    %c0_7 = arith.constant 0 : index
    %c0_8 = arith.constant 0 : index
    %8 = vector.load %arg4[%c0_7, %c0_8] : memref<1x32xf32, #tpu.memory_space<vmem>>, vector<1x32xf32>
    %9 = vector.broadcast %8 : vector<1x32xf32> to vector<8x32xf32>
    %10 = arith.addf %7, %9 : vector<8x32xf32>
    %11 = arith.truncf %10 : vector<8x32xf32> to vector<8x32xbf16>
    %12 = vector.extract_strided_slice %11 {offsets = [0, 0], sizes = [8, 8], strides = [1, 1]} : vector<8x32xbf16> to vector<8x8xbf16>
    %13 = vector.extract_strided_slice %4 {offsets = [0, 0], sizes = [16, 8], strides = [1, 1]} : vector<16x64xbf16> to vector<16x8xbf16>
    %14 = vector.extract_strided_slice %4 {offsets = [0, 32], sizes = [16, 8], strides = [1, 1]} : vector<16x64xbf16> to vector<16x8xbf16>
    %cst_9 = arith.constant dense<0.000000e+00> : vector<8x16xf32>
    %15 = tpu.matmul %12, %13, %cst_9 {dimension_numbers = #tpu.dot_dimension_numbers<[1], [1], [0], [0], [0, 0, 1, 0], [], []>} : vector<8x8xbf16>, vector<16x8xbf16>, vector<8x16xf32> -> vector<8x16xf32>
    %cst_10 = arith.constant 0.353553385 : f32
    %16 = vector.broadcast %cst_10 : f32 to vector<8x16xf32>
    %17 = arith.mulf %15, %16 : vector<8x16xf32>
    %cst_11 = arith.constant dense<0xFF800000> : vector<8xf32>
    %18 = vector.multi_reduction <maximumf>, %17, %cst_11 [1] : vector<8x16xf32> to vector<8xf32>
    %19 = vector.shape_cast %18 : vector<8xf32> to vector<8x1xf32>
    %20 = vector.broadcast %19 : vector<8x1xf32> to vector<8x16xf32>
    %21 = arith.subf %17, %20 : vector<8x16xf32>
    %22 = math.exp %21 : vector<8x16xf32>
    %cst_12 = arith.constant dense<0.000000e+00> : vector<8xf32>
    %23 = vector.multi_reduction <add>, %22, %cst_12 [1] : vector<8x16xf32> to vector<8xf32>
    %24 = vector.shape_cast %23 : vector<8xf32> to vector<8x1xf32>
    %25 = tpu.reciprocal %24 {approx = true} : vector<8x1xf32> -> vector<8x1xf32>
    %26 = vector.broadcast %25 : vector<8x1xf32> to vector<8x16xf32>
    %27 = arith.mulf %22, %26 : vector<8x16xf32>
    %28 = arith.truncf %27 : vector<8x16xf32> to vector<8x16xbf16>
    %cst_13 = arith.constant dense<0.000000e+00> : vector<8x8xf32>
    %29 = tpu.matmul %28, %14, %cst_13 {dimension_numbers = #tpu.dot_dimension_numbers<[1], [0], [0], [1], [0, 0, 1, 1], [], []>} : vector<8x16xbf16>, vector<16x8xbf16>, vector<8x8xf32> -> vector<8x8xf32>
    %c0_14 = arith.constant 0 : index
    %c0_15 = arith.constant 0 : index
    %30 = vector.load %arg22[%c0_14, %c0_15] : memref<8x32xf32, #tpu.memory_space<vmem>>, vector<8x8xf32>
    tpu.vector_store %arg22[%c0_14, %c0_15], %29 {strides = array<i32>} : memref<8x32xf32, #tpu.memory_space<vmem>>, vector<8x8xf32>,
    %31 = vector.extract_strided_slice %11 {offsets = [0, 8], sizes = [8, 8], strides = [1, 1]} : vector<8x32xbf16> to vector<8x8xbf16>
    %32 = vector.extract_strided_slice %4 {offsets = [0, 8], sizes = [16, 8], strides = [1, 1]} : vector<16x64xbf16> to vector<16x8xbf16>
    %33 = vector.extract_strided_slice %4 {offsets = [0, 40], sizes = [16, 8], strides = [1, 1]} : vector<16x64xbf16> to vector<16x8xbf16>
    %cst_16 = arith.constant dense<0.000000e+00> : vector<8x16xf32>
    %34 = tpu.matmul %31, %32, %cst_16 {dimension_numbers = #tpu.dot_dimension_numbers<[1], [1], [0], [0], [0, 0, 1, 0], [], []>} : vector<8x8xbf16>, vector<16x8xbf16>, vector<8x16xf32> -> vector<8x16xf32>
    %cst_17 = arith.constant 0.353553385 : f32
    %35 = vector.broadcast %cst_17 : f32 to vector<8x16xf32>
    %36 = arith.mulf %34, %35 : vector<8x16xf32>
    %cst_18 = arith.constant dense<0xFF800000> : vector<8xf32>
    %37 = vector.multi_reduction <maximumf>, %36, %cst_18 [1] : vector<8x16xf32> to vector<8xf32>
    %38 = vector.shape_cast %37 : vector<8xf32> to vector<8x1xf32>
    %39 = vector.broadcast %38 : vector<8x1xf32> to vector<8x16xf32>
    %40 = arith.subf %36, %39 : vector<8x16xf32>
    %41 = math.exp %40 : vector<8x16xf32>
    %cst_19 = arith.constant dense<0.000000e+00> : vector<8xf32>
    %42 = vector.multi_reduction <add>, %41, %cst_19 [1] : vector<8x16xf32> to vector<8xf32>
    %43 = vector.shape_cast %42 : vector<8xf32> to vector<8x1xf32>
    %44 = tpu.reciprocal %43 {approx = true} : vector<8x1xf32> -> vector<8x1xf32>
    %45 = vector.broadcast %44 : vector<8x1xf32> to vector<8x16xf32>
    %46 = arith.mulf %41, %45 : vector<8x16xf32>
    %47 = arith.truncf %46 : vector<8x16xf32> to vector<8x16xbf16>
    %cst_20 = arith.constant dense<0.000000e+00> : vector<8x8xf32>
    %48 = tpu.matmul %47, %33, %cst_20 {dimension_numbers = #tpu.dot_dimension_numbers<[1], [0], [0], [1], [0, 0, 1, 1], [], []>} : vector<8x16xbf16>, vector<16x8xbf16>, vector<8x8xf32> -> vector<8x8xf32>
    %c0_21 = arith.constant 0 : index
    %c8 = arith.constant 8 : index
    %49 = vector.load %arg22[%c0_21, %c8] : memref<8x32xf32, #tpu.memory_space<vmem>>, vector<8x8xf32>
    tpu.vector_store %arg22[%c0_21, %c8], %48 {strides = array<i32>} : memref<8x32xf32, #tpu.memory_space<vmem>>, vector<8x8xf32>,
    %50 = vector.extract_strided_slice %11 {offsets = [0, 16], sizes = [8, 8], strides = [1, 1]} : vector<8x32xbf16> to vector<8x8xbf16>
    %51 = vector.extract_strided_slice %4 {offsets = [0, 16], sizes = [16, 8], strides = [1, 1]} : vector<16x64xbf16> to vector<16x8xbf16>
    %52 = vector.extract_strided_slice %4 {offsets = [0, 48], sizes = [16, 8], strides = [1, 1]} : vector<16x64xbf16> to vector<16x8xbf16>
    %cst_22 = arith.constant dense<0.000000e+00> : vector<8x16xf32>
    %53 = tpu.matmul %50, %51, %cst_22 {dimension_numbers = #tpu.dot_dimension_numbers<[1], [1], [0], [0], [0, 0, 1, 0], [], []>} : vector<8x8xbf16>, vector<16x8xbf16>, vector<8x16xf32> -> vector<8x16xf32>
    %cst_23 = arith.constant 0.353553385 : f32
    %54 = vector.broadcast %cst_23 : f32 to vector<8x16xf32>
    %55 = arith.mulf %53, %54 : vector<8x16xf32>
    %cst_24 = arith.constant dense<0xFF800000> : vector<8xf32>
    %56 = vector.multi_reduction <maximumf>, %55, %cst_24 [1] : vector<8x16xf32> to vector<8xf32>
    %57 = vector.shape_cast %56 : vector<8xf32> to vector<8x1xf32>
    %58 = vector.broadcast %57 : vector<8x1xf32> to vector<8x16xf32>
    %59 = arith.subf %55, %58 : vector<8x16xf32>
    %60 = math.exp %59 : vector<8x16xf32>
    %cst_25 = arith.constant dense<0.000000e+00> : vector<8xf32>
    %61 = vector.multi_reduction <add>, %60, %cst_25 [1] : vector<8x16xf32> to vector<8xf32>
    %62 = vector.shape_cast %61 : vector<8xf32> to vector<8x1xf32>
    %63 = tpu.reciprocal %62 {approx = true} : vector<8x1xf32> -> vector<8x1xf32>
    %64 = vector.broadcast %63 : vector<8x1xf32> to vector<8x16xf32>
    %65 = arith.mulf %60, %64 : vector<8x16xf32>
    %66 = arith.truncf %65 : vector<8x16xf32> to vector<8x16xbf16>
    %cst_26 = arith.constant dense<0.000000e+00> : vector<8x8xf32>
    %67 = tpu.matmul %66, %52, %cst_26 {dimension_numbers = #tpu.dot_dimension_numbers<[1], [0], [0], [1], [0, 0, 1, 1], [], []>} : vector<8x16xbf16>, vector<16x8xbf16>, vector<8x8xf32> -> vector<8x8xf32>
    %c0_27 = arith.constant 0 : index
    %c16 = arith.constant 16 : index
    %68 = vector.load %arg22[%c0_27, %c16] : memref<8x32xf32, #tpu.memory_space<vmem>>, vector<8x8xf32>
    tpu.vector_store %arg22[%c0_27, %c16], %67 {strides = array<i32>} : memref<8x32xf32, #tpu.memory_space<vmem>>, vector<8x8xf32>,
    %69 = vector.extract_strided_slice %11 {offsets = [0, 24], sizes = [8, 8], strides = [1, 1]} : vector<8x32xbf16> to vector<8x8xbf16>
    %70 = vector.extract_strided_slice %4 {offsets = [0, 24], sizes = [16, 8], strides = [1, 1]} : vector<16x64xbf16> to vector<16x8xbf16>
    %71 = vector.extract_strided_slice %4 {offsets = [0, 56], sizes = [16, 8], strides = [1, 1]} : vector<16x64xbf16> to vector<16x8xbf16>
    %cst_28 = arith.constant dense<0.000000e+00> : vector<8x16xf32>
    %72 = tpu.matmul %69, %70, %cst_28 {dimension_numbers = #tpu.dot_dimension_numbers<[1], [1], [0], [0], [0, 0, 1, 0], [], []>} : vector<8x8xbf16>, vector<16x8xbf16>, vector<8x16xf32> -> vector<8x16xf32>
    %cst_29 = arith.constant 0.353553385 : f32
    %73 = vector.broadcast %cst_29 : f32 to vector<8x16xf32>
    %74 = arith.mulf %72, %73 : vector<8x16xf32>
    %cst_30 = arith.constant dense<0xFF800000> : vector<8xf32>
    %75 = vector.multi_reduction <maximumf>, %74, %cst_30 [1] : vector<8x16xf32> to vector<8xf32>
    %76 = vector.shape_cast %75 : vector<8xf32> to vector<8x1xf32>
    %77 = vector.broadcast %76 : vector<8x1xf32> to vector<8x16xf32>
    %78 = arith.subf %74, %77 : vector<8x16xf32>
    %79 = math.exp %78 : vector<8x16xf32>
    %cst_31 = arith.constant dense<0.000000e+00> : vector<8xf32>
    %80 = vector.multi_reduction <add>, %79, %cst_31 [1] : vector<8x16xf32> to vector<8xf32>
    %81 = vector.shape_cast %80 : vector<8xf32> to vector<8x1xf32>
    %82 = tpu.reciprocal %81 {approx = true} : vector<8x1xf32> -> vector<8x1xf32>
    %83 = vector.broadcast %82 : vector<8x1xf32> to vector<8x16xf32>
    %84 = arith.mulf %79, %83 : vector<8x16xf32>
    %85 = arith.truncf %84 : vector<8x16xf32> to vector<8x16xbf16>
    %cst_32 = arith.constant dense<0.000000e+00> : vector<8x8xf32>
    %86 = tpu.matmul %85, %71, %cst_32 {dimension_numbers = #tpu.dot_dimension_numbers<[1], [0], [0], [1], [0, 0, 1, 1], [], []>} : vector<8x16xbf16>, vector<16x8xbf16>, vector<8x8xf32> -> vector<8x8xf32>
    %c0_33 = arith.constant 0 : index
    %c24 = arith.constant 24 : index
    %87 = vector.load %arg22[%c0_33, %c24] : memref<8x32xf32, #tpu.memory_space<vmem>>, vector<8x8xf32>
    tpu.vector_store %arg22[%c0_33, %c24], %86 {strides = array<i32>} : memref<8x32xf32, #tpu.memory_space<vmem>>, vector<8x8xf32>,
    %c0_34 = arith.constant 0 : index
    %c0_35 = arith.constant 0 : index
    %88 = vector.load %arg22[%c0_34, %c0_35] : memref<8x32xf32, #tpu.memory_space<vmem>>, vector<8x32xf32>
    %89 = arith.truncf %88 : vector<8x32xf32> to vector<8x32xbf16>
    %c0_36 = arith.constant 0 : index
    %c0_37 = arith.constant 0 : index
    %90 = vector.load %arg5[%c0_36, %c0_37] : memref<32x32xbf16, #tpu.memory_space<vmem>>, vector<32x32xbf16>
    %cst_38 = arith.constant dense<0.000000e+00> : vector<8x32xf32>
    %91 = tpu.matmul %89, %90, %cst_38 {dimension_numbers = #tpu.dot_dimension_numbers<[1], [0], [0], [1], [0, 0, 1, 1], [], []>} : vector<8x32xbf16>, vector<32x32xbf16>, vector<8x32xf32> -> vector<8x32xf32>
    %92 = arith.addf %2, %91 : vector<8x32xf32>
    %c0_39 = arith.constant 0 : index
    %c0_40 = arith.constant 0 : index
    %93 = vector.load %arg6[%c0_39, %c0_40] : memref<1x32xf32, #tpu.memory_space<vmem>>, vector<1x32xf32>
    %94 = vector.broadcast %93 : vector<1x32xf32> to vector<8x32xf32>
    %95 = arith.addf %92, %94 : vector<8x32xf32>
    %c0_41 = arith.constant 0 : index
    %c0_42 = arith.constant 0 : index
    %96 = vector.load %arg7[%c0_41, %c0_42] : memref<1x32xf32, #tpu.memory_space<vmem>>, vector<1x32xf32>
    %c0_43 = arith.constant 0 : index
    %c0_44 = arith.constant 0 : index
    %97 = vector.load %arg8[%c0_43, %c0_44] : memref<1x32xf32, #tpu.memory_space<vmem>>, vector<1x32xf32>
    %cst_45 = arith.constant dense<0.000000e+00> : vector<8xf32>
    %98 = vector.multi_reduction <add>, %95, %cst_45 [1] : vector<8x32xf32> to vector<8xf32>
    %99 = vector.shape_cast %98 : vector<8xf32> to vector<8x1xf32>
    %cst_46 = arith.constant 3.200000e+01 : f32
    %100 = vector.broadcast %cst_46 : f32 to vector<8x1xf32>
    %101 = arith.divf %99, %100 : vector<8x1xf32>
    %102 = vector.broadcast %101 : vector<8x1xf32> to vector<8x32xf32>
    %103 = arith.subf %95, %102 : vector<8x32xf32>
    %104 = arith.mulf %103, %103 : vector<8x32xf32>
    %cst_47 = arith.constant dense<0.000000e+00> : vector<8xf32>
    %105 = vector.multi_reduction <add>, %104, %cst_47 [1] : vector<8x32xf32> to vector<8xf32>
    %106 = vector.shape_cast %105 : vector<8xf32> to vector<8x1xf32>
    %cst_48 = arith.constant 3.200000e+01 : f32
    %107 = vector.broadcast %cst_48 : f32 to vector<8x1xf32>
    %108 = arith.divf %106, %107 : vector<8x1xf32>
    %109 = vector.broadcast %101 : vector<8x1xf32> to vector<8x32xf32>
    %110 = arith.subf %95, %109 : vector<8x32xf32>
    %cst_49 = arith.constant 9.99999974E-6 : f32
    %111 = vector.broadcast %cst_49 : f32 to vector<8x1xf32>
    %112 = arith.addf %108, %111 : vector<8x1xf32>
    %113 = math.rsqrt %112 : vector<8x1xf32>
    %114 = vector.broadcast %113 : vector<8x1xf32> to vector<8x32xf32>
    %115 = arith.mulf %110, %114 : vector<8x32xf32>
    %116 = vector.broadcast %96 : vector<1x32xf32> to vector<8x32xf32>
    %117 = arith.mulf %115, %116 : vector<8x32xf32>
    %118 = vector.broadcast %97 : vector<1x32xf32> to vector<8x32xf32>
    %119 = arith.addf %117, %118 : vector<8x32xf32>
    %120 = arith.truncf %119 : vector<8x32xf32> to vector<8x32xbf16>
    %c0_50 = arith.constant 0 : index
    %c0_51 = arith.constant 0 : index
    %121 = vector.load %arg9[%c0_50, %c0_51] : memref<32x96xbf16, #tpu.memory_space<vmem>>, vector<32x96xbf16>
    %cst_52 = arith.constant dense<0.000000e+00> : vector<8x96xf32>
    %122 = tpu.matmul %120, %121, %cst_52 {dimension_numbers = #tpu.dot_dimension_numbers<[1], [0], [0], [1], [0, 0, 1, 1], [], []>} : vector<8x32xbf16>, vector<32x96xbf16>, vector<8x96xf32> -> vector<8x96xf32>
    %c0_53 = arith.constant 0 : index
    %c0_54 = arith.constant 0 : index
    %123 = vector.load %arg10[%c0_53, %c0_54] : memref<1x96xf32, #tpu.memory_space<vmem>>, vector<1x96xf32>
    %124 = vector.broadcast %123 : vector<1x96xf32> to vector<8x96xf32>
    %125 = arith.addf %122, %124 : vector<8x96xf32>
    %126 = arith.truncf %125 : vector<8x96xf32> to vector<8x96xbf16>
    %127 = vector.extract_strided_slice %126 {offsets = [0, 0], sizes = [8, 8], strides = [1, 1]} : vector<8x96xbf16> to vector<8x8xbf16>
    %128 = vector.extract_strided_slice %126 {offsets = [0, 32], sizes = [8, 8], strides = [1, 1]} : vector<8x96xbf16> to vector<8x8xbf16>
    %129 = vector.extract_strided_slice %126 {offsets = [0, 64], sizes = [8, 8], strides = [1, 1]} : vector<8x96xbf16> to vector<8x8xbf16>
    %cst_55 = arith.constant dense<0.000000e+00> : vector<8x8xf32>
    %130 = tpu.matmul %127, %128, %cst_55 {dimension_numbers = #tpu.dot_dimension_numbers<[1], [1], [0], [0], [0, 0, 1, 0], [], []>} : vector<8x8xbf16>, vector<8x8xbf16>, vector<8x8xf32> -> vector<8x8xf32>
    %cst_56 = arith.constant 0.353553385 : f32
    %131 = vector.broadcast %cst_56 : f32 to vector<8x8xf32>
    %132 = arith.mulf %130, %131 : vector<8x8xf32>
    %cst_57 = arith.constant dense<0xFF800000> : vector<8xf32>
    %133 = vector.multi_reduction <maximumf>, %132, %cst_57 [1] : vector<8x8xf32> to vector<8xf32>
    %134 = vector.shape_cast %133 : vector<8xf32> to vector<8x1xf32>
    %135 = vector.broadcast %134 : vector<8x1xf32> to vector<8x8xf32>
    %136 = arith.subf %132, %135 : vector<8x8xf32>
    %137 = math.exp %136 : vector<8x8xf32>
    %cst_58 = arith.constant dense<0.000000e+00> : vector<8xf32>
    %138 = vector.multi_reduction <add>, %137, %cst_58 [1] : vector<8x8xf32> to vector<8xf32>
    %139 = vector.shape_cast %138 : vector<8xf32> to vector<8x1xf32>
    %140 = tpu.reciprocal %139 {approx = true} : vector<8x1xf32> -> vector<8x1xf32>
    %141 = vector.broadcast %140 : vector<8x1xf32> to vector<8x8xf32>
    %142 = arith.mulf %137, %141 : vector<8x8xf32>
    %143 = arith.truncf %142 : vector<8x8xf32> to vector<8x8xbf16>
    %cst_59 = arith.constant dense<0.000000e+00> : vector<8x8xf32>
    %144 = tpu.matmul %143, %129, %cst_59 {dimension_numbers = #tpu.dot_dimension_numbers<[1], [0], [0], [1], [0, 0, 1, 1], [], []>} : vector<8x8xbf16>, vector<8x8xbf16>, vector<8x8xf32> -> vector<8x8xf32>
    %c0_60 = arith.constant 0 : index
    %c0_61 = arith.constant 0 : index
    %145 = vector.load %arg22[%c0_60, %c0_61] : memref<8x32xf32, #tpu.memory_space<vmem>>, vector<8x8xf32>
    tpu.vector_store %arg22[%c0_60, %c0_61], %144 {strides = array<i32>} : memref<8x32xf32, #tpu.memory_space<vmem>>, vector<8x8xf32>,
    %146 = vector.extract_strided_slice %126 {offsets = [0, 8], sizes = [8, 8], strides = [1, 1]} : vector<8x96xbf16> to vector<8x8xbf16>
    %147 = vector.extract_strided_slice %126 {offsets = [0, 40], sizes = [8, 8], strides = [1, 1]} : vector<8x96xbf16> to vector<8x8xbf16>
    %148 = vector.extract_strided_slice %126 {offsets = [0, 72], sizes = [8, 8], strides = [1, 1]} : vector<8x96xbf16> to vector<8x8xbf16>
    %cst_62 = arith.constant dense<0.000000e+00> : vector<8x8xf32>
    %149 = tpu.matmul %146, %147, %cst_62 {dimension_numbers = #tpu.dot_dimension_numbers<[1], [1], [0], [0], [0, 0, 1, 0], [], []>} : vector<8x8xbf16>, vector<8x8xbf16>, vector<8x8xf32> -> vector<8x8xf32>
    %cst_63 = arith.constant 0.353553385 : f32
    %150 = vector.broadcast %cst_63 : f32 to vector<8x8xf32>
    %151 = arith.mulf %149, %150 : vector<8x8xf32>
    %cst_64 = arith.constant dense<0xFF800000> : vector<8xf32>
    %152 = vector.multi_reduction <maximumf>, %151, %cst_64 [1] : vector<8x8xf32> to vector<8xf32>
    %153 = vector.shape_cast %152 : vector<8xf32> to vector<8x1xf32>
    %154 = vector.broadcast %153 : vector<8x1xf32> to vector<8x8xf32>
    %155 = arith.subf %151, %154 : vector<8x8xf32>
    %156 = math.exp %155 : vector<8x8xf32>
    %cst_65 = arith.constant dense<0.000000e+00> : vector<8xf32>
    %157 = vector.multi_reduction <add>, %156, %cst_65 [1] : vector<8x8xf32> to vector<8xf32>
    %158 = vector.shape_cast %157 : vector<8xf32> to vector<8x1xf32>
    %159 = tpu.reciprocal %158 {approx = true} : vector<8x1xf32> -> vector<8x1xf32>
    %160 = vector.broadcast %159 : vector<8x1xf32> to vector<8x8xf32>
    %161 = arith.mulf %156, %160 : vector<8x8xf32>
    %162 = arith.truncf %161 : vector<8x8xf32> to vector<8x8xbf16>
    %cst_66 = arith.constant dense<0.000000e+00> : vector<8x8xf32>
    %163 = tpu.matmul %162, %148, %cst_66 {dimension_numbers = #tpu.dot_dimension_numbers<[1], [0], [0], [1], [0, 0, 1, 1], [], []>} : vector<8x8xbf16>, vector<8x8xbf16>, vector<8x8xf32> -> vector<8x8xf32>
    %c0_67 = arith.constant 0 : index
    %c8_68 = arith.constant 8 : index
    %164 = vector.load %arg22[%c0_67, %c8_68] : memref<8x32xf32, #tpu.memory_space<vmem>>, vector<8x8xf32>
    tpu.vector_store %arg22[%c0_67, %c8_68], %163 {strides = array<i32>} : memref<8x32xf32, #tpu.memory_space<vmem>>, vector<8x8xf32>,
    %165 = vector.extract_strided_slice %126 {offsets = [0, 16], sizes = [8, 8], strides = [1, 1]} : vector<8x96xbf16> to vector<8x8xbf16>
    %166 = vector.extract_strided_slice %126 {offsets = [0, 48], sizes = [8, 8], strides = [1, 1]} : vector<8x96xbf16> to vector<8x8xbf16>
    %167 = vector.extract_strided_slice %126 {offsets = [0, 80], sizes = [8, 8], strides = [1, 1]} : vector<8x96xbf16> to vector<8x8xbf16>
    %cst_69 = arith.constant dense<0.000000e+00> : vector<8x8xf32>
    %168 = tpu.matmul %165, %166, %cst_69 {dimension_numbers = #tpu.dot_dimension_numbers<[1], [1], [0], [0], [0, 0, 1, 0], [], []>} : vector<8x8xbf16>, vector<8x8xbf16>, vector<8x8xf32> -> vector<8x8xf32>
    %cst_70 = arith.constant 0.353553385 : f32
    %169 = vector.broadcast %cst_70 : f32 to vector<8x8xf32>
    %170 = arith.mulf %168, %169 : vector<8x8xf32>
    %cst_71 = arith.constant dense<0xFF800000> : vector<8xf32>
    %171 = vector.multi_reduction <maximumf>, %170, %cst_71 [1] : vector<8x8xf32> to vector<8xf32>
    %172 = vector.shape_cast %171 : vector<8xf32> to vector<8x1xf32>
    %173 = vector.broadcast %172 : vector<8x1xf32> to vector<8x8xf32>
    %174 = arith.subf %170, %173 : vector<8x8xf32>
    %175 = math.exp %174 : vector<8x8xf32>
    %cst_72 = arith.constant dense<0.000000e+00> : vector<8xf32>
    %176 = vector.multi_reduction <add>, %175, %cst_72 [1] : vector<8x8xf32> to vector<8xf32>
    %177 = vector.shape_cast %176 : vector<8xf32> to vector<8x1xf32>
    %178 = tpu.reciprocal %177 {approx = true} : vector<8x1xf32> -> vector<8x1xf32>
    %179 = vector.broadcast %178 : vector<8x1xf32> to vector<8x8xf32>
    %180 = arith.mulf %175, %179 : vector<8x8xf32>
    %181 = arith.truncf %180 : vector<8x8xf32> to vector<8x8xbf16>
    %cst_73 = arith.constant dense<0.000000e+00> : vector<8x8xf32>
    %182 = tpu.matmul %181, %167, %cst_73 {dimension_numbers = #tpu.dot_dimension_numbers<[1], [0], [0], [1], [0, 0, 1, 1], [], []>} : vector<8x8xbf16>, vector<8x8xbf16>, vector<8x8xf32> -> vector<8x8xf32>
    %c0_74 = arith.constant 0 : index
    %c16_75 = arith.constant 16 : index
    %183 = vector.load %arg22[%c0_74, %c16_75] : memref<8x32xf32, #tpu.memory_space<vmem>>, vector<8x8xf32>
    tpu.vector_store %arg22[%c0_74, %c16_75], %182 {strides = array<i32>} : memref<8x32xf32, #tpu.memory_space<vmem>>, vector<8x8xf32>,
    %184 = vector.extract_strided_slice %126 {offsets = [0, 24], sizes = [8, 8], strides = [1, 1]} : vector<8x96xbf16> to vector<8x8xbf16>
    %185 = vector.extract_strided_slice %126 {offsets = [0, 56], sizes = [8, 8], strides = [1, 1]} : vector<8x96xbf16> to vector<8x8xbf16>
    %186 = vector.extract_strided_slice %126 {offsets = [0, 88], sizes = [8, 8], strides = [1, 1]} : vector<8x96xbf16> to vector<8x8xbf16>
    %cst_76 = arith.constant dense<0.000000e+00> : vector<8x8xf32>
    %187 = tpu.matmul %184, %185, %cst_76 {dimension_numbers = #tpu.dot_dimension_numbers<[1], [1], [0], [0], [0, 0, 1, 0], [], []>} : vector<8x8xbf16>, vector<8x8xbf16>, vector<8x8xf32> -> vector<8x8xf32>
    %cst_77 = arith.constant 0.353553385 : f32
    %188 = vector.broadcast %cst_77 : f32 to vector<8x8xf32>
    %189 = arith.mulf %187, %188 : vector<8x8xf32>
    %cst_78 = arith.constant dense<0xFF800000> : vector<8xf32>
    %190 = vector.multi_reduction <maximumf>, %189, %cst_78 [1] : vector<8x8xf32> to vector<8xf32>
    %191 = vector.shape_cast %190 : vector<8xf32> to vector<8x1xf32>
    %192 = vector.broadcast %191 : vector<8x1xf32> to vector<8x8xf32>
    %193 = arith.subf %189, %192 : vector<8x8xf32>
    %194 = math.exp %193 : vector<8x8xf32>
    %cst_79 = arith.constant dense<0.000000e+00> : vector<8xf32>
    %195 = vector.multi_reduction <add>, %194, %cst_79 [1] : vector<8x8xf32> to vector<8xf32>
    %196 = vector.shape_cast %195 : vector<8xf32> to vector<8x1xf32>
    %197 = tpu.reciprocal %196 {approx = true} : vector<8x1xf32> -> vector<8x1xf32>
    %198 = vector.broadcast %197 : vector<8x1xf32> to vector<8x8xf32>
    %199 = arith.mulf %194, %198 : vector<8x8xf32>
    %200 = arith.truncf %199 : vector<8x8xf32> to vector<8x8xbf16>
    %cst_80 = arith.constant dense<0.000000e+00> : vector<8x8xf32>
    %201 = tpu.matmul %200, %186, %cst_80 {dimension_numbers = #tpu.dot_dimension_numbers<[1], [0], [0], [1], [0, 0, 1, 1], [], []>} : vector<8x8xbf16>, vector<8x8xbf16>, vector<8x8xf32> -> vector<8x8xf32>
    %c0_81 = arith.constant 0 : index
    %c24_82 = arith.constant 24 : index
    %202 = vector.load %arg22[%c0_81, %c24_82] : memref<8x32xf32, #tpu.memory_space<vmem>>, vector<8x8xf32>
    tpu.vector_store %arg22[%c0_81, %c24_82], %201 {strides = array<i32>} : memref<8x32xf32, #tpu.memory_space<vmem>>, vector<8x8xf32>,
    %c0_83 = arith.constant 0 : index
    %c0_84 = arith.constant 0 : index
    %203 = vector.load %arg22[%c0_83, %c0_84] : memref<8x32xf32, #tpu.memory_space<vmem>>, vector<8x32xf32>
    %204 = arith.truncf %203 : vector<8x32xf32> to vector<8x32xbf16>
    %c0_85 = arith.constant 0 : index
    %c0_86 = arith.constant 0 : index
    %205 = vector.load %arg11[%c0_85, %c0_86] : memref<32x32xbf16, #tpu.memory_space<vmem>>, vector<32x32xbf16>
    %cst_87 = arith.constant dense<0.000000e+00> : vector<8x32xf32>
    %206 = tpu.matmul %204, %205, %cst_87 {dimension_numbers = #tpu.dot_dimension_numbers<[1], [0], [0], [1], [0, 0, 1, 1], [], []>} : vector<8x32xbf16>, vector<32x32xbf16>, vector<8x32xf32> -> vector<8x32xf32>
    %207 = arith.addf %119, %206 : vector<8x32xf32>
    %c0_88 = arith.constant 0 : index
    %c0_89 = arith.constant 0 : index
    %208 = vector.load %arg12[%c0_88, %c0_89] : memref<1x32xf32, #tpu.memory_space<vmem>>, vector<1x32xf32>
    %209 = vector.broadcast %208 : vector<1x32xf32> to vector<8x32xf32>
    %210 = arith.addf %207, %209 : vector<8x32xf32>
    %c0_90 = arith.constant 0 : index
    %c0_91 = arith.constant 0 : index
    %211 = vector.load %arg13[%c0_90, %c0_91] : memref<1x32xf32, #tpu.memory_space<vmem>>, vector<1x32xf32>
    %c0_92 = arith.constant 0 : index
    %c0_93 = arith.constant 0 : index
    %212 = vector.load %arg14[%c0_92, %c0_93] : memref<1x32xf32, #tpu.memory_space<vmem>>, vector<1x32xf32>
    %cst_94 = arith.constant dense<0.000000e+00> : vector<8xf32>
    %213 = vector.multi_reduction <add>, %210, %cst_94 [1] : vector<8x32xf32> to vector<8xf32>
    %214 = vector.shape_cast %213 : vector<8xf32> to vector<8x1xf32>
    %cst_95 = arith.constant 3.200000e+01 : f32
    %215 = vector.broadcast %cst_95 : f32 to vector<8x1xf32>
    %216 = arith.divf %214, %215 : vector<8x1xf32>
    %217 = vector.broadcast %216 : vector<8x1xf32> to vector<8x32xf32>
    %218 = arith.subf %210, %217 : vector<8x32xf32>
    %219 = arith.mulf %218, %218 : vector<8x32xf32>
    %cst_96 = arith.constant dense<0.000000e+00> : vector<8xf32>
    %220 = vector.multi_reduction <add>, %219, %cst_96 [1] : vector<8x32xf32> to vector<8xf32>
    %221 = vector.shape_cast %220 : vector<8xf32> to vector<8x1xf32>
    %cst_97 = arith.constant 3.200000e+01 : f32
    %222 = vector.broadcast %cst_97 : f32 to vector<8x1xf32>
    %223 = arith.divf %221, %222 : vector<8x1xf32>
    %224 = vector.broadcast %216 : vector<8x1xf32> to vector<8x32xf32>
    %225 = arith.subf %210, %224 : vector<8x32xf32>
    %cst_98 = arith.constant 9.99999974E-6 : f32
    %226 = vector.broadcast %cst_98 : f32 to vector<8x1xf32>
    %227 = arith.addf %223, %226 : vector<8x1xf32>
    %228 = math.rsqrt %227 : vector<8x1xf32>
    %229 = vector.broadcast %228 : vector<8x1xf32> to vector<8x32xf32>
    %230 = arith.mulf %225, %229 : vector<8x32xf32>
    %231 = vector.broadcast %211 : vector<1x32xf32> to vector<8x32xf32>
    %232 = arith.mulf %230, %231 : vector<8x32xf32>
    %233 = vector.broadcast %212 : vector<1x32xf32> to vector<8x32xf32>
    %234 = arith.addf %232, %233 : vector<8x32xf32>
    %235 = arith.truncf %234 : vector<8x32xf32> to vector<8x32xbf16>
    %c0_99 = arith.constant 0 : index
    %c0_100 = arith.constant 0 : index
    %236 = vector.load %arg15[%c0_99, %c0_100] : memref<32x64xbf16, #tpu.memory_space<vmem>>, vector<32x64xbf16>
    %cst_101 = arith.constant dense<0.000000e+00> : vector<8x64xf32>
    %237 = tpu.matmul %235, %236, %cst_101 {dimension_numbers = #tpu.dot_dimension_numbers<[1], [0], [0], [1], [0, 0, 1, 1], [], []>} : vector<8x32xbf16>, vector<32x64xbf16>, vector<8x64xf32> -> vector<8x64xf32>
    %c0_102 = arith.constant 0 : index
    %c0_103 = arith.constant 0 : index
    %238 = vector.load %arg16[%c0_102, %c0_103] : memref<1x64xf32, #tpu.memory_space<vmem>>, vector<1x64xf32>
    %239 = vector.broadcast %238 : vector<1x64xf32> to vector<8x64xf32>
    %240 = arith.addf %237, %239 : vector<8x64xf32>
    %cst_104 = arith.constant 5.000000e-01 : f32
    %241 = vector.broadcast %cst_104 : f32 to vector<8x64xf32>
    %242 = arith.mulf %241, %240 : vector<8x64xf32>
    %cst_105 = arith.constant 0.707106769 : f32
    %243 = vector.broadcast %cst_105 : f32 to vector<8x64xf32>
    %244 = arith.mulf %240, %243 : vector<8x64xf32>
    %245 = math.erf %244 : vector<8x64xf32>
    %cst_106 = arith.constant 1.000000e+00 : f32
    %246 = vector.broadcast %cst_106 : f32 to vector<8x64xf32>
    %247 = arith.addf %246, %245 : vector<8x64xf32>
    %248 = arith.mulf %242, %247 : vector<8x64xf32>
    %249 = arith.truncf %248 : vector<8x64xf32> to vector<8x64xbf16>
    %c0_107 = arith.constant 0 : index
    %c0_108 = arith.constant 0 : index
    %250 = vector.load %arg17[%c0_107, %c0_108] : memref<64x32xbf16, #tpu.memory_space<vmem>>, vector<64x32xbf16>
    %cst_109 = arith.constant dense<0.000000e+00> : vector<8x32xf32>
    %251 = tpu.matmul %249, %250, %cst_109 {dimension_numbers = #tpu.dot_dimension_numbers<[1], [0], [0], [1], [0, 0, 1, 1], [], []>} : vector<8x64xbf16>, vector<64x32xbf16>, vector<8x32xf32> -> vector<8x32xf32>
    %252 = arith.addf %234, %251 : vector<8x32xf32>
    %c0_110 = arith.constant 0 : index
    %c0_111 = arith.constant 0 : index
    %253 = vector.load %arg18[%c0_110, %c0_111] : memref<1x32xf32, #tpu.memory_space<vmem>>, vector<1x32xf32>
    %254 = vector.broadcast %253 : vector<1x32xf32> to vector<8x32xf32>
    %255 = arith.addf %252, %254 : vector<8x32xf32>
    %c0_112 = arith.constant 0 : index
    %c0_113 = arith.constant 0 : index
    %256 = vector.load %arg19[%c0_112, %c0_113] : memref<1x32xf32, #tpu.memory_space<vmem>>, vector<1x32xf32>
    %c0_114 = arith.constant 0 : index
    %c0_115 = arith.constant 0 : index
    %257 = vector.load %arg20[%c0_114, %c0_115] : memref<1x32xf32, #tpu.memory_space<vmem>>, vector<1x32xf32>
    %cst_116 = arith.constant dense<0.000000e+00> : vector<8xf32>
    %258 = vector.multi_reduction <add>, %255, %cst_116 [1] : vector<8x32xf32> to vector<8xf32>
    %259 = vector.shape_cast %258 : vector<8xf32> to vector<8x1xf32>
    %cst_117 = arith.constant 3.200000e+01 : f32
    %260 = vector.broadcast %cst_117 : f32 to vector<8x1xf32>
    %261 = arith.divf %259, %260 : vector<8x1xf32>
    %262 = vector.broadcast %261 : vector<8x1xf32> to vector<8x32xf32>
    %263 = arith.subf %255, %262 : vector<8x32xf32>
    %264 = arith.mulf %263, %263 : vector<8x32xf32>
    %cst_118 = arith.constant dense<0.000000e+00> : vector<8xf32>
    %265 = vector.multi_reduction <add>, %264, %cst_118 [1] : vector<8x32xf32> to vector<8xf32>
    %266 = vector.shape_cast %265 : vector<8xf32> to vector<8x1xf32>
    %cst_119 = arith.constant 3.200000e+01 : f32
    %267 = vector.broadcast %cst_119 : f32 to vector<8x1xf32>
    %268 = arith.divf %266, %267 : vector<8x1xf32>
    %269 = vector.broadcast %261 : vector<8x1xf32> to vector<8x32xf32>
    %270 = arith.subf %255, %269 : vector<8x32xf32>
    %cst_120 = arith.constant 9.99999974E-6 : f32
    %271 = vector.broadcast %cst_120 : f32 to vector<8x1xf32>
    %272 = arith.addf %268, %271 : vector<8x1xf32>
    %273 = math.rsqrt %272 : vector<8x1xf32>
    %274 = vector.broadcast %273 : vector<8x1xf32> to vector<8x32xf32>
    %275 = arith.mulf %270, %274 : vector<8x32xf32>
    %276 = vector.broadcast %256 : vector<1x32xf32> to vector<8x32xf32>
    %277 = arith.mulf %275, %276 : vector<8x32xf32>
    %278 = vector.broadcast %257 : vector<1x32xf32> to vector<8x32xf32>
    %279 = arith.addf %277, %278 : vector<8x32xf32>
    %280 = vector.shape_cast %279 : vector<8x32xf32> to vector<1x8x32xf32>
    %281 = arith.truncf %280 : vector<1x8x32xf32> to vector<1x8x32xbf16>
    %c0_121 = arith.constant 0 : index
    %c0_122 = arith.constant 0 : index
    %c0_123 = arith.constant 0 : index
    %282 = vector.load %arg21[%c0_121, %c0_122, %c0_123] : memref<1x8x32xbf16, #tpu.memory_space<vmem>>, vector<1x8x32xbf16>
    tpu.vector_store %arg21[%c0_121, %c0_122, %c0_123], %281 {strides = array<i32>} : memref<1x8x32xbf16, #tpu.memory_space<vmem>>, vector<1x8x32xbf16>,
    return
  }
  func.func @transform_0(%arg0: i32) -> (i32, i32, i32) {
    %c0_i32 = arith.constant 0 : i32
    %c0_i32_0 = arith.constant 0 : i32
    %c0_i32_1 = arith.constant 0 : i32
    return %arg0, %c0_i32, %c0_i32_0 : i32, i32, i32
  }
  func.func @transform_1(%arg0: i32) -> (i32, i32, i32) {
    %c0_i32 = arith.constant 0 : i32
    %c0_i32_0 = arith.constant 0 : i32
    %c0_i32_1 = arith.constant 0 : i32
    return %arg0, %c0_i32, %c0_i32_0 : i32, i32, i32
  }
  func.func @transform_2(%arg0: i32) -> (i32, i32) {
    %c0_i32 = arith.constant 0 : i32
    %c0_i32_0 = arith.constant 0 : i32
    %c0_i32_1 = arith.constant 0 : i32
    return %c0_i32, %c0_i32_0 : i32, i32
  }
  func.func @transform_3(%arg0: i32) -> (i32, i32) {
    %c0_i32 = arith.constant 0 : i32
    %c0_i32_0 = arith.constant 0 : i32
    %c0_i32_1 = arith.constant 0 : i32
    return %c0_i32, %c0_i32_0 : i32, i32
  }
  func.func @transform_4(%arg0: i32) -> (i32, i32) {
    %c0_i32 = arith.constant 0 : i32
    %c0_i32_0 = arith.constant 0 : i32
    %c0_i32_1 = arith.constant 0 : i32
    return %c0_i32, %c0_i32_0 : i32, i32
  }
  func.func @transform_5(%arg0: i32) -> (i32, i32) {
    %c0_i32 = arith.constant 0 : i32
    %c0_i32_0 = arith.constant 0 : i32
    %c0_i32_1 = arith.constant 0 : i32
    return %c0_i32, %c0_i32_0 : i32, i32
  }
  func.func @transform_6(%arg0: i32) -> (i32, i32) {
    %c0_i32 = arith.constant 0 : i32
    %c0_i32_0 = arith.constant 0 : i32
    %c0_i32_1 = arith.constant 0 : i32
    return %c0_i32, %c0_i32_0 : i32, i32
  }
  func.func @transform_7(%arg0: i32) -> (i32, i32) {
    %c0_i32 = arith.constant 0 : i32
    %c0_i32_0 = arith.constant 0 : i32
    %c0_i32_1 = arith.constant 0 : i32
    return %c0_i32, %c0_i32_0 : i32, i32
  }
  func.func @transform_8(%arg0: i32) -> (i32, i32) {
    %c0_i32 = arith.constant 0 : i32
    %c0_i32_0 = arith.constant 0 : i32
    %c0_i32_1 = arith.constant 0 : i32
    return %c0_i32, %c0_i32_0 : i32, i32
  }
  func.func @transform_9(%arg0: i32) -> (i32, i32) {
    %c0_i32 = arith.constant 0 : i32
    %c0_i32_0 = arith.constant 0 : i32
    %c0_i32_1 = arith.constant 0 : i32
    return %c0_i32, %c0_i32_0 : i32, i32
  }
  func.func @transform_10(%arg0: i32) -> (i32, i32) {
    %c0_i32 = arith.constant 0 : i32
    %c0_i32_0 = arith.constant 0 : i32
    %c0_i32_1 = arith.constant 0 : i32
    return %c0_i32, %c0_i32_0 : i32, i32
  }
  func.func @transform_11(%arg0: i32) -> (i32, i32) {
    %c0_i32 = arith.constant 0 : i32
    %c0_i32_0 = arith.constant 0 : i32
    %c0_i32_1 = arith.constant 0 : i32
    return %c0_i32, %c0_i32_0 : i32, i32
  }
  func.func @transform_12(%arg0: i32) -> (i32, i32) {
    %c0_i32 = arith.constant 0 : i32
    %c0_i32_0 = arith.constant 0 : i32
    %c0_i32_1 = arith.constant 0 : i32
    return %c0_i32, %c0_i32_0 : i32, i32
  }
  func.func @transform_13(%arg0: i32) -> (i32, i32) {
    %c0_i32 = arith.constant 0 : i32
    %c0_i32_0 = arith.constant 0 : i32
    %c0_i32_1 = arith.constant 0 : i32
    return %c0_i32, %c0_i32_0 : i32, i32
  }
  func.func @transform_14(%arg0: i32) -> (i32, i32) {
    %c0_i32 = arith.constant 0 : i32
    %c0_i32_0 = arith.constant 0 : i32
    %c0_i32_1 = arith.constant 0 : i32
    return %c0_i32, %c0_i32_0 : i32, i32
  }
  func.func @transform_15(%arg0: i32) -> (i32, i32) {
    %c0_i32 = arith.constant 0 : i32
    %c0_i32_0 = arith.constant 0 : i32
    %c0_i32_1 = arith.constant 0 : i32
    return %c0_i32, %c0_i32_0 : i32, i32
  }
  func.func @transform_16(%arg0: i32) -> (i32, i32) {
    %c0_i32 = arith.constant 0 : i32
    %c0_i32_0 = arith.constant 0 : i32
    %c0_i32_1 = arith.constant 0 : i32
    return %c0_i32, %c0_i32_0 : i32, i32
  }
  func.func @transform_17(%arg0: i32) -> (i32, i32) {
    %c0_i32 = arith.constant 0 : i32
    %c0_i32_0 = arith.constant 0 : i32
    %c0_i32_1 = arith.constant 0 : i32
    return %c0_i32, %c0_i32_0 : i32, i32
  }
  func.func @transform_18(%arg0: i32) -> (i32, i32) {
    %c0_i32 = arith.constant 0 : i32
    %c0_i32_0 = arith.constant 0 : i32
    %c0_i32_1 = arith.constant 0 : i32
    return %c0_i32, %c0_i32_0 : i32, i32
  }
  func.func @transform_19(%arg0: i32) -> (i32, i32) {
    %c0_i32 = arith.constant 0 : i32
    %c0_i32_0 = arith.constant 0 : i32
    %c0_i32_1 = arith.constant 0 : i32
    return %c0_i32, %c0_i32_0 : i32, i32
  }
  func.func @transform_20(%arg0: i32) -> (i32, i32, i32) {
    %c0_i32 = arith.constant 0 : i32
    %c0_i32_0 = arith.constant 0 : i32
    %c0_i32_1 = arith.constant 0 : i32
    return %arg0, %c0_i32, %c0_i32_0 : i32, i32, i32
  }
}

module attributes {stable_mosaic.version = 11 : i64} {
  func.func @_fused_matmul_kernel(%arg0: i32, %arg1: i32, %arg2: i32, %arg3: memref<8x32xbf16, #tpu.memory_space<vmem>>, %arg4: memref<32x64xbf16, #tpu.memory_space<vmem>>, %arg5: memref<1x64xf32, #tpu.memory_space<vmem>>, %arg6: memref<8x64xbf16, #tpu.memory_space<vmem>>) attributes {dimension_semantics = [#tpu.dimension_semantics<parallel>, #tpu.dimension_semantics<parallel>, #tpu.dimension_semantics<arbitrary>], iteration_bounds = array<i64: 2, 1, 1>, scalar_prefetch = 0 : i64, scratch_operands = 0 : i64, tpu.core_type = #tpu.core_type<tc>, window_params = [{transform_indices = @transform_0, window_bounds = array<i64: 8, 32>}, {transform_indices = @transform_1, window_bounds = array<i64: 32, 64>}, {transform_indices = @transform_2, window_bounds = array<i64: 1, 64>}, {transform_indices = @transform_3, window_bounds = array<i64: 8, 64>}]} {
    %c0 = arith.constant 0 : index
    %c0_0 = arith.constant 0 : index
    %0 = vector.load %arg3[%c0, %c0_0] : memref<8x32xbf16, #tpu.memory_space<vmem>>, vector<8x32xbf16>
    %c0_1 = arith.constant 0 : index
    %c0_2 = arith.constant 0 : index
    %1 = vector.load %arg4[%c0_1, %c0_2] : memref<32x64xbf16, #tpu.memory_space<vmem>>, vector<32x64xbf16>
    %cst = arith.constant dense<0.000000e+00> : vector<8x64xf32>
    %2 = tpu.matmul %0, %1, %cst {dimension_numbers = #tpu.dot_dimension_numbers<[1], [0], [0], [1], [0, 0, 1, 1], [], []>} : vector<8x32xbf16>, vector<32x64xbf16>, vector<8x64xf32> -> vector<8x64xf32>
    %c0_3 = arith.constant 0 : index
    %c0_4 = arith.constant 0 : index
    %3 = vector.load %arg5[%c0_3, %c0_4] : memref<1x64xf32, #tpu.memory_space<vmem>>, vector<1x64xf32>
    %4 = vector.broadcast %3 : vector<1x64xf32> to vector<8x64xf32>
    %5 = arith.addf %2, %4 : vector<8x64xf32>
    %6 = arith.truncf %5 : vector<8x64xf32> to vector<8x64xbf16>
    %c0_5 = arith.constant 0 : index
    %c0_6 = arith.constant 0 : index
    %7 = vector.load %arg6[%c0_5, %c0_6] : memref<8x64xbf16, #tpu.memory_space<vmem>>, vector<8x64xbf16>
    tpu.vector_store %arg6[%c0_5, %c0_6], %6 {strides = array<i32>} : memref<8x64xbf16, #tpu.memory_space<vmem>>, vector<8x64xbf16>,
    return
  }
  func.func @transform_0(%arg0: i32, %arg1: i32, %arg2: i32) -> (i32, i32) {
    %c0_i32 = arith.constant 0 : i32
    return %arg0, %arg2 : i32, i32
  }
  func.func @transform_1(%arg0: i32, %arg1: i32, %arg2: i32) -> (i32, i32) {
    %c0_i32 = arith.constant 0 : i32
    return %arg2, %arg1 : i32, i32
  }
  func.func @transform_2(%arg0: i32, %arg1: i32, %arg2: i32) -> (i32, i32) {
    %c0_i32 = arith.constant 0 : i32
    %c0_i32_0 = arith.constant 0 : i32
    return %c0_i32, %arg1 : i32, i32
  }
  func.func @transform_3(%arg0: i32, %arg1: i32, %arg2: i32) -> (i32, i32) {
    %c0_i32 = arith.constant 0 : i32
    return %arg0, %arg1 : i32, i32
  }
}

module attributes {stable_mosaic.version = 11 : i64} {
  func.func @_fused_matmul_kernel(%arg0: i32, %arg1: i32, %arg2: i32, %arg3: memref<16x32xbf16, #tpu.memory_space<vmem>>, %arg4: memref<32x32xbf16, #tpu.memory_space<vmem>>, %arg5: memref<1x32xf32, #tpu.memory_space<vmem>>, %arg6: memref<16x32xbf16, #tpu.memory_space<vmem>>) attributes {dimension_semantics = [#tpu.dimension_semantics<parallel>, #tpu.dimension_semantics<parallel>, #tpu.dimension_semantics<arbitrary>], iteration_bounds = array<i64: 2, 1, 1>, scalar_prefetch = 0 : i64, scratch_operands = 0 : i64, tpu.core_type = #tpu.core_type<tc>, window_params = [{transform_indices = @transform_0, window_bounds = array<i64: 16, 32>}, {transform_indices = @transform_1, window_bounds = array<i64: 32, 32>}, {transform_indices = @transform_2, window_bounds = array<i64: 1, 32>}, {transform_indices = @transform_3, window_bounds = array<i64: 16, 32>}]} {
    %c0 = arith.constant 0 : index
    %c0_0 = arith.constant 0 : index
    %0 = vector.load %arg3[%c0, %c0_0] : memref<16x32xbf16, #tpu.memory_space<vmem>>, vector<16x32xbf16>
    %c0_1 = arith.constant 0 : index
    %c0_2 = arith.constant 0 : index
    %1 = vector.load %arg4[%c0_1, %c0_2] : memref<32x32xbf16, #tpu.memory_space<vmem>>, vector<32x32xbf16>
    %cst = arith.constant dense<0.000000e+00> : vector<16x32xf32>
    %2 = tpu.matmul %0, %1, %cst {dimension_numbers = #tpu.dot_dimension_numbers<[1], [0], [0], [1], [0, 0, 1, 1], [], []>} : vector<16x32xbf16>, vector<32x32xbf16>, vector<16x32xf32> -> vector<16x32xf32>
    %c0_3 = arith.constant 0 : index
    %c0_4 = arith.constant 0 : index
    %3 = vector.load %arg5[%c0_3, %c0_4] : memref<1x32xf32, #tpu.memory_space<vmem>>, vector<1x32xf32>
    %4 = vector.broadcast %3 : vector<1x32xf32> to vector<16x32xf32>
    %5 = arith.addf %2, %4 : vector<16x32xf32>
    %6 = arith.truncf %5 : vector<16x32xf32> to vector<16x32xbf16>
    %c0_5 = arith.constant 0 : index
    %c0_6 = arith.constant 0 : index
    %7 = vector.load %arg6[%c0_5, %c0_6] : memref<16x32xbf16, #tpu.memory_space<vmem>>, vector<16x32xbf16>
    tpu.vector_store %arg6[%c0_5, %c0_6], %6 {strides = array<i32>} : memref<16x32xbf16, #tpu.memory_space<vmem>>, vector<16x32xbf16>,
    return
  }
  func.func @transform_0(%arg0: i32, %arg1: i32, %arg2: i32) -> (i32, i32) {
    %c0_i32 = arith.constant 0 : i32
    return %arg0, %arg2 : i32, i32
  }
  func.func @transform_1(%arg0: i32, %arg1: i32, %arg2: i32) -> (i32, i32) {
    %c0_i32 = arith.constant 0 : i32
    return %arg2, %arg1 : i32, i32
  }
  func.func @transform_2(%arg0: i32, %arg1: i32, %arg2: i32) -> (i32, i32) {
    %c0_i32 = arith.constant 0 : i32
    %c0_i32_0 = arith.constant 0 : i32
    return %c0_i32, %arg1 : i32, i32
  }
  func.func @transform_3(%arg0: i32, %arg1: i32, %arg2: i32) -> (i32, i32) {
    %c0_i32 = arith.constant 0 : i32
    return %arg0, %arg1 : i32, i32
  }
}

module attributes {stable_mosaic.version = 11 : i64} {
  func.func @_final_head_kernel(%arg0: i32, %arg1: memref<2x8x32xbf16, #tpu.memory_space<vmem>>, %arg2: memref<1x32xf32, #tpu.memory_space<vmem>>, %arg3: memref<1x32xf32, #tpu.memory_space<vmem>>, %arg4: memref<32x10xbf16, #tpu.memory_space<vmem>>, %arg5: memref<1x10xf32, #tpu.memory_space<vmem>>, %arg6: memref<2x10xf32, #tpu.memory_space<vmem>>, %arg7: memref<2x32xf32, #tpu.memory_space<vmem>>) attributes {dimension_semantics = [#tpu.dimension_semantics<arbitrary>], iteration_bounds = array<i64: 2>, scalar_prefetch = 0 : i64, scratch_operands = 1 : i64, tpu.core_type = #tpu.core_type<tc>, window_params = [{transform_indices = @transform_0, window_bounds = array<i64: 2, 8, 32>}, {pipeline_mode = #tpu.pipeline_mode<synchronous>, transform_indices = @transform_1, window_bounds = array<i64: 1, 32>}, {pipeline_mode = #tpu.pipeline_mode<synchronous>, transform_indices = @transform_2, window_bounds = array<i64: 1, 32>}, {pipeline_mode = #tpu.pipeline_mode<synchronous>, transform_indices = @transform_3, window_bounds = array<i64: 32, 10>}, {pipeline_mode = #tpu.pipeline_mode<synchronous>, transform_indices = @transform_4, window_bounds = array<i64: 1, 10>}, {pipeline_mode = #tpu.pipeline_mode<synchronous>, transform_indices = @transform_5, window_bounds = array<i64: 2, 10>}]} {
    %c0_i32 = arith.constant 0 : i32
    %0 = arith.cmpi eq, %arg0, %c0_i32 : i32
    %1 = arith.extui %0 : i1 to i32
    %c0_i32_0 = arith.constant 0 : i32
    %2 = arith.cmpi ne, %1, %c0_i32_0 : i32
    scf.if %2 {
      %cst_17 = arith.constant 0.000000e+00 : f32
      %38 = vector.broadcast %cst_17 : f32 to vector<2x32xf32>
      %c0_18 = arith.constant 0 : index
      %c0_19 = arith.constant 0 : index
      %39 = vector.load %arg7[%c0_18, %c0_19] : memref<2x32xf32, #tpu.memory_space<vmem>>, vector<2x32xf32>
      tpu.vector_store %arg7[%c0_18, %c0_19], %38 {strides = array<i32>} : memref<2x32xf32, #tpu.memory_space<vmem>>, vector<2x32xf32>,
    } else {
    }
    %c0 = arith.constant 0 : index
    %c0_1 = arith.constant 0 : index
    %c0_2 = arith.constant 0 : index
    %3 = vector.load %arg1[%c0, %c0_1, %c0_2] : memref<2x8x32xbf16, #tpu.memory_space<vmem>>, vector<2x8x32xbf16>
    %4 = arith.extf %3 : vector<2x8x32xbf16> to vector<2x8x32xf32>
    %c0_3 = arith.constant 0 : index
    %c0_4 = arith.constant 0 : index
    %5 = vector.load %arg2[%c0_3, %c0_4] : memref<1x32xf32, #tpu.memory_space<vmem>>, vector<1x32xf32>
    %c0_5 = arith.constant 0 : index
    %c0_6 = arith.constant 0 : index
    %6 = vector.load %arg3[%c0_5, %c0_6] : memref<1x32xf32, #tpu.memory_space<vmem>>, vector<1x32xf32>
    %cst = arith.constant dense<0.000000e+00> : vector<2x8xf32>
    %7 = vector.multi_reduction <add>, %4, %cst [2] : vector<2x8x32xf32> to vector<2x8xf32>
    %8 = vector.shape_cast %7 : vector<2x8xf32> to vector<2x8x1xf32>
    %cst_7 = arith.constant 3.200000e+01 : f32
    %9 = vector.broadcast %cst_7 : f32 to vector<2x8x1xf32>
    %10 = arith.divf %8, %9 : vector<2x8x1xf32>
    %11 = vector.broadcast %10 : vector<2x8x1xf32> to vector<2x8x32xf32>
    %12 = arith.subf %4, %11 : vector<2x8x32xf32>
    %13 = arith.mulf %12, %12 : vector<2x8x32xf32>
    %cst_8 = arith.constant dense<0.000000e+00> : vector<2x8xf32>
    %14 = vector.multi_reduction <add>, %13, %cst_8 [2] : vector<2x8x32xf32> to vector<2x8xf32>
    %15 = vector.shape_cast %14 : vector<2x8xf32> to vector<2x8x1xf32>
    %cst_9 = arith.constant 3.200000e+01 : f32
    %16 = vector.broadcast %cst_9 : f32 to vector<2x8x1xf32>
    %17 = arith.divf %15, %16 : vector<2x8x1xf32>
    %18 = vector.broadcast %10 : vector<2x8x1xf32> to vector<2x8x32xf32>
    %19 = arith.subf %4, %18 : vector<2x8x32xf32>
    %cst_10 = arith.constant 9.99999974E-6 : f32
    %20 = vector.broadcast %cst_10 : f32 to vector<2x8x1xf32>
    %21 = arith.addf %17, %20 : vector<2x8x1xf32>
    %22 = math.rsqrt %21 : vector<2x8x1xf32>
    %23 = vector.broadcast %22 : vector<2x8x1xf32> to vector<2x8x32xf32>
    %24 = arith.mulf %19, %23 : vector<2x8x32xf32>
    %25 = vector.shape_cast %5 : vector<1x32xf32> to vector<1x1x32xf32>
    %26 = vector.broadcast %25 : vector<1x1x32xf32> to vector<2x8x32xf32>
    %27 = arith.mulf %24, %26 : vector<2x8x32xf32>
    %28 = vector.shape_cast %6 : vector<1x32xf32> to vector<1x1x32xf32>
    %29 = vector.broadcast %28 : vector<1x1x32xf32> to vector<2x8x32xf32>
    %30 = arith.addf %27, %29 : vector<2x8x32xf32>
    %c0_11 = arith.constant 0 : index
    %c0_12 = arith.constant 0 : index
    %31 = vector.load %arg7[%c0_11, %c0_12] : memref<2x32xf32, #tpu.memory_space<vmem>>, vector<2x32xf32>
    %cst_13 = arith.constant dense<0.000000e+00> : vector<2x32xf32>
    %32 = vector.multi_reduction <add>, %30, %cst_13 [1] : vector<2x8x32xf32> to vector<2x32xf32>
    %33 = arith.addf %31, %32 : vector<2x32xf32>
    %c0_14 = arith.constant 0 : index
    %c0_15 = arith.constant 0 : index
    %34 = vector.load %arg7[%c0_14, %c0_15] : memref<2x32xf32, #tpu.memory_space<vmem>>, vector<2x32xf32>
    tpu.vector_store %arg7[%c0_14, %c0_15], %33 {strides = array<i32>} : memref<2x32xf32, #tpu.memory_space<vmem>>, vector<2x32xf32>,
    %c1_i32 = arith.constant 1 : i32
    %35 = arith.cmpi eq, %arg0, %c1_i32 : i32
    %36 = arith.extui %35 : i1 to i32
    %c0_i32_16 = arith.constant 0 : i32
    %37 = arith.cmpi ne, %36, %c0_i32_16 : i32
    scf.if %37 {
      %c0_17 = arith.constant 0 : index
      %c0_18 = arith.constant 0 : index
      %38 = vector.load %arg7[%c0_17, %c0_18] : memref<2x32xf32, #tpu.memory_space<vmem>>, vector<2x32xf32>
      %cst_19 = arith.constant 6.250000e-02 : f32
      %39 = vector.broadcast %cst_19 : f32 to vector<2x32xf32>
      %40 = arith.mulf %38, %39 : vector<2x32xf32>
      %41 = arith.truncf %40 : vector<2x32xf32> to vector<2x32xbf16>
      %c0_20 = arith.constant 0 : index
      %c0_21 = arith.constant 0 : index
      %42 = vector.load %arg4[%c0_20, %c0_21] : memref<32x10xbf16, #tpu.memory_space<vmem>>, vector<32x10xbf16>
      %cst_22 = arith.constant dense<0.000000e+00> : vector<2x10xf32>
      %43 = tpu.matmul %41, %42, %cst_22 {dimension_numbers = #tpu.dot_dimension_numbers<[1], [0], [0], [1], [0, 0, 1, 1], [], []>} : vector<2x32xbf16>, vector<32x10xbf16>, vector<2x10xf32> -> vector<2x10xf32>
      %c0_23 = arith.constant 0 : index
      %c0_24 = arith.constant 0 : index
      %44 = vector.load %arg5[%c0_23, %c0_24] : memref<1x10xf32, #tpu.memory_space<vmem>>, vector<1x10xf32>
      %45 = vector.broadcast %44 : vector<1x10xf32> to vector<2x10xf32>
      %46 = arith.addf %43, %45 : vector<2x10xf32>
      %c0_25 = arith.constant 0 : index
      %c0_26 = arith.constant 0 : index
      %47 = vector.load %arg6[%c0_25, %c0_26] : memref<2x10xf32, #tpu.memory_space<vmem>>, vector<2x10xf32>
      tpu.vector_store %arg6[%c0_25, %c0_26], %46 {strides = array<i32>} : memref<2x10xf32, #tpu.memory_space<vmem>>, vector<2x10xf32>,
    } else {
    }
    return
  }
  func.func @transform_0(%arg0: i32) -> (i32, i32, i32) {
    %c0_i32 = arith.constant 0 : i32
    %c0_i32_0 = arith.constant 0 : i32
    %c0_i32_1 = arith.constant 0 : i32
    return %c0_i32, %arg0, %c0_i32_0 : i32, i32, i32
  }
  func.func @transform_1(%arg0: i32) -> (i32, i32) {
    %c0_i32 = arith.constant 0 : i32
    %c0_i32_0 = arith.constant 0 : i32
    %c0_i32_1 = arith.constant 0 : i32
    return %c0_i32, %c0_i32_0 : i32, i32
  }
  func.func @transform_2(%arg0: i32) -> (i32, i32) {
    %c0_i32 = arith.constant 0 : i32
    %c0_i32_0 = arith.constant 0 : i32
    %c0_i32_1 = arith.constant 0 : i32
    return %c0_i32, %c0_i32_0 : i32, i32
  }
  func.func @transform_3(%arg0: i32) -> (i32, i32) {
    %c0_i32 = arith.constant 0 : i32
    %c0_i32_0 = arith.constant 0 : i32
    %c0_i32_1 = arith.constant 0 : i32
    return %c0_i32, %c0_i32_0 : i32, i32
  }
  func.func @transform_4(%arg0: i32) -> (i32, i32) {
    %c0_i32 = arith.constant 0 : i32
    %c0_i32_0 = arith.constant 0 : i32
    %c0_i32_1 = arith.constant 0 : i32
    return %c0_i32, %c0_i32_0 : i32, i32
  }
  func.func @transform_5(%arg0: i32) -> (i32, i32) {
    %c0_i32 = arith.constant 0 : i32
    %c0_i32_0 = arith.constant 0 : i32
    %c0_i32_1 = arith.constant 0 : i32
    return %c0_i32, %c0_i32_0 : i32, i32
  }
}

</mosaic_0001>

<bundles_post_ra>
// kernel: decoder_vit_forward.25
= control target key start
LH: loop header
LB: loop body
LE: loop exit
PB: predicated region body
PF: predicated region fallthrough
CT: control target
= control target key end

     0   :  { %s653_s18 = smov 0   ;;  %s655_s19 = smov 0   ;;  %s713_s0 = inlined_call_operand.vmem [shape: bf16[32,32], index: 0, kind: input, shape index: {}]   ;;  %s714_s1 = inlined_call_operand.vmem [shape: f32[1,32], index: 1, kind: input, shape index: {}]   ;;  %s715_s2 = inlined_call_operand.vmem [shape: f32[1,32], index: 2, kind: input, shape index: {}]   ;;  %s716_s3 = inlined_call_operand.vmem [shape: bf16[32,96], index: 3, kind: input, shape index: {}]   ;;  %s717_s4 = inlined_call_operand.vmem [shape: f32[1,96], index: 4, kind: input, shape index: {}]   ;;  %s718_s5 = inlined_call_operand.vmem [shape: bf16[32,96], index: 5, kind: output, shape index: {}]  }
   0x1   :  { %s657_s20 = smov 0  }
   0x2 LB: > { %s34_s21 = sadd.s32 1, %s616_s19  ;;  %p542_p0 = scmp.ge.s32.totalorder %s620_s20, 1  ;;  %s620_s20 = sphi %s657_s20, %s15_s20   ;;  %s616_s19 = sphi %s655_s19, %s720_s19   ;;  %s612_s18 = sphi %s653_s18, %s719_s18  }
   0x3   : > { %p36_p1 = scmp.ge.s32.totalorder %s34_s21, 2  ;;  %p238_p2 = scmp.lt.s32.totalorder %s620_s20, 3 }
   0x5   : > { %s722_s21 = smov (%p36_p1, %s34_s21), 0  ;;  %p239_p3 = pnand %p542_p0, %p238_p2 }
   0x6   : > { %s543_s22 = sshll.u32 (!%p239_p3), %s612_s18, 1 }
   0x7   : > { %242 = sbr.rel (%p239_p3) target bundleno = 435 (0x1b3), region = 40  ;;  %p284_p4 = scmp.lt.s32.totalorder (!%p239_p3), %s543_s22, 3 }
   0xc   : > { %s724_s22 = smov (!%p284_p4, %s543_s22), 3  ;;  %vm320_vm0 = vcmask 261120   ;;  %v622_v5 = vmov 32.0   ;;  %v559_v22 = vld [vmem:[%s716_s3 + $0x8] sm:$0xff]  ;;  %v558_v24 = vld [vmem:[%s716_s3] sm:$0xff]  ;;  %vm422_vm8 = vcmask 781312  }
   0xd   : > { %s544_s23 = sshll.u32 %s724_s22, 2  ;;  %592 = vrcp.f32 %v622_v5  ;;  %412 = vmatpush.bf16.msra.mxu0 %v559_v22  ;;  %v589_v43 = vld [vmem:[%s714_s1] ss:$0 sm:$0xff] }
   0xe   : > { %s290_s26 = scalar_lea.vmem %s713_s0, %s544_s23  ;;  %v590_v48 = vld [vmem:[%s715_s2] ss:$0 sm:$0xff]  ;;  %s311_s14 = scalar_lea.vmem %s718_s5, %s544_s23 }
   0xf   : > { %v561_v0 = vld [vmem:[%s290_s26] sm:$0xff]  }
  0x10   : > { %v562_v1 = vunpack.c.l.bf16 %v561_v0  ;;  %v563_v3 = vunpack.c.h.bf16 %v561_v0  ;;  %v591_v53 = vld [vmem:[%s717_s4] ss:$0 sm:$0xff] }
  0x11   : > { %413 = vmatpush.bf16.msra.mxu0 %v558_v24 }
  0x12   : > { %v321_v2 = vsel %vm320_vm0, %v562_v1, 0.0  ;;  %v324_v4 = vsel %vm320_vm0, %v563_v3, 0.0 }
  0x13   : > { %322 = vadd.xlane.f32.xlu0 %v321_v2  ;;  %v593_v6 = vpop.eup %592 }
  0x14   : > { %v328_v7 = vmul.f32 32.0, %v593_v6  ;;  %vm332_vm1 = vweird.f32 %v593_v6 }
  0x16   : > { %v329_v8 = vsub.f32 1.0, %v328_v7 }
  0x18   : > { %v330_v9 = vmul.f32 %v593_v6, %v329_v8 }
  0x1a   : > { %v331_v10 = vadd.f32 %v593_v6, %v330_v9 }
  0x1b   : > { %325 = vadd.xlane.f32.xlu0 %v324_v4 }
  0x1c   : > { %v333_v11 = vsel %vm332_vm1, %v593_v6, %v331_v10 }
  0x86   : > { %v323_v12 = vpop.xlane.xlu0 %322 }
  0x87   : > { %v334_v13 = vmul.f32 %v333_v11, %v323_v12 }
  0x89   : > { %v336_v14 = vsub.f32 %v562_v1, %v334_v13 }
  0x8b   : > { %v338_v15 = vmul.f32 %v336_v14, %v336_v14 }
  0x8d   : > { %v340_v16 = vsel %vm320_vm0, %v338_v15, 0.0 }
  0x8e   : > { %341 = vadd.xlane.f32.xlu1 %v340_v16  ;;  %v326_v17 = vpop.xlane.xlu0 %325 }
  0x8f   : > { %v335_v18 = vmul.f32 %v333_v11, %v326_v17 }
  0x91   : > { %v337_v19 = vsub.f32 %v563_v3, %v335_v18 }
  0x93   : > { %v339_v20 = vmul.f32 %v337_v19, %v337_v19 }
  0x95   : > { %v343_v21 = vsel %vm320_vm0, %v339_v20, 0.0 }
  0x96   : > { %344 = vadd.xlane.f32.xlu1 %v343_v21 }
 0x101   : > { %v342_v23 = vpop.xlane.xlu1 %341 }
 0x102   : > { %v346_v25 = vmul.f32 %v342_v23, %v333_v11 }
 0x104   : > { %v348_v26 = vadd.f32 1e-05, %v346_v25 }
 0x106   : > { %594 = vrsqrt.f32 %v348_v26  ;;  %vm356_vm3 = vweird.f32 %v348_v26 }
 0x109   : > { %v345_v27 = vpop.xlane.xlu1 %344 }
 0x10a   : > { %v347_v28 = vmul.f32 %v345_v27, %v333_v11 }
 0x10c   : > { %v595_v29 = vpop.eup %594  ;;  %v349_v30 = vadd.f32 1e-05, %v347_v28 }
 0x10d   : > { %v351_v31 = vmul.f32 %v595_v29, %v348_v26  ;;  %vm357_vm2 = vweird.f32 %v595_v29 }
 0x10e   : > { %596 = vrsqrt.f32 %v349_v30  ;;  %vm358_vm4 = vmor %vm356_vm3, %vm357_vm2  ;;  %vm366_vm6 = vweird.f32 %v349_v30 }
 0x10f   : > { %v352_v32 = vmul.f32 %v595_v29, %v351_v31 }
 0x111   : > { %v353_v33 = vmul.f32 0.5, %v352_v32 }
 0x113   : > { %v354_v34 = vsub.f32 1.5, %v353_v33 }
 0x114   : > { %v597_v35 = vpop.eup %596 }
 0x115   : > { %v355_v36 = vmul.f32 %v595_v29, %v354_v34  ;;  %v361_v37 = vmul.f32 %v597_v35, %v349_v30  ;;  %vm367_vm5 = vweird.f32 %v597_v35 }
 0x116   : > { %vm368_vm7 = vmor %vm366_vm6, %vm367_vm5 }
 0x117   : > { %v362_v38 = vmul.f32 %v597_v35, %v361_v37  ;;  %v359_v39 = vsel %vm358_vm4, %v595_v29, %v355_v36 }
 0x118   : > { %v370_v42 = vmul.f32 %v359_v39, %v336_v14 }
 0x119   : > { %v363_v40 = vmul.f32 0.5, %v362_v38 }
 0x11a   : > { %v375_v47 = vmul.f32 %v589_v43, %v370_v42 }
 0x11b   : > { %v364_v41 = vsub.f32 1.5, %v363_v40 }
 0x11c   : > { %v380_v50 = vadd.f32 %v590_v48, %v375_v47 }
 0x11d   : > { %v365_v44 = vmul.f32 %v597_v35, %v364_v41 }
 0x11f   : > { %v369_v45 = vsel %vm368_vm7, %v597_v35, %v365_v44 }
 0x120   : > { %v371_v46 = vmul.f32 %v369_v45, %v337_v19 }
 0x122   : > { %v376_v49 = vmul.f32 %v589_v43, %v371_v46 }
 0x124   : > { %v381_v51 = vadd.f32 %v590_v48, %v376_v49 }
 0x126   : > { %v382_v52 = vpack.c.bf16 %v381_v51, %v380_v50 }
 0x128   : > { %555 = vmatmul.msk.bf16.vlgmr.msra.gmra.mxu0 %vm320_vm0, %v382_v52 }
 0x1a5   : > { %v415_v54 = vpop.f32.mrf.mxu0 }
 0x1a6   : > { %v416_v55 = vadd.f32 %v591_v53, %v415_v54 }
 0x1a8   : > { %v420_v56 = vpack.c.bf16 %v416_v55, %v416_v55 }
 0x1aa   : > { %423 = vst.msk [vmem:[%s311_s14] sm:$0xf] %vm422_vm8, %v420_v56 }
 0x1ad   : > { %v417_v57 = vpop.f32.mrf.mxu0 }
 0x1ae   : > { %v418_v58 = vadd.f32 %v591_v53, %v417_v57 }
 0x1b0   : > { %v421_v59 = vpack.c.bf16 %v418_v58, %v418_v58 }
 0x1b2   : > { %424 = vst.msk [vmem:[%s311_s14 + $0x4] sm:$0xf] %vm422_vm8, %v421_v59 }
 0x1b3 PF: > { %s15_s20 = sadd.s32 1, %s620_s20   ;;  %s719_s18 = smov %s616_s19 }
 0x1b4   : > { %p12_p5 = scmp.ge.s32.totalorder %s15_s20, 4   ;;  %s720_s19 = smov %s722_s21 }
 0x1b6   :  { %14 = sbr.rel (!%p12_p5) target bundleno = 2 (0x2), region = 76 }

// kernel: decoder_vit_forward.24
= control target key start
LH: loop header
LB: loop body
LE: loop exit
PB: predicated region body
PF: predicated region fallthrough
CT: control target
= control target key end

     0   :  { %s549_s12 = smov 0   ;;  %s551_s13 = smov 0   ;;  %s594_s0 = inlined_call_operand.vmem [shape: f32[32,48], index: 0, kind: input, shape index: {}]   ;;  %s595_s1 = inlined_call_operand.vmem [shape: bf16[48,32], index: 1, kind: input, shape index: {}]   ;;  %s596_s2 = inlined_call_operand.vmem [shape: bf16[32,32], index: 2, kind: input, shape index: {}]   ;;  %s597_s3 = inlined_call_operand.vmem [shape: bf16[32,32], index: 3, kind: output, shape index: {}]  }
   0x1   :  { %s553_s14 = smov 0  }
   0x2 LB: > { %s32_s15 = sadd.s32 1, %s523_s13  ;;  %p452_p0 = scmp.ge.s32.totalorder %s527_s14, 1  ;;  %s527_s14 = sphi %s553_s14, %s13_s14   ;;  %s523_s13 = sphi %s551_s13, %s599_s13   ;;  %s519_s12 = sphi %s549_s12, %s598_s12  }
   0x3   : > { %p34_p1 = scmp.ge.s32.totalorder %s32_s15, 2  ;;  %p196_p2 = scmp.lt.s32.totalorder %s527_s14, 3 }
   0x5   : > { %s601_s15 = smov (%p34_p1, %s32_s15), 0  ;;  %p197_p3 = pnand %p452_p0, %p196_p2 }
   0x6   : > { %s453_s18 = sshll.u32 (!%p197_p3), %s519_s12, 1 }
   0x7   : > { %200 = sbr.rel (%p197_p3) target bundleno = 163 (0xa3), region = 32  ;;  %p243_p4 = scmp.lt.s32.totalorder (!%p197_p3), %s453_s18, 3 }
   0xc   : > { %v476_v0 = vld [vmem:[%s595_s1 + $0x10] sm:$0xff]  ;;  %v475_v1 = vld [vmem:[%s595_s1 + $0x8] sm:$0xff]  ;;  %s603_s18 = smov (!%p243_p4, %s453_s18), 3  ;;  %v474_v2 = vld [vmem:[%s595_s1] sm:$0xff]  ;;  %vm310_vm0 = vcmask 392192   ;;  %vm330_vm1 = vcmask 257024  }
   0xd   : > { %319 = vmatpush.bf16.msra.mxu0 %v476_v0  ;;  %s454_s21 = sshll.u32 %s603_s18, 3  ;;  %s456_s27 = sshll.u32 %s603_s18, 2 }
   0xe   : > { %s249_s26 = scalar_lea.vmem %s594_s0, %s454_s21  ;;  %s267_s30 = scalar_lea.vmem %s596_s2, %s456_s27 }
   0xf   : > { %v279_v3 = vld [vmem:[%s249_s26] sm:$0xff]  ;;  %v280_v4 = vld [vmem:[%s249_s26 + $0x8] sm:$0xff]  ;;  %s276_s6 = scalar_lea.vmem %s597_s3, %s456_s27 }
  0x10   : > { %v281_v5 = vpack.c.bf16 %v280_v4, %v279_v3  ;;  %v478_v6 = vld [vmem:[%s267_s30] sm:$0xff]  }
  0x11   : > { %320 = vmatpush.bf16.msra.mxu0 %v475_v1  ;;  %v479_v7 = vunpack.c.l.bf16 %v478_v6  ;;  %v480_v11 = vunpack.c.h.bf16 %v478_v6 }
  0x15   : > { %321 = vmatpush.bf16.msra.mxu0 %v474_v2 }
  0x18   : > { %471 = vmatmul.msk.bf16.vlgmr.msra.gmra.mxu0 %vm310_vm0, %v281_v5 }
  0x95   : > { %v323_v8 = vpop.f32.mrf.mxu0 }
  0x96   : > { %v324_v9 = vadd.f32 %v479_v7, %v323_v8 }
  0x98   : > { %v328_v10 = vpack.c.bf16 %v324_v9, %v324_v9 }
  0x9a   : > { %331 = vst.msk [vmem:[%s276_s6] sm:$0xf] %vm330_vm1, %v328_v10 }
  0x9d   : > { %v325_v12 = vpop.f32.mrf.mxu0 }
  0x9e   : > { %v326_v13 = vadd.f32 %v480_v11, %v325_v12 }
  0xa0   : > { %v329_v14 = vpack.c.bf16 %v326_v13, %v326_v13 }
  0xa2   : > { %332 = vst.msk [vmem:[%s276_s6 + $0x4] sm:$0xf] %vm330_vm1, %v329_v14 }
  0xa3 PF: > { %s13_s14 = sadd.s32 1, %s527_s14   ;;  %s598_s12 = smov %s523_s13 }
  0xa4   : > { %p10_p5 = scmp.ge.s32.totalorder %s13_s14, 4   ;;  %s599_s13 = smov %s601_s15 }
  0xa6   :  { %12 = sbr.rel (!%p10_p5) target bundleno = 2 (0x2), region = 68 }

// kernel: decoder_vit_forward.27
= control target key start
LH: loop header
LB: loop body
LE: loop exit
PB: predicated region body
PF: predicated region fallthrough
CT: control target
= control target key end

     0   :  { %s611_s15 = smov 0   ;;  %s613_s16 = smov 0   ;;  %s656_s0 = inlined_call_operand.vmem [shape: bf16[32,32], index: 0, kind: input, shape index: {}]   ;;  %s657_s1 = inlined_call_operand.vmem [shape: bf16[32,32], index: 1, kind: input, shape index: {}]   ;;  %s658_s2 = inlined_call_operand.vmem [shape: f32[1,32], index: 2, kind: input, shape index: {}]   ;;  %s659_s3 = inlined_call_operand.vmem [shape: bf16[32,32], index: 3, kind: input, shape index: {}]   ;;  %s660_s4 = inlined_call_operand.vmem [shape: bf16[32,32], index: 4, kind: output, shape index: {}]  }
   0x1   :  { %s615_s17 = smov 0  }
   0x2 LB: > { %s33_s18 = sadd.s32 1, %s580_s16  ;;  %p508_p0 = scmp.ge.s32.totalorder %s584_s17, 1  ;;  %s584_s17 = sphi %s615_s17, %s14_s17   ;;  %s580_s16 = sphi %s613_s16, %s662_s16   ;;  %s576_s15 = sphi %s611_s15, %s661_s15  }
   0x3   : > { %p35_p1 = scmp.ge.s32.totalorder %s33_s18, 2  ;;  %p229_p2 = scmp.lt.s32.totalorder %s584_s17, 3 }
   0x5   : > { %s664_s18 = smov (%p35_p1, %s33_s18), 0  ;;  %p230_p3 = pnand %p508_p0, %p229_p2 }
   0x6   : > { %s509_s21 = sshll.u32 (!%p230_p3), %s576_s15, 1 }
   0x7   : > { %233 = sbr.rel (%p230_p3) target bundleno = 161 (0xa1), region = 36  ;;  %p281_p4 = scmp.lt.s32.totalorder (!%p230_p3), %s509_s21, 3 }
   0xc   : > { %v532_v0 = vld [vmem:[%s657_s1 + $0x8] sm:$0xff]  ;;  %v531_v1 = vld [vmem:[%s657_s1] sm:$0xff]  ;;  %s666_s21 = smov (!%p281_p4, %s509_s21), 3  ;;  %vm347_vm0 = vcmask 261120   ;;  %vm373_vm1 = vcmask 257024  }
   0xd   : > { %357 = vmatpush.bf16.msra.mxu0 %v532_v0  ;;  %s510_s24 = sshll.u32 %s666_s21, 2  ;;  %v561_v4 = vld [vmem:[%s658_s2] ss:$0 sm:$0xff] }
   0xe   : > { %s287_s27 = scalar_lea.vmem %s656_s0, %s510_s24  ;;  %s308_s30 = scalar_lea.vmem %s659_s3, %s510_s24 }
   0xf   : > { %v530_v2 = vld [vmem:[%s287_s27] sm:$0xff]  ;;  %s317_s9 = scalar_lea.vmem %s660_s4, %s510_s24 }
  0x10   : > { %v534_v3 = vld [vmem:[%s308_s30] sm:$0xff]  }
  0x11   : > { %358 = vmatpush.bf16.msra.mxu0 %v531_v1  ;;  %v535_v5 = vunpack.c.l.bf16 %v534_v3  ;;  %v536_v10 = vunpack.c.h.bf16 %v534_v3 }
  0x14   : > { %527 = vmatmul.msk.bf16.vlgmr.msra.gmra.mxu0 %vm347_vm0, %v530_v2 }
  0x91   : > { %v360_v6 = vpop.f32.mrf.mxu0 }
  0x92   : > { %v361_v7 = vadd.f32 %v561_v4, %v360_v6 }
  0x94   : > { %v369_v8 = vadd.f32 %v535_v5, %v361_v7 }
  0x96   : > { %v371_v9 = vpack.c.bf16 %v369_v8, %v369_v8 }
  0x98   : > { %374 = vst.msk [vmem:[%s317_s9] sm:$0xf] %vm373_vm1, %v371_v9 }
  0x99   : > { %v362_v11 = vpop.f32.mrf.mxu0 }
  0x9a   : > { %v363_v12 = vadd.f32 %v561_v4, %v362_v11 }
  0x9c   : > { %v370_v13 = vadd.f32 %v536_v10, %v363_v12 }
  0x9e   : > { %v372_v14 = vpack.c.bf16 %v370_v13, %v370_v13 }
  0xa0   : > { %375 = vst.msk [vmem:[%s317_s9 + $0x4] sm:$0xf] %vm373_vm1, %v372_v14 }
  0xa1 PF: > { %s14_s17 = sadd.s32 1, %s584_s17   ;;  %s661_s15 = smov %s580_s16 }
  0xa2   : > { %p11_p5 = scmp.ge.s32.totalorder %s14_s17, 4   ;;  %s662_s16 = smov %s664_s18 }
  0xa4   :  { %13 = sbr.rel (!%p11_p5) target bundleno = 2 (0x2), region = 75 }

// kernel: decoder_vit_forward.26
= control target key start
LH: loop header
LB: loop body
LE: loop exit
PB: predicated region body
PF: predicated region fallthrough
CT: control target
= control target key end

     0   :  { %s674_s6 = smov 0   ;;  %s676_s7 = smov 0   ;;  %s786_s0 = inlined_call_operand.vmem [shape: bf16[2,16,96], index: 0, kind: input, shape index: {}]   ;;  %s787_s1 = inlined_call_operand.vmem [shape: bf16[2,16,32], index: 1, kind: output, shape index: {}]  }
   0x1   :  { %s678_s8 = smov 0  }
   0x2 LB: > { %s532_s9 = sadd.s32 4294967295, %s657_s8   ;;  %s691_s10 = sadd.s32 1, %s657_s8   ;;  %s657_s8 = sphi %s678_s8, %s791_s8   ;;  %s653_s7 = sphi %s676_s7, %s790_s7   ;;  %s649_s6 = sphi %s674_s6, %s789_s6  }
   0x3   : > { %s15_s11 = ssub.s32 %s657_s8, %s691_s10  ;;  %s18_s12 = sadd.s32 1, %s653_s7 }
   0x4   : > { %p16_p0 = scmp.eq.s32.totalorder %s15_s11, 0  ;;  %p25_p1 = scmp.ne.s32.totalorder %s653_s7, %s649_s6 }
   0x5   : > { %p26_p2 = scmp.eq.s32.totalorder %s657_s8, 0  ;;  %p55_p3 = scmp.eq.s32.totalorder %s532_s9, 1 }
   0x6   : > { %s702_s13 = scalar_select %p16_p0, %s653_s7, %s18_s12  }
   0x7   : > { %p27_p4 = por %p26_p2, %p25_p1  ;;  %p704_p5 = por %p55_p3, %p25_p1 }
   0x8   : > { %p535_p6 = scmp.ge.s32.totalorder %s657_s8, 2 }
   0xa   : > { %77 = sbr.rel (%p535_p6) target bundleno = 21 (0x15), region = 16 }
   0xf   : > { %80 = sbr.rel (!%p27_p4) target bundleno = 21 (0x15), region = 20  ;;  %s82_s15 = sand.u32 (%p27_p4), 1, %s653_s7  }
  0x10   : > { %s537_s16 = sshll.u32 (%p27_p4), %s657_s8, 2  ;;  %s536_s17 = sshll.u32 (%p27_p4), %s82_s15, 3 }
  0x11   : > { %s86_s20 = scalar_lea.vmem (%p27_p4), %s786_s0, %s537_s16  ;;  %s84_s21 = scalar_lea.vmem (%p27_p4), [#allocation2], %s536_s17 }
  0x12   : > { %v103_v0 = vld [vmem:[%s86_s20] sm:$0xf] (%p27_p4)  ;;  %v105_v1 = vld [vmem:[%s86_s20 + $0x8] sm:$0xf] (%p27_p4) }
  0x13   : > { %104 = vst [vmem:[%s84_s21] sm:$0xf] (%p27_p4), %v103_v0 }
  0x14   : > { %106 = vst [vmem:[%s84_s21 + $0x4] sm:$0xf] %v105_v1 }
  0x15 PF: > { %p538_p7 = scmp.ge.s32.totalorder %s657_s8, 1  ;;  %p133_p8 = scmp.lt.s32.totalorder %s657_s8, 3 }
  0x17   : > { %p134_p9 = pnand %p538_p7, %p133_p8 }
  0x18   : > { %s140_s22 = sand.u32 (!%p134_p9), 1, %s649_s6   ;;  %s659_s25 = smov (!%p134_p9), 96  }
  0x19   : > { %137 = sbr.rel (%p134_p9) target bundleno = 572 (0x23c), region = 61  ;;  %s717_s23 = sshll.u32 (!%p134_p9), %s140_s22, 3 }
  0x1a   : > { %s142_s24 = scalar_lea.vmem (!%p134_p9), [#allocation2], %s717_s23  ;;  %s660_s26 = smov (!%p134_p9), 120  }
  0x1b   : > { %s661_s27 = smov (!%p134_p9), 112   ;;  %s662_s28 = smov (!%p134_p9), 104  }
  0x1c   : > { %s663_s29 = smov (!%p134_p9), 64   ;;  %s157_s30 = scalar_lea.vmem (!%p134_p9), [#allocation3], %s717_s23 }
  0x1e   : > { %v550_v2 = vld [vmem:[%s142_s24] sm:$0xff]   ;;  %vm169_vm0 = vcmask 64512   ;;  %vm199_vm1 = vcmask 60416   ;;  %vm261_vm2 = vcmask 126016   ;;  %vm326_vm3 = vcmask 191616   ;;  %s546_s2 = sshll.u32 (%p704_p5), %s532_s9, 2 }
  0x1f   : > { %v720_v3 = vunpack.c.l.bf16 %v550_v2  ;;  %v722_v4 = vunpack.c.h.bf16 %v550_v2  ;;  %vm389_vm4 = vcmask 257216   ;;  %s430_s5 = scalar_lea.vmem (%p704_p5), %s787_s1, %s546_s2 }
  0x21   : > { %v582_v5 = vpack.i.bf16 %v722_v4, %v720_v3  ;;  %v163_v6 = vmul.f32 0.35355338, %v722_v4  ;;  %v162_v7 = vmul.f32 0.35355338, %v720_v3 }
  0x23   : > { %583 = vrot.lane.b32.xlu0 %v582_v5, %s659_s25 }
  0x95   : > { %v584_v8 = vpop.permute.xlu0 %583 }
  0x96   : > { %v586_v9 = vunpack.i.h.bf16 %v584_v8  ;;  %v585_v10 = vunpack.i.l.bf16 %v584_v8 }
  0x98   : > { %v205_v11 = vmul.f32 %v586_v9, %v163_v6  ;;  %v168_v12 = vmul.f32 %v585_v10, %v162_v7  ;;  %v201_v13 = vmul.f32 %v585_v10, %v163_v6  ;;  %v177_v14 = vmul.f32 %v586_v9, %v162_v7 }
  0x9a   : > { %271 = vrot.lane.b32.xlu2 %v205_v11, %s660_s26  ;;  %264 = vrot.lane.b32.xlu0 %v201_v13, %s660_s26  ;;  %v202_v15 = vsel %vm169_vm0, %v201_v13, 0.0  ;;  %v178_v16 = vsel %vm169_vm0, %v177_v14, 0.0  ;;  %v206_v17 = vsel %vm169_vm0, %v205_v11, 0.0  ;;  %v170_v18 = vsel %vm169_vm0, %v168_v12, 0.0 }
  0x9b   : > { %230 = vrot.lane.b32.xlu1 %v168_v12, %s660_s26 }
  0xa2   : > { %302 = vrot.lane.b32.xlu0 %v177_v14, %s661_s27  ;;  %296 = vrot.lane.b32.xlu2 %v168_v12, %s661_s27 }
  0xa3   : > { %237 = vrot.lane.b32.xlu1 %v177_v14, %s660_s26 }
  0xaa   : > { %328 = vrot.lane.b32.xlu0 %v201_v13, %s661_s27  ;;  %359 = vrot.lane.b32.xlu2 %v168_v12, %s662_s28 }
  0xab   : > { %397 = vrot.lane.b32.xlu1 %v205_v11, %s662_s28 }
  0xb2   : > { %334 = vrot.lane.b32.xlu0 %v205_v11, %s661_s27 }
  0xba   : > { %365 = vrot.lane.b32.xlu0 %v177_v14, %s662_s28 }
  0xc2   : > { %391 = vrot.lane.b32.xlu0 %v201_v13, %s662_s28 }
  0xd3   : > { %203 = vadd.xlane.f32.xlu2 %v202_v15 }
  0xd5   : > { %179 = vadd.xlane.f32.xlu1 %v178_v16 }
  0xdb   : > { %207 = vadd.xlane.f32.xlu2 %v206_v17 }
  0xec   : > { %171 = vadd.xlane.f32.xlu0 %v170_v18 }
  0xf4   : > { %v272_v19 = vpop.permute.xlu2 %271 }
  0xf5   : > { %v274_v31 = vsel %vm169_vm0, %v272_v19, 0.0 }
  0xfc   : > { %v297_v24 = vpop.permute.xlu2 %296 }
  0xfd   : > { %v299_v27 = vsel %vm169_vm0, %v297_v24, 0.0 }
 0x104   : > { %v360_v35 = vpop.permute.xlu2 %359 }
 0x105   : > { %v362_v38 = vsel %vm169_vm0, %v360_v35, 0.0 }
 0x10c   : > { %v265_v20 = vpop.permute.xlu0 %264 }
 0x10d   : > { %v231_v21 = vpop.permute.xlu1 %230  ;;  %v267_v22 = vsel %vm169_vm0, %v265_v20, 0.0 }
 0x10e   : > { %v233_v23 = vsel %vm169_vm0, %v231_v21, 0.0  ;;  %268 = vadd.xlane.f32.xlu0 %v267_v22 }
 0x10f   : > { %234 = vadd.xlane.f32.xlu2 %v233_v23 }
 0x114   : > { %v303_v25 = vpop.permute.xlu0 %302 }
 0x115   : > { %v238_v26 = vpop.permute.xlu1 %237  ;;  %v305_v34 = vsel %vm169_vm0, %v303_v25, 0.0 }
 0x116   : > { %v240_v28 = vsel %vm169_vm0, %v238_v26, 0.0 }
 0x117   : > { %300 = vadd.xlane.f32.xlu2 %v299_v27  ;;  %241 = vadd.xlane.f32.xlu1 %v240_v28 }
 0x11c   : > { %v329_v29 = vpop.permute.xlu0 %328 }
 0x11d   : > { %v331_v30 = vsel %vm169_vm0, %v329_v29, 0.0  ;;  %v398_v39 = vpop.permute.xlu1 %397 }
 0x11e   : > { %v400_v41 = vsel %vm169_vm0, %v398_v39, 0.0 }
 0x11f   : > { %332 = vadd.xlane.f32.xlu2 %v331_v30  ;;  %275 = vadd.xlane.f32.xlu1 %v274_v31 }
 0x124   : > { %v335_v32 = vpop.permute.xlu0 %334 }
 0x125   : > { %v337_v33 = vsel %vm169_vm0, %v335_v32, 0.0 }
 0x126   : > { %338 = vadd.xlane.f32.xlu0 %v337_v33 }
 0x127   : > { %306 = vadd.xlane.f32.xlu1 %v305_v34 }
 0x12c   : > { %v366_v36 = vpop.permute.xlu0 %365 }
 0x12d   : > { %v368_v37 = vsel %vm169_vm0, %v366_v36, 0.0 }
 0x12e   : > { %369 = vadd.xlane.f32.xlu2 %v368_v37 }
 0x12f   : > { %363 = vadd.xlane.f32.xlu1 %v362_v38 }
 0x134   : > { %v392_v40 = vpop.permute.xlu0 %391 }
 0x135   : > { %v394_v42 = vsel %vm169_vm0, %v392_v40, 0.0 }
 0x136   : > { %401 = vadd.xlane.f32.xlu2 %v400_v41  ;;  %395 = vadd.xlane.f32.xlu0 %v394_v42 }
 0x146   : > { %v204_v43 = vpop.xlane.xlu2 %203 }
 0x148   : > { %v180_v53 = vpop.xlane.xlu1 %179 }
 0x14e   : > { %v208_v44 = vpop.xlane.xlu2 %207 }
 0x14f   : > { %v209_v45 = vmax.f32 %v204_v43, %v208_v44 }
 0x151   : > { %v210_v46 = vsub.f32 %v204_v43, %v209_v45  ;;  %v213_v47 = vsub.f32 %v208_v44, %v209_v45 }
 0x153   : > { %v211_v48 = vmul.f32 1.442695, %v210_v46  ;;  %v214_v49 = vmul.f32 1.442695, %v213_v47 }
 0x155   : > { %587 = vpow2.f32 %v211_v48 }
 0x156   : > { %589 = vpow2.f32 %v214_v49 }
 0x15b   : > { %v588_v50 = vpop.eup %587 }
 0x15c   : > { %v590_v51 = vpop.eup %589  ;;  %v218_v56 = vmul.f32 %v588_v50, %v720_v3 }
 0x15d   : > { %v216_v52 = vadd.f32 %v590_v51, %v588_v50  ;;  %v219_v57 = vmul.f32 %v590_v51, %v722_v4 }
 0x15f   : > { %591 = vrcp.f32 %v216_v52  ;;  %v172_v54 = vpop.xlane.xlu0 %171  ;;  %v220_v62 = vadd.f32 %v219_v57, %v218_v56 }
 0x160   : > { %v181_v55 = vmax.f32 %v172_v54, %v180_v53 }
 0x162   : > { %v182_v58 = vsub.f32 %v172_v54, %v181_v55  ;;  %v185_v59 = vsub.f32 %v180_v53, %v181_v55 }
 0x164   : > { %v183_v60 = vmul.f32 1.442695, %v182_v58  ;;  %v186_v61 = vmul.f32 1.442695, %v185_v59 }
 0x165   : > { %v592_v63 = vpop.eup %591 }
 0x166   : > { %593 = vpow2.f32 %v183_v60  ;;  %v221_v0 = vmul.f32 %v592_v63, %v220_v62 }
 0x167   : > { %595 = vpow2.f32 %v186_v61 }
 0x168   : > { %v222_v1 = vpack.c.bf16 %v221_v0, %v221_v0 }
 0x16a   : > { %224 = vrot.lane.b32.xlu2 %v222_v1, %s663_s29 }
 0x16c   : > { %v594_v2 = vpop.eup %593 }
 0x16d   : > { %v596_v5 = vpop.eup %595  ;;  %v190_v7 = vmul.f32 %v594_v2, %v720_v3 }
 0x16e   : > { %v188_v6 = vadd.f32 %v596_v5, %v594_v2  ;;  %v191_v8 = vmul.f32 %v596_v5, %v722_v4 }
 0x170   : > { %597 = vrcp.f32 %v188_v6  ;;  %v192_v9 = vadd.f32 %v191_v8, %v190_v7 }
 0x176   : > { %v598_v10 = vpop.eup %597 }
 0x177   : > { %v193_v11 = vmul.f32 %v598_v10, %v192_v9 }
 0x179   : > { %v194_v12 = vpack.c.bf16 %v193_v11, %v193_v11 }
 0x17b   : > { %196 = vrot.lane.b32.xlu1 %v194_v12, %s663_s29 }
 0x181   : > { %v269_v21 = vpop.xlane.xlu0 %268 }
 0x182   : > { %v235_v13 = vpop.xlane.xlu2 %234 }
 0x18a   : > { %v242_v14 = vpop.xlane.xlu1 %241  ;;  %v301_v18 = vpop.xlane.xlu2 %300 }
 0x18b   : > { %v243_v15 = vmax.f32 %v235_v13, %v242_v14 }
 0x18d   : > { %v244_v16 = vsub.f32 %v235_v13, %v243_v15  ;;  %v247_v17 = vsub.f32 %v242_v14, %v243_v15 }
 0x18f   : > { %v245_v19 = vmul.f32 1.442695, %v244_v16  ;;  %v248_v20 = vmul.f32 1.442695, %v247_v17 }
 0x191   : > { %599 = vpow2.f32 %v245_v19 }
 0x192   : > { %601 = vpow2.f32 %v248_v20  ;;  %v276_v22 = vpop.xlane.xlu1 %275  ;;  %v333_v31 = vpop.xlane.xlu2 %332 }
 0x193   : > { %v277_v23 = vmax.f32 %v269_v21, %v276_v22 }
 0x195   : > { %v278_v24 = vsub.f32 %v269_v21, %v277_v23  ;;  %v281_v25 = vsub.f32 %v276_v22, %v277_v23 }
 0x197   : > { %v600_v26 = vpop.eup %599  ;;  %v279_v27 = vmul.f32 1.442695, %v278_v24  ;;  %v282_v28 = vmul.f32 1.442695, %v281_v25 }
 0x198   : > { %v602_v29 = vpop.eup %601  ;;  %v252_v38 = vmul.f32 %v600_v26, %v720_v3 }
 0x199   : > { %v250_v30 = vadd.f32 %v602_v29, %v600_v26  ;;  %603 = vpow2.f32 %v279_v27  ;;  %v339_v32 = vpop.xlane.xlu0 %338  ;;  %v253_v39 = vmul.f32 %v602_v29, %v722_v4 }
 0x19a   : > { %605 = vpow2.f32 %v282_v28  ;;  %v307_v33 = vpop.xlane.xlu1 %306  ;;  %v340_v34 = vmax.f32 %v333_v31, %v339_v32 }
 0x19b   : > { %607 = vrcp.f32 %v250_v30  ;;  %v308_v35 = vmax.f32 %v301_v18, %v307_v33  ;;  %v254_v48 = vadd.f32 %v253_v39, %v252_v38 }
 0x19c   : > { %v341_v36 = vsub.f32 %v333_v31, %v340_v34  ;;  %v344_v37 = vsub.f32 %v339_v32, %v340_v34 }
 0x19d   : > { %v309_v40 = vsub.f32 %v301_v18, %v308_v35  ;;  %v312_v41 = vsub.f32 %v307_v33, %v308_v35 }
 0x19e   : > { %v342_v42 = vmul.f32 1.442695, %v341_v36  ;;  %v345_v47 = vmul.f32 1.442695, %v344_v37 }
 0x19f   : > { %v604_v43 = vpop.eup %603  ;;  %v310_v44 = vmul.f32 1.442695, %v309_v40  ;;  %v313_v45 = vmul.f32 1.442695, %v312_v41 }
 0x1a0   : > { %v606_v46 = vpop.eup %605  ;;  %609 = vpow2.f32 %v342_v42  ;;  %v286_v56 = vmul.f32 %v604_v43, %v720_v3 }
 0x1a1   : > { %v608_v49 = vpop.eup %607  ;;  %v284_v50 = vadd.f32 %v606_v46, %v604_v43  ;;  %611 = vpow2.f32 %v310_v44  ;;  %v370_v51 = vpop.xlane.xlu2 %369  ;;  %v287_v57 = vmul.f32 %v606_v46, %v722_v4 }
 0x1a2   : > { %613 = vpow2.f32 %v313_v45  ;;  %v364_v52 = vpop.xlane.xlu1 %363  ;;  %v255_v53 = vmul.f32 %v608_v49, %v254_v48 }
 0x1a3   : > { %615 = vrcp.f32 %v284_v50  ;;  %v371_v54 = vmax.f32 %v364_v52, %v370_v51  ;;  %v288_v1 = vadd.f32 %v287_v57, %v286_v56 }
 0x1a4   : > { %617 = vpow2.f32 %v345_v47  ;;  %v256_v55 = vpack.c.bf16 %v255_v53, %v255_v53 }
 0x1a5   : > { %v372_v58 = vsub.f32 %v364_v52, %v371_v54  ;;  %v375_v59 = vsub.f32 %v370_v51, %v371_v54 }
 0x1a6   : > { %v610_v60 = vpop.eup %609  ;;  %258 = vrot.lane.b32.xlu0 %v256_v55, %s663_s29 }
 0x1a7   : > { %v612_v61 = vpop.eup %611  ;;  %v373_v62 = vmul.f32 1.442695, %v372_v58  ;;  %v376_v63 = vmul.f32 1.442695, %v375_v59  ;;  %v349_v25 = vmul.f32 %v610_v60, %v720_v3 }
 0x1a8   : > { %v614_v0 = vpop.eup %613  ;;  %v317_v12 = vmul.f32 %v612_v61, %v720_v3 }
 0x1a9   : > { %v616_v2 = vpop.eup %615  ;;  %v315_v5 = vadd.f32 %v614_v0, %v612_v61  ;;  %619 = vpow2.f32 %v373_v62  ;;  %v402_v6 = vpop.xlane.xlu2 %401  ;;  %v318_v16 = vmul.f32 %v614_v0, %v722_v4 }
 0x1aa   : > { %v396_v7 = vpop.xlane.xlu0 %395  ;;  %v618_v8 = vpop.eup %617  ;;  %621 = vpow2.f32 %v376_v63  ;;  %v289_v10 = vmul.f32 %v616_v2, %v288_v1 }
 0x1ab   : > { %v403_v9 = vmax.f32 %v396_v7, %v402_v6  ;;  %623 = vrcp.f32 %v315_v5  ;;  %v347_v11 = vadd.f32 %v618_v8, %v610_v60  ;;  %v319_v21 = vadd.f32 %v318_v16, %v317_v12 }
 0x1ac   : > { %v290_v15 = vpack.c.bf16 %v289_v10, %v289_v10  ;;  %v350_v26 = vmul.f32 %v618_v8, %v722_v4 }
 0x1ad   : > { %v404_v13 = vsub.f32 %v396_v7, %v403_v9  ;;  %v407_v14 = vsub.f32 %v402_v6, %v403_v9  ;;  %625 = vrcp.f32 %v347_v11 }
 0x1ae   : > { %292 = vrot.lane.b32.xlu1 %v290_v15, %s663_s29  ;;  %v351_v32 = vadd.f32 %v350_v26, %v349_v25 }
 0x1af   : > { %v405_v17 = vmul.f32 1.442695, %v404_v13  ;;  %v408_v18 = vmul.f32 1.442695, %v407_v14  ;;  %v620_v19 = vpop.eup %619 }
 0x1b0   : > { %v622_v20 = vpop.eup %621  ;;  %v380_v28 = vmul.f32 %v620_v19, %v720_v3 }
 0x1b1   : > { %627 = vpow2.f32 %v405_v17  ;;  %v624_v22 = vpop.eup %623  ;;  %v378_v23 = vadd.f32 %v622_v20, %v620_v19  ;;  %v381_v29 = vmul.f32 %v622_v20, %v722_v4 }
 0x1b2   : > { %629 = vpow2.f32 %v408_v18  ;;  %v320_v24 = vmul.f32 %v624_v22, %v319_v21 }
 0x1b3   : > { %631 = vrcp.f32 %v378_v23  ;;  %v626_v30 = vpop.eup %625  ;;  %v382_v35 = vadd.f32 %v381_v29, %v380_v28 }
 0x1b4   : > { %v321_v27 = vpack.c.bf16 %v320_v24, %v320_v24  ;;  %v352_v36 = vmul.f32 %v626_v30, %v351_v32 }
 0x1b6   : > { %323 = vrot.lane.b32.xlu0 %v321_v27, %s663_s29  ;;  %v353_v42 = vpack.c.bf16 %v352_v36, %v352_v36 }
 0x1b7   : > { %v628_v31 = vpop.eup %627 }
 0x1b8   : > { %v630_v33 = vpop.eup %629  ;;  %v412_v39 = vmul.f32 %v628_v31, %v720_v3 }
 0x1b9   : > { %v410_v34 = vadd.f32 %v630_v33, %v628_v31  ;;  %v632_v37 = vpop.eup %631  ;;  %v413_v40 = vmul.f32 %v630_v33, %v722_v4 }
 0x1ba   : > { %v383_v38 = vmul.f32 %v632_v37, %v382_v35 }
 0x1bb   : > { %633 = vrcp.f32 %v410_v34  ;;  %v414_v43 = vadd.f32 %v413_v40, %v412_v39 }
 0x1bc   : > { %v384_v41 = vpack.c.bf16 %v383_v38, %v383_v38 }
 0x1be   : > { %386 = vrot.lane.b32.xlu1 %v384_v41, %s663_s29  ;;  %355 = vrot.lane.b32.xlu0 %v353_v42, %s663_s29 }
 0x1c1   : > { %v634_v44 = vpop.eup %633 }
 0x1c2   : > { %v415_v45 = vmul.f32 %v634_v44, %v414_v43 }
 0x1c4   : > { %v416_v46 = vpack.c.bf16 %v415_v45, %v415_v45  ;;  %v225_v47 = vpop.permute.xlu2 %224 }
 0x1c5   : > { %541 = vst.msk [vmem:[%s157_s30 + $0x4] sm:$0xf] %vm199_vm1, %v225_v47 }
 0x1c6   : > { %418 = vrot.lane.b32.xlu2 %v416_v46, %s663_s29 }
 0x1ed   : > { %v197_v48 = vpop.permute.xlu1 %196 }
 0x1ee   : > { %200 = vst.msk [vmem:[%s157_s30] sm:$0xf] %vm199_vm1, %v197_v48 }
 0x218   : > { %v259_v3 = vpop.permute.xlu0 %258 }
 0x219   : > { %262 = vst.msk [vmem:[%s157_s30] sm:$0xf] %vm261_vm2, %v259_v3 }
 0x220   : > { %v293_v4 = vpop.permute.xlu1 %292  ;;  %v419_v52 = vpop.permute.xlu2 %418 }
 0x221   : > { %542 = vst.msk [vmem:[%s157_s30 + $0x4] sm:$0xf] %vm261_vm2, %v293_v4 }
 0x228   : > { %v324_v49 = vpop.permute.xlu0 %323 }
 0x229   : > { %327 = vst.msk [vmem:[%s157_s30] sm:$0xf] %vm326_vm3, %v324_v49 }
 0x22f   : > { %428 = sbr.rel (!%p704_p5) target bundleno = 572 (0x23c), region = 69 }
 0x230   : > { %v387_v50 = vpop.permute.xlu1 %386  ;;  %v356_v51 = vpop.permute.xlu0 %355 }
 0x231   : > { %390 = vst.msk [vmem:[%s157_s30] sm:$0xf] %vm389_vm4, %v387_v50 }
 0x232   : > { %543 = vst.msk [vmem:[%s157_s30 + $0x4] sm:$0xf] %vm326_vm3, %v356_v51 }
 0x233   : > { %544 = vst.msk [vmem:[%s157_s30 + $0x4] sm:$0xf] %vm389_vm4, %v419_v52 }
 0x238   : > { %v447_v53 = vld [vmem:[%s157_s30] sm:$0xf] }
 0x239   : > { %448 = vst [vmem:[%s430_s5] sm:$0xf] %v447_v53 }
 0x23a   : > { %v449_v54 = vld [vmem:[%s157_s30 + $0x4] sm:$0xf] }
 0x23b   : > { %450 = vst [vmem:[%s430_s5 + $0x8] sm:$0xf] %v449_v54 }
 0x23c PF: > { %p8_p10 = scmp.ge.s32.totalorder %s691_s10, 4   ;;  %s789_s6 = smov %s653_s7 }
 0x23d   : > { %s790_s7 = smov %s702_s13  ;;  %s791_s8 = smov %s691_s10 }
 0x23e   :  { %10 = sbr.rel (!%p8_p10) target bundleno = 2 (0x2), region = 142 }

// kernel: decoder_vit_forward.28
= control target key start
LH: loop header
LB: loop body
LE: loop exit
PB: predicated region body
PF: predicated region fallthrough
CT: control target
= control target key end

     0   :  { %s747_s18 = smov 0   ;;  %s749_s19 = smov 0   ;;  %s820_s0 = inlined_call_operand.vmem [shape: bf16[32,32], index: 0, kind: input, shape index: {}]   ;;  %s821_s1 = inlined_call_operand.vmem [shape: f32[1,32], index: 1, kind: input, shape index: {}]   ;;  %s822_s2 = inlined_call_operand.vmem [shape: f32[1,32], index: 2, kind: input, shape index: {}]   ;;  %s823_s3 = inlined_call_operand.vmem [shape: bf16[32,64], index: 3, kind: input, shape index: {}]   ;;  %s824_s4 = inlined_call_operand.vmem [shape: f32[1,64], index: 4, kind: input, shape index: {}]   ;;  %s825_s5 = inlined_call_operand.vmem [shape: bf16[32,64], index: 5, kind: output, shape index: {}]  }
   0x1   :  { %s751_s20 = smov 0  }
   0x2 LB: > { %s34_s21 = sadd.s32 1, %s710_s19  ;;  %p630_p0 = scmp.ge.s32.totalorder %s714_s20, 1  ;;  %s714_s20 = sphi %s751_s20, %s15_s20   ;;  %s710_s19 = sphi %s749_s19, %s827_s19   ;;  %s706_s18 = sphi %s747_s18, %s826_s18  }
   0x3   : > { %p36_p1 = scmp.ge.s32.totalorder %s34_s21, 2  ;;  %p238_p2 = scmp.lt.s32.totalorder %s714_s20, 3 }
   0x5   : > { %s829_s21 = smov (%p36_p1, %s34_s21), 0  ;;  %p239_p3 = pnand %p630_p0, %p238_p2 }
   0x6   : > { %s631_s22 = sshll.u32 (!%p239_p3), %s706_s18, 1 }
   0x7   : > { %242 = sbr.rel (%p239_p3) target bundleno = 486 (0x1e6), region = 40  ;;  %p284_p4 = scmp.lt.s32.totalorder (!%p239_p3), %s631_s22, 3 }
   0xc   : > { %s831_s22 = smov (!%p284_p4, %s631_s22), 3  ;;  %vm320_vm0 = vcmask 261120   ;;  %v716_v5 = vmov 32.0   ;;  %v649_v22 = vld [vmem:[%s823_s3 + $0x8] sm:$0xff]  ;;  %v648_v24 = vld [vmem:[%s823_s3] sm:$0xff]  ;;  %vm510_vm15 = vcmask 519168  }
   0xd   : > { %s632_s23 = sshll.u32 %s831_s22, 2  ;;  %682 = vrcp.f32 %v716_v5  ;;  %412 = vmatpush.bf16.msra.mxu0 %v649_v22  ;;  %v679_v43 = vld [vmem:[%s821_s1] ss:$0 sm:$0xff] }
   0xe   : > { %s290_s26 = scalar_lea.vmem %s820_s0, %s632_s23  ;;  %v680_v48 = vld [vmem:[%s822_s2] ss:$0 sm:$0xff]  ;;  %s311_s14 = scalar_lea.vmem %s825_s5, %s632_s23 }
   0xf   : > { %v651_v0 = vld [vmem:[%s290_s26] sm:$0xff]  }
  0x10   : > { %v652_v1 = vunpack.c.l.bf16 %v651_v0  ;;  %v653_v3 = vunpack.c.h.bf16 %v651_v0  ;;  %v681_v53 = vld [vmem:[%s824_s4] ss:$0 sm:$0xff] }
  0x11   : > { %413 = vmatpush.bf16.msra.mxu0 %v648_v24 }
  0x12   : > { %v321_v2 = vsel %vm320_vm0, %v652_v1, 0.0  ;;  %v324_v4 = vsel %vm320_vm0, %v653_v3, 0.0 }
  0x13   : > { %322 = vadd.xlane.f32.xlu0 %v321_v2  ;;  %v683_v6 = vpop.eup %682 }
  0x14   : > { %v328_v7 = vmul.f32 32.0, %v683_v6  ;;  %vm332_vm1 = vweird.f32 %v683_v6 }
  0x16   : > { %v329_v8 = vsub.f32 1.0, %v328_v7 }
  0x18   : > { %v330_v9 = vmul.f32 %v683_v6, %v329_v8 }
  0x1a   : > { %v331_v10 = vadd.f32 %v683_v6, %v330_v9 }
  0x1b   : > { %325 = vadd.xlane.f32.xlu0 %v324_v4 }
  0x1c   : > { %v333_v11 = vsel %vm332_vm1, %v683_v6, %v331_v10 }
  0x86   : > { %v323_v12 = vpop.xlane.xlu0 %322 }
  0x87   : > { %v334_v13 = vmul.f32 %v333_v11, %v323_v12 }
  0x89   : > { %v336_v14 = vsub.f32 %v652_v1, %v334_v13 }
  0x8b   : > { %v338_v15 = vmul.f32 %v336_v14, %v336_v14 }
  0x8d   : > { %v340_v16 = vsel %vm320_vm0, %v338_v15, 0.0 }
  0x8e   : > { %341 = vadd.xlane.f32.xlu1 %v340_v16  ;;  %v326_v17 = vpop.xlane.xlu0 %325 }
  0x8f   : > { %v335_v18 = vmul.f32 %v333_v11, %v326_v17 }
  0x91   : > { %v337_v19 = vsub.f32 %v653_v3, %v335_v18 }
  0x93   : > { %v339_v20 = vmul.f32 %v337_v19, %v337_v19 }
  0x95   : > { %v343_v21 = vsel %vm320_vm0, %v339_v20, 0.0 }
  0x96   : > { %344 = vadd.xlane.f32.xlu1 %v343_v21 }
 0x101   : > { %v342_v23 = vpop.xlane.xlu1 %341 }
 0x102   : > { %v346_v25 = vmul.f32 %v342_v23, %v333_v11 }
 0x104   : > { %v348_v26 = vadd.f32 1e-05, %v346_v25 }
 0x106   : > { %684 = vrsqrt.f32 %v348_v26  ;;  %vm356_vm3 = vweird.f32 %v348_v26 }
 0x109   : > { %v345_v27 = vpop.xlane.xlu1 %344 }
 0x10a   : > { %v347_v28 = vmul.f32 %v345_v27, %v333_v11 }
 0x10c   : > { %v685_v29 = vpop.eup %684  ;;  %v349_v30 = vadd.f32 1e-05, %v347_v28 }
 0x10d   : > { %v351_v31 = vmul.f32 %v685_v29, %v348_v26  ;;  %vm357_vm2 = vweird.f32 %v685_v29 }
 0x10e   : > { %686 = vrsqrt.f32 %v349_v30  ;;  %vm358_vm4 = vmor %vm356_vm3, %vm357_vm2  ;;  %vm366_vm6 = vweird.f32 %v349_v30 }
 0x10f   : > { %v352_v32 = vmul.f32 %v685_v29, %v351_v31 }
 0x111   : > { %v353_v33 = vmul.f32 0.5, %v352_v32 }
 0x113   : > { %v354_v34 = vsub.f32 1.5, %v353_v33 }
 0x114   : > { %v687_v35 = vpop.eup %686 }
 0x115   : > { %v355_v36 = vmul.f32 %v685_v29, %v354_v34  ;;  %v361_v37 = vmul.f32 %v687_v35, %v349_v30  ;;  %vm367_vm5 = vweird.f32 %v687_v35 }
 0x116   : > { %vm368_vm7 = vmor %vm366_vm6, %vm367_vm5 }
 0x117   : > { %v362_v38 = vmul.f32 %v687_v35, %v361_v37  ;;  %v359_v39 = vsel %vm358_vm4, %v685_v29, %v355_v36 }
 0x118   : > { %v370_v42 = vmul.f32 %v359_v39, %v336_v14 }
 0x119   : > { %v363_v40 = vmul.f32 0.5, %v362_v38 }
 0x11a   : > { %v375_v47 = vmul.f32 %v679_v43, %v370_v42 }
 0x11b   : > { %v364_v41 = vsub.f32 1.5, %v363_v40 }
 0x11c   : > { %v380_v50 = vadd.f32 %v680_v48, %v375_v47 }
 0x11d   : > { %v365_v44 = vmul.f32 %v687_v35, %v364_v41 }
 0x11f   : > { %v369_v45 = vsel %vm368_vm7, %v687_v35, %v365_v44 }
 0x120   : > { %v371_v46 = vmul.f32 %v369_v45, %v337_v19 }
 0x122   : > { %v376_v49 = vmul.f32 %v679_v43, %v371_v46 }
 0x124   : > { %v381_v51 = vadd.f32 %v680_v48, %v376_v49 }
 0x126   : > { %v382_v52 = vpack.c.bf16 %v381_v51, %v380_v50 }
 0x128   : > { %643 = vmatmul.msk.bf16.vlgmr.msra.gmra.mxu0 %vm320_vm0, %v382_v52 }
 0x1a5   : > { %v415_v54 = vpop.f32.mrf.mxu0 }
 0x1a6   : > { %v793_v55 = vadd.f32 %v681_v53, %v415_v54 }
 0x1a8   : > { %v422_v56 = vmul.f32 0.70710677, %v793_v55 }
 0x1aa   : > { %v424_v57 = vmul.f32 %v422_v56, %v422_v56 }
 0x1ac   : > { %v425_v58 = vmin.f32 %v424_v57, 16.0 }
 0x1ad   : > { %v417_v59 = vpop.f32.mrf.mxu0 }
 0x1ae   : > { %v426_v60 = vmul.f32 2.1237322e-06, %v425_v58  ;;  %v437_v61 = vmul.f32 3.8918573e-05, %v425_v58  ;;  %v796_v62 = vadd.f32 %v681_v53, %v417_v59 }
 0x1b0   : > { %v427_v63 = vadd.f32 0.00028619796, %v426_v60  ;;  %v438_v0 = vadd.f32 0.001143296, %v437_v61  ;;  %v799_v1 = vmul.f32 0.70710677, %v796_v62 }
 0x1b1   : > { %v420_v61 = vmul.f32 0.5, %v793_v55 }
 0x1b2   : > { %v428_v2 = vmul.f32 %v427_v63, %v425_v58  ;;  %v439_v3 = vmul.f32 %v438_v0, %v425_v58  ;;  %v464_v4 = vmul.f32 %v799_v1, %v799_v1 }
 0x1b4   : > { %v440_v5 = vadd.f32 0.014752088, %v439_v3  ;;  %v429_v6 = vadd.f32 0.0036580483, %v428_v2  ;;  %v465_v7 = vmin.f32 %v464_v4, 16.0 }
 0x1b6   : > { %v441_v8 = vmul.f32 %v440_v5, %v425_v58  ;;  %v466_v9 = vmul.f32 2.1237322e-06, %v465_v7  ;;  %v477_v10 = vmul.f32 3.8918573e-05, %v465_v7  ;;  %v430_v12 = vmul.f32 %v429_v6, %v425_v58 }
 0x1b8   : > { %v442_v11 = vadd.f32 0.112945676, %v441_v8  ;;  %v467_v13 = vadd.f32 0.00028619796, %v466_v9  ;;  %v478_v14 = vadd.f32 0.001143296, %v477_v10 }
 0x1b9   : > { %v431_v19 = vadd.f32 0.05243302, %v430_v12  ;;  %v421_v8 = vmul.f32 0.5, %v796_v62 }
 0x1ba   : > { %v443_v15 = vmul.f32 %v442_v11, %v425_v58  ;;  %v468_v16 = vmul.f32 %v467_v13, %v465_v7  ;;  %v479_v17 = vmul.f32 %v478_v14, %v465_v7 }
 0x1bb   : > { %v432_v25 = vmul.f32 %v431_v19, %v425_v58 }
 0x1bc   : > { %v444_v18 = vadd.f32 0.4994258, %v443_v15  ;;  %v480_v20 = vadd.f32 0.014752088, %v479_v17  ;;  %v469_v22 = vadd.f32 0.0036580483, %v468_v16 }
 0x1bd   : > { %v433_v29 = vadd.f32 0.18741608, %v432_v25 }
 0x1be   : > { %v445_v21 = vmul.f32 %v444_v18, %v425_v58  ;;  %v481_v23 = vmul.f32 %v480_v20, %v465_v7  ;;  %v470_v27 = vmul.f32 %v469_v22, %v465_v7 }
 0x1bf   : > { %v434_v34 = vmul.f32 %v433_v29, %v425_v58 }
 0x1c0   : > { %v446_v24 = vadd.f32 1.0, %v445_v21  ;;  %v482_v26 = vadd.f32 0.112945676, %v481_v23  ;;  %v471_v31 = vadd.f32 0.05243302, %v470_v27 }
 0x1c1   : > { %v435_v40 = vadd.f32 1.1283791, %v434_v34 }
 0x1c2   : > { %688 = vrcp.f32 %v446_v24  ;;  %v483_v28 = vmul.f32 %v482_v26, %v465_v7  ;;  %v472_v37 = vmul.f32 %v471_v31, %v465_v7  ;;  %v458_v39 = vand.u32 2147483648, %v446_v24 }
 0x1c3   : > { %v456_v42 = vand.u32 2147483647, %v446_v24  ;;  %vm452_vm9 = vweird.f32 %v446_v24  ;;  %v436_v47 = vmul.f32 %v435_v40, %v422_v56 }
 0x1c4   : > { %v484_v30 = vadd.f32 0.4994258, %v483_v28  ;;  %v473_v43 = vadd.f32 0.18741608, %v472_v37  ;;  %v459_v45 = vor.u32 1.1754944e-38, %v458_v39 }
 0x1c5   : > { %vm457_vm11 = vcmp.eq.f32.partialorder %v456_v42, 8.507059e+37 }
 0x1c6   : > { %v485_v32 = vmul.f32 %v484_v30, %v465_v7  ;;  %v474_v50 = vmul.f32 %v473_v43, %v465_v7 }
 0x1c8   : > { %v689_v33 = vpop.eup %688  ;;  %v486_v36 = vadd.f32 1.0, %v485_v32  ;;  %v475_v58 = vadd.f32 1.1283791, %v474_v50 }
 0x1c9   : > { %v448_v35 = vmul.f32 %v689_v33, %v446_v24  ;;  %vm453_vm8 = vweird.f32 %v689_v33 }
 0x1ca   : > { %690 = vrcp.f32 %v486_v36  ;;  %vm454_vm10 = vmor %vm452_vm9, %vm453_vm8  ;;  %v498_v57 = vand.u32 2147483648, %v486_v36  ;;  %v496_v60 = vand.u32 2147483647, %v486_v36  ;;  %vm492_vm13 = vweird.f32 %v486_v36 }
 0x1cb   : > { %v449_v38 = vsub.f32 1.0, %v448_v35  ;;  %v476_v3 = vmul.f32 %v475_v58, %v799_v1 }
 0x1cc   : > { %v499_v2 = vor.u32 1.1754944e-38, %v498_v57  ;;  %vm497_vm0 = vcmp.eq.f32.partialorder %v496_v60, 8.507059e+37 }
 0x1cd   : > { %v450_v41 = vmul.f32 %v689_v33, %v449_v38 }
 0x1cf   : > { %v451_v44 = vadd.f32 %v689_v33, %v450_v41 }
 0x1d0   : > { %v691_v46 = vpop.eup %690 }
 0x1d1   : > { %v455_v48 = vsel %vm454_vm10, %v689_v33, %v451_v44  ;;  %v488_v51 = vmul.f32 %v691_v46, %v486_v36  ;;  %vm493_vm12 = vweird.f32 %v691_v46 }
 0x1d2   : > { %v460_v49 = vsel %vm457_vm11, %v459_v45, %v455_v48  ;;  %vm494_vm14 = vmor %vm492_vm13, %vm493_vm12 }
 0x1d3   : > { %v461_v52 = vmul.f32 %v460_v49, %v436_v47  ;;  %v489_v53 = vsub.f32 1.0, %v488_v51 }
 0x1d5   : > { %v644_v54 = vclamps-f32 %v461_v52, 1.0  ;;  %v490_v59 = vmul.f32 %v691_v46, %v489_v53 }
 0x1d7   : > { %v504_v63 = vadd.f32 1.0, %v644_v54  ;;  %v491_v0 = vadd.f32 %v691_v46, %v490_v59 }
 0x1d9   : > { %v506_v56 = vmul.f32 %v504_v63, %v420_v61  ;;  %v495_v4 = vsel %vm494_vm14, %v691_v46, %v491_v0 }
 0x1da   : > { %v500_v6 = vsel %vm497_vm0, %v499_v2, %v495_v4 }
 0x1db   : > { %v508_v5 = vpack.c.bf16 %v506_v56, %v506_v56  ;;  %v501_v7 = vmul.f32 %v500_v6, %v476_v3 }
 0x1dd   : > { %511 = vst.msk [vmem:[%s311_s14] sm:$0xf] %vm510_vm15, %v508_v5  ;;  %v645_v55 = vclamps-f32 %v501_v7, 1.0 }
 0x1df   : > { %v505_v9 = vadd.f32 1.0, %v645_v55 }
 0x1e1   : > { %v507_v10 = vmul.f32 %v505_v9, %v421_v8 }
 0x1e3   : > { %v509_v11 = vpack.c.bf16 %v507_v10, %v507_v10 }
 0x1e5   : > { %512 = vst.msk [vmem:[%s311_s14 + $0x4] sm:$0xf] %vm510_vm15, %v509_v11 }
 0x1e6 PF: > { %s15_s20 = sadd.s32 1, %s714_s20   ;;  %s826_s18 = smov %s710_s19 }
 0x1e7   : > { %p12_p5 = scmp.ge.s32.totalorder %s15_s20, 4   ;;  %s827_s19 = smov %s829_s21 }
 0x1e9   :  { %14 = sbr.rel (!%p12_p5) target bundleno = 2 (0x2), region = 76 }

// kernel: decoder_vit_forward.29
= control target key start
LH: loop header
LB: loop body
LE: loop exit
PB: predicated region body
PF: predicated region fallthrough
CT: control target
= control target key end

     0   :  { %s879_s24 = smov 0   ;;  %s881_s25 = smov 0   ;;  %s953_s0 = inlined_call_operand.vmem [shape: bf16[32,64], index: 0, kind: input, shape index: {}]   ;;  %s954_s1 = inlined_call_operand.vmem [shape: bf16[64,32], index: 1, kind: input, shape index: {}]   ;;  %s955_s2 = inlined_call_operand.vmem [shape: f32[1,32], index: 2, kind: input, shape index: {}]   ;;  %s956_s3 = inlined_call_operand.vmem [shape: bf16[32,32], index: 3, kind: input, shape index: {}]   ;;  %s957_s4 = inlined_call_operand.vmem [shape: f32[1,32], index: 4, kind: input, shape index: {}]   ;;  %s958_s5 = inlined_call_operand.vmem [shape: f32[1,32], index: 5, kind: input, shape index: {}]   ;;  %s959_s6 = inlined_call_operand.vmem [shape: bf16[32,32], index: 6, kind: output, shape index: {0}]   ;;  %s960_s7 = inlined_call_operand.vmem [shape: bf16[32,32], index: 7, kind: output, shape index: {1}]  }
   0x1   :  { %s883_s26 = smov 0  }
   0x2 LB: > { %s37_s27 = sadd.s32 1, %s832_s25  ;;  %p739_p0 = scmp.ge.s32.totalorder %s836_s26, 1  ;;  %s836_s26 = sphi %s883_s26, %s18_s26   ;;  %s832_s25 = sphi %s881_s25, %s962_s25   ;;  %s828_s24 = sphi %s879_s24, %s961_s24  }
   0x3   : > { %p39_p1 = scmp.ge.s32.totalorder %s37_s27, 2  ;;  %p309_p2 = scmp.lt.s32.totalorder %s836_s26, 3 }
   0x5   : > { %s964_s27 = smov (%p39_p1, %s37_s27), 0  ;;  %p310_p3 = pnand %p739_p0, %p309_p2 }
   0x6   : > { %s740_s30 = sshll.u32 (!%p310_p3), %s828_s24, 1 }
   0x7   : > { %313 = sbr.rel (%p310_p3) target bundleno = 437 (0x1b5), region = 44  ;;  %p375_p4 = scmp.lt.s32.totalorder (!%p310_p3), %s740_s30, 3 }
   0xc   : > { %v775_v0 = vld [vmem:[%s954_s1 + $0x18] sm:$0xff]  ;;  %v774_v1 = vld [vmem:[%s954_s1 + $0x10] sm:$0xff]  ;;  %s966_s30 = smov (!%p375_p4, %s740_s30), 3  ;;  %v773_v2 = vld [vmem:[%s954_s1 + $0x8] sm:$0xff]  ;;  %vm466_vm0 = vcmask 523264   ;;  %vm497_vm1 = vcmask 261120  }
   0xd   : > { %474 = vmatpush.bf16.msra.mxu0 %v775_v0  ;;  %s906_s12 = sshll.u32 %s966_s30, 2  ;;  %v772_v3 = vld [vmem:[%s954_s1] sm:$0xff]  ;;  %vm492_vm2 = vcmask 257024   ;;  %v838_v19 = vmov 32.0  }
   0xe   : > { %s381_s17 = scalar_lea.vmem %s953_s0, %s906_s12  ;;  %s402_s20 = scalar_lea.vmem %s956_s3, %s906_s12  ;;  %v805_v6 = vld [vmem:[%s955_s2] ss:$0 sm:$0xff]  ;;  %808 = vrcp.f32 %v838_v19 }
   0xf   : > { %v771_v4 = vld [vmem:[%s381_s17] sm:$0xff]  ;;  %s411_s28 = scalar_lea.vmem %s959_s6, %s906_s12  ;;  %s420_s13 = scalar_lea.vmem %s960_s7, %s906_s12 }
  0x10   : > { %v777_v5 = vld [vmem:[%s402_s20] sm:$0xff]  }
  0x11   : > { %475 = vmatpush.bf16.msra.mxu0 %v774_v1  ;;  %v778_v7 = vunpack.c.l.bf16 %v777_v5  ;;  %v779_v13 = vunpack.c.h.bf16 %v777_v5  ;;  %v806_v50 = vld [vmem:[%s957_s4] ss:$0 sm:$0xff] }
  0x12   : > { %v807_v53 = vld [vmem:[%s958_s5] ss:$0 sm:$0xff] }
  0x14   : > { %v809_v20 = vpop.eup %808 }
  0x15   : > { %476 = vmatpush.bf16.msra.mxu0 %v773_v2  ;;  %v505_v21 = vmul.f32 32.0, %v809_v20  ;;  %vm509_vm3 = vweird.f32 %v809_v20 }
  0x17   : > { %v506_v22 = vsub.f32 1.0, %v505_v21 }
  0x19   : > { %477 = vmatpush.bf16.msra.mxu0 %v772_v3  ;;  %v507_v23 = vmul.f32 %v809_v20, %v506_v22 }
  0x1b   : > { %v508_v24 = vadd.f32 %v809_v20, %v507_v23 }
  0x1c   : > { %768 = vmatmul.msk.bf16.vlgmr.msra.gmra.mxu0 %vm466_vm0, %v771_v4 }
  0x1d   : > { %v510_v25 = vsel %vm509_vm3, %v809_v20, %v508_v24 }
  0x99   : > { %v479_v8 = vpop.f32.mrf.mxu0 }
  0x9a   : > { %v480_v9 = vadd.f32 %v805_v6, %v479_v8 }
  0x9c   : > { %v488_v10 = vadd.f32 %v778_v7, %v480_v9 }
  0x9e   : > { %v490_v11 = vpack.c.bf16 %v488_v10, %v488_v10  ;;  %v498_v12 = vsel %vm497_vm1, %v488_v10, 0.0 }
  0x9f   : > { %499 = vadd.xlane.f32.xlu0 %v498_v12 }
  0xa0   : > { %493 = vst.msk [vmem:[%s411_s28] sm:$0xf] %vm492_vm2, %v490_v11 }
  0xa1   : > { %v481_v14 = vpop.f32.mrf.mxu0 }
  0xa2   : > { %v482_v15 = vadd.f32 %v805_v6, %v481_v14 }
  0xa4   : > { %v489_v16 = vadd.f32 %v779_v13, %v482_v15 }
  0xa6   : > { %v491_v17 = vpack.c.bf16 %v489_v16, %v489_v16  ;;  %v501_v18 = vsel %vm497_vm1, %v489_v16, 0.0 }
  0xa7   : > { %502 = vadd.xlane.f32.xlu0 %v501_v18 }
  0xa8   : > { %494 = vst.msk [vmem:[%s411_s28 + $0x4] sm:$0xf] %vm492_vm2, %v491_v17 }
 0x112   : > { %v500_v26 = vpop.xlane.xlu0 %499 }
 0x113   : > { %v511_v27 = vmul.f32 %v510_v25, %v500_v26 }
 0x115   : > { %v513_v28 = vsub.f32 %v488_v10, %v511_v27 }
 0x117   : > { %v515_v29 = vmul.f32 %v513_v28, %v513_v28 }
 0x119   : > { %v517_v30 = vsel %vm497_vm1, %v515_v29, 0.0 }
 0x11a   : > { %518 = vadd.xlane.f32.xlu1 %v517_v30  ;;  %v503_v31 = vpop.xlane.xlu0 %502 }
 0x11b   : > { %v512_v32 = vmul.f32 %v510_v25, %v503_v31 }
 0x11d   : > { %v514_v33 = vsub.f32 %v489_v16, %v512_v32 }
 0x11f   : > { %v516_v34 = vmul.f32 %v514_v33, %v514_v33 }
 0x121   : > { %v520_v35 = vsel %vm497_vm1, %v516_v34, 0.0 }
 0x122   : > { %521 = vadd.xlane.f32.xlu1 %v520_v35 }
 0x18d   : > { %v519_v36 = vpop.xlane.xlu1 %518 }
 0x18e   : > { %v523_v37 = vmul.f32 %v519_v36, %v510_v25 }
 0x190   : > { %v525_v38 = vadd.f32 1e-05, %v523_v37 }
 0x192   : > { %810 = vrsqrt.f32 %v525_v38  ;;  %vm533_vm5 = vweird.f32 %v525_v38 }
 0x195   : > { %v522_v39 = vpop.xlane.xlu1 %521 }
 0x196   : > { %v524_v40 = vmul.f32 %v522_v39, %v510_v25 }
 0x198   : > { %v811_v41 = vpop.eup %810  ;;  %v526_v42 = vadd.f32 1e-05, %v524_v40 }
 0x199   : > { %v528_v43 = vmul.f32 %v811_v41, %v525_v38  ;;  %vm534_vm4 = vweird.f32 %v811_v41 }
 0x19a   : > { %812 = vrsqrt.f32 %v526_v42  ;;  %vm535_vm6 = vmor %vm533_vm5, %vm534_vm4  ;;  %vm543_vm8 = vweird.f32 %v526_v42 }
 0x19b   : > { %v529_v44 = vmul.f32 %v811_v41, %v528_v43 }
 0x19d   : > { %v530_v45 = vmul.f32 0.5, %v529_v44 }
 0x19f   : > { %v531_v46 = vsub.f32 1.5, %v530_v45 }
 0x1a0   : > { %v813_v47 = vpop.eup %812 }
 0x1a1   : > { %v532_v48 = vmul.f32 %v811_v41, %v531_v46  ;;  %v538_v49 = vmul.f32 %v813_v47, %v526_v42  ;;  %vm544_vm7 = vweird.f32 %v813_v47 }
 0x1a2   : > { %vm545_vm9 = vmor %vm543_vm8, %vm544_vm7 }
 0x1a3   : > { %v536_v51 = vsel %vm535_vm6, %v811_v41, %v532_v48  ;;  %v539_v52 = vmul.f32 %v813_v47, %v538_v49 }
 0x1a4   : > { %v547_v54 = vmul.f32 %v536_v51, %v513_v28 }
 0x1a5   : > { %v540_v55 = vmul.f32 0.5, %v539_v52 }
 0x1a6   : > { %v552_v56 = vmul.f32 %v806_v50, %v547_v54 }
 0x1a7   : > { %v541_v57 = vsub.f32 1.5, %v540_v55 }
 0x1a8   : > { %v557_v58 = vadd.f32 %v807_v53, %v552_v56 }
 0x1a9   : > { %v542_v59 = vmul.f32 %v813_v47, %v541_v57 }
 0x1aa   : > { %v559_v60 = vpack.c.bf16 %v557_v58, %v557_v58 }
 0x1ab   : > { %v546_v61 = vsel %vm545_vm9, %v813_v47, %v542_v59 }
 0x1ac   : > { %561 = vst.msk [vmem:[%s420_s13] sm:$0xf] %vm492_vm2, %v559_v60  ;;  %v548_v62 = vmul.f32 %v546_v61, %v514_v33 }
 0x1ae   : > { %v553_v63 = vmul.f32 %v806_v50, %v548_v62 }
 0x1b0   : > { %v558_v0 = vadd.f32 %v807_v53, %v553_v63 }
 0x1b2   : > { %v560_v1 = vpack.c.bf16 %v558_v0, %v558_v0 }
 0x1b4   : > { %562 = vst.msk [vmem:[%s420_s13 + $0x4] sm:$0xf] %vm492_vm2, %v560_v1 }
 0x1b5 PF: > { %s18_s26 = sadd.s32 1, %s836_s26   ;;  %s961_s24 = smov %s832_s25 }
 0x1b6   : > { %p15_p5 = scmp.ge.s32.totalorder %s18_s26, 4   ;;  %s962_s25 = smov %s964_s27 }
 0x1b8   :  { %17 = sbr.rel (!%p15_p5) target bundleno = 2 (0x2), region = 95 }

// kernel: decoder_vit_forward.30
= control target key start
LH: loop header
LB: loop body
LE: loop exit
PB: predicated region body
PF: predicated region fallthrough
CT: control target
= control target key end

     0   :  { %s519_s12 = smov 0   ;;  %s521_s13 = smov 0   ;;  %s561_s0 = inlined_call_operand.vmem [shape: bf16[32,32], index: 0, kind: input, shape index: {}]   ;;  %s562_s1 = inlined_call_operand.vmem [shape: bf16[32,64], index: 1, kind: input, shape index: {}]   ;;  %s563_s2 = inlined_call_operand.vmem [shape: f32[1,64], index: 2, kind: input, shape index: {}]   ;;  %s564_s3 = inlined_call_operand.vmem [shape: bf16[32,64], index: 3, kind: output, shape index: {}]  }
   0x1   :  { %s523_s14 = smov 0  }
   0x2 LB: > { %s32_s15 = sadd.s32 1, %s493_s13  ;;  %p427_p0 = scmp.ge.s32.totalorder %s497_s14, 1  ;;  %s497_s14 = sphi %s523_s14, %s13_s14   ;;  %s493_s13 = sphi %s521_s13, %s566_s13   ;;  %s489_s12 = sphi %s519_s12, %s565_s12  }
   0x3   : > { %p34_p1 = scmp.ge.s32.totalorder %s32_s15, 2  ;;  %p188_p2 = scmp.lt.s32.totalorder %s497_s14, 3 }
   0x5   : > { %s568_s15 = smov (%p34_p1, %s32_s15), 0  ;;  %p189_p3 = pnand %p427_p0, %p188_p2 }
   0x6   : > { %s428_s18 = sshll.u32 (!%p189_p3), %s489_s12, 1 }
   0x7   : > { %192 = sbr.rel (%p189_p3) target bundleno = 159 (0x9f), region = 32  ;;  %p230_p4 = scmp.lt.s32.totalorder (!%p189_p3), %s428_s18, 3 }
   0xc   : > { %v449_v0 = vld [vmem:[%s562_s1 + $0x8] sm:$0xff]  ;;  %v448_v1 = vld [vmem:[%s562_s1] sm:$0xff]  ;;  %s570_s18 = smov (!%p230_p4, %s428_s18), 3  ;;  %vm287_vm0 = vcmask 261120   ;;  %vm307_vm1 = vcmask 519168  }
   0xd   : > { %297 = vmatpush.bf16.msra.mxu0 %v449_v0  ;;  %s429_s21 = sshll.u32 %s570_s18, 2  ;;  %v474_v3 = vld [vmem:[%s563_s2] ss:$0 sm:$0xff] }
   0xe   : > { %s236_s24 = scalar_lea.vmem %s561_s0, %s429_s21  ;;  %s257_s29 = scalar_lea.vmem %s564_s3, %s429_s21 }
   0xf   : > { %v447_v2 = vld [vmem:[%s236_s24] sm:$0xff] }
  0x11   : > { %298 = vmatpush.bf16.msra.mxu0 %v448_v1 }
  0x14   : > { %444 = vmatmul.msk.bf16.vlgmr.msra.gmra.mxu0 %vm287_vm0, %v447_v2 }
  0x91   : > { %v300_v4 = vpop.f32.mrf.mxu0 }
  0x92   : > { %v301_v5 = vadd.f32 %v474_v3, %v300_v4 }
  0x94   : > { %v305_v6 = vpack.c.bf16 %v301_v5, %v301_v5 }
  0x96   : > { %308 = vst.msk [vmem:[%s257_s29] sm:$0xf] %vm307_vm1, %v305_v6 }
  0x99   : > { %v302_v7 = vpop.f32.mrf.mxu0 }
  0x9a   : > { %v303_v8 = vadd.f32 %v474_v3, %v302_v7 }
  0x9c   : > { %v306_v9 = vpack.c.bf16 %v303_v8, %v303_v8 }
  0x9e   : > { %309 = vst.msk [vmem:[%s257_s29 + $0x4] sm:$0xf] %vm307_vm1, %v306_v9 }
  0x9f PF: > { %s13_s14 = sadd.s32 1, %s497_s14   ;;  %s565_s12 = smov %s493_s13 }
  0xa0   : > { %p10_p5 = scmp.ge.s32.totalorder %s13_s14, 4   ;;  %s566_s13 = smov %s568_s15 }
  0xa2   :  { %12 = sbr.rel (!%p10_p5) target bundleno = 2 (0x2), region = 68 }

// kernel: decoder_vit_forward.33
= control target key start
LH: loop header
LB: loop body
LE: loop exit
PB: predicated region body
PF: predicated region fallthrough
CT: control target
= control target key end

     0   :  { %8 = vsyncpa [#allocation3], 0  ;;  %s547_s12 = smov 0   ;;  %s549_s13 = smov 0   ;;  %s590_s0 = inlined_call_operand.vmem [shape: bf16[16,32], index: 0, kind: input, shape index: {}]   ;;  %s591_s1 = inlined_call_operand.vmem [shape: bf16[32,64], index: 1, kind: input, shape index: {}]   ;;  %s592_s2 = inlined_call_operand.hbm [shape: f32[1,64], index: 2, kind: input, shape index: {}]   ;;  %s593_s3 = inlined_call_operand.vmem [shape: bf16[16,64], index: 3, kind: output, shape index: {}]  }
   0x1   :  { %s551_s14 = smov 0  }
   0x2 LB: > { %s409_s15 = sadd.s32 4294967295, %s524_s14   ;;  %s33_s16 = sadd.s32 1, %s520_s13  ;;  %s524_s14 = sphi %s551_s14, %s14_s14   ;;  %s520_s13 = sphi %s549_s13, %s595_s13   ;;  %s516_s12 = sphi %s547_s12, %s594_s12  }
   0x3   : > { %p35_p0 = scmp.ge.s32.totalorder %s33_s16, 2  ;;  %p411_p1 = scmp.ge.s32.totalorder %s524_s14, 1 }
   0x4   : > { %p148_p2 = scmp.lt.s32.totalorder %s524_s14, 3  ;;  %p440_p4 = scmp.eq.s32.totalorder %s409_s15, 0 }
   0x5   : > { %s597_s16 = smov (%p35_p0, %s33_s16), 0  ;;  %s173_s19 = sshll.u32 %s592_s2, 4  ;;  %s174_s19 = int_to_ptr.hbm [resolvable:$true] %s173_s19 }
   0x6   : > { %p149_p3 = pnand %p411_p1, %p148_p2  ;;  %s526_s20 = smov [#allocation2]  }
   0x7   : > { %s175_s21 = sshll.u32 %s526_s20, 4  ;;  %s176_s21 = int_to_ptr.vmem [resolvable:$true] %s175_s21 }
   0x8   : > { %p436_p5 = pneg %p149_p3  ;;  %198 = sbr.rel (%p149_p3) target bundleno = 156 (0x9c), region = 32 }
   0xa   : > { %p437_p6 = pnand %p440_p4, %p436_p5 }
   0xc   : > { %439 = dma.hbm_to_vmem [thread:$0]  (!%p437_p6), %s174_s19, 16, %s176_s21, [#allocation3]  }
   0xd   : > { %511 = dma.done.wait (%p440_p4), [#allocation3], 16  }
   0xe   : > { %513 = vsyncadd (%p440_p4), [#allocation3], 4294967280  ;;  %p235_p7 = scmp.lt.s32.totalorder %s516_s12, 1  ;;  %v431_v0 = vld [vmem:[%s591_s1 + $0x8] sm:$0xff]  ;;  %v430_v1 = vld [vmem:[%s591_s1] sm:$0xff]  ;;  %vm280_vm0 = vcmask 261120  }
   0xf   : > { %290 = vmatpush.bf16.msra.mxu0 %v431_v0  ;;  %v467_v3 = vld [vmem:[#allocation2] ss:$0 sm:$0xff]  ;;  %vm298_vm1 = vcmask 519168  }
  0x10   : > { %s599_s12 = smov (!%p235_p7, %s516_s12), 1 }
  0x11   : > { %s417_s24 = sshll.u32 %s599_s12, 2 }
  0x12   : > { %s241_s29 = scalar_lea.vmem %s590_s0, %s417_s24  ;;  %s257_s5 = scalar_lea.vmem %s593_s3, %s417_s24 }
  0x13   : > { %291 = vmatpush.bf16.msra.mxu0 %v430_v1  ;;  %v259_v2 = vld [vmem:[%s241_s29] sm:$0xf] }
  0x16   : > { %427 = vmatmul.msk.bf16.vlgmr.msra.gmra.mxu0 %vm280_vm0, %v259_v2 }
  0x93   : > { %v293_v4 = vpop.f32.mrf.mxu0 }
  0x94   : > { %v294_v5 = vadd.f32 %v467_v3, %v293_v4 }
  0x96   : > { %v297_v6 = vpack.c.bf16 %v294_v5, %v294_v5 }
  0x98   : > { %299 = vst.msk [vmem:[%s257_s5] sm:$0xf] %vm298_vm1, %v297_v6 }
  0x9b   : > { %v295_v7 = vpop.f32.mrf.mxu0 }
  0x9c PF: > { %s14_s14 = sadd.s32 1, %s524_s14   ;;  %s594_s12 = smov %s520_s13 }
  0x9d   : > { %p11_p8 = scmp.ge.s32.totalorder %s14_s14, 4   ;;  %s595_s13 = smov %s597_s16 }
  0x9f   :  { %13 = sbr.rel (!%p11_p8) target bundleno = 2 (0x2), region = 71 }
  0xa4   :  { %325 = vsyncpa [#allocation3], 1 }
  0xa5   :  { %327 = vsyncpa [#allocation3 + $0x1], 1 }

// kernel: decoder_vit_forward.32
= control target key start
LH: loop header
LB: loop body
LE: loop exit
PB: predicated region body
PF: predicated region fallthrough
CT: control target
= control target key end

     0   :  { %8 = vsyncpa [#allocation3], 0  ;;  %s574_s12 = smov 0   ;;  %s576_s13 = smov 0   ;;  %s617_s0 = inlined_call_operand.vmem [shape: bf16[32,32], index: 0, kind: input, shape index: {}]   ;;  %s618_s1 = inlined_call_operand.vmem [shape: bf16[32,32], index: 1, kind: input, shape index: {}]   ;;  %s619_s2 = inlined_call_operand.hbm [shape: f32[1,32], index: 2, kind: input, shape index: {}]   ;;  %s620_s3 = inlined_call_operand.vmem [shape: bf16[32,32], index: 3, kind: output, shape index: {}]  }
   0x1   :  { %s578_s14 = smov 0  }
   0x2 LB: > { %s429_s15 = sadd.s32 4294967295, %s551_s14   ;;  %s33_s16 = sadd.s32 1, %s547_s13  ;;  %s551_s14 = sphi %s578_s14, %s14_s14   ;;  %s547_s13 = sphi %s576_s13, %s622_s13   ;;  %s543_s12 = sphi %s574_s12, %s621_s12  }
   0x3   : > { %p35_p0 = scmp.ge.s32.totalorder %s33_s16, 2  ;;  %p431_p1 = scmp.ge.s32.totalorder %s551_s14, 1 }
   0x4   : > { %p148_p2 = scmp.lt.s32.totalorder %s551_s14, 3  ;;  %p467_p4 = scmp.eq.s32.totalorder %s429_s15, 0 }
   0x5   : > { %s624_s16 = smov (%p35_p0, %s33_s16), 0  ;;  %s173_s19 = sshll.u32 %s619_s2, 4  ;;  %s174_s19 = int_to_ptr.hbm [resolvable:$true] %s173_s19 }
   0x6   : > { %p149_p3 = pnand %p431_p1, %p148_p2  ;;  %s553_s20 = smov [#allocation2]  }
   0x7   : > { %s175_s21 = sshll.u32 %s553_s20, 4  ;;  %s176_s21 = int_to_ptr.vmem [resolvable:$true] %s175_s21 }
   0x8   : > { %p463_p5 = pneg %p149_p3  ;;  %200 = sbr.rel (%p149_p3) target bundleno = 161 (0xa1), region = 32 }
   0xa   : > { %p464_p6 = pnand %p467_p4, %p463_p5 }
   0xc   : > { %466 = dma.hbm_to_vmem [thread:$0]  (!%p464_p6), %s174_s19, 16, %s176_s21, [#allocation3]  }
   0xd   : > { %538 = dma.done.wait (%p467_p4), [#allocation3], 16  }
   0xe   : > { %540 = vsyncadd (%p467_p4), [#allocation3], 4294967280  ;;  %s437_s22 = sshll.u32 %s543_s12, 1  ;;  %v458_v0 = vld [vmem:[%s618_s1 + $0x8] sm:$0xff]  ;;  %v457_v1 = vld [vmem:[%s618_s1] sm:$0xff]  ;;  %vm294_vm0 = vcmask 261120  }
   0xf   : > { %p240_p7 = scmp.lt.s32.totalorder %s437_s22, 3  ;;  %304 = vmatpush.bf16.msra.mxu0 %v458_v0  ;;  %v494_v3 = vld [vmem:[#allocation2] ss:$0 sm:$0xff]  ;;  %vm314_vm1 = vcmask 257024  }
  0x11   : > { %s626_s22 = smov (!%p240_p7, %s437_s22), 3 }
  0x12   : > { %s438_s23 = sshll.u32 %s626_s22, 2 }
  0x13   : > { %s246_s30 = scalar_lea.vmem %s617_s0, %s438_s23  ;;  %305 = vmatpush.bf16.msra.mxu0 %v457_v1  ;;  %s264_s6 = scalar_lea.vmem %s620_s3, %s438_s23 }
  0x14   : > { %v456_v2 = vld [vmem:[%s246_s30] sm:$0xff] }
  0x16   : > { %453 = vmatmul.msk.bf16.vlgmr.msra.gmra.mxu0 %vm294_vm0, %v456_v2 }
  0x93   : > { %v307_v4 = vpop.f32.mrf.mxu0 }
  0x94   : > { %v308_v5 = vadd.f32 %v494_v3, %v307_v4 }
  0x96   : > { %v312_v6 = vpack.c.bf16 %v308_v5, %v308_v5 }
  0x98   : > { %315 = vst.msk [vmem:[%s264_s6] sm:$0xf] %vm314_vm1, %v312_v6 }
  0x9b   : > { %v309_v7 = vpop.f32.mrf.mxu0 }
  0x9c   : > { %v310_v8 = vadd.f32 %v494_v3, %v309_v7 }
  0x9e   : > { %v313_v9 = vpack.c.bf16 %v310_v8, %v310_v8 }
  0xa0   : > { %316 = vst.msk [vmem:[%s264_s6 + $0x4] sm:$0xf] %vm314_vm1, %v313_v9 }
  0xa1 PF: > { %s14_s14 = sadd.s32 1, %s551_s14   ;;  %s621_s12 = smov %s547_s13 }
  0xa2   : > { %p11_p8 = scmp.ge.s32.totalorder %s14_s14, 4   ;;  %s622_s13 = smov %s624_s16 }
  0xa4   :  { %13 = sbr.rel (!%p11_p8) target bundleno = 2 (0x2), region = 71 }
  0xa9   :  { %345 = vsyncpa [#allocation3], 1 }
  0xaa   :  { %347 = vsyncpa [#allocation3 + $0x1], 1 }

// kernel: decoder_vit_forward.34
= control target key start
LH: loop header
LB: loop body
LE: loop exit
PB: predicated region body
PF: predicated region fallthrough
CT: control target
= control target key end

     0   :  { %s676_s9 = smov 0   ;;  %s761_s0 = inlined_call_operand.vmem [shape: bf16[2,16,32], index: 0, kind: input, shape index: {}]   ;;  %s762_s1 = inlined_call_operand.vmem [shape: bf16[2,8,64], index: 1, kind: input, shape index: {}]   ;;  %s763_s2 = inlined_call_operand.vmem [shape: bf16[2,16,32], index: 2, kind: output, shape index: {}]  }
   0x1 LB: > { %s566_s10 = sadd.s32 4294967295, %s649_s9   ;;  %p570_p0 = scmp.ge.s32.totalorder %s649_s9, 1  ;;  %s649_s9 = sphi %s676_s9, %s12_s9  }
   0x2   : > { %p121_p1 = scmp.lt.s32.totalorder %s649_s9, 3 }
   0x4   : > { %p122_p2 = pnand %p570_p0, %p121_p1 }
   0x5   : > { %p147_p3 = scmp.lt.s32.totalorder (!%p122_p2), %s566_s10, 1  ;;  %s651_s19 = smov (!%p122_p2), 120  }
   0x6   : > { %125 = sbr.rel (%p122_p2) target bundleno = 1087 (0x43f), region = 28  ;;  %s652_s20 = smov (!%p122_p2), 112  }
   0x7   : > { %s653_s21 = smov (!%p122_p2), 96   ;;  %s654_s22 = smov (!%p122_p2), 104  }
   0x8   : > { %s655_s26 = smov (!%p122_p2), 88   ;;  %s656_s27 = smov (!%p122_p2), 80  }
   0x9   : > { %s657_s28 = smov (!%p122_p2), 72   ;;  %s658_s29 = smov (!%p122_p2), 8  }
   0xa   : > { %s659_s30 = smov (!%p122_p2), 24   ;;  %s660_s3 = smov (!%p122_p2), 16  }
   0xb   : > { %s765_s10 = smov (!%p147_p3, %s566_s10), 1  ;;  %vm170_vm0 = vcmask 64512   ;;  %vm224_vm1 = vcmask 1043456   ;;  %vm244_vm2 = vcmask 60416   ;;  %vm328_vm3 = vcmask 126016  }
   0xc   : > { %s590_s11 = sshll.u32 %s765_s10, 3  ;;  %s573_s12 = sshll.u32 %s765_s10, 2  ;;  %vm412_vm4 = vcmask 191616   ;;  %vm496_vm5 = vcmask 257216  }
   0xd   : > { %s151_s15 = scalar_lea.vmem %s761_s0, %s590_s11  ;;  %s155_s18 = scalar_lea.vmem %s762_s1, %s573_s12 }
   0xe   : > { %v592_v0 = vld [vmem:[%s151_s15] sm:$0xff]  ;;  %s731_s25 = scalar_lea.vmem %s763_s2, %s590_s11 }
   0xf   : > { %v164_v1 = vld [vmem:[%s155_s18] sm:$0xf]  ;;  %247 = vrot.lane.b32.xlu2 %v592_v0, %s651_s19 }
  0x10   : > { %v175_v2 = vsel %vm170_vm0, %v164_v1, 0  ;;  %v217_v3 = vunpack.c.l.b16 %v164_v1 }
  0x11   : > { %184 = vmatpush.bf16.xpose.msra.mxu0 %v175_v2 }
  0x12   : > { %v697_v4 = vpack.c.b16 %v217_v3, %v217_v3 }
  0x14   : > { %249 = vrot.lane.b32.xlu1 %v697_v4, %s651_s19 }
  0x17   : > { %333 = vrot.lane.b32.xlu2 %v697_v4, %s652_s20 }
  0x18   : > { %580 = vmatmul.msk.bf16.vlgmr.msra.gmra.mxu0 %vm170_vm0, %v592_v0 }
  0x69   : > { %v248_v7 = vpop.permute.xlu2 %247 }
  0x71   : > { %v334_v28 = vpop.permute.xlu2 %333 }
  0x72   : > { %v339_v30 = vsel %vm170_vm0, %v334_v28, 0 }
  0x86   : > { %v250_v5 = vpop.permute.xlu1 %249 }
  0x87   : > { %v255_v6 = vsel %vm170_vm0, %v250_v5, 0 }
  0x88   : > { %264 = vmatpush.bf16.xpose.msra.mxu2 %v255_v6 }
  0x8f   : > { %582 = vmatmul.msk.bf16.vlgmr.msra.gmra.mxu2 %vm170_vm0, %v248_v7 }
  0x95   : > { %v186_v8 = vpop.f32.mrf.mxu0 }
  0x96   : > { %v191_v9 = vmul.f32 0.35355338, %v186_v8 }
  0x98   : > { %v193_v10 = vsel %vm170_vm0, %v191_v9, -inf }
  0x99   : > { %194 = vmax.xlane.f32.xlu0 %v193_v10 }
  0x9d   : > { %v188_v11 = vpop.f32.mrf.mxu0 }
  0x9e   : > { %v192_v12 = vmul.f32 0.35355338, %v188_v11 }
  0xa0   : > { %v196_v13 = vsel %vm170_vm0, %v192_v12, -inf }
  0xa1   : > { %197 = vmax.xlane.f32.xlu0 %v196_v13 }
  0xb5   : > { %219 = vrot.lane.b32.xlu0 %v697_v4, %s653_s21 }
  0xbd   : > { %417 = vrot.lane.b32.xlu0 %v697_v4, %s654_s22 }
  0xc5   : > { %415 = vrot.lane.b32.xlu0 %v592_v0, %s654_s22 }
 0x10c   : > { %v195_v14 = vpop.xlane.xlu0 %194 }
 0x10d   : > { %v199_v15 = vsub.f32 %v191_v9, %v195_v14 }
 0x10f   : > { %v201_v16 = vmul.f32 1.442695, %v199_v15 }
 0x111   : > { %611 = vpow2.f32 %v201_v16 }
 0x112   : > { %v266_v17 = vpop.f32.mrf.mxu2 }
 0x113   : > { %v271_v35 = vmul.f32 0.35355338, %v266_v17 }
 0x114   : > { %v198_v18 = vpop.xlane.xlu0 %197 }
 0x115   : > { %v200_v19 = vsub.f32 %v192_v12, %v198_v18  ;;  %v273_v36 = vsel %vm170_vm0, %v271_v35, -inf }
 0x117   : > { %v612_v20 = vpop.eup %611  ;;  %v203_v21 = vmul.f32 1.442695, %v200_v19 }
 0x118   : > { %v205_v22 = vsel %vm170_vm0, %v612_v20, 0.0 }
 0x119   : > { %613 = vpow2.f32 %v203_v21  ;;  %206 = vadd.xlane.f32.xlu1 %v205_v22 }
 0x11a   : > { %v268_v23 = vpop.f32.mrf.mxu2 }
 0x11b   : > { %v272_v24 = vmul.f32 0.35355338, %v268_v23 }
 0x11d   : > { %v276_v25 = vsel %vm170_vm0, %v272_v24, -inf }
 0x11f   : > { %v614_v26 = vpop.eup %613 }
 0x120   : > { %v208_v27 = vsel %vm170_vm0, %v614_v26, 0.0 }
 0x121   : > { %277 = vmax.xlane.f32.xlu1 %v276_v25  ;;  %209 = vadd.xlane.f32.xlu2 %v208_v27 }
 0x127   : > { %v220_v29 = vpop.permute.xlu0 %219 }
 0x128   : > { %v226_v31 = vsel %vm224_vm1, %v220_v29, 0 }
 0x129   : > { %235 = vmatpush.bf16.msra.mxu1 %v226_v31 }
 0x12d   : > { %348 = vmatpush.bf16.xpose.msrb.mxu1 %v339_v30 }
 0x12f   : > { %v418_v32 = vpop.permute.xlu0 %417 }
 0x130   : > { %v423_v33 = vsel %vm170_vm0, %v418_v32, 0 }
 0x131   : > { %432 = vmatpush.bf16.xpose.msrb.mxu0 %v423_v33 }
 0x137   : > { %v416_v34 = vpop.permute.xlu0 %415 }
 0x138   : > { %586 = vmatmul.msk.bf16.vlgmr.msrb.gmra.mxu0 %vm170_vm0, %v416_v34 }
 0x139   : > { %331 = vrot.lane.b32.xlu2 %v592_v0, %s652_s20 }
 0x162   : > { %274 = vmax.xlane.f32.xlu2 %v273_v36 }
 0x18c   : > { %v207_v37 = vpop.xlane.xlu1 %206 }
 0x18d   : > { %615 = vrcp.f32 %v207_v37 }
 0x193   : > { %v616_v42 = vpop.eup %615 }
 0x194   : > { %v278_v38 = vpop.xlane.xlu1 %277  ;;  %v210_v39 = vpop.xlane.xlu2 %209  ;;  %v213_v44 = vmul.f32 %v616_v42, %v612_v20 }
 0x195   : > { %v280_v40 = vsub.f32 %v272_v24, %v278_v38  ;;  %617 = vrcp.f32 %v210_v39 }
 0x197   : > { %v283_v41 = vmul.f32 1.442695, %v280_v40 }
 0x199   : > { %619 = vpow2.f32 %v283_v41 }
 0x19b   : > { %v618_v43 = vpop.eup %617 }
 0x19c   : > { %v214_v45 = vmul.f32 %v618_v43, %v614_v26  ;;  %v332_v49 = vpop.permute.xlu2 %331 }
 0x19e   : > { %v215_v46 = vpack.c.bf16 %v214_v45, %v213_v44 }
 0x19f   : > { %v718_v47 = vpop.eup %619 }
 0x1a0   : > { %581 = vmatmul.msk.bf16.vlgmr.msra.gmra.mxu1 %vm170_vm0, %v215_v46  ;;  %v288_v48 = vsel %vm170_vm0, %v718_v47, 0.0 }
 0x1a1   : > { %289 = vadd.xlane.f32.xlu2 %v288_v48 }
 0x1b0   : > { %584 = vmatmul.msk.bf16.vlgmr.msrb.gmra.mxu1 %vm170_vm0, %v332_v49 }
 0x1b5   : > { %v434_v50 = vpop.f32.mrf.mxu0 }
 0x1b6   : > { %v439_v51 = vmul.f32 0.35355338, %v434_v50 }
 0x1b8   : > { %v441_v52 = vsel %vm170_vm0, %v439_v51, -inf }
 0x1b9   : > { %442 = vmax.xlane.f32.xlu1 %v441_v52 }
 0x1bd   : > { %v436_v53 = vpop.f32.mrf.mxu0 }
 0x1be   : > { %v440_v54 = vmul.f32 0.35355338, %v436_v53 }
 0x1c0   : > { %v444_v55 = vsel %vm170_vm0, %v440_v54, -inf }
 0x1c1   : > { %445 = vmax.xlane.f32.xlu1 %v444_v55 }
 0x1d5   : > { %v275_v60 = vpop.xlane.xlu2 %274 }
 0x1d6   : > { %v279_v1 = vsub.f32 %v271_v35, %v275_v60 }
 0x1d8   : > { %v281_v5 = vmul.f32 1.442695, %v279_v1 }
 0x214   : > { %v290_v29 = vpop.xlane.xlu2 %289 }
 0x21d   : > { %v237_v56 = vpop.f32.mrf.mxu1 }
 0x21e   : > { %v242_v57 = vpack.c.bf16 %v237_v56, %v237_v56 }
 0x220   : > { %245 = vst.msk [vmem:[%s731_s25] sm:$0xf] %vm244_vm2, %v242_v57 }
 0x225   : > { %v239_v58 = vpop.f32.mrf.mxu1 }
 0x226   : > { %v243_v59 = vpack.c.bf16 %v239_v58, %v239_v58 }
 0x228   : > { %246 = vst.msk [vmem:[%s731_s25 + $0x4] sm:$0xf] %vm244_vm2, %v243_v59 }
 0x22c   : > { %v443_v61 = vpop.xlane.xlu1 %442 }
 0x22d   : > { %v447_v62 = vsub.f32 %v439_v51, %v443_v61  ;;  %v350_v63 = vpop.f32.mrf.mxu1 }
 0x22e   : > { %v355_v0 = vmul.f32 0.35355338, %v350_v63 }
 0x22f   : > { %v449_v2 = vmul.f32 1.442695, %v447_v62 }
 0x230   : > { %v357_v3 = vsel %vm170_vm0, %v355_v0, -inf }
 0x231   : > { %621 = vpow2.f32 %v449_v2  ;;  %358 = vmax.xlane.f32.xlu0 %v357_v3 }
 0x232   : > { %623 = vpow2.f32 %v281_v5 }
 0x234   : > { %v446_v6 = vpop.xlane.xlu1 %445 }
 0x235   : > { %v448_v7 = vsub.f32 %v440_v54, %v446_v6  ;;  %v352_v8 = vpop.f32.mrf.mxu1 }
 0x236   : > { %v356_v9 = vmul.f32 0.35355338, %v352_v8 }
 0x237   : > { %v622_v10 = vpop.eup %621  ;;  %v451_v11 = vmul.f32 1.442695, %v448_v7 }
 0x238   : > { %v453_v12 = vsel %vm170_vm0, %v622_v10, 0.0  ;;  %v360_v13 = vsel %vm170_vm0, %v356_v9, -inf  ;;  %v624_v14 = vpop.eup %623 }
 0x239   : > { %625 = vpow2.f32 %v451_v11  ;;  %454 = vadd.xlane.f32.xlu0 %v453_v12  ;;  %361 = vmax.xlane.f32.xlu1 %v360_v13  ;;  %v285_v16 = vsel %vm170_vm0, %v624_v14, 0.0 }
 0x23f   : > { %v626_v15 = vpop.eup %625 }
 0x240   : > { %v456_v17 = vsel %vm170_vm0, %v626_v15, 0.0 }
 0x241   : > { %286 = vadd.xlane.f32.xlu1 %v285_v16  ;;  %457 = vadd.xlane.f32.xlu2 %v456_v17 }
 0x25a   : > { %296 = vrot.lane.b32.xlu1 %v697_v4, %s655_s26 }
 0x2a4   : > { %v359_v18 = vpop.xlane.xlu0 %358 }
 0x2a5   : > { %v363_v19 = vsub.f32 %v355_v0, %v359_v18 }
 0x2a7   : > { %v365_v20 = vmul.f32 1.442695, %v363_v19 }
 0x2a9   : > { %627 = vpow2.f32 %v365_v20 }
 0x2ac   : > { %v362_v21 = vpop.xlane.xlu1 %361  ;;  %v455_v37 = vpop.xlane.xlu0 %454 }
 0x2ad   : > { %v364_v22 = vsub.f32 %v356_v9, %v362_v21 }
 0x2af   : > { %v628_v23 = vpop.eup %627  ;;  %v367_v24 = vmul.f32 1.442695, %v364_v22 }
 0x2b0   : > { %v369_v25 = vsel %vm170_vm0, %v628_v23, 0.0 }
 0x2b1   : > { %629 = vpow2.f32 %v367_v24  ;;  %370 = vadd.xlane.f32.xlu0 %v369_v25 }
 0x2b4   : > { %v287_v28 = vpop.xlane.xlu1 %286  ;;  %v458_v38 = vpop.xlane.xlu2 %457 }
 0x2b5   : > { %631 = vrcp.f32 %v287_v28 }
 0x2b6   : > { %633 = vrcp.f32 %v290_v29 }
 0x2b7   : > { %v630_v26 = vpop.eup %629  ;;  %635 = vrcp.f32 %v458_v38 }
 0x2b8   : > { %v372_v27 = vsel %vm170_vm0, %v630_v26, 0.0  ;;  %637 = vrcp.f32 %v455_v37 }
 0x2b9   : > { %373 = vadd.xlane.f32.xlu2 %v372_v27 }
 0x2bb   : > { %v632_v30 = vpop.eup %631 }
 0x2bc   : > { %v634_v31 = vpop.eup %633  ;;  %v293_v32 = vmul.f32 %v632_v30, %v624_v14 }
 0x2bd   : > { %v294_v35 = vmul.f32 %v634_v31, %v718_v47  ;;  %v636_v41 = vpop.eup %635 }
 0x2be   : > { %v638_v42 = vpop.eup %637  ;;  %v462_v44 = vmul.f32 %v636_v41, %v626_v15 }
 0x2bf   : > { %v295_v36 = vpack.c.bf16 %v294_v35, %v293_v32  ;;  %v461_v47 = vmul.f32 %v638_v42, %v622_v10 }
 0x2c1   : > { %v463_v50 = vpack.c.bf16 %v462_v44, %v461_v47 }
 0x2c5   : > { %380 = vrot.lane.b32.xlu0 %v697_v4, %s656_s27 }
 0x2cc   : > { %v297_v33 = vpop.permute.xlu1 %296 }
 0x2cd   : > { %v302_v34 = vsel %vm224_vm1, %v297_v33, 0 }
 0x2ce   : > { %311 = vmatpush.bf16.msra.mxu3 %v302_v34 }
 0x2d1   : > { %583 = vmatmul.msk.bf16.vlgmr.msra.gmra.mxu3 %vm170_vm0, %v295_v36  ;;  %464 = vrot.lane.b32.xlu2 %v697_v4, %s657_s28 }
 0x324   : > { %v371_v39 = vpop.xlane.xlu0 %370 }
 0x32c   : > { %v374_v40 = vpop.xlane.xlu2 %373 }
 0x32d   : > { %639 = vrcp.f32 %v374_v40 }
 0x32e   : > { %641 = vrcp.f32 %v371_v39 }
 0x333   : > { %v640_v43 = vpop.eup %639 }
 0x334   : > { %v465_v45 = vpop.permute.xlu2 %464  ;;  %v642_v46 = vpop.eup %641  ;;  %v378_v49 = vmul.f32 %v640_v43, %v630_v26 }
 0x335   : > { %v470_v48 = vsel %vm224_vm1, %v465_v45, 0  ;;  %v377_v51 = vmul.f32 %v642_v46, %v628_v23 }
 0x336   : > { %479 = vmatpush.bf16.msrb.mxu2 %v470_v48 }
 0x337   : > { %v381_v4 = vpop.permute.xlu0 %380  ;;  %v379_v53 = vpack.c.bf16 %v378_v49, %v377_v51 }
 0x338   : > { %v386_v52 = vsel %vm224_vm1, %v381_v4, 0 }
 0x339   : > { %395 = vmatpush.bf16.msrb.mxu3 %v386_v52  ;;  %587 = vmatmul.msk.bf16.vlgmr.msrb.gmra.mxu2 %vm170_vm0, %v463_v50 }
 0x33c   : > { %585 = vmatmul.msk.bf16.vlgmr.msrb.gmra.mxu3 %vm170_vm0, %v379_v53 }
 0x354   : > { %v313_v54 = vpop.f32.mrf.mxu3 }
 0x355   : > { %v318_v55 = vpack.c.bf16 %v313_v54, %v313_v54 }
 0x357   : > { %322 = vrot.lane.b32.xlu1 %v318_v55, %s658_s29 }
 0x35c   : > { %v315_v56 = vpop.f32.mrf.mxu3 }
 0x35d   : > { %v319_v57 = vpack.c.bf16 %v315_v56, %v315_v56 }
 0x35f   : > { %324 = vrot.lane.b32.xlu1 %v319_v57, %s658_s29 }
 0x3bc   : > { %v481_v58 = vpop.f32.mrf.mxu2 }
 0x3bd   : > { %v486_v59 = vpack.c.bf16 %v481_v58, %v481_v58 }
 0x3bf   : > { %490 = vrot.lane.b32.xlu2 %v486_v59, %s659_s30  ;;  %v397_v60 = vpop.f32.mrf.mxu3 }
 0x3c0   : > { %v402_v61 = vpack.c.bf16 %v397_v60, %v397_v60 }
 0x3c2   : > { %406 = vrot.lane.b32.xlu0 %v402_v61, %s660_s3 }
 0x3c4   : > { %v483_v62 = vpop.f32.mrf.mxu2 }
 0x3c5   : > { %v487_v0 = vpack.c.bf16 %v483_v62, %v483_v62 }
 0x3c7   : > { %v399_v63 = vpop.f32.mrf.mxu3 }
 0x3c8   : > { %v403_v1 = vpack.c.bf16 %v399_v63, %v399_v63 }
 0x3c9   : > { %v323_v2 = vpop.permute.xlu1 %322 }
 0x3ca   : > { %329 = vst.msk [vmem:[%s731_s25] sm:$0xf] %vm328_vm3, %v323_v2  ;;  %492 = vrot.lane.b32.xlu0 %v487_v0, %s659_s30  ;;  %408 = vrot.lane.b32.xlu1 %v403_v1, %s660_s3 }
 0x3d1   : > { %v325_v3 = vpop.permute.xlu1 %324 }
 0x3d2   : > { %330 = vst.msk [vmem:[%s731_s25 + $0x4] sm:$0xf] %vm328_vm3, %v325_v3 }
 0x419   : > { %v491_v6 = vpop.permute.xlu2 %490 }
 0x434   : > { %v407_v5 = vpop.permute.xlu0 %406 }
 0x435   : > { %413 = vst.msk [vmem:[%s731_s25] sm:$0xf] %vm412_vm4, %v407_v5 }
 0x436   : > { %497 = vst.msk [vmem:[%s731_s25] sm:$0xf] %vm496_vm5, %v491_v6 }
 0x43c   : > { %v493_v7 = vpop.permute.xlu0 %492  ;;  %v409_v8 = vpop.permute.xlu1 %408 }
 0x43d   : > { %414 = vst.msk [vmem:[%s731_s25 + $0x4] sm:$0xf] %vm412_vm4, %v409_v8 }
 0x43e   : > { %498 = vst.msk [vmem:[%s731_s25 + $0x4] sm:$0xf] %vm496_vm5, %v493_v7 }
 0x43f PF: > { %s12_s9 = sadd.s32 1, %s649_s9  }
 0x440   : > { %p9_p4 = scmp.ge.s32.totalorder %s12_s9, 4  }
 0x442   :  { %11 = sbr.rel (!%p9_p4) target bundleno = 1 (0x1), region = 61 }

// kernel: decoder_vit_forward.31
= control target key start
LH: loop header
LB: loop body
LE: loop exit
PB: predicated region body
PF: predicated region fallthrough
CT: control target
= control target key end

     0   :  { %s2773_s0 = inlined_call_operand.vmem [shape: bf16[2,8,32], index: 0, kind: input, shape index: {}]   ;;  %s2774_s1 = inlined_call_operand.vmem [shape: bf16[2,16,64], index: 1, kind: input, shape index: {}]   ;;  %s2775_s2 = inlined_call_operand.vmem [shape: bf16[32,32], index: 2, kind: input, shape index: {}]   ;;  %s2776_s3 = inlined_call_operand.vmem [shape: f32[1,32], index: 3, kind: input, shape index: {}]   ;;  %s2777_s4 = inlined_call_operand.vmem [shape: bf16[32,32], index: 4, kind: input, shape index: {}]   ;;  %s2778_s5 = inlined_call_operand.vmem [shape: f32[1,32], index: 5, kind: input, shape index: {}]   ;;  %s2779_s6 = inlined_call_operand.vmem [shape: f32[1,32], index: 6, kind: input, shape index: {}]   ;;  %s2780_s7 = inlined_call_operand.vmem [shape: f32[1,32], index: 7, kind: input, shape index: {}]   ;;  %s2781_s8 = inlined_call_operand.vmem [shape: bf16[32,96], index: 8, kind: input, shape index: {}]   ;;  %s2782_s9 = inlined_call_operand.hbm [shape: f32[1,96], index: 9, kind: input, shape index: {}]   ;;  %s2783_s10 = inlined_call_operand.vmem [shape: bf16[32,32], index: 10, kind: input, shape index: {}]   ;;  %s2784_s11 = inlined_call_operand.hbm [shape: f32[1,32], index: 11, kind: input, shape index: {}]   ;;  %s2785_s12 = inlined_call_operand.hbm [shape: f32[1,32], index: 12, kind: input, shape index: {}]   ;;  %s2786_s13 = inlined_call_operand.hbm [shape: f32[1,32], index: 13, kind: input, shape index: {}]   ;;  %s2787_s14 = inlined_call_operand.vmem [shape: bf16[32,64], index: 14, kind: input, shape index: {}]   ;;  %s2788_s15 = inlined_call_operand.hbm [shape: f32[1,64], index: 15, kind: input, shape index: {}]   ;;  %s2789_s16 = inlined_call_operand.vmem [shape: bf16[64,32], index: 16, kind: input, shape index: {}]   ;;  %s2790_s17 = inlined_call_operand.hbm [shape: f32[1,32], index: 17, kind: input, shape index: {}]   ;;  %s2791_s18 = inlined_call_operand.hbm [shape: f32[1,32], index: 18, kind: input, shape index: {}]   ;;  %s2792_s19 = inlined_call_operand.hbm [shape: f32[1,32], index: 19, kind: input, shape index: {}]   ;;  %s2793_s20 = inlined_call_operand.vmem [shape: bf16[2,8,32], index: 20, kind: output, shape index: {}]  }
   0x1   :  { %2797 = sst [smem:[#allocation21_spill]] %s2773_s0 }
   0x2   :  { %2798 = sst [smem:[#allocation22_spill]] %s2774_s1 }
   0x3   :  { %2799 = sst [smem:[#allocation23_spill]] %s2775_s2 }
   0x4   :  { %2800 = sst [smem:[#allocation24_spill]] %s2776_s3 }
   0x5   :  { %2801 = sst [smem:[#allocation25_spill]] %s2777_s4 }
   0x6   :  { %2802 = sst [smem:[#allocation26_spill]] %s2784_s11 }
   0x7   :  { %2803 = sst [smem:[#allocation27_spill]] %s2786_s13 }
   0x8   :  { %2804 = sst [smem:[#allocation28_spill]] %s2790_s17 }
   0x9   :  { %25 = vsyncpa [#allocation4], 0 }
   0xa   :  { %26 = vsyncpa [#allocation6], 0 }
   0xb   :  { %27 = vsyncpa [#allocation9], 0 }
   0xc   :  { %28 = vsyncpa [#allocation12], 0 }
   0xd   :  { %29 = vsyncpa [#allocation15], 0  ;;  %s2481_s1 = smov 0  }
   0xe LB: > { %s2805_s11 = sld [smem:[#allocation26_spill]]  ;;  %s2490_s2 = sadd.s32 4294967295, %s2351_s1   ;;  %s2351_s1 = sphi %s2481_s1, %s35_s1  }
   0xf   : > { %p1803_p0 = scmp.ge.s32.totalorder %s2351_s1, 1  ;;  %p496_p1 = scmp.lt.s32.totalorder %s2351_s1, 3 }
  0x10   : > { %p1984_p2 = scmp.eq.s32.totalorder %s2490_s2, 0  ;;  %s2353_s3 = smov [#allocation5]  }
  0x11   : > { %p2495_p3 = pnand %p1803_p0, %p496_p1  ;;  %s546_s26 = sshll.u32 %s2353_s3, 4  ;;  %s547_s26 = int_to_ptr.vmem [resolvable:$true] %s546_s26 }
  0x12   : > { %s2807_s13 = sld [smem:[#allocation27_spill]]  ;;  %s2354_s22 = smov [#allocation8]  }
  0x13   : > { %p1959_p4 = pneg %p2495_p3  ;;  %s2808_s17 = sld [smem:[#allocation28_spill]] }
  0x14   : > { %s544_s24 = sshll.u32 %s2805_s11, 4  ;;  %s570_s23 = sshll.u32 %s2354_s22, 4  ;;  %s545_s24 = int_to_ptr.hbm [resolvable:$true] %s544_s24  ;;  %s571_s23 = int_to_ptr.vmem [resolvable:$true] %s570_s23 }
  0x15   : > { %p2509_p5 = pnand %p1984_p2, %p1959_p4  ;;  %s2355_s3 = smov [#allocation11]  }
  0x16   : > { %s600_s27 = sshll.u32 %s2355_s3, 4  ;;  %s529_s30 = sshll.u32 %s2782_s9, 4  ;;  %s601_s27 = int_to_ptr.vmem [resolvable:$true] %s600_s27  ;;  %s530_s30 = int_to_ptr.hbm [resolvable:$true] %s529_s30 }
  0x17   : > { %1965 = dma.hbm_to_vmem [thread:$0]  (!%p2509_p5), %s545_s24, 16, %s547_s26, [#allocation6]  }
  0x18   : > { %s568_s4 = sshll.u32 %s2807_s13, 4  ;;  %s556_s13 = sshll.u32 %s2785_s12, 4  ;;  %s569_s4 = int_to_ptr.hbm [resolvable:$true] %s568_s4  ;;  %s557_s13 = int_to_ptr.hbm [resolvable:$true] %s556_s13 }
  0x19   : > { %s598_s0 = sshll.u32 %s2808_s17, 4  ;;  %s2356_s17 = smov [#allocation3]   ;;  %s599_s0 = int_to_ptr.hbm [resolvable:$true] %s598_s0 }
  0x1a   : > { %1971 = dma.hbm_to_vmem [thread:$0]  (!%p2509_p5), %s569_s4, 16, %s571_s23, [#allocation9]  }
  0x1b   : > { %1977 = dma.hbm_to_vmem [thread:$0]  (!%p2509_p5), %s599_s0, 16, %s601_s27, [#allocation12]  }
  0x1c   : > { %s531_s24 = sshll.u32 %s2356_s17, 4  ;;  %s2357_s26 = smov [#allocation7]   ;;  %s532_s24 = int_to_ptr.vmem [resolvable:$true] %s531_s24 }
  0x1d   : > { %1962 = dma.hbm_to_vmem [thread:$0]  (!%p2509_p5), %s530_s30, 16, %s532_s24, [#allocation4]  }
  0x1e   : > { %s558_s4 = sshll.u32 %s2357_s26, 4  ;;  %s583_s28 = sshll.u32 %s2788_s15, 4  ;;  %s559_s4 = int_to_ptr.vmem [resolvable:$true] %s558_s4  ;;  %s584_s28 = int_to_ptr.hbm [resolvable:$true] %s583_s28 }
  0x1f   : > { %1968 = dma.hbm_to_vmem [thread:$0]  (!%p2509_p5), %s557_s13, 16, %s559_s4, [#allocation6]  }
  0x20   : > { %s610_s17 = sshll.u32 %s2791_s18, 4  ;;  %s2358_s27 = smov [#allocation10]   ;;  %s611_s17 = int_to_ptr.hbm [resolvable:$true] %s610_s17 }
  0x21   : > { %s585_s29 = sshll.u32 %s2358_s27, 4  ;;  %s2359_s30 = smov [#allocation13]   ;;  %s586_s29 = int_to_ptr.vmem [resolvable:$true] %s585_s29 }
  0x22   : > { %1974 = dma.hbm_to_vmem [thread:$0]  (!%p2509_p5), %s584_s28, 16, %s586_s29, [#allocation9]  }
  0x23   : > { %s612_s22 = sshll.u32 %s2359_s30, 4  ;;  %s622_s23 = sshll.u32 %s2792_s19, 4  ;;  %s613_s22 = int_to_ptr.vmem [resolvable:$true] %s612_s22  ;;  %s623_s23 = int_to_ptr.hbm [resolvable:$true] %s622_s23 }
  0x24   : > { %1980 = dma.hbm_to_vmem [thread:$0]  (!%p2509_p5), %s611_s17, 16, %s613_s22, [#allocation12]  }
  0x25   : > { %s2360_s13 = smov [#allocation14]   ;;  %652 = sbr.rel (%p2495_p3) target bundleno = 3304 (0xce8), region = 100 }
  0x26   : > { %s624_s4 = sshll.u32 %s2360_s13, 4  ;;  %s625_s4 = int_to_ptr.vmem [resolvable:$true] %s624_s4 }
  0x27   : > { %1983 = dma.hbm_to_vmem [thread:$0]  (!%p2509_p5), %s623_s23, 16, %s625_s4, [#allocation15]  }
  0x2a   : > { %2330 = dma.done.wait (%p1984_p2), [#allocation4], 16  }
  0x2b   : > { %2332 = vsyncadd (%p1984_p2), [#allocation4], 4294967280 }
  0x2c   : > { %2334 = dma.done.wait (%p1984_p2), [#allocation6], 32  }
  0x2d   : > { %2336 = vsyncadd (%p1984_p2), [#allocation6], 4294967264 }
  0x2e   : > { %2338 = dma.done.wait (%p1984_p2), [#allocation9], 32  }
  0x2f   : > { %2340 = vsyncadd (%p1984_p2), [#allocation9], 4294967264 }
  0x30   : > { %2342 = dma.done.wait (%p1984_p2), [#allocation12], 32  }
  0x31   : > { %2344 = vsyncadd (%p1984_p2), [#allocation12], 4294967264 }
  0x32   : > { %2346 = dma.done.wait (%p1984_p2), [#allocation15], 16  }
  0x33   : > { %2348 = vsyncadd (%p1984_p2), [#allocation15], 4294967280  ;;  %p749_p6 = scmp.lt.s32.totalorder %s2490_s2, 1  ;;  %s2810_s28 = sld [smem:[#allocation22_spill]]  ;;  %vm810_vm0 = vcmask 64512   ;;  %vm787_vm1 = vcmask 261120  }
  0x34   : > { %s2811_s27 = sld [smem:[#allocation23_spill]]  ;;  %s2361_s4 = smov 112   ;;  %vm831_vm2 = vcmask 130048   ;;  %vm926_vm3 = vcmask 130112   ;;  %vm987_vm4 = vcmask 195712   ;;  %vm1048_vm5 = vcmask 261312  }
  0x35   : > { %s2817_s2 = smov (!%p749_p6, %s2490_s2), 1  ;;  %s2812_s23 = sld [smem:[#allocation21_spill]]  ;;  %vm1209_vm10 = vcmask 1043456  }
  0x36   : > { %s1911_s25 = sshll.u32 %s2817_s2, 3  ;;  %s2796_s29 = sshll.u32 %s2817_s2, 2 }
  0x37   : > { %s2363_s21 = smov 120   ;;  %s2364_s0 = smov 88  }
  0x38   : > { %s2365_s17 = smov 96   ;;  %s2366_s30 = smov 80  }
  0x39   : > { %s757_s11 = scalar_lea.vmem %s2810_s28, %s1911_s25  ;;  %s2362_s25 = smov 104  }
  0x3a   : > { %v1914_v0 = vld [vmem:[%s2811_s27 + $0x8] sm:$0xff]  ;;  %v1913_v1 = vld [vmem:[%s2811_s27] sm:$0xff]  ;;  %s2367_s22 = smov 72   ;;  %s2368_s24 = smov 8  }
  0x3b   : > { %v2581_v2 = vld [vmem:[%s757_s11] sm:$0xff]  ;;  %797 = vmatpush.bf16.msra.mxu0 %v1914_v0  ;;  %s752_s13 = scalar_lea.vmem %s2812_s23, %s2796_s29  ;;  %s2813_s11 = sld [smem:[#allocation24_spill]] }
  0x3c   : > { %v815_v3 = vsel %vm810_vm0, %v2581_v2, 0  ;;  %v2590_v4 = vld [vmem:[%s752_s13] sm:$0xf]  ;;  %930 = vrot.lane.b32.xlu2 %v2581_v2, %s2361_s4  ;;  %991 = vrot.lane.b32.xlu1 %v2581_v2, %s2362_s25  ;;  %s2369_s26 = smov 24   ;;  %s2370_s23 = smov 16  }
  0x3d   : > { %824 = vmatpush.bf16.xpose.msra.mxu1 %v815_v3  ;;  %869 = vrot.lane.b32.xlu0 %v2581_v2, %s2363_s21  ;;  %s2814_s28 = sld [smem:[#allocation25_spill]] }
  0x3f   : > { %798 = vmatpush.bf16.msra.mxu0 %v1913_v1 }
  0x41   : > { %v2031_v7 = vld [vmem:[%s2813_s11] ss:$0 sm:$0xff] }
  0x42   : > { %1834 = vmatmul.msk.bf16.vlgmr.msra.gmra.mxu0 %vm787_vm1, %v2590_v4 }
  0x96   : > { %v931_v5 = vpop.permute.xlu2 %930 }
  0x97   : > { %v936_v6 = vsel %vm810_vm0, %v931_v5, 0 }
  0x98   : > { %945 = vmatpush.bf16.xpose.msrb.mxu0 %v936_v6 }
  0xae   : > { %v992_v16 = vpop.permute.xlu1 %991 }
  0xaf   : > { %v870_v14 = vpop.permute.xlu0 %869  ;;  %v997_v18 = vsel %vm810_vm0, %v992_v16, 0 }
  0xb0   : > { %v875_v15 = vsel %vm810_vm0, %v870_v14, 0 }
  0xb1   : > { %884 = vmatpush.bf16.xpose.msra.mxu3 %v875_v15 }
  0xb9   : > { %1006 = vmatpush.bf16.xpose.msrb.mxu3 %v997_v18 }
  0xbf   : > { %v800_v8 = vpop.f32.mrf.mxu0 }
  0xc0   : > { %v801_v9 = vadd.f32 %v2031_v7, %v800_v8 }
  0xc2   : > { %v804_v10 = vpack.c.bf16 %v801_v9, %v801_v9 }
  0xc4   : > { %v865_v11 = vunpack.c.l.b16 %v804_v10  ;;  %1839 = vmatmul.msk.bf16.vlgmr.msra.gmra.mxu1 %vm810_vm0, %v804_v10 }
  0xc6   : > { %v866_v12 = vpack.c.b16 %v865_v11, %v865_v11 }
  0xc7   : > { %v802_v13 = vpop.f32.mrf.mxu0 }
  0xc8   : > { %928 = vrot.lane.b32.xlu2 %v866_v12, %s2361_s4  ;;  %989 = vrot.lane.b32.xlu1 %v866_v12, %s2362_s25 }
  0xc9   : > { %867 = vrot.lane.b32.xlu0 %v866_v12, %s2363_s21 }
 0x122   : > { %v929_v17 = vpop.permute.xlu2 %928 }
 0x123   : > { %1843 = vmatmul.msk.bf16.vlgmr.msrb.gmra.mxu0 %vm810_vm0, %v929_v17 }
 0x13a   : > { %v990_v24 = vpop.permute.xlu1 %989 }
 0x13b   : > { %v868_v19 = vpop.permute.xlu0 %867 }
 0x13c   : > { %1841 = vmatmul.msk.bf16.vlgmr.msra.gmra.mxu3 %vm810_vm0, %v868_v19 }
 0x141   : > { %v826_v20 = vpop.f32.mrf.mxu1 }
 0x142   : > { %v830_v21 = vmul.f32 0.35355338, %v826_v20 }
 0x144   : > { %v832_v22 = vsel %vm831_vm2, %v830_v21, -inf }
 0x145   : > { %833 = vmax.xlane.f32.xlu0 %v832_v22 }
 0x149   : > { %v828_v23 = vpop.f32.mrf.mxu1 }
 0x14a   : > { %v1916_v23 = vld [vmem:[%s2814_s28 + $0x8] sm:$0xff] }
 0x14b   : > { %1077 = vmatpush.bf16.msra.mxu0 %v1916_v23 }
 0x14c   : > { %1845 = vmatmul.msk.bf16.vlgmr.msrb.gmra.mxu3 %vm810_vm0, %v990_v24  ;;  %v1915_v24 = vld [vmem:[%s2814_s28] sm:$0xff] }
 0x14f   : > { %1078 = vmatpush.bf16.msra.mxu0 %v1915_v24 }
 0x1a0   : > { %v947_v25 = vpop.f32.mrf.mxu0 }
 0x1a1   : > { %v951_v39 = vmul.f32 0.35355338, %v947_v25 }
 0x1a3   : > { %v952_v41 = vsel %vm831_vm2, %v951_v39, -inf }
 0x1a8   : > { %v949_v26 = vpop.f32.mrf.mxu0 }
 0x1b8   : > { %v834_v27 = vpop.xlane.xlu0 %833 }
 0x1b9   : > { %v835_v28 = vsub.f32 %v830_v21, %v834_v27 }
 0x1bb   : > { %v836_v29 = vmul.f32 1.442695, %v835_v28 }
 0x1bd   : > { %2043 = vpow2.f32 %v836_v29  ;;  %v764_v29 = vunpack.c.l.bf16 %v2590_v4 }
 0x1bf   : > { %v886_v30 = vpop.f32.mrf.mxu3 }
 0x1c0   : > { %v890_v31 = vmul.f32 0.35355338, %v886_v30  ;;  %v2032_v30 = vld [vmem:[%s2778_s5] ss:$0 sm:$0xff] }
 0x1c2   : > { %v891_v32 = vsel %vm831_vm2, %v890_v31, -inf }
 0x1c3   : > { %v2044_v33 = vpop.eup %2043  ;;  %892 = vmax.xlane.f32.xlu1 %v891_v32 }
 0x1c4   : > { %v838_v34 = vsel %vm831_vm2, %v2044_v33, 0.0 }
 0x1c5   : > { %839 = vadd.xlane.f32.xlu0 %v838_v34 }
 0x1c7   : > { %v888_v35 = vpop.f32.mrf.mxu3 }
 0x1cf   : > { %v1008_v36 = vpop.f32.mrf.mxu3 }
 0x1d0   : > { %v1012_v37 = vmul.f32 0.35355338, %v1008_v36  ;;  %v2371_v36 = vmov 32.0  }
 0x1d2   : > { %v1013_v38 = vsel %vm831_vm2, %v1012_v37, -inf }
 0x1d3   : > { %1014 = vmax.xlane.f32.xlu2 %v1013_v38 }
 0x1d7   : > { %v1010_v40 = vpop.f32.mrf.mxu3 }
 0x1d9   : > { %903 = vrot.lane.b32.xlu0 %v2581_v2, %s2364_s0 }
 0x1db   : > { %953 = vmax.xlane.f32.xlu2 %v952_v41 }
 0x1dc   : > { %844 = vrot.lane.b32.xlu1 %v2581_v2, %s2365_s17 }
 0x1e1   : > { %964 = vrot.lane.b32.xlu0 %v2581_v2, %s2366_s30 }
 0x1e4   : > { %1025 = vrot.lane.b32.xlu1 %v2581_v2, %s2367_s22 }
 0x236   : > { %v893_v42 = vpop.xlane.xlu1 %892 }
 0x237   : > { %v894_v43 = vsub.f32 %v890_v31, %v893_v42 }
 0x238   : > { %v840_v45 = vpop.xlane.xlu0 %839 }
 0x239   : > { %v895_v44 = vmul.f32 1.442695, %v894_v43 }
 0x23b   : > { %2045 = vpow2.f32 %v895_v44 }
 0x23c   : > { %2047 = vrcp.f32 %v840_v45 }
 0x241   : > { %v2046_v46 = vpop.eup %2045 }
 0x242   : > { %v897_v47 = vsel %vm831_vm2, %v2046_v46, 0.0  ;;  %v2048_v50 = vpop.eup %2047 }
 0x243   : > { %898 = vadd.xlane.f32.xlu2 %v897_v47  ;;  %v842_v52 = vmul.f32 %v2048_v50, %v2044_v33  ;;  %v1918_v47 = vld [vmem:[%s2781_s8 + $0x8] sm:$0xff] }
 0x245   : > { %v843_v56 = vpack.c.bf16 %v842_v52, %v842_v52 }
 0x246   : > { %v1015_v48 = vpop.xlane.xlu2 %1014 }
 0x247   : > { %v1016_v49 = vsub.f32 %v1012_v37, %v1015_v48  ;;  %v1917_v48 = vld [vmem:[%s2781_s8] sm:$0xff] }
 0x249   : > { %v1017_v51 = vmul.f32 1.442695, %v1016_v49 }
 0x24b   : > { %2049 = vpow2.f32 %v1017_v51  ;;  %v904_v62 = vpop.permute.xlu0 %903 }
 0x24e   : > { %v845_v53 = vpop.permute.xlu1 %844  ;;  %v954_v54 = vpop.xlane.xlu2 %953 }
 0x24f   : > { %v955_v55 = vsub.f32 %v951_v39, %v954_v54  ;;  %857 = vmatpush.bf16.msra.mxu2 %v845_v53 }
 0x251   : > { %v2050_v57 = vpop.eup %2049  ;;  %v956_v58 = vmul.f32 1.442695, %v955_v55 }
 0x252   : > { %1840 = vmatmul.msk.bf16.vlgmr.msra.gmra.mxu2 %vm831_vm2, %v843_v56  ;;  %v1019_v59 = vsel %vm831_vm2, %v2050_v57, 0.0 }
 0x253   : > { %2051 = vpow2.f32 %v956_v58  ;;  %1020 = vadd.xlane.f32.xlu2 %v1019_v59  ;;  %916 = vmatpush.bf16.msrb.mxu2 %v904_v62  ;;  %v965_v1 = vpop.permute.xlu0 %964  ;;  %v2033_v58 = vld [vmem:[%s2779_s6] ss:$0 sm:$0xff] }
 0x254   : > { %977 = vmatpush.bf16.msrb.mxu1 %v965_v1  ;;  %v2035_v1 = vld [vmem:[#allocation3] ss:$0 sm:$0xff] }
 0x256   : > { %v1026_v63 = vpop.permute.xlu1 %1025 }
 0x257   : > { %1038 = vmatpush.bf16.msra.mxu2 %v1026_v63 }
 0x258   : > { %1159 = vmatpush.bf16.msra.mxu1 %v1918_v47 }
 0x259   : > { %v2052_v60 = vpop.eup %2051 }
 0x25a   : > { %v958_v61 = vsel %vm831_vm2, %v2052_v60, 0.0 }
 0x25b   : > { %959 = vadd.xlane.f32.xlu2 %v958_v61 }
 0x25c   : > { %1160 = vmatpush.bf16.msra.mxu1 %v1917_v48 }
 0x2b6   : > { %v899_v0 = vpop.xlane.xlu2 %898 }
 0x2b7   : > { %2053 = vrcp.f32 %v899_v0 }
 0x2bd   : > { %v2054_v2 = vpop.eup %2053 }
 0x2be   : > { %v901_v3 = vmul.f32 %v2054_v2, %v2046_v46 }
 0x2c0   : > { %v902_v5 = vpack.c.bf16 %v901_v3, %v901_v3 }
 0x2c2   : > { %1842 = vmatmul.msk.bf16.vlgmr.msrb.gmra.mxu2 %vm831_vm2, %v902_v5 }
 0x2c6   : > { %v1021_v6 = vpop.xlane.xlu2 %1020 }
 0x2c7   : > { %2055 = vrcp.f32 %v1021_v6 }
 0x2cd   : > { %v2056_v7 = vpop.eup %2055 }
 0x2ce   : > { %v1023_v8 = vmul.f32 %v2056_v7, %v2050_v57  ;;  %v960_v9 = vpop.xlane.xlu2 %959 }
 0x2cf   : > { %2057 = vrcp.f32 %v960_v9 }
 0x2d0   : > { %v1024_v10 = vpack.c.bf16 %v1023_v8, %v1023_v8  ;;  %2059 = vrcp.f32 %v2371_v36 }
 0x2d2   : > { %1846 = vmatmul.msk.bf16.vlgmr.msra.gmra.mxu2 %vm831_vm2, %v1024_v10 }
 0x2d5   : > { %v2058_v11 = vpop.eup %2057  ;;  %v859_v12 = vpop.f32.mrf.mxu2 }
 0x2d6   : > { %v962_v13 = vmul.f32 %v2058_v11, %v2052_v60  ;;  %863 = vst.msk [vmem:[#allocation2] sm:$0xff] %vm810_vm0, %v859_v12  ;;  %v2060_v37 = vpop.eup %2059  ;;  %v2034_v60 = vld [vmem:[%s2780_s7] ss:$0 sm:$0xff] }
 0x2d7   : > { %v1096_v38 = vmul.f32 32.0, %v2060_v37  ;;  %vm1100_vm6 = vweird.f32 %v2060_v37 }
 0x2d8   : > { %v963_v14 = vpack.c.bf16 %v962_v13, %v962_v13 }
 0x2d9   : > { %v1097_v39 = vsub.f32 1.0, %v1096_v38 }
 0x2da   : > { %1844 = vmatmul.msk.bf16.vlgmr.msrb.gmra.mxu1 %vm831_vm2, %v963_v14 }
 0x2db   : > { %v1098_v40 = vmul.f32 %v2060_v37, %v1097_v39 }
 0x2dd   : > { %v861_v15 = vpop.f32.mrf.mxu2  ;;  %v1099_v41 = vadd.f32 %v2060_v37, %v1098_v40 }
 0x2df   : > { %v2652_v4 = vsel %vm1100_vm6, %v2060_v37, %v1099_v41 }
 0x345   : > { %v918_v16 = vpop.f32.mrf.mxu2 }
 0x346   : > { %923 = vrot.lane.b32.xlu2 %v918_v16, %s2368_s24 }
 0x34d   : > { %v920_v17 = vpop.f32.mrf.mxu2 }
 0x355   : > { %v1040_v18 = vpop.f32.mrf.mxu2 }
 0x356   : > { %1045 = vrot.lane.b32.xlu0 %v1040_v18, %s2369_s26 }
 0x357   : > { %v979_v19 = vpop.f32.mrf.mxu1 }
 0x358   : > { %984 = vrot.lane.b32.xlu1 %v979_v19, %s2370_s23 }
 0x35d   : > { %v1042_v20 = vpop.f32.mrf.mxu2 }
 0x35f   : > { %v981_v21 = vpop.f32.mrf.mxu1 }
 0x3a0   : > { %v924_v22 = vpop.permute.xlu2 %923 }
 0x3a1   : > { %927 = vst.msk [vmem:[#allocation2] sm:$0xff] %vm926_vm3, %v924_v22 }
 0x3c8   : > { %v1046_v26 = vpop.permute.xlu0 %1045 }
 0x3ca   : > { %v985_v25 = vpop.permute.xlu1 %984 }
 0x3cb   : > { %988 = vst.msk [vmem:[#allocation2] sm:$0xff] %vm987_vm4, %v985_v25 }
 0x3cc   : > { %1049 = vst.msk [vmem:[#allocation2] sm:$0xff] %vm1048_vm5, %v1046_v26 }
 0x3d3   : > { %v1050_v27 = vld [vmem:[#allocation2] sm:$0xff] }
 0x3d4   : > { %v1051_v28 = vpack.c.bf16 %v1050_v27, %v1050_v27 }
 0x3d6   : > { %1855 = vmatmul.msk.bf16.vlgmr.msra.gmra.mxu0 %vm787_vm1, %v1051_v28 }
 0x453   : > { %v1080_v31 = vpop.f32.mrf.mxu0 }
 0x454   : > { %v1084_v32 = vadd.f32 %v1080_v31, %v764_v29 }
 0x456   : > { %v1089_v33 = vadd.f32 %v2032_v30, %v1084_v32 }
 0x458   : > { %v1092_v34 = vsel %vm787_vm1, %v1089_v33, 0.0 }
 0x459   : > { %1093 = vadd.xlane.f32.xlu1 %v1092_v34 }
 0x45b   : > { %v1082_v35 = vpop.f32.mrf.mxu0 }
 0x4cc   : > { %v1094_v42 = vpop.xlane.xlu1 %1093 }
 0x4cd   : > { %v1102_v43 = vmul.f32 %v2652_v4, %v1094_v42 }
 0x4cf   : > { %v1103_v44 = vsub.f32 %v1089_v33, %v1102_v43 }
 0x4d1   : > { %v1104_v45 = vmul.f32 %v1103_v44, %v1103_v44 }
 0x4d3   : > { %v1105_v46 = vsel %vm787_vm1, %v1104_v45, 0.0 }
 0x4d4   : > { %1106 = vadd.xlane.f32.xlu0 %v1105_v46 }
 0x547   : > { %v1107_v49 = vpop.xlane.xlu0 %1106 }
 0x548   : > { %v1108_v50 = vmul.f32 %v1107_v49, %v2652_v4 }
 0x54a   : > { %v1109_v51 = vadd.f32 1e-05, %v1108_v50 }
 0x54c   : > { %2061 = vrsqrt.f32 %v1109_v51  ;;  %vm1116_vm8 = vweird.f32 %v1109_v51 }
 0x552   : > { %v2062_v52 = vpop.eup %2061 }
 0x553   : > { %v1111_v53 = vmul.f32 %v2062_v52, %v1109_v51  ;;  %vm1117_vm7 = vweird.f32 %v2062_v52 }
 0x554   : > { %vm1118_vm9 = vmor %vm1116_vm8, %vm1117_vm7 }
 0x555   : > { %v1112_v54 = vmul.f32 %v2062_v52, %v1111_v53 }
 0x557   : > { %v1113_v55 = vmul.f32 0.5, %v1112_v54 }
 0x559   : > { %v1114_v56 = vsub.f32 1.5, %v1113_v55 }
 0x55b   : > { %v1115_v57 = vmul.f32 %v2062_v52, %v1114_v56 }
 0x55d   : > { %v1119_v59 = vsel %vm1118_vm9, %v2062_v52, %v1115_v57 }
 0x55e   : > { %v1120_v61 = vmul.f32 %v1119_v59, %v1103_v44 }
 0x560   : > { %v1124_v62 = vmul.f32 %v2033_v58, %v1120_v61 }
 0x562   : > { %v2669_v63 = vadd.f32 %v2034_v60, %v1124_v62 }
 0x564   : > { %v1129_v0 = vpack.c.bf16 %v2669_v63, %v2669_v63 }
 0x566   : > { %1864 = vmatmul.msk.bf16.vlgmr.msra.gmra.mxu1 %vm787_vm1, %v1129_v0 }
 0x5e3   : > { %v1162_v2 = vpop.f32.mrf.mxu1 }
 0x5e4   : > { %v1163_v3 = vadd.f32 %v2035_v1, %v1162_v2 }
 0x5e6   : > { %v1166_v5 = vpack.c.bf16 %v1163_v3, %v1163_v3 }
 0x5e8   : > { %v1168_v6 = vunpack.c.l.b16 %v1166_v5 }
 0x5ea   : > { %v2674_v7 = vpack.c.b16 %v1168_v6, %v1168_v6 }
 0x5eb   : > { %v1164_v8 = vpop.f32.mrf.mxu1 }
 0x5ec   : > { %1353 = vrot.lane.b32.xlu0 %v2674_v7, %s2367_s22  ;;  %1289 = vrot.lane.b32.xlu1 %v2674_v7, %s2361_s4  ;;  %s2372_s4 = smov 64   ;;  %s2815_s22 = sshll.u32 %s2817_s2, 2 }
 0x5ed   : > { %1170 = vrot.lane.b32.xlu2 %v2674_v7, %s2365_s17 }
 0x5f5   : > { %1229 = vrot.lane.b32.xlu2 %v2674_v7, %s2364_s0  ;;  %s2375_s0 = smov 48  }
 0x5fd   : > { %1291 = vrot.lane.b32.xlu2 %v2674_v7, %s2366_s30 }
 0x605   : > { %1227 = vrot.lane.b32.xlu2 %v2674_v7, %s2363_s21  ;;  %s2374_s21 = smov 56  }
 0x60d   : > { %1351 = vrot.lane.b32.xlu2 %v2674_v7, %s2362_s25  ;;  %s2373_s25 = smov 40  }
 0x647   : > { %v1171_v9 = vpop.permute.xlu2 %1170 }
 0x648   : > { %v1176_v10 = vsel %vm810_vm0, %v1171_v9, 0 }
 0x649   : > { %1185 = vmatpush.bf16.xpose.msra.mxu3 %v1176_v10 }
 0x64f   : > { %v1230_v11 = vpop.permute.xlu2 %1229 }
 0x650   : > { %v1235_v12 = vsel %vm810_vm0, %v1230_v11, 0  ;;  %1865 = vmatmul.msk.bf16.vlgmr.msra.gmra.mxu3 %vm810_vm0, %v1166_v5 }
 0x651   : > { %1244 = vmatpush.bf16.xpose.msrb.mxu0 %v1235_v12 }
 0x657   : > { %v1292_v13 = vpop.permute.xlu2 %1291 }
 0x658   : > { %v1297_v14 = vsel %vm810_vm0, %v1292_v13, 0 }
 0x659   : > { %1306 = vmatpush.bf16.xpose.msrb.mxu3 %v1297_v14 }
 0x65e   : > { %v1354_v15 = vpop.permute.xlu0 %1353  ;;  %v1290_v16 = vpop.permute.xlu1 %1289 }
 0x65f   : > { %v1359_v17 = vsel %vm810_vm0, %v1354_v15, 0  ;;  %v1228_v18 = vpop.permute.xlu2 %1227 }
 0x660   : > { %1867 = vmatmul.msk.bf16.vlgmr.msrb.gmra.mxu0 %vm810_vm0, %v1228_v18  ;;  %1869 = vmatmul.msk.bf16.vlgmr.msrb.gmra.mxu3 %vm810_vm0, %v1290_v16 }
 0x661   : > { %1368 = vmatpush.bf16.xpose.msra.mxu0 %v1359_v17 }
 0x667   : > { %v1352_v19 = vpop.permute.xlu2 %1351 }
 0x670   : > { %1871 = vmatmul.msk.bf16.vlgmr.msra.gmra.mxu0 %vm810_vm0, %v1352_v19 }
 0x6d3   : > { %v1187_v20 = vpop.f32.mrf.mxu3 }
 0x6d4   : > { %v1191_v21 = vmul.f32 0.35355338, %v1187_v20 }
 0x6d6   : > { %v1192_v22 = vsel %vm810_vm0, %v1191_v21, -inf }
 0x6d7   : > { %1193 = vmax.xlane.f32.xlu2 %v1192_v22 }
 0x6db   : > { %v1189_v23 = vpop.f32.mrf.mxu3 }
 0x6dd   : > { %v1246_v24 = vpop.f32.mrf.mxu0 }
 0x6de   : > { %v1250_v25 = vmul.f32 0.35355338, %v1246_v24 }
 0x6e0   : > { %v1251_v26 = vsel %vm810_vm0, %v1250_v25, -inf }
 0x6e1   : > { %1252 = vmax.xlane.f32.xlu0 %v1251_v26 }
 0x6e3   : > { %v1308_v27 = vpop.f32.mrf.mxu3 }
 0x6e4   : > { %v1312_v28 = vmul.f32 0.35355338, %v1308_v27  ;;  %v1920_v27 = vld [vmem:[%s2783_s10 + $0x8] sm:$0xff] }
 0x6e5   : > { %v1248_v29 = vpop.f32.mrf.mxu0  ;;  %1440 = vmatpush.bf16.msra.mxu3 %v1920_v27 }
 0x6e6   : > { %v1313_v30 = vsel %vm810_vm0, %v1312_v28, -inf }
 0x6e7   : > { %1314 = vmax.xlane.f32.xlu1 %v1313_v30 }
 0x6eb   : > { %v1310_v31 = vpop.f32.mrf.mxu3 }
 0x6ed   : > { %v1370_v32 = vpop.f32.mrf.mxu0 }
 0x6ee   : > { %v1374_v33 = vmul.f32 0.35355338, %v1370_v32 }
 0x6f0   : > { %v1375_v34 = vsel %vm810_vm0, %v1374_v33, -inf }
 0x6f1   : > { %1376 = vmax.xlane.f32.xlu2 %v1375_v34 }
 0x6f5   : > { %v1372_v35 = vpop.f32.mrf.mxu0 }
 0x700   : > { %1204 = vrot.lane.b32.xlu1 %v2674_v7, %s2372_s4 }
 0x708   : > { %1387 = vrot.lane.b32.xlu1 %v2674_v7, %s2373_s25 }
 0x74a   : > { %v1194_v36 = vpop.xlane.xlu2 %1193 }
 0x74b   : > { %v1195_v37 = vsub.f32 %v1191_v21, %v1194_v36 }
 0x74d   : > { %v1196_v38 = vmul.f32 1.442695, %v1195_v37 }
 0x74f   : > { %2063 = vpow2.f32 %v1196_v38 }
 0x754   : > { %v1253_v39 = vpop.xlane.xlu0 %1252 }
 0x755   : > { %v2064_v40 = vpop.eup %2063  ;;  %v1254_v41 = vsub.f32 %v1250_v25, %v1253_v39 }
 0x756   : > { %v1198_v42 = vsel %vm810_vm0, %v2064_v40, 0.0 }
 0x757   : > { %v1255_v43 = vmul.f32 1.442695, %v1254_v41  ;;  %1199 = vadd.xlane.f32.xlu2 %v1198_v42 }
 0x759   : > { %2065 = vpow2.f32 %v1255_v43 }
 0x75a   : > { %v1315_v46 = vpop.xlane.xlu1 %1314 }
 0x75b   : > { %v1316_v49 = vsub.f32 %v1312_v28, %v1315_v46  ;;  %v1919_v28 = vld [vmem:[%s2783_s10] sm:$0xff] }
 0x75c   : > { %1441 = vmatpush.bf16.msra.mxu3 %v1919_v28 }
 0x75d   : > { %v1317_v51 = vmul.f32 1.442695, %v1316_v49 }
 0x75f   : > { %v2066_v44 = vpop.eup %2065 }
 0x760   : > { %v1257_v45 = vsel %vm810_vm0, %v2066_v44, 0.0 }
 0x761   : > { %1258 = vadd.xlane.f32.xlu0 %v1257_v45 }
 0x764   : > { %v1377_v47 = vpop.xlane.xlu2 %1376 }
 0x765   : > { %v1378_v48 = vsub.f32 %v1374_v33, %v1377_v47  ;;  %v2036_v33 = vld [vmem:[#allocation5] ss:$0 sm:$0xff] }
 0x767   : > { %v1379_v50 = vmul.f32 1.442695, %v1378_v48 }
 0x769   : > { %2067 = vpow2.f32 %v1379_v50 }
 0x76a   : > { %2069 = vpow2.f32 %v1317_v51 }
 0x76f   : > { %v2068_v52 = vpop.eup %2067  ;;  %1263 = vrot.lane.b32.xlu2 %v2674_v7, %s2374_s21 }
 0x770   : > { %v1381_v53 = vsel %vm810_vm0, %v2068_v52, 0.0  ;;  %v2070_v56 = vpop.eup %2069 }
 0x771   : > { %1382 = vadd.xlane.f32.xlu0 %v1381_v53  ;;  %v1319_v57 = vsel %vm810_vm0, %v2070_v56, 0.0 }
 0x772   : > { %v1205_v54 = vpop.permute.xlu1 %1204 }
 0x773   : > { %v1211_v55 = vsel %vm1209_vm10, %v1205_v54, 0  ;;  %v2037_v54 = vld [vmem:[#allocation7] ss:$0 sm:$0xff] }
 0x774   : > { %1220 = vmatpush.bf16.msrb.mxu2 %v1211_v55 }
 0x779   : > { %1320 = vadd.xlane.f32.xlu0 %v1319_v57 }
 0x77a   : > { %v1388_v60 = vpop.permute.xlu1 %1387 }
 0x77b   : > { %v1393_v1 = vsel %vm1209_vm10, %v1388_v60, 0 }
 0x78d   : > { %1325 = vrot.lane.b32.xlu0 %v2674_v7, %s2375_s0 }
 0x7ca   : > { %v1200_v58 = vpop.xlane.xlu2 %1199 }
 0x7cb   : > { %2071 = vrcp.f32 %v1200_v58 }
 0x7d1   : > { %v2072_v59 = vpop.eup %2071 }
 0x7d2   : > { %v1202_v61 = vmul.f32 %v2072_v59, %v2064_v40  ;;  %v1264_v62 = vpop.permute.xlu2 %1263 }
 0x7d3   : > { %v1269_v0 = vsel %vm1209_vm10, %v1264_v62, 0 }
 0x7d4   : > { %v1203_v2 = vpack.c.bf16 %v1202_v61, %v1202_v61  ;;  %v1259_v3 = vpop.xlane.xlu0 %1258  ;;  %1278 = vmatpush.bf16.msrb.mxu1 %v1269_v0  ;;  %v2039_v61 = vld [vmem:[#allocation10] ss:$0 sm:$0xff] }
 0x7d5   : > { %2073 = vrcp.f32 %v1259_v3 }
 0x7d6   : > { %1866 = vmatmul.msk.bf16.vlgmr.msrb.gmra.mxu2 %vm810_vm0, %v1203_v2 }
 0x7d8   : > { %1402 = vmatpush.bf16.msra.mxu1 %v1393_v1 }
 0x7db   : > { %v2074_v5 = vpop.eup %2073 }
 0x7dc   : > { %v1261_v6 = vmul.f32 %v2074_v5, %v2066_v44  ;;  %v1922_v44 = vld [vmem:[%s2787_s14 + $0x8] sm:$0xff] }
 0x7de   : > { %v1262_v7 = vpack.c.bf16 %v1261_v6, %v1261_v6  ;;  %v1926_v6 = vld [vmem:[%s2789_s16 + $0x18] sm:$0xff] }
 0x7df   : > { %1607 = vmatpush.bf16.msrb.mxu0 %v1926_v6  ;;  %v2042_v6 = vld [vmem:[#allocation14] ss:$0 sm:$0xff] }
 0x7e0   : > { %1868 = vmatmul.msk.bf16.vlgmr.msrb.gmra.mxu1 %vm810_vm0, %v1262_v7 }
 0x7e4   : > { %v1383_v8 = vpop.xlane.xlu0 %1382 }
 0x7e5   : > { %2075 = vrcp.f32 %v1383_v8 }
 0x7eb   : > { %v2076_v9 = vpop.eup %2075 }
 0x7ec   : > { %v1385_v10 = vmul.f32 %v2076_v9, %v2068_v52  ;;  %v1321_v12 = vpop.xlane.xlu0 %1320 }
 0x7ed   : > { %2077 = vrcp.f32 %v1321_v12 }
 0x7ee   : > { %v1386_v11 = vpack.c.bf16 %v1385_v10, %v1385_v10 }
 0x7f0   : > { %1872 = vmatmul.msk.bf16.vlgmr.msra.gmra.mxu1 %vm810_vm0, %v1386_v11  ;;  %v1925_v11 = vld [vmem:[%s2789_s16 + $0x10] sm:$0xff] }
 0x7f1   : > { %1608 = vmatpush.bf16.msrb.mxu0 %v1925_v11 }
 0x7f3   : > { %v2078_v13 = vpop.eup %2077 }
 0x7f4   : > { %v1323_v14 = vmul.f32 %v2078_v13, %v2070_v56  ;;  %v2038_v56 = vld [vmem:[#allocation8] ss:$0 sm:$0xff] }
 0x7f6   : > { %v1324_v17 = vpack.c.bf16 %v1323_v14, %v1323_v14 }
 0x7ff   : > { %v1326_v15 = vpop.permute.xlu0 %1325 }
 0x800   : > { %v1331_v16 = vsel %vm1209_vm10, %v1326_v15, 0 }
 0x801   : > { %1340 = vmatpush.bf16.msra.mxu2 %v1331_v16  ;;  %v1924_v16 = vld [vmem:[%s2789_s16 + $0x8] sm:$0xff] }
 0x802   : > { %1609 = vmatpush.bf16.msrb.mxu0 %v1924_v16 }
 0x804   : > { %1870 = vmatmul.msk.bf16.vlgmr.msra.gmra.mxu2 %vm810_vm0, %v1324_v17 }
 0x805   : > { %1515 = vmatpush.bf16.msrb.mxu2 %v1922_v44 }
 0x859   : > { %v1222_v18 = vpop.f32.mrf.mxu2 }
 0x85a   : > { %1226 = vst.msk [vmem:[#allocation2] sm:$0xff] %vm810_vm0, %v1222_v18 }
 0x85d   : > { %v1280_v19 = vpop.f32.mrf.mxu1 }
 0x85e   : > { %1285 = vrot.lane.b32.xlu2 %v1280_v19, %s2368_s24 }
 0x861   : > { %v1224_v20 = vpop.f32.mrf.mxu2 }
 0x862   : > { %v1923_v20 = vld [vmem:[%s2789_s16] sm:$0xff] }
 0x863   : > { %1610 = vmatpush.bf16.msrb.mxu0 %v1923_v20 }
 0x865   : > { %v1282_v21 = vpop.f32.mrf.mxu1 }
 0x86d   : > { %v1404_v22 = vpop.f32.mrf.mxu1 }
 0x86e   : > { %1409 = vrot.lane.b32.xlu2 %v1404_v22, %s2369_s26 }
 0x875   : > { %v1406_v23 = vpop.f32.mrf.mxu1 }
 0x887   : > { %v1342_v24 = vpop.f32.mrf.mxu2 }
 0x888   : > { %1347 = vrot.lane.b32.xlu1 %v1342_v24, %s2370_s23  ;;  %s761_s23 = scalar_lea.vmem %s2793_s20, %s2815_s22 }
 0x88f   : > { %v1344_v25 = vpop.f32.mrf.mxu2 }
 0x8b8   : > { %v1286_v26 = vpop.permute.xlu2 %1285 }
 0x8b9   : > { %1288 = vst.msk [vmem:[#allocation2] sm:$0xff] %vm926_vm3, %v1286_v26  ;;  %vm1599_vm3 = vcmask 523264  }
 0x8c8   : > { %v1410_v30 = vpop.permute.xlu2 %1409 }
 0x8fa   : > { %v1348_v29 = vpop.permute.xlu1 %1347 }
 0x8fb   : > { %1350 = vst.msk [vmem:[#allocation2] sm:$0xff] %vm987_vm4, %v1348_v29 }
 0x8fc   : > { %1412 = vst.msk [vmem:[#allocation2] sm:$0xff] %vm1048_vm5, %v1410_v30 }
 0x903   : > { %v1413_v31 = vld [vmem:[#allocation2] sm:$0xff] }
 0x904   : > { %v1414_v32 = vpack.c.bf16 %v1413_v31, %v1413_v31 }
 0x906   : > { %1881 = vmatmul.msk.bf16.vlgmr.msra.gmra.mxu3 %vm787_vm1, %v1414_v32 }
 0x989   : > { %v1443_v34 = vpop.f32.mrf.mxu3 }
 0x98a   : > { %v1447_v35 = vadd.f32 %v1443_v34, %v2669_v63  ;;  %v1921_v63 = vld [vmem:[%s2787_s14] sm:$0xff] }
 0x98b   : > { %1516 = vmatpush.bf16.msrb.mxu2 %v1921_v63 }
 0x98c   : > { %v1452_v36 = vadd.f32 %v2036_v33, %v1447_v35 }
 0x98e   : > { %v1455_v37 = vsel %vm787_vm1, %v1452_v36, 0.0 }
 0x98f   : > { %1456 = vadd.xlane.f32.xlu1 %v1455_v37 }
 0x991   : > { %v1445_v38 = vpop.f32.mrf.mxu3 }
 0xa02   : > { %v1457_v39 = vpop.xlane.xlu1 %1456 }
 0xa03   : > { %v1458_v40 = vmul.f32 %v1457_v39, %v2652_v4 }
 0xa05   : > { %v1459_v41 = vsub.f32 %v1452_v36, %v1458_v40 }
 0xa07   : > { %v1460_v42 = vmul.f32 %v1459_v41, %v1459_v41 }
 0xa09   : > { %v1461_v43 = vsel %vm787_vm1, %v1460_v42, 0.0 }
 0xa0a   : > { %1462 = vadd.xlane.f32.xlu0 %v1461_v43 }
 0xa7d   : > { %v1463_v45 = vpop.xlane.xlu0 %1462 }
 0xa7e   : > { %v1464_v46 = vmul.f32 %v1463_v45, %v2652_v4 }
 0xa80   : > { %v1465_v47 = vadd.f32 1e-05, %v1464_v46  ;;  %v2040_v46 = vld [vmem:[#allocation11] ss:$0 sm:$0xff] }
 0xa82   : > { %2079 = vrsqrt.f32 %v1465_v47  ;;  %vm1472_vm12 = vweird.f32 %v1465_v47 }
 0xa88   : > { %v2080_v48 = vpop.eup %2079 }
 0xa89   : > { %v1467_v49 = vmul.f32 %v2080_v48, %v1465_v47  ;;  %vm1473_vm11 = vweird.f32 %v2080_v48 }
 0xa8a   : > { %vm1474_vm13 = vmor %vm1472_vm12, %vm1473_vm11 }
 0xa8b   : > { %v1468_v50 = vmul.f32 %v2080_v48, %v1467_v49 }
 0xa8d   : > { %v1469_v51 = vmul.f32 0.5, %v1468_v50 }
 0xa8f   : > { %v1470_v52 = vsub.f32 1.5, %v1469_v51 }
 0xa91   : > { %v1471_v53 = vmul.f32 %v2080_v48, %v1470_v52 }
 0xa93   : > { %v1475_v55 = vsel %vm1474_vm13, %v2080_v48, %v1471_v53 }
 0xa94   : > { %v1476_v57 = vmul.f32 %v1475_v55, %v1459_v41 }
 0xa96   : > { %v1480_v58 = vmul.f32 %v2037_v54, %v1476_v57 }
 0xa98   : > { %v2743_v59 = vadd.f32 %v2038_v56, %v1480_v58 }
 0xa9a   : > { %v1485_v60 = vpack.c.bf16 %v2743_v59, %v2743_v59 }
 0xa9c   : > { %1890 = vmatmul.msk.bf16.vlgmr.msrb.gmra.mxu2 %vm787_vm1, %v1485_v60 }
 0xb1f   : > { %v1518_v62 = vpop.f32.mrf.mxu2 }
 0xb20   : > { %v1519_v0 = vadd.f32 %v2039_v61, %v1518_v62 }
 0xb22   : > { %v1523_v1 = vmul.f32 0.70710677, %v1519_v0  ;;  %v1522_v43 = vmul.f32 0.5, %v1519_v0 }
 0xb24   : > { %v1524_v2 = vmul.f32 %v1523_v1, %v1523_v1 }
 0xb26   : > { %v1525_v3 = vmin.f32 %v1524_v2, 16.0 }
 0xb27   : > { %v1520_v5 = vpop.f32.mrf.mxu2 }
 0xb28   : > { %v1526_v7 = vmul.f32 2.1237322e-06, %v1525_v3  ;;  %v1537_v8 = vmul.f32 3.8918573e-05, %v1525_v3 }
 0xb2a   : > { %v1527_v9 = vadd.f32 0.00028619796, %v1526_v7  ;;  %v1538_v10 = vadd.f32 0.001143296, %v1537_v8 }
 0xb2c   : > { %v1528_v12 = vmul.f32 %v1527_v9, %v1525_v3  ;;  %v1539_v13 = vmul.f32 %v1538_v10, %v1525_v3 }
 0xb2e   : > { %v1540_v14 = vadd.f32 0.014752088, %v1539_v13  ;;  %v1529_v15 = vadd.f32 0.0036580483, %v1528_v12 }
 0xb30   : > { %v1541_v17 = vmul.f32 %v1540_v14, %v1525_v3  ;;  %v1530_v19 = vmul.f32 %v1529_v15, %v1525_v3 }
 0xb32   : > { %v1542_v18 = vadd.f32 0.112945676, %v1541_v17  ;;  %v1531_v23 = vadd.f32 0.05243302, %v1530_v19 }
 0xb34   : > { %v1543_v21 = vmul.f32 %v1542_v18, %v1525_v3  ;;  %v1532_v26 = vmul.f32 %v1531_v23, %v1525_v3 }
 0xb36   : > { %v1544_v22 = vadd.f32 0.4994258, %v1543_v21  ;;  %v1533_v27 = vadd.f32 0.18741608, %v1532_v26 }
 0xb38   : > { %v1545_v24 = vmul.f32 %v1544_v22, %v1525_v3  ;;  %v1534_v29 = vmul.f32 %v1533_v27, %v1525_v3  ;;  %v2041_v3 = vld [vmem:[#allocation13] ss:$0 sm:$0xff] }
 0xb3a   : > { %v1546_v25 = vadd.f32 1.0, %v1545_v24  ;;  %v1535_v33 = vadd.f32 1.1283791, %v1534_v29 }
 0xb3c   : > { %2081 = vrcp.f32 %v1546_v25  ;;  %v1558_v32 = vand.u32 2147483648, %v1546_v25  ;;  %v1556_v35 = vand.u32 2147483647, %v1546_v25  ;;  %vm1552_vm15 = vweird.f32 %v1546_v25 }
 0xb3d   : > { %v1536_v38 = vmul.f32 %v1535_v33, %v1523_v1 }
 0xb3e   : > { %v1559_v37 = vor.u32 1.1754944e-38, %v1558_v32  ;;  %vm1557_vm2 = vcmp.eq.f32.partialorder %v1556_v35, 8.507059e+37 }
 0xb42   : > { %v2082_v28 = vpop.eup %2081 }
 0xb43   : > { %v1548_v30 = vmul.f32 %v2082_v28, %v1546_v25  ;;  %vm1553_vm14 = vweird.f32 %v2082_v28 }
 0xb44   : > { %vm1554_vm0 = vmor %vm1552_vm15, %vm1553_vm14 }
 0xb45   : > { %v1549_v31 = vsub.f32 1.0, %v1548_v30 }
 0xb47   : > { %v1550_v34 = vmul.f32 %v2082_v28, %v1549_v31 }
 0xb49   : > { %v1551_v36 = vadd.f32 %v2082_v28, %v1550_v34 }
 0xb4b   : > { %v1555_v39 = vsel %vm1554_vm0, %v2082_v28, %v1551_v36 }
 0xb4c   : > { %v1560_v40 = vsel %vm1557_vm2, %v1559_v37, %v1555_v39 }
 0xb4d   : > { %v1561_v41 = vmul.f32 %v1560_v40, %v1536_v38 }
 0xb4f   : > { %v1891_v42 = vclamps-f32 %v1561_v41, 1.0 }
 0xb51   : > { %v1564_v44 = vadd.f32 1.0, %v1891_v42 }
 0xb53   : > { %v1565_v63 = vmul.f32 %v1564_v44, %v1522_v43 }
 0xb55   : > { %v1566_v45 = vpack.c.bf16 %v1565_v63, %v1565_v63 }
 0xb57   : > { %1908 = vmatmul.msk.bf16.vlgmr.msrb.gmra.mxu0 %vm1599_vm3, %v1566_v45 }
 0xbd4   : > { %v1612_v47 = vpop.f32.mrf.mxu0 }
 0xbd5   : > { %v1616_v48 = vadd.f32 %v1612_v47, %v2743_v59 }
 0xbd7   : > { %v1621_v49 = vadd.f32 %v2040_v46, %v1616_v48 }
 0xbd9   : > { %v1624_v50 = vsel %vm787_vm1, %v1621_v49, 0.0 }
 0xbda   : > { %1625 = vadd.xlane.f32.xlu2 %v1624_v50 }
 0xbdc   : > { %v1614_v51 = vpop.f32.mrf.mxu0 }
 0xc4d   : > { %v1626_v52 = vpop.xlane.xlu2 %1625 }
 0xc4e   : > { %v1627_v53 = vmul.f32 %v1626_v52, %v2652_v4 }
 0xc50   : > { %v1628_v54 = vsub.f32 %v1621_v49, %v1627_v53 }
 0xc52   : > { %v1629_v55 = vmul.f32 %v1628_v54, %v1628_v54 }
 0xc54   : > { %v1630_v56 = vsel %vm787_vm1, %v1629_v55, 0.0  ;;  %vm1655_vm1 = vcmask 257024  }
 0xc55   : > { %1631 = vadd.xlane.f32.xlu1 %v1630_v56 }
 0xcc8   : > { %v1632_v57 = vpop.xlane.xlu1 %1631 }
 0xcc9   : > { %v1633_v58 = vmul.f32 %v1632_v57, %v2652_v4 }
 0xccb   : > { %v1634_v60 = vadd.f32 1e-05, %v1633_v58 }
 0xccd   : > { %2083 = vrsqrt.f32 %v1634_v60  ;;  %vm1641_vm5 = vweird.f32 %v1634_v60 }
 0xcd3   : > { %v2084_v59 = vpop.eup %2083 }
 0xcd4   : > { %v1636_v61 = vmul.f32 %v2084_v59, %v1634_v60  ;;  %vm1642_vm4 = vweird.f32 %v2084_v59 }
 0xcd5   : > { %vm1643_vm6 = vmor %vm1641_vm5, %vm1642_vm4 }
 0xcd6   : > { %v1637_v62 = vmul.f32 %v2084_v59, %v1636_v61 }
 0xcd8   : > { %v1638_v0 = vmul.f32 0.5, %v1637_v62 }
 0xcda   : > { %v1639_v1 = vsub.f32 1.5, %v1638_v0 }
 0xcdc   : > { %v1640_v2 = vmul.f32 %v2084_v59, %v1639_v1 }
 0xcde   : > { %v1644_v5 = vsel %vm1643_vm6, %v2084_v59, %v1640_v2 }
 0xcdf   : > { %v1645_v7 = vmul.f32 %v1644_v5, %v1628_v54 }
 0xce1   : > { %v1649_v8 = vmul.f32 %v2041_v3, %v1645_v7 }
 0xce3   : > { %v1653_v9 = vadd.f32 %v2042_v6, %v1649_v8 }
 0xce5   : > { %v1654_v4 = vpack.c.bf16 %v1653_v9, %v1653_v9 }
 0xce7   : > { %1656 = vst.msk [vmem:[%s761_s23] sm:$0xf] %vm1655_vm1, %v1654_v4 }
 0xce8 PF: > { %s35_s1 = sadd.s32 1, %s2351_s1  }
 0xce9   : > { %p32_p7 = scmp.ge.s32.totalorder %s35_s1, 4  }
 0xceb   :  { %34 = sbr.rel (!%p32_p7) target bundleno = 14 (0xe), region = 166 }
 0xcf0   :  { %1676 = vsyncpa [#allocation4], 1 }
 0xcf1   :  { %1678 = vsyncpa [#allocation4 + $0x1], 1 }
 0xcf2   :  { %1679 = vsyncpa [#allocation6], 1 }
 0xcf3   :  { %1680 = vsyncpa [#allocation9], 1 }
 0xcf4   :  { %1681 = vsyncpa [#allocation12], 1 }
 0xcf5   :  { %1682 = vsyncpa [#allocation15], 1 }

// kernel: decoder_vit_forward.35
= control target key start
LH: loop header
LB: loop body
LE: loop exit
PB: predicated region body
PF: predicated region fallthrough
CT: control target
= control target key end

     0   :  { %9 = vsyncpa [#allocation3], 0  ;;  %s666_s15 = smov 0   ;;  %s668_s16 = smov 0   ;;  %s712_s0 = inlined_call_operand.vmem [shape: bf16[32,32], index: 0, kind: input, shape index: {}]   ;;  %s713_s1 = inlined_call_operand.vmem [shape: bf16[32,32], index: 1, kind: input, shape index: {}]   ;;  %s714_s2 = inlined_call_operand.hbm [shape: f32[1,32], index: 2, kind: input, shape index: {}]   ;;  %s715_s3 = inlined_call_operand.vmem [shape: bf16[32,32], index: 3, kind: input, shape index: {}]   ;;  %s716_s4 = inlined_call_operand.vmem [shape: bf16[32,32], index: 4, kind: output, shape index: {}]  }
   0x1   :  { %s670_s17 = smov 0  }
   0x2 LB: > { %s510_s18 = sadd.s32 4294967295, %s638_s17   ;;  %s34_s19 = sadd.s32 1, %s634_s16  ;;  %s638_s17 = sphi %s670_s17, %s15_s17   ;;  %s634_s16 = sphi %s668_s16, %s718_s16   ;;  %s630_s15 = sphi %s666_s15, %s717_s15  }
   0x3   : > { %p36_p0 = scmp.ge.s32.totalorder %s34_s19, 2  ;;  %p512_p1 = scmp.ge.s32.totalorder %s638_s17, 1 }
   0x4   : > { %p177_p2 = scmp.lt.s32.totalorder %s638_s17, 3  ;;  %p554_p4 = scmp.eq.s32.totalorder %s510_s18, 0 }
   0x5   : > { %s720_s19 = smov (%p36_p0, %s34_s19), 0  ;;  %s202_s22 = sshll.u32 %s714_s2, 4  ;;  %s203_s22 = int_to_ptr.hbm [resolvable:$true] %s202_s22 }
   0x6   : > { %p178_p3 = pnand %p512_p1, %p177_p2  ;;  %s640_s23 = smov [#allocation2]  }
   0x7   : > { %s204_s24 = sshll.u32 %s640_s23, 4  ;;  %s205_s24 = int_to_ptr.vmem [resolvable:$true] %s204_s24 }
   0x8   : > { %p550_p5 = pneg %p178_p3  ;;  %241 = sbr.rel (%p178_p3) target bundleno = 163 (0xa3), region = 36 }
   0xa   : > { %p551_p6 = pnand %p554_p4, %p550_p5 }
   0xc   : > { %553 = dma.hbm_to_vmem [thread:$0]  (!%p551_p6), %s203_s22, 16, %s205_s24, [#allocation3]  }
   0xd   : > { %625 = dma.done.wait (%p554_p4), [#allocation3], 16  }
   0xe   : > { %627 = vsyncadd (%p554_p4), [#allocation3], 4294967280  ;;  %s518_s25 = sshll.u32 %s630_s15, 1  ;;  %v541_v0 = vld [vmem:[%s713_s1 + $0x8] sm:$0xff]  ;;  %v540_v1 = vld [vmem:[%s713_s1] sm:$0xff]  ;;  %vm354_vm0 = vcmask 261120  }
   0xf   : > { %p291_p7 = scmp.lt.s32.totalorder %s518_s25, 3  ;;  %364 = vmatpush.bf16.msra.mxu0 %v541_v0  ;;  %v581_v4 = vld [vmem:[#allocation2] ss:$0 sm:$0xff]  ;;  %vm380_vm1 = vcmask 257024  }
  0x11   : > { %s722_s25 = smov (!%p291_p7, %s518_s25), 3 }
  0x12   : > { %s519_s26 = sshll.u32 %s722_s25, 2 }
  0x13   : > { %s297_s7 = scalar_lea.vmem %s712_s0, %s519_s26  ;;  %365 = vmatpush.bf16.msra.mxu0 %v540_v1  ;;  %s315_s10 = scalar_lea.vmem %s715_s3, %s519_s26 }
  0x14   : > { %v539_v2 = vld [vmem:[%s297_s7] sm:$0xff]  ;;  %s324_s13 = scalar_lea.vmem %s716_s4, %s519_s26 }
  0x15   : > { %v543_v3 = vld [vmem:[%s315_s10] sm:$0xff]  }
  0x16   : > { %536 = vmatmul.msk.bf16.vlgmr.msra.gmra.mxu0 %vm354_vm0, %v539_v2  ;;  %v544_v5 = vunpack.c.l.bf16 %v543_v3  ;;  %v545_v10 = vunpack.c.h.bf16 %v543_v3 }
  0x93   : > { %v367_v6 = vpop.f32.mrf.mxu0 }
  0x94   : > { %v368_v7 = vadd.f32 %v581_v4, %v367_v6 }
  0x96   : > { %v376_v8 = vadd.f32 %v544_v5, %v368_v7 }
  0x98   : > { %v378_v9 = vpack.c.bf16 %v376_v8, %v376_v8 }
  0x9a   : > { %381 = vst.msk [vmem:[%s324_s13] sm:$0xf] %vm380_vm1, %v378_v9 }
  0x9b   : > { %v369_v11 = vpop.f32.mrf.mxu0 }
  0x9c   : > { %v370_v12 = vadd.f32 %v581_v4, %v369_v11 }
  0x9e   : > { %v377_v13 = vadd.f32 %v545_v10, %v370_v12 }
  0xa0   : > { %v379_v14 = vpack.c.bf16 %v377_v13, %v377_v13 }
  0xa2   : > { %382 = vst.msk [vmem:[%s324_s13 + $0x4] sm:$0xf] %vm380_vm1, %v379_v14 }
  0xa3 PF: > { %s15_s17 = sadd.s32 1, %s638_s17   ;;  %s717_s15 = smov %s634_s16 }
  0xa4   : > { %p12_p8 = scmp.ge.s32.totalorder %s15_s17, 4   ;;  %s718_s16 = smov %s720_s19 }
  0xa6   :  { %14 = sbr.rel (!%p12_p8) target bundleno = 2 (0x2), region = 78 }
  0xab   :  { %411 = vsyncpa [#allocation3], 1 }
  0xac   :  { %413 = vsyncpa [#allocation3 + $0x1], 1 }

// kernel: decoder_vit_forward.36
= control target key start
LH: loop header
LB: loop body
LE: loop exit
PB: predicated region body
PF: predicated region fallthrough
CT: control target
= control target key end

     0   :  { %10 = vsyncpa [#allocation3], 0  ;;  %s942_s0 = inlined_call_operand.vmem [shape: bf16[32,32], index: 0, kind: input, shape index: {}]   ;;  %s943_s1 = inlined_call_operand.hbm [shape: f32[1,32], index: 1, kind: input, shape index: {}]   ;;  %s944_s2 = inlined_call_operand.hbm [shape: f32[1,32], index: 2, kind: input, shape index: {}]   ;;  %s945_s3 = inlined_call_operand.vmem [shape: bf16[32,96], index: 3, kind: input, shape index: {}]   ;;  %s946_s4 = inlined_call_operand.hbm [shape: f32[1,96], index: 4, kind: input, shape index: {}]   ;;  %s947_s5 = inlined_call_operand.vmem [shape: bf16[32,96], index: 5, kind: output, shape index: {}]  }
   0x1   :  { %11 = vsyncpa [#allocation5], 0  ;;  %s846_s18 = smov 0   ;;  %s848_s19 = smov 0  }
   0x2   :  { %s850_s20 = smov 0  }
   0x3 LB: > { %s217_s23 = sshll.u32 %s944_s2, 4  ;;  %s592_s24 = sadd.s32 4294967295, %s810_s20   ;;  %s810_s20 = sphi %s850_s20, %s17_s20   ;;  %s806_s19 = sphi %s848_s19, %s952_s19   ;;  %s802_s18 = sphi %s846_s18, %s951_s18   ;;  %s218_s23 = int_to_ptr.hbm [resolvable:$true] %s217_s23 }
   0x4   : > { %p594_p0 = scmp.ge.s32.totalorder %s810_s20, 1  ;;  %p193_p1 = scmp.lt.s32.totalorder %s810_s20, 3 }
   0x5   : > { %p867_p2 = scmp.eq.s32.totalorder %s592_s24, 0  ;;  %s812_s27 = smov [#allocation4]  }
   0x6   : > { %p871_p3 = pnand %p594_p0, %p193_p1  ;;  %s219_s28 = sshll.u32 %s812_s27, 4  ;;  %s220_s28 = int_to_ptr.vmem [resolvable:$true] %s219_s28 }
   0x7   : > { %s36_s30 = sadd.s32 1, %s806_s19  ;;  %s205_s8 = sshll.u32 %s943_s1, 4  ;;  %s206_s8 = int_to_ptr.hbm [resolvable:$true] %s205_s8 }
   0x8   : > { %p637_p4 = pneg %p871_p3  ;;  %p38_p6 = scmp.ge.s32.totalorder %s36_s30, 2 }
   0x9   : > { %s242_s11 = sshll.u32 %s946_s4, 4  ;;  %s813_s12 = smov [#allocation2]   ;;  %s243_s11 = int_to_ptr.hbm [resolvable:$true] %s242_s11 }
   0xa   : > { %p879_p5 = pnand %p867_p2, %p637_p4  ;;  %s954_s30 = smov (%p38_p6, %s36_s30), 0 }
   0xb   : > { %s207_s13 = sshll.u32 %s813_s12, 4  ;;  %s814_s14 = smov [#allocation6]   ;;  %s208_s13 = int_to_ptr.vmem [resolvable:$true] %s207_s13 }
   0xc   : > { %643 = dma.hbm_to_vmem [thread:$0]  (!%p879_p5), %s218_s23, 16, %s220_s28, [#allocation5]  }
   0xd   : > { %640 = dma.hbm_to_vmem [thread:$0]  (!%p879_p5), %s206_s8, 16, %s208_s13, [#allocation3]  }
   0xe   : > { %s244_s15 = sshll.u32 %s814_s14, 4  ;;  %269 = sbr.rel (%p871_p3) target bundleno = 448 (0x1c0), region = 40  ;;  %s245_s15 = int_to_ptr.vmem [resolvable:$true] %s244_s15 }
   0xf   : > { %646 = dma.hbm_to_vmem [thread:$0]  (!%p879_p5), %s243_s11, 16, %s245_s15, [#allocation5]  }
  0x13   : > { %793 = dma.done.wait (%p867_p2), [#allocation3], 16  }
  0x14   : > { %795 = vsyncadd (%p867_p2), [#allocation3], 4294967280 }
  0x15   : > { %797 = dma.done.wait (%p867_p2), [#allocation5], 32  }
  0x16   : > { %799 = vsyncadd (%p867_p2), [#allocation5], 4294967264  ;;  %s604_s16 = sshll.u32 %s802_s18, 1  ;;  %vm356_vm0 = vcmask 261120   ;;  %v815_v5 = vmov 32.0   ;;  %v620_v22 = vld [vmem:[%s945_s3 + $0x8] sm:$0xff] }
  0x17   : > { %p323_p7 = scmp.lt.s32.totalorder %s604_s16, 3  ;;  %684 = vrcp.f32 %v815_v5  ;;  %448 = vmatpush.bf16.msra.mxu0 %v620_v22  ;;  %v619_v24 = vld [vmem:[%s945_s3] sm:$0xff]  ;;  %vm458_vm8 = vcmask 781312  }
  0x18   : > { %v681_v43 = vld [vmem:[#allocation2] ss:$0 sm:$0xff]  ;;  %v682_v48 = vld [vmem:[#allocation4] ss:$0 sm:$0xff]  ;;  %v683_v53 = vld [vmem:[#allocation6] ss:$0 sm:$0xff] }
  0x19   : > { %s956_s16 = smov (!%p323_p7, %s604_s16), 3 }
  0x1a   : > { %s605_s17 = sshll.u32 %s956_s16, 2 }
  0x1b   : > { %s329_s23 = scalar_lea.vmem %s942_s0, %s605_s17  ;;  %449 = vmatpush.bf16.msra.mxu0 %v619_v24  ;;  %s347_s29 = scalar_lea.vmem %s947_s5, %s605_s17 }
  0x1c   : > { %v622_v0 = vld [vmem:[%s329_s23] sm:$0xff]  }
  0x1d   : > { %v623_v1 = vunpack.c.l.bf16 %v622_v0  ;;  %v624_v3 = vunpack.c.h.bf16 %v622_v0  ;;  %v685_v6 = vpop.eup %684 }
  0x1e   : > { %v364_v7 = vmul.f32 32.0, %v685_v6  ;;  %vm368_vm1 = vweird.f32 %v685_v6 }
  0x1f   : > { %v357_v2 = vsel %vm356_vm0, %v623_v1, 0.0  ;;  %v360_v4 = vsel %vm356_vm0, %v624_v3, 0.0 }
  0x20   : > { %358 = vadd.xlane.f32.xlu0 %v357_v2  ;;  %v365_v8 = vsub.f32 1.0, %v364_v7 }
  0x22   : > { %v366_v9 = vmul.f32 %v685_v6, %v365_v8 }
  0x24   : > { %v367_v10 = vadd.f32 %v685_v6, %v366_v9 }
  0x26   : > { %v369_v11 = vsel %vm368_vm1, %v685_v6, %v367_v10 }
  0x28   : > { %361 = vadd.xlane.f32.xlu0 %v360_v4 }
  0x93   : > { %v359_v12 = vpop.xlane.xlu0 %358 }
  0x94   : > { %v370_v13 = vmul.f32 %v369_v11, %v359_v12 }
  0x96   : > { %v372_v14 = vsub.f32 %v623_v1, %v370_v13 }
  0x98   : > { %v374_v15 = vmul.f32 %v372_v14, %v372_v14 }
  0x9a   : > { %v376_v16 = vsel %vm356_vm0, %v374_v15, 0.0 }
  0x9b   : > { %377 = vadd.xlane.f32.xlu1 %v376_v16  ;;  %v362_v17 = vpop.xlane.xlu0 %361 }
  0x9c   : > { %v371_v18 = vmul.f32 %v369_v11, %v362_v17 }
  0x9e   : > { %v373_v19 = vsub.f32 %v624_v3, %v371_v18 }
  0xa0   : > { %v375_v20 = vmul.f32 %v373_v19, %v373_v19 }
  0xa2   : > { %v379_v21 = vsel %vm356_vm0, %v375_v20, 0.0 }
  0xa3   : > { %380 = vadd.xlane.f32.xlu1 %v379_v21 }
 0x10e   : > { %v378_v23 = vpop.xlane.xlu1 %377 }
 0x10f   : > { %v382_v25 = vmul.f32 %v378_v23, %v369_v11 }
 0x111   : > { %v384_v26 = vadd.f32 1e-05, %v382_v25 }
 0x113   : > { %686 = vrsqrt.f32 %v384_v26  ;;  %vm392_vm3 = vweird.f32 %v384_v26 }
 0x116   : > { %v381_v27 = vpop.xlane.xlu1 %380 }
 0x117   : > { %v383_v28 = vmul.f32 %v381_v27, %v369_v11 }
 0x119   : > { %v687_v29 = vpop.eup %686  ;;  %v385_v30 = vadd.f32 1e-05, %v383_v28 }
 0x11a   : > { %v387_v31 = vmul.f32 %v687_v29, %v384_v26  ;;  %vm393_vm2 = vweird.f32 %v687_v29 }
 0x11b   : > { %688 = vrsqrt.f32 %v385_v30  ;;  %vm394_vm4 = vmor %vm392_vm3, %vm393_vm2  ;;  %vm402_vm6 = vweird.f32 %v385_v30 }
 0x11c   : > { %v388_v32 = vmul.f32 %v687_v29, %v387_v31 }
 0x11e   : > { %v389_v33 = vmul.f32 0.5, %v388_v32 }
 0x120   : > { %v390_v34 = vsub.f32 1.5, %v389_v33 }
 0x121   : > { %v689_v35 = vpop.eup %688 }
 0x122   : > { %v391_v36 = vmul.f32 %v687_v29, %v390_v34  ;;  %v397_v37 = vmul.f32 %v689_v35, %v385_v30  ;;  %vm403_vm5 = vweird.f32 %v689_v35 }
 0x123   : > { %vm404_vm7 = vmor %vm402_vm6, %vm403_vm5 }
 0x124   : > { %v398_v38 = vmul.f32 %v689_v35, %v397_v37  ;;  %v395_v39 = vsel %vm394_vm4, %v687_v29, %v391_v36 }
 0x125   : > { %v406_v42 = vmul.f32 %v395_v39, %v372_v14 }
 0x126   : > { %v399_v40 = vmul.f32 0.5, %v398_v38 }
 0x127   : > { %v411_v47 = vmul.f32 %v681_v43, %v406_v42 }
 0x128   : > { %v400_v41 = vsub.f32 1.5, %v399_v40 }
 0x129   : > { %v416_v50 = vadd.f32 %v682_v48, %v411_v47 }
 0x12a   : > { %v401_v44 = vmul.f32 %v689_v35, %v400_v41 }
 0x12c   : > { %v405_v45 = vsel %vm404_vm7, %v689_v35, %v401_v44 }
 0x12d   : > { %v407_v46 = vmul.f32 %v405_v45, %v373_v19 }
 0x12f   : > { %v412_v49 = vmul.f32 %v681_v43, %v407_v46 }
 0x131   : > { %v417_v51 = vadd.f32 %v682_v48, %v412_v49 }
 0x133   : > { %v418_v52 = vpack.c.bf16 %v417_v51, %v416_v50 }
 0x135   : > { %616 = vmatmul.msk.bf16.vlgmr.msra.gmra.mxu0 %vm356_vm0, %v418_v52 }
 0x1b2   : > { %v451_v54 = vpop.f32.mrf.mxu0 }
 0x1b3   : > { %v452_v55 = vadd.f32 %v683_v53, %v451_v54 }
 0x1b5   : > { %v456_v56 = vpack.c.bf16 %v452_v55, %v452_v55 }
 0x1b7   : > { %459 = vst.msk [vmem:[%s347_s29] sm:$0xf] %vm458_vm8, %v456_v56 }
 0x1ba   : > { %v453_v57 = vpop.f32.mrf.mxu0 }
 0x1bb   : > { %v454_v58 = vadd.f32 %v683_v53, %v453_v57 }
 0x1bd   : > { %v457_v59 = vpack.c.bf16 %v454_v58, %v454_v58 }
 0x1bf   : > { %460 = vst.msk [vmem:[%s347_s29 + $0x4] sm:$0xf] %vm458_vm8, %v457_v59 }
 0x1c0 PF: > { %s17_s20 = sadd.s32 1, %s810_s20   ;;  %s951_s18 = smov %s806_s19 }
 0x1c1   : > { %p14_p8 = scmp.ge.s32.totalorder %s17_s20, 4   ;;  %s952_s19 = smov %s954_s30 }
 0x1c3   :  { %16 = sbr.rel (!%p14_p8) target bundleno = 3 (0x3), region = 87 }
 0x1c8   :  { %489 = vsyncpa [#allocation3], 1 }
 0x1c9   :  { %491 = vsyncpa [#allocation3 + $0x1], 1 }
 0x1ca   :  { %492 = vsyncpa [#allocation5], 1 }

// kernel: decoder_vit_forward.39
= control target key start
LH: loop header
LB: loop body
LE: loop exit
PB: predicated region body
PF: predicated region fallthrough
CT: control target
= control target key end

     0   :  { %10 = vsyncpa [#allocation3], 0  ;;  %s1049_s0 = inlined_call_operand.vmem [shape: bf16[32,32], index: 0, kind: input, shape index: {}]   ;;  %s1050_s1 = inlined_call_operand.hbm [shape: f32[1,32], index: 1, kind: input, shape index: {}]   ;;  %s1051_s2 = inlined_call_operand.hbm [shape: f32[1,32], index: 2, kind: input, shape index: {}]   ;;  %s1052_s3 = inlined_call_operand.vmem [shape: bf16[32,64], index: 3, kind: input, shape index: {}]   ;;  %s1053_s4 = inlined_call_operand.hbm [shape: f32[1,64], index: 4, kind: input, shape index: {}]   ;;  %s1054_s5 = inlined_call_operand.vmem [shape: bf16[32,64], index: 5, kind: output, shape index: {}]  }
   0x1   :  { %11 = vsyncpa [#allocation5], 0  ;;  %s940_s18 = smov 0   ;;  %s942_s19 = smov 0  }
   0x2   :  { %s944_s20 = smov 0  }
   0x3 LB: > { %s217_s23 = sshll.u32 %s1051_s2, 4  ;;  %s680_s24 = sadd.s32 4294967295, %s904_s20   ;;  %s904_s20 = sphi %s944_s20, %s17_s20   ;;  %s900_s19 = sphi %s942_s19, %s1059_s19   ;;  %s896_s18 = sphi %s940_s18, %s1058_s18   ;;  %s218_s23 = int_to_ptr.hbm [resolvable:$true] %s217_s23 }
   0x4   : > { %p682_p0 = scmp.ge.s32.totalorder %s904_s20, 1  ;;  %p193_p1 = scmp.lt.s32.totalorder %s904_s20, 3 }
   0x5   : > { %p961_p2 = scmp.eq.s32.totalorder %s680_s24, 0  ;;  %s906_s27 = smov [#allocation4]  }
   0x6   : > { %p965_p3 = pnand %p682_p0, %p193_p1  ;;  %s219_s28 = sshll.u32 %s906_s27, 4  ;;  %s220_s28 = int_to_ptr.vmem [resolvable:$true] %s219_s28 }
   0x7   : > { %s36_s30 = sadd.s32 1, %s900_s19  ;;  %s205_s8 = sshll.u32 %s1050_s1, 4  ;;  %s206_s8 = int_to_ptr.hbm [resolvable:$true] %s205_s8 }
   0x8   : > { %p727_p4 = pneg %p965_p3  ;;  %p38_p6 = scmp.ge.s32.totalorder %s36_s30, 2 }
   0x9   : > { %s242_s11 = sshll.u32 %s1053_s4, 4  ;;  %s907_s12 = smov [#allocation2]   ;;  %s243_s11 = int_to_ptr.hbm [resolvable:$true] %s242_s11 }
   0xa   : > { %p973_p5 = pnand %p961_p2, %p727_p4  ;;  %s1061_s30 = smov (%p38_p6, %s36_s30), 0 }
   0xb   : > { %s207_s13 = sshll.u32 %s907_s12, 4  ;;  %s908_s14 = smov [#allocation6]   ;;  %s208_s13 = int_to_ptr.vmem [resolvable:$true] %s207_s13 }
   0xc   : > { %733 = dma.hbm_to_vmem [thread:$0]  (!%p973_p5), %s218_s23, 16, %s220_s28, [#allocation5]  }
   0xd   : > { %730 = dma.hbm_to_vmem [thread:$0]  (!%p973_p5), %s206_s8, 16, %s208_s13, [#allocation3]  }
   0xe   : > { %s244_s15 = sshll.u32 %s908_s14, 4  ;;  %269 = sbr.rel (%p965_p3) target bundleno = 499 (0x1f3), region = 40  ;;  %s245_s15 = int_to_ptr.vmem [resolvable:$true] %s244_s15 }
   0xf   : > { %736 = dma.hbm_to_vmem [thread:$0]  (!%p973_p5), %s243_s11, 16, %s245_s15, [#allocation5]  }
  0x13   : > { %887 = dma.done.wait (%p961_p2), [#allocation3], 16  }
  0x14   : > { %889 = vsyncadd (%p961_p2), [#allocation3], 4294967280 }
  0x15   : > { %891 = dma.done.wait (%p961_p2), [#allocation5], 32  }
  0x16   : > { %893 = vsyncadd (%p961_p2), [#allocation5], 4294967264  ;;  %s692_s16 = sshll.u32 %s896_s18, 1  ;;  %vm356_vm0 = vcmask 261120   ;;  %v909_v5 = vmov 32.0   ;;  %v710_v22 = vld [vmem:[%s1052_s3 + $0x8] sm:$0xff] }
  0x17   : > { %p323_p7 = scmp.lt.s32.totalorder %s692_s16, 3  ;;  %774 = vrcp.f32 %v909_v5  ;;  %448 = vmatpush.bf16.msra.mxu0 %v710_v22  ;;  %v709_v24 = vld [vmem:[%s1052_s3] sm:$0xff]  ;;  %vm546_vm15 = vcmask 519168  }
  0x18   : > { %v771_v43 = vld [vmem:[#allocation2] ss:$0 sm:$0xff]  ;;  %v772_v48 = vld [vmem:[#allocation4] ss:$0 sm:$0xff]  ;;  %v773_v53 = vld [vmem:[#allocation6] ss:$0 sm:$0xff] }
  0x19   : > { %s1063_s16 = smov (!%p323_p7, %s692_s16), 3 }
  0x1a   : > { %s693_s17 = sshll.u32 %s1063_s16, 2 }
  0x1b   : > { %s329_s23 = scalar_lea.vmem %s1049_s0, %s693_s17  ;;  %449 = vmatpush.bf16.msra.mxu0 %v709_v24  ;;  %s347_s29 = scalar_lea.vmem %s1054_s5, %s693_s17 }
  0x1c   : > { %v712_v0 = vld [vmem:[%s329_s23] sm:$0xff]  }
  0x1d   : > { %v713_v1 = vunpack.c.l.bf16 %v712_v0  ;;  %v714_v3 = vunpack.c.h.bf16 %v712_v0  ;;  %v775_v6 = vpop.eup %774 }
  0x1e   : > { %v364_v7 = vmul.f32 32.0, %v775_v6  ;;  %vm368_vm1 = vweird.f32 %v775_v6 }
  0x1f   : > { %v357_v2 = vsel %vm356_vm0, %v713_v1, 0.0  ;;  %v360_v4 = vsel %vm356_vm0, %v714_v3, 0.0 }
  0x20   : > { %358 = vadd.xlane.f32.xlu0 %v357_v2  ;;  %v365_v8 = vsub.f32 1.0, %v364_v7 }
  0x22   : > { %v366_v9 = vmul.f32 %v775_v6, %v365_v8 }
  0x24   : > { %v367_v10 = vadd.f32 %v775_v6, %v366_v9 }
  0x26   : > { %v369_v11 = vsel %vm368_vm1, %v775_v6, %v367_v10 }
  0x28   : > { %361 = vadd.xlane.f32.xlu0 %v360_v4 }
  0x93   : > { %v359_v12 = vpop.xlane.xlu0 %358 }
  0x94   : > { %v370_v13 = vmul.f32 %v369_v11, %v359_v12 }
  0x96   : > { %v372_v14 = vsub.f32 %v713_v1, %v370_v13 }
  0x98   : > { %v374_v15 = vmul.f32 %v372_v14, %v372_v14 }
  0x9a   : > { %v376_v16 = vsel %vm356_vm0, %v374_v15, 0.0 }
  0x9b   : > { %377 = vadd.xlane.f32.xlu1 %v376_v16  ;;  %v362_v17 = vpop.xlane.xlu0 %361 }
  0x9c   : > { %v371_v18 = vmul.f32 %v369_v11, %v362_v17 }
  0x9e   : > { %v373_v19 = vsub.f32 %v714_v3, %v371_v18 }
  0xa0   : > { %v375_v20 = vmul.f32 %v373_v19, %v373_v19 }
  0xa2   : > { %v379_v21 = vsel %vm356_vm0, %v375_v20, 0.0 }
  0xa3   : > { %380 = vadd.xlane.f32.xlu1 %v379_v21 }
 0x10e   : > { %v378_v23 = vpop.xlane.xlu1 %377 }
 0x10f   : > { %v382_v25 = vmul.f32 %v378_v23, %v369_v11 }
 0x111   : > { %v384_v26 = vadd.f32 1e-05, %v382_v25 }
 0x113   : > { %776 = vrsqrt.f32 %v384_v26  ;;  %vm392_vm3 = vweird.f32 %v384_v26 }
 0x116   : > { %v381_v27 = vpop.xlane.xlu1 %380 }
 0x117   : > { %v383_v28 = vmul.f32 %v381_v27, %v369_v11 }
 0x119   : > { %v777_v29 = vpop.eup %776  ;;  %v385_v30 = vadd.f32 1e-05, %v383_v28 }
 0x11a   : > { %v387_v31 = vmul.f32 %v777_v29, %v384_v26  ;;  %vm393_vm2 = vweird.f32 %v777_v29 }
 0x11b   : > { %778 = vrsqrt.f32 %v385_v30  ;;  %vm394_vm4 = vmor %vm392_vm3, %vm393_vm2  ;;  %vm402_vm6 = vweird.f32 %v385_v30 }
 0x11c   : > { %v388_v32 = vmul.f32 %v777_v29, %v387_v31 }
 0x11e   : > { %v389_v33 = vmul.f32 0.5, %v388_v32 }
 0x120   : > { %v390_v34 = vsub.f32 1.5, %v389_v33 }
 0x121   : > { %v779_v35 = vpop.eup %778 }
 0x122   : > { %v391_v36 = vmul.f32 %v777_v29, %v390_v34  ;;  %v397_v37 = vmul.f32 %v779_v35, %v385_v30  ;;  %vm403_vm5 = vweird.f32 %v779_v35 }
 0x123   : > { %vm404_vm7 = vmor %vm402_vm6, %vm403_vm5 }
 0x124   : > { %v398_v38 = vmul.f32 %v779_v35, %v397_v37  ;;  %v395_v39 = vsel %vm394_vm4, %v777_v29, %v391_v36 }
 0x125   : > { %v406_v42 = vmul.f32 %v395_v39, %v372_v14 }
 0x126   : > { %v399_v40 = vmul.f32 0.5, %v398_v38 }
 0x127   : > { %v411_v47 = vmul.f32 %v771_v43, %v406_v42 }
 0x128   : > { %v400_v41 = vsub.f32 1.5, %v399_v40 }
 0x129   : > { %v416_v50 = vadd.f32 %v772_v48, %v411_v47 }
 0x12a   : > { %v401_v44 = vmul.f32 %v779_v35, %v400_v41 }
 0x12c   : > { %v405_v45 = vsel %vm404_vm7, %v779_v35, %v401_v44 }
 0x12d   : > { %v407_v46 = vmul.f32 %v405_v45, %v373_v19 }
 0x12f   : > { %v412_v49 = vmul.f32 %v771_v43, %v407_v46 }
 0x131   : > { %v417_v51 = vadd.f32 %v772_v48, %v412_v49 }
 0x133   : > { %v418_v52 = vpack.c.bf16 %v417_v51, %v416_v50 }
 0x135   : > { %704 = vmatmul.msk.bf16.vlgmr.msra.gmra.mxu0 %vm356_vm0, %v418_v52 }
 0x1b2   : > { %v451_v54 = vpop.f32.mrf.mxu0 }
 0x1b3   : > { %v1022_v55 = vadd.f32 %v773_v53, %v451_v54 }
 0x1b5   : > { %v458_v56 = vmul.f32 0.70710677, %v1022_v55 }
 0x1b7   : > { %v460_v57 = vmul.f32 %v458_v56, %v458_v56 }
 0x1b9   : > { %v461_v58 = vmin.f32 %v460_v57, 16.0 }
 0x1ba   : > { %v453_v59 = vpop.f32.mrf.mxu0 }
 0x1bb   : > { %v462_v60 = vmul.f32 2.1237322e-06, %v461_v58  ;;  %v473_v61 = vmul.f32 3.8918573e-05, %v461_v58  ;;  %v1025_v62 = vadd.f32 %v773_v53, %v453_v59 }
 0x1bd   : > { %v463_v63 = vadd.f32 0.00028619796, %v462_v60  ;;  %v474_v0 = vadd.f32 0.001143296, %v473_v61  ;;  %v1028_v1 = vmul.f32 0.70710677, %v1025_v62 }
 0x1be   : > { %v456_v61 = vmul.f32 0.5, %v1022_v55 }
 0x1bf   : > { %v464_v2 = vmul.f32 %v463_v63, %v461_v58  ;;  %v475_v3 = vmul.f32 %v474_v0, %v461_v58  ;;  %v500_v4 = vmul.f32 %v1028_v1, %v1028_v1 }
 0x1c1   : > { %v476_v5 = vadd.f32 0.014752088, %v475_v3  ;;  %v465_v6 = vadd.f32 0.0036580483, %v464_v2  ;;  %v501_v7 = vmin.f32 %v500_v4, 16.0 }
 0x1c3   : > { %v477_v8 = vmul.f32 %v476_v5, %v461_v58  ;;  %v502_v9 = vmul.f32 2.1237322e-06, %v501_v7  ;;  %v513_v10 = vmul.f32 3.8918573e-05, %v501_v7  ;;  %v466_v12 = vmul.f32 %v465_v6, %v461_v58 }
 0x1c5   : > { %v478_v11 = vadd.f32 0.112945676, %v477_v8  ;;  %v503_v13 = vadd.f32 0.00028619796, %v502_v9  ;;  %v514_v14 = vadd.f32 0.001143296, %v513_v10 }
 0x1c6   : > { %v467_v19 = vadd.f32 0.05243302, %v466_v12  ;;  %v457_v8 = vmul.f32 0.5, %v1025_v62 }
 0x1c7   : > { %v479_v15 = vmul.f32 %v478_v11, %v461_v58  ;;  %v504_v16 = vmul.f32 %v503_v13, %v501_v7  ;;  %v515_v17 = vmul.f32 %v514_v14, %v501_v7 }
 0x1c8   : > { %v468_v25 = vmul.f32 %v467_v19, %v461_v58 }
 0x1c9   : > { %v480_v18 = vadd.f32 0.4994258, %v479_v15  ;;  %v516_v20 = vadd.f32 0.014752088, %v515_v17  ;;  %v505_v22 = vadd.f32 0.0036580483, %v504_v16 }
 0x1ca   : > { %v469_v29 = vadd.f32 0.18741608, %v468_v25 }
 0x1cb   : > { %v481_v21 = vmul.f32 %v480_v18, %v461_v58  ;;  %v517_v23 = vmul.f32 %v516_v20, %v501_v7  ;;  %v506_v27 = vmul.f32 %v505_v22, %v501_v7 }
 0x1cc   : > { %v470_v34 = vmul.f32 %v469_v29, %v461_v58 }
 0x1cd   : > { %v482_v24 = vadd.f32 1.0, %v481_v21  ;;  %v518_v26 = vadd.f32 0.112945676, %v517_v23  ;;  %v507_v31 = vadd.f32 0.05243302, %v506_v27 }
 0x1ce   : > { %v471_v40 = vadd.f32 1.1283791, %v470_v34 }
 0x1cf   : > { %780 = vrcp.f32 %v482_v24  ;;  %v519_v28 = vmul.f32 %v518_v26, %v501_v7  ;;  %v508_v37 = vmul.f32 %v507_v31, %v501_v7  ;;  %v494_v39 = vand.u32 2147483648, %v482_v24 }
 0x1d0   : > { %v492_v42 = vand.u32 2147483647, %v482_v24  ;;  %vm488_vm9 = vweird.f32 %v482_v24  ;;  %v472_v47 = vmul.f32 %v471_v40, %v458_v56 }
 0x1d1   : > { %v520_v30 = vadd.f32 0.4994258, %v519_v28  ;;  %v509_v43 = vadd.f32 0.18741608, %v508_v37  ;;  %v495_v45 = vor.u32 1.1754944e-38, %v494_v39 }
 0x1d2   : > { %vm493_vm11 = vcmp.eq.f32.partialorder %v492_v42, 8.507059e+37 }
 0x1d3   : > { %v521_v32 = vmul.f32 %v520_v30, %v501_v7  ;;  %v510_v50 = vmul.f32 %v509_v43, %v501_v7 }
 0x1d5   : > { %v781_v33 = vpop.eup %780  ;;  %v522_v36 = vadd.f32 1.0, %v521_v32  ;;  %v511_v58 = vadd.f32 1.1283791, %v510_v50 }
 0x1d6   : > { %v484_v35 = vmul.f32 %v781_v33, %v482_v24  ;;  %vm489_vm8 = vweird.f32 %v781_v33 }
 0x1d7   : > { %782 = vrcp.f32 %v522_v36  ;;  %vm490_vm10 = vmor %vm488_vm9, %vm489_vm8  ;;  %v534_v57 = vand.u32 2147483648, %v522_v36  ;;  %v532_v60 = vand.u32 2147483647, %v522_v36  ;;  %vm528_vm13 = vweird.f32 %v522_v36 }
 0x1d8   : > { %v485_v38 = vsub.f32 1.0, %v484_v35  ;;  %v512_v3 = vmul.f32 %v511_v58, %v1028_v1 }
 0x1d9   : > { %v535_v2 = vor.u32 1.1754944e-38, %v534_v57  ;;  %vm533_vm0 = vcmp.eq.f32.partialorder %v532_v60, 8.507059e+37 }
 0x1da   : > { %v486_v41 = vmul.f32 %v781_v33, %v485_v38 }
 0x1dc   : > { %v487_v44 = vadd.f32 %v781_v33, %v486_v41 }
 0x1dd   : > { %v783_v46 = vpop.eup %782 }
 0x1de   : > { %v491_v48 = vsel %vm490_vm10, %v781_v33, %v487_v44  ;;  %v524_v51 = vmul.f32 %v783_v46, %v522_v36  ;;  %vm529_vm12 = vweird.f32 %v783_v46 }
 0x1df   : > { %v496_v49 = vsel %vm493_vm11, %v495_v45, %v491_v48  ;;  %vm530_vm14 = vmor %vm528_vm13, %vm529_vm12 }
 0x1e0   : > { %v497_v52 = vmul.f32 %v496_v49, %v472_v47  ;;  %v525_v53 = vsub.f32 1.0, %v524_v51 }
 0x1e2   : > { %v705_v54 = vclamps-f32 %v497_v52, 1.0  ;;  %v526_v59 = vmul.f32 %v783_v46, %v525_v53 }
 0x1e4   : > { %v540_v63 = vadd.f32 1.0, %v705_v54  ;;  %v527_v0 = vadd.f32 %v783_v46, %v526_v59 }
 0x1e6   : > { %v542_v56 = vmul.f32 %v540_v63, %v456_v61  ;;  %v531_v4 = vsel %vm530_vm14, %v783_v46, %v527_v0 }
 0x1e7   : > { %v536_v6 = vsel %vm533_vm0, %v535_v2, %v531_v4 }
 0x1e8   : > { %v544_v5 = vpack.c.bf16 %v542_v56, %v542_v56  ;;  %v537_v7 = vmul.f32 %v536_v6, %v512_v3 }
 0x1ea   : > { %547 = vst.msk [vmem:[%s347_s29] sm:$0xf] %vm546_vm15, %v544_v5  ;;  %v706_v55 = vclamps-f32 %v537_v7, 1.0 }
 0x1ec   : > { %v541_v9 = vadd.f32 1.0, %v706_v55 }
 0x1ee   : > { %v543_v10 = vmul.f32 %v541_v9, %v457_v8 }
 0x1f0   : > { %v545_v11 = vpack.c.bf16 %v543_v10, %v543_v10 }
 0x1f2   : > { %548 = vst.msk [vmem:[%s347_s29 + $0x4] sm:$0xf] %vm546_vm15, %v545_v11 }
 0x1f3 PF: > { %s17_s20 = sadd.s32 1, %s904_s20   ;;  %s1058_s18 = smov %s900_s19 }
 0x1f4   : > { %p14_p8 = scmp.ge.s32.totalorder %s17_s20, 4   ;;  %s1059_s19 = smov %s1061_s30 }
 0x1f6   :  { %16 = sbr.rel (!%p14_p8) target bundleno = 3 (0x3), region = 87 }
 0x1fb   :  { %577 = vsyncpa [#allocation3], 1 }
 0x1fc   :  { %579 = vsyncpa [#allocation3 + $0x1], 1 }
 0x1fd   :  { %580 = vsyncpa [#allocation5], 1 }

// kernel: decoder_vit_forward.44
= control target key start
LH: loop header
LB: loop body
LE: loop exit
PB: predicated region body
PF: predicated region fallthrough
CT: control target
= control target key end

     0   :  { %s492_s12 = smov 0   ;;  %s494_s13 = smov 0   ;;  %s531_s0 = inlined_call_operand.vmem [shape: bf16[16,32], index: 0, kind: input, shape index: {}]   ;;  %s532_s1 = inlined_call_operand.vmem [shape: bf16[32,64], index: 1, kind: input, shape index: {}]   ;;  %s533_s2 = inlined_call_operand.vmem [shape: f32[1,64], index: 2, kind: input, shape index: {}]   ;;  %s534_s3 = inlined_call_operand.vmem [shape: bf16[16,64], index: 3, kind: output, shape index: {}]  }
   0x1   :  { %s496_s14 = smov 0  }
   0x2 LB: > { %s32_s15 = sadd.s32 1, %s466_s13  ;;  %p407_p0 = scmp.ge.s32.totalorder %s470_s14, 1  ;;  %s470_s14 = sphi %s496_s14, %s13_s14   ;;  %s466_s13 = sphi %s494_s13, %s536_s13   ;;  %s462_s12 = sphi %s492_s12, %s535_s12  }
   0x3   : > { %p34_p1 = scmp.ge.s32.totalorder %s32_s15, 2  ;;  %p186_p2 = scmp.lt.s32.totalorder %s470_s14, 3 }
   0x5   : > { %s538_s15 = smov (%p34_p1, %s32_s15), 0  ;;  %p187_p3 = pnand %p407_p0, %p186_p2 }
   0x6   : > { %p225_p4 = scmp.lt.s32.totalorder (!%p187_p3), %s462_s12, 1 }
   0x7   : > { %190 = sbr.rel (%p187_p3) target bundleno = 154 (0x9a), region = 32 }
   0xc   : > { %v422_v0 = vld [vmem:[%s532_s1 + $0x8] sm:$0xff]  ;;  %v421_v1 = vld [vmem:[%s532_s1] sm:$0xff]  ;;  %s540_s12 = smov (!%p225_p4, %s462_s12), 1  ;;  %vm273_vm0 = vcmask 261120   ;;  %vm291_vm1 = vcmask 519168  }
   0xd   : > { %283 = vmatpush.bf16.msra.mxu0 %v422_v0  ;;  %s408_s20 = sshll.u32 %s540_s12, 2  ;;  %v447_v3 = vld [vmem:[%s533_s2] ss:$0 sm:$0xff] }
   0xe   : > { %s231_s23 = scalar_lea.vmem %s531_s0, %s408_s20  ;;  %s250_s28 = scalar_lea.vmem %s534_s3, %s408_s20 }
   0xf   : > { %v252_v2 = vld [vmem:[%s231_s23] sm:$0xf] }
  0x11   : > { %284 = vmatpush.bf16.msra.mxu0 %v421_v1 }
  0x14   : > { %418 = vmatmul.msk.bf16.vlgmr.msra.gmra.mxu0 %vm273_vm0, %v252_v2 }
  0x91   : > { %v286_v4 = vpop.f32.mrf.mxu0 }
  0x92   : > { %v287_v5 = vadd.f32 %v447_v3, %v286_v4 }
  0x94   : > { %v290_v6 = vpack.c.bf16 %v287_v5, %v287_v5 }
  0x96   : > { %292 = vst.msk [vmem:[%s250_s28] sm:$0xf] %vm291_vm1, %v290_v6 }
  0x99   : > { %v288_v7 = vpop.f32.mrf.mxu0 }
  0x9a PF: > { %s13_s14 = sadd.s32 1, %s470_s14   ;;  %s535_s12 = smov %s466_s13 }
  0x9b   : > { %p10_p5 = scmp.ge.s32.totalorder %s13_s14, 4   ;;  %s536_s13 = smov %s538_s15 }
  0x9d   :  { %12 = sbr.rel (!%p10_p5) target bundleno = 2 (0x2), region = 68 }

// kernel: decoder_vit_forward.43
= control target key start
LH: loop header
LB: loop body
LE: loop exit
PB: predicated region body
PF: predicated region fallthrough
CT: control target
= control target key end

     0   :  { %s519_s12 = smov 0   ;;  %s521_s13 = smov 0   ;;  %s561_s0 = inlined_call_operand.vmem [shape: bf16[32,32], index: 0, kind: input, shape index: {}]   ;;  %s562_s1 = inlined_call_operand.vmem [shape: bf16[32,32], index: 1, kind: input, shape index: {}]   ;;  %s563_s2 = inlined_call_operand.vmem [shape: f32[1,32], index: 2, kind: input, shape index: {}]   ;;  %s564_s3 = inlined_call_operand.vmem [shape: bf16[32,32], index: 3, kind: output, shape index: {}]  }
   0x1   :  { %s523_s14 = smov 0  }
   0x2 LB: > { %s32_s15 = sadd.s32 1, %s493_s13  ;;  %p427_p0 = scmp.ge.s32.totalorder %s497_s14, 1  ;;  %s497_s14 = sphi %s523_s14, %s13_s14   ;;  %s493_s13 = sphi %s521_s13, %s566_s13   ;;  %s489_s12 = sphi %s519_s12, %s565_s12  }
   0x3   : > { %p34_p1 = scmp.ge.s32.totalorder %s32_s15, 2  ;;  %p188_p2 = scmp.lt.s32.totalorder %s497_s14, 3 }
   0x5   : > { %s568_s15 = smov (%p34_p1, %s32_s15), 0  ;;  %p189_p3 = pnand %p427_p0, %p188_p2 }
   0x6   : > { %s428_s18 = sshll.u32 (!%p189_p3), %s489_s12, 1 }
   0x7   : > { %192 = sbr.rel (%p189_p3) target bundleno = 159 (0x9f), region = 32  ;;  %p230_p4 = scmp.lt.s32.totalorder (!%p189_p3), %s428_s18, 3 }
   0xc   : > { %v449_v0 = vld [vmem:[%s562_s1 + $0x8] sm:$0xff]  ;;  %v448_v1 = vld [vmem:[%s562_s1] sm:$0xff]  ;;  %s570_s18 = smov (!%p230_p4, %s428_s18), 3  ;;  %vm287_vm0 = vcmask 261120   ;;  %vm307_vm1 = vcmask 257024  }
   0xd   : > { %297 = vmatpush.bf16.msra.mxu0 %v449_v0  ;;  %s429_s21 = sshll.u32 %s570_s18, 2  ;;  %v474_v3 = vld [vmem:[%s563_s2] ss:$0 sm:$0xff] }
   0xe   : > { %s236_s24 = scalar_lea.vmem %s561_s0, %s429_s21  ;;  %s257_s29 = scalar_lea.vmem %s564_s3, %s429_s21 }
   0xf   : > { %v447_v2 = vld [vmem:[%s236_s24] sm:$0xff] }
  0x11   : > { %298 = vmatpush.bf16.msra.mxu0 %v448_v1 }
  0x14   : > { %444 = vmatmul.msk.bf16.vlgmr.msra.gmra.mxu0 %vm287_vm0, %v447_v2 }
  0x91   : > { %v300_v4 = vpop.f32.mrf.mxu0 }
  0x92   : > { %v301_v5 = vadd.f32 %v474_v3, %v300_v4 }
  0x94   : > { %v305_v6 = vpack.c.bf16 %v301_v5, %v301_v5 }
  0x96   : > { %308 = vst.msk [vmem:[%s257_s29] sm:$0xf] %vm307_vm1, %v305_v6 }
  0x99   : > { %v302_v7 = vpop.f32.mrf.mxu0 }
  0x9a   : > { %v303_v8 = vadd.f32 %v474_v3, %v302_v7 }
  0x9c   : > { %v306_v9 = vpack.c.bf16 %v303_v8, %v303_v8 }
  0x9e   : > { %309 = vst.msk [vmem:[%s257_s29 + $0x4] sm:$0xf] %vm307_vm1, %v306_v9 }
  0x9f PF: > { %s13_s14 = sadd.s32 1, %s497_s14   ;;  %s565_s12 = smov %s493_s13 }
  0xa0   : > { %p10_p5 = scmp.ge.s32.totalorder %s13_s14, 4   ;;  %s566_s13 = smov %s568_s15 }
  0xa2   :  { %12 = sbr.rel (!%p10_p5) target bundleno = 2 (0x2), region = 68 }

// kernel: decoder_vit_forward.47
= control target key start
LH: loop header
LB: loop body
LE: loop exit
PB: predicated region body
PF: predicated region fallthrough
CT: control target
= control target key end

     0   :  { %10 = vsyncpa [#allocation5], 0  ;;  %s614_s18 = smov 0   ;;  %s616_s19 = smov 0   ;;  %s681_s0 = inlined_call_operand.vmem [shape: bf16[2,16,32], index: 0, kind: input, shape index: {}]   ;;  %s682_s1 = inlined_call_operand.vmem [shape: f32[1,32], index: 1, kind: input, shape index: {}]   ;;  %s683_s2 = inlined_call_operand.vmem [shape: f32[1,32], index: 2, kind: input, shape index: {}]   ;;  %s684_s3 = inlined_call_operand.vmem [shape: bf16[32,10], index: 3, kind: input, shape index: {}]   ;;  %s685_s4 = inlined_call_operand.vmem [shape: f32[1,10], index: 4, kind: input, shape index: {}]   ;;  %s686_s5 = inlined_call_operand.hbm [shape: f32[2,10], index: 5, kind: output, shape index: {}]  }
   0x1   :  { %s618_s20 = smov 0  }
   0x2 LB: > { %s627_s21 = sadd.s32 4294967295, %s579_s20   ;;  %s629_s22 = sadd.s32 1, %s579_s20   ;;  %s579_s20 = sphi %s618_s20, %s689_s20   ;;  %s575_s19 = sphi %s616_s19, %s688_s19   ;;  %s571_s18 = sphi %s614_s18, %s687_s18  }
   0x3   : > { %s20_s23 = ssub.s32 %s579_s20, %s629_s22  ;;  %s23_s24 = sadd.s32 1, %s575_s19 }
   0x4   : > { %p21_p0 = scmp.eq.s32.totalorder %s20_s23, 0  ;;  %p30_p1 = scmp.ne.s32.totalorder %s575_s19, %s571_s18 }
   0x5   : > { %p31_p2 = scmp.eq.s32.totalorder %s579_s20, 0  ;;  %p457_p4 = scmp.ge.s32.totalorder %s579_s20, 2 }
   0x6   : > { %s636_s25 = scalar_select %p21_p0, %s575_s19, %s23_s24  }
   0x7   : > { %p32_p3 = por %p31_p2, %p30_p1  ;;  %173 = sbr.rel (%p457_p4) target bundleno = 18 (0x12), region = 32 }
   0xc   : > { %176 = sbr.rel (!%p32_p3) target bundleno = 18 (0x12), region = 36  ;;  %s178_s26 = sand.u32 (%p32_p3), 1, %s575_s19  }
   0xd   : > { %s459_s27 = sshll.u32 (%p32_p3), %s579_s20, 2  ;;  %s458_s28 = sshll.u32 (%p32_p3), %s178_s26, 3 }
   0xe   : > { %s182_s6 = scalar_lea.vmem (%p32_p3), %s681_s0, %s459_s27  ;;  %s180_s7 = scalar_lea.vmem (%p32_p3), [#allocation3], %s458_s28 }
   0xf   : > { %v199_v0 = vld [vmem:[%s182_s6] sm:$0xf] (%p32_p3)  ;;  %v201_v1 = vld [vmem:[%s182_s6 + $0x8] sm:$0xf] (%p32_p3) }
  0x10   : > { %200 = vst [vmem:[%s180_s7] sm:$0xf] (%p32_p3), %v199_v0 }
  0x11   : > { %202 = vst [vmem:[%s180_s7 + $0x4] sm:$0xf] %v201_v1 }
  0x12 PF: > { %p460_p5 = scmp.ge.s32.totalorder %s579_s20, 1  ;;  %p229_p6 = scmp.lt.s32.totalorder %s579_s20, 3 }
  0x14   : > { %p230_p7 = pnand %p460_p5, %p229_p6 }
  0x15   : > { %s236_s8 = sand.u32 (!%p230_p7), 1, %s571_s18   ;;  %p462_p8 = scmp.ne.s32.totalorder (!%p230_p7), %s627_s21, 0 }
  0x16   : > { %233 = sbr.rel (%p230_p7) target bundleno = 480 (0x1e0), region = 77  ;;  %s461_s9 = sshll.u32 (!%p230_p7), %s236_s8, 3 }
  0x17   : > { %s238_s10 = scalar_lea.vmem (!%p230_p7), [#allocation3], %s461_s9 }
  0x1b   : > { %262 = sbr.rel (%p462_p8) target bundleno = 34 (0x22), region = 85 }
  0x20   : > { %vm263_vm0 = vcmask 254976   ;;  %v581_v2 = vmov 0.0  }
  0x21   : > { %264 = vst.msk [vmem:[#allocation2] sm:$0x3] %vm263_vm0, %v581_v2 }
  0x22 PF: > { %v480_v3 = vld [vmem:[%s238_s10] sm:$0xff]   ;;  %vm271_vm1 = vcmask 261120   ;;  %v582_v8 = vmov 32.0   ;;  %v516_v39 = vld [vmem:[%s682_s1] ss:$0 sm:$0xff]  ;;  %vm350_vm9 = vcmask 1041409  }
  0x23   : > { %v481_v4 = vunpack.c.l.bf16 %v480_v3  ;;  %v482_v6 = vunpack.c.h.bf16 %v480_v3  ;;  %518 = vrcp.f32 %v582_v8  ;;  %v517_v42 = vld [vmem:[%s683_s2] ss:$0 sm:$0xff]  ;;  %vm354_vm10 = vcmask 254976   ;;  %p463_p9 = scmp.ne.s32.totalorder %s627_s21, 1 }
  0x25   : > { %v272_v5 = vsel %vm271_vm1, %v481_v4, 0.0  ;;  %v275_v7 = vsel %vm271_vm1, %v482_v6, 0.0 }
  0x26   : > { %273 = vadd.xlane.f32.xlu0 %v272_v5 }
  0x28   : > { %v333_v2 = vld [vmem:[#allocation2] sm:$0x3] }
  0x29   : > { %v519_v9 = vpop.eup %518 }
  0x2a   : > { %v279_v10 = vmul.f32 32.0, %v519_v9  ;;  %vm283_vm2 = vweird.f32 %v519_v9 }
  0x2c   : > { %v280_v11 = vsub.f32 1.0, %v279_v10 }
  0x2e   : > { %276 = vadd.xlane.f32.xlu0 %v275_v7  ;;  %v281_v12 = vmul.f32 %v519_v9, %v280_v11 }
  0x30   : > { %v282_v13 = vadd.f32 %v519_v9, %v281_v12 }
  0x32   : > { %v284_v14 = vsel %vm283_vm2, %v519_v9, %v282_v13 }
  0x99   : > { %v274_v15 = vpop.xlane.xlu0 %273 }
  0x9a   : > { %v285_v16 = vmul.f32 %v284_v14, %v274_v15 }
  0x9c   : > { %v287_v17 = vsub.f32 %v481_v4, %v285_v16 }
  0x9e   : > { %v289_v18 = vmul.f32 %v287_v17, %v287_v17 }
  0xa0   : > { %v291_v19 = vsel %vm271_vm1, %v289_v18, 0.0 }
  0xa1   : > { %292 = vadd.xlane.f32.xlu1 %v291_v19  ;;  %v277_v20 = vpop.xlane.xlu0 %276 }
  0xa2   : > { %v286_v21 = vmul.f32 %v284_v14, %v277_v20 }
  0xa4   : > { %v288_v22 = vsub.f32 %v482_v6, %v286_v21 }
  0xa6   : > { %v290_v23 = vmul.f32 %v288_v22, %v288_v22 }
  0xa8   : > { %v294_v24 = vsel %vm271_vm1, %v290_v23, 0.0 }
  0xa9   : > { %295 = vadd.xlane.f32.xlu1 %v294_v24 }
 0x114   : > { %v293_v25 = vpop.xlane.xlu1 %292 }
 0x115   : > { %v297_v26 = vmul.f32 %v293_v25, %v284_v14 }
 0x117   : > { %v299_v27 = vadd.f32 1e-05, %v297_v26 }
 0x119   : > { %520 = vrsqrt.f32 %v299_v27  ;;  %vm307_vm4 = vweird.f32 %v299_v27 }
 0x11c   : > { %v296_v28 = vpop.xlane.xlu1 %295 }
 0x11d   : > { %v298_v29 = vmul.f32 %v296_v28, %v284_v14 }
 0x11f   : > { %v521_v30 = vpop.eup %520  ;;  %v300_v31 = vadd.f32 1e-05, %v298_v29 }
 0x120   : > { %v302_v32 = vmul.f32 %v521_v30, %v299_v27  ;;  %vm308_vm3 = vweird.f32 %v521_v30 }
 0x121   : > { %522 = vrsqrt.f32 %v300_v31  ;;  %vm309_vm5 = vmor %vm307_vm4, %vm308_vm3  ;;  %vm317_vm7 = vweird.f32 %v300_v31 }
 0x122   : > { %v303_v33 = vmul.f32 %v521_v30, %v302_v32 }
 0x124   : > { %v304_v34 = vmul.f32 0.5, %v303_v33 }
 0x126   : > { %v305_v35 = vsub.f32 1.5, %v304_v34 }
 0x127   : > { %v523_v36 = vpop.eup %522 }
 0x128   : > { %v306_v37 = vmul.f32 %v521_v30, %v305_v35  ;;  %v312_v38 = vmul.f32 %v523_v36, %v300_v31  ;;  %vm318_vm6 = vweird.f32 %v523_v36 }
 0x129   : > { %vm319_vm8 = vmor %vm317_vm7, %vm318_vm6 }
 0x12a   : > { %v310_v40 = vsel %vm309_vm5, %v521_v30, %v306_v37  ;;  %v313_v41 = vmul.f32 %v523_v36, %v312_v38 }
 0x12b   : > { %v321_v43 = vmul.f32 %v310_v40, %v287_v17 }
 0x12c   : > { %v314_v44 = vmul.f32 0.5, %v313_v41 }
 0x12d   : > { %v326_v45 = vmul.f32 %v516_v39, %v321_v43 }
 0x12e   : > { %v315_v46 = vsub.f32 1.5, %v314_v44 }
 0x12f   : > { %v331_v47 = vadd.f32 %v517_v42, %v326_v45 }
 0x130   : > { %v316_v48 = vmul.f32 %v523_v36, %v315_v46 }
 0x131   : > { %v334_v49 = vsel %vm271_vm1, %v331_v47, 0.0 }
 0x132   : > { %v335_v50 = vrot.slane %v334_v49, 4  ;;  %v320_v51 = vsel %vm319_vm8, %v523_v36, %v316_v48 }
 0x133   : > { %v322_v52 = vmul.f32 %v320_v51, %v288_v22 }
 0x134   : > { %v336_v53 = vadd.f32 %v335_v50, %v334_v49 }
 0x135   : > { %v327_v54 = vmul.f32 %v516_v39, %v322_v52 }
 0x136   : > { %v337_v56 = vrot.slane %v336_v53, 2 }
 0x137   : > { %v332_v55 = vadd.f32 %v517_v42, %v327_v54 }
 0x138   : > { %v338_v59 = vadd.f32 %v337_v56, %v336_v53 }
 0x139   : > { %v341_v57 = vsel %vm271_vm1, %v332_v55, 0.0 }
 0x13a   : > { %v342_v58 = vrot.slane %v341_v57, 4  ;;  %v339_v62 = vrot.slane %v338_v59, 1 }
 0x13c   : > { %v343_v60 = vadd.f32 %v342_v58, %v341_v57  ;;  %v340_v1 = vadd.f32 %v339_v62, %v338_v59 }
 0x13e   : > { %v344_v61 = vrot.slane %v343_v60, 2 }
 0x140   : > { %v345_v63 = vadd.f32 %v344_v61, %v343_v60 }
 0x142   : > { %v346_v0 = vrot.slane %v345_v63, 1 }
 0x144   : > { %v347_v3 = vadd.f32 %v346_v0, %v345_v63 }
 0x145   : > { %359 = sbr.rel (%p463_p9) target bundleno = 475 (0x1db), region = 89 }
 0x146   : > { %v351_v4 = vsel %vm350_vm9, %v347_v3, %v340_v1 }
 0x147   : > { %v353_v5 = vadd.f32 %v351_v4, %v333_v2 }
 0x149   : > { %355 = vst.msk [vmem:[#allocation2] sm:$0x3] %vm354_vm10, %v353_v5 }
 0x14a   : > { %v478_v6 = vld [vmem:[%s684_s3 + $0x8] sm:$0xff]  ;;  %v477_v9 = vld [vmem:[%s684_s3] sm:$0xff]  ;;  %vm399_vm11 = vcmask 74752  }
 0x14b   : > { %392 = vmatpush.bf16.msra.mxu0 %v478_v6  ;;  %v524_v11 = vld [vmem:[%s685_s4] ss:$0 sm:$0xff] }
 0x14f   : > { %393 = vmatpush.bf16.msra.mxu0 %v477_v9 }
 0x150   : > { %v360_v7 = vld [vmem:[#allocation2] sm:$0x3] }
 0x151   : > { %v361_v8 = vmul.f32 0.0625, %v360_v7 }
 0x153   : > { %v362_v10 = vpack.c.bf16 %v361_v8, %v361_v8 }
 0x155   : > { %472 = vmatmul.msk.bf16.vlgmr.msra.gmra.mxu0 %vm271_vm1, %v362_v10 }
 0x1d2   : > { %v395_v12 = vpop.f32.mrf.mxu0 }
 0x1d3   : > { %v396_v13 = vadd.f32 %v524_v11, %v395_v12 }
 0x1d5   : > { %400 = vst.msk [vmem:[#allocation4] sm:$0x3] %vm399_vm11, %v396_v13 }
 0x1da   : > { %v397_v14 = vpop.f32.mrf.mxu0 }
 0x1db PF: > { %p487_p10 = scmp.eq.s32.totalorder %s627_s21, 1  ;;  %s583_s24 = smov [#allocation4]  }
 0x1dc   : > { %s407_s26 = sshll.u32 %s583_s24, 4  ;;  %s409_s29 = sshll.u32 %s686_s5, 4  ;;  %s408_s26 = int_to_ptr.vmem [resolvable:$true] %s407_s26  ;;  %s410_s29 = int_to_ptr.hbm [resolvable:$true] %s409_s29 }
 0x1dd   : > { %484 = dma.vmem_to_hbm [thread:$0]  (%p487_p10), %s408_s26, 32, %s410_s29, [#allocation5]  }
 0x1de   : > { %566 = dma.done.wait (%p487_p10), [#allocation5], 32  }
 0x1df   : > { %568 = vsyncadd (%p487_p10), [#allocation5], 4294967264 }
 0x1e0 PF: > { %p13_p11 = scmp.ge.s32.totalorder %s629_s22, 4   ;;  %s687_s18 = smov %s575_s19 }
 0x1e1   : > { %s688_s19 = smov %s636_s25  ;;  %s689_s20 = smov %s629_s22 }
 0x1e2   :  { %15 = sbr.rel (!%p13_p11) target bundleno = 2 (0x2), region = 121 }
 0x1e7   :  { %423 = vsyncpa [#allocation5], 1 }
 0x1e8   :  { %425 = vsyncpa [#allocation5 + $0x1], 1 }

// kernel: decoder_vit_forward.42
= control target key start
LH: loop header
LB: loop body
LE: loop exit
PB: predicated region body
PF: predicated region fallthrough
CT: control target
= control target key end

     0   :  { %s3065_s0 = inlined_call_operand.vmem [shape: bf16[2,8,32], index: 0, kind: input, shape index: {}]   ;;  %s3066_s1 = inlined_call_operand.vmem [shape: bf16[2,16,64], index: 1, kind: input, shape index: {}]   ;;  %s3067_s2 = inlined_call_operand.vmem [shape: bf16[32,32], index: 2, kind: input, shape index: {}]   ;;  %s3068_s3 = inlined_call_operand.hbm [shape: f32[1,32], index: 3, kind: input, shape index: {}]   ;;  %s3069_s4 = inlined_call_operand.vmem [shape: bf16[32,32], index: 4, kind: input, shape index: {}]   ;;  %s3070_s5 = inlined_call_operand.hbm [shape: f32[1,32], index: 5, kind: input, shape index: {}]   ;;  %s3071_s6 = inlined_call_operand.hbm [shape: f32[1,32], index: 6, kind: input, shape index: {}]   ;;  %s3072_s7 = inlined_call_operand.hbm [shape: f32[1,32], index: 7, kind: input, shape index: {}]   ;;  %s3073_s8 = inlined_call_operand.vmem [shape: bf16[32,96], index: 8, kind: input, shape index: {}]   ;;  %s3074_s9 = inlined_call_operand.hbm [shape: f32[1,96], index: 9, kind: input, shape index: {}]   ;;  %s3075_s10 = inlined_call_operand.vmem [shape: bf16[32,32], index: 10, kind: input, shape index: {}]   ;;  %s3076_s11 = inlined_call_operand.hbm [shape: f32[1,32], index: 11, kind: input, shape index: {}]   ;;  %s3077_s12 = inlined_call_operand.hbm [shape: f32[1,32], index: 12, kind: input, shape index: {}]   ;;  %s3078_s13 = inlined_call_operand.hbm [shape: f32[1,32], index: 13, kind: input, shape index: {}]   ;;  %s3079_s14 = inlined_call_operand.vmem [shape: bf16[32,64], index: 14, kind: input, shape index: {}]   ;;  %s3080_s15 = inlined_call_operand.hbm [shape: f32[1,64], index: 15, kind: input, shape index: {}]   ;;  %s3081_s16 = inlined_call_operand.vmem [shape: bf16[64,32], index: 16, kind: input, shape index: {}]   ;;  %s3082_s17 = inlined_call_operand.hbm [shape: f32[1,32], index: 17, kind: input, shape index: {}]   ;;  %s3083_s18 = inlined_call_operand.hbm [shape: f32[1,32], index: 18, kind: input, shape index: {}]   ;;  %s3084_s19 = inlined_call_operand.hbm [shape: f32[1,32], index: 19, kind: input, shape index: {}]   ;;  %s3085_s20 = inlined_call_operand.vmem [shape: bf16[2,8,32], index: 20, kind: output, shape index: {}]  }
   0x1   :  { %3089 = sst [smem:[#allocation29_spill]] %s3065_s0 }
   0x2   :  { %3090 = sst [smem:[#allocation30_spill]] %s3066_s1 }
   0x3   :  { %3091 = sst [smem:[#allocation31_spill]] %s3067_s2 }
   0x4   :  { %3092 = sst [smem:[#allocation32_spill]] %s3068_s3 }
   0x5   :  { %3093 = sst [smem:[#allocation33_spill]] %s3069_s4 }
   0x6   :  { %3094 = sst [smem:[#allocation34_spill]] %s3070_s5 }
   0x7   :  { %3095 = sst [smem:[#allocation35_spill]] %s3072_s7 }
   0x8   :  { %3096 = sst [smem:[#allocation36_spill]] %s3076_s11 }
   0x9   :  { %25 = vsyncpa [#allocation4], 0 }
   0xa   :  { %26 = vsyncpa [#allocation6], 0 }
   0xb   :  { %27 = vsyncpa [#allocation9], 0 }
   0xc   :  { %28 = vsyncpa [#allocation12], 0 }
   0xd   :  { %29 = vsyncpa [#allocation15], 0 }
   0xe   :  { %30 = vsyncpa [#allocation18], 0 }
   0xf   :  { %31 = vsyncpa [#allocation21], 0  ;;  %s2757_s1 = smov 0  }
  0x10 LB: > { %s3097_s5 = sld [smem:[#allocation34_spill]]  ;;  %s2766_s2 = sadd.s32 4294967295, %s2623_s1   ;;  %s2623_s1 = sphi %s2757_s1, %s37_s1  }
  0x11   : > { %p1899_p0 = scmp.ge.s32.totalorder %s2623_s1, 1  ;;  %p498_p1 = scmp.lt.s32.totalorder %s2623_s1, 3 }
  0x12   : > { %p2116_p2 = scmp.eq.s32.totalorder %s2766_s2, 0  ;;  %s2625_s3 = smov [#allocation5]  }
  0x13   : > { %p2771_p3 = pnand %p1899_p0, %p498_p1  ;;  %s530_s26 = sshll.u32 %s2625_s3, 4  ;;  %s531_s26 = int_to_ptr.vmem [resolvable:$true] %s530_s26 }
  0x14   : > { %s3099_s7 = sld [smem:[#allocation35_spill]]  ;;  %s2626_s22 = smov [#allocation8]  }
  0x15   : > { %p2079_p4 = pneg %p2771_p3  ;;  %s3100_s11 = sld [smem:[#allocation36_spill]] }
  0x16   : > { %s528_s24 = sshll.u32 %s3097_s5, 4  ;;  %s554_s23 = sshll.u32 %s2626_s22, 4  ;;  %s529_s24 = int_to_ptr.hbm [resolvable:$true] %s528_s24  ;;  %s555_s23 = int_to_ptr.vmem [resolvable:$true] %s554_s23 }
  0x17   : > { %p2785_p5 = pnand %p2116_p2, %p2079_p4  ;;  %s2627_s3 = smov [#allocation11]  }
  0x18   : > { %s584_s27 = sshll.u32 %s2627_s3, 4  ;;  %s606_s30 = sshll.u32 %s3078_s13, 4  ;;  %s585_s27 = int_to_ptr.vmem [resolvable:$true] %s584_s27  ;;  %s607_s30 = int_to_ptr.hbm [resolvable:$true] %s606_s30 }
  0x19   : > { %2085 = dma.hbm_to_vmem [thread:$0]  (!%p2785_p5), %s529_s24, 16, %s531_s26, [#allocation6]  }
  0x1a   : > { %s552_s4 = sshll.u32 %s3099_s7, 4  ;;  %s636_s7 = sshll.u32 %s3082_s17, 4  ;;  %s553_s4 = int_to_ptr.hbm [resolvable:$true] %s552_s4  ;;  %s637_s7 = int_to_ptr.hbm [resolvable:$true] %s636_s7 }
  0x1b   : > { %s582_s0 = sshll.u32 %s3100_s11, 4  ;;  %s2628_s11 = smov [#allocation14]   ;;  %s583_s0 = int_to_ptr.hbm [resolvable:$true] %s582_s0 }
  0x1c   : > { %2091 = dma.hbm_to_vmem [thread:$0]  (!%p2785_p5), %s553_s4, 16, %s555_s23, [#allocation9]  }
  0x1d   : > { %2097 = dma.hbm_to_vmem [thread:$0]  (!%p2785_p5), %s583_s0, 16, %s585_s27, [#allocation12]  }
  0x1e   : > { %s608_s24 = sshll.u32 %s2628_s11, 4  ;;  %s2629_s26 = smov [#allocation17]   ;;  %s609_s24 = int_to_ptr.vmem [resolvable:$true] %s608_s24 }
  0x1f   : > { %2103 = dma.hbm_to_vmem [thread:$0]  (!%p2785_p5), %s607_s30, 16, %s609_s24, [#allocation15]  }
  0x20   : > { %s638_s4 = sshll.u32 %s2629_s26, 4  ;;  %s3102_s28 = sld [smem:[#allocation32_spill]]  ;;  %s639_s4 = int_to_ptr.vmem [resolvable:$true] %s638_s4 }
  0x21   : > { %2109 = dma.hbm_to_vmem [thread:$0]  (!%p2785_p5), %s637_s7, 16, %s639_s4, [#allocation18]  }
  0x22   : > { %s540_s27 = sshll.u32 %s3071_s6, 4  ;;  %s2630_s11 = smov [#allocation3]   ;;  %s541_s27 = int_to_ptr.hbm [resolvable:$true] %s540_s27 }
  0x23   : > { %s515_s22 = sshll.u32 %s2630_s11, 4  ;;  %s2631_s30 = smov [#allocation7]   ;;  %s516_s22 = int_to_ptr.vmem [resolvable:$true] %s515_s22 }
  0x24   : > { %s542_s24 = sshll.u32 %s2631_s30, 4  ;;  %s567_s3 = sshll.u32 %s3074_s9, 4  ;;  %s543_s24 = int_to_ptr.vmem [resolvable:$true] %s542_s24  ;;  %s568_s3 = int_to_ptr.hbm [resolvable:$true] %s567_s3 }
  0x25   : > { %2088 = dma.hbm_to_vmem [thread:$0]  (!%p2785_p5), %s541_s27, 16, %s543_s24, [#allocation6]  }
  0x26   : > { %s513_s29 = sshll.u32 %s3102_s28, 4  ;;  %s594_s28 = sshll.u32 %s3077_s12, 4  ;;  %s514_s29 = int_to_ptr.hbm [resolvable:$true] %s513_s29  ;;  %s595_s28 = int_to_ptr.hbm [resolvable:$true] %s594_s28 }
  0x27   : > { %2082 = dma.hbm_to_vmem [thread:$0]  (!%p2785_p5), %s514_s29, 16, %s516_s22, [#allocation4]  }
  0x28   : > { %s2632_s5 = smov [#allocation10]   ;;  %s2633_s29 = smov [#allocation13]  }
  0x29   : > { %s569_s0 = sshll.u32 %s2632_s5, 4  ;;  %s596_s11 = sshll.u32 %s2633_s29, 4  ;;  %s570_s0 = int_to_ptr.vmem [resolvable:$true] %s569_s0  ;;  %s597_s11 = int_to_ptr.vmem [resolvable:$true] %s596_s11 }
  0x2a   : > { %2094 = dma.hbm_to_vmem [thread:$0]  (!%p2785_p5), %s568_s3, 16, %s570_s0, [#allocation9]  }
  0x2b   : > { %s621_s26 = sshll.u32 %s3080_s15, 4  ;;  %s648_s23 = sshll.u32 %s3083_s18, 4  ;;  %s622_s26 = int_to_ptr.hbm [resolvable:$true] %s621_s26  ;;  %s649_s23 = int_to_ptr.hbm [resolvable:$true] %s648_s23 }
  0x2c   : > { %2100 = dma.hbm_to_vmem [thread:$0]  (!%p2785_p5), %s595_s28, 16, %s597_s11, [#allocation12]  }
  0x2d   : > { %s2634_s7 = smov [#allocation16]   ;;  %s2635_s3 = smov [#allocation19]  }
  0x2e   : > { %s623_s4 = sshll.u32 %s2634_s7, 4  ;;  %s650_s5 = sshll.u32 %s2635_s3, 4  ;;  %s624_s4 = int_to_ptr.vmem [resolvable:$true] %s623_s4  ;;  %s651_s5 = int_to_ptr.vmem [resolvable:$true] %s650_s5 }
  0x2f   : > { %2106 = dma.hbm_to_vmem [thread:$0]  (!%p2785_p5), %s622_s26, 16, %s624_s4, [#allocation15]  }
  0x30   : > { %s660_s22 = sshll.u32 %s3084_s19, 4  ;;  %s2636_s28 = smov [#allocation20]   ;;  %s661_s22 = int_to_ptr.hbm [resolvable:$true] %s660_s22 }
  0x31   : > { %2112 = dma.hbm_to_vmem [thread:$0]  (!%p2785_p5), %s649_s23, 16, %s651_s5, [#allocation18]  }
  0x32   : > { %s662_s11 = sshll.u32 %s2636_s28, 4  ;;  %690 = sbr.rel (%p2771_p3) target bundleno = 3321 (0xcf9), region = 100  ;;  %s663_s11 = int_to_ptr.vmem [resolvable:$true] %s662_s11 }
  0x33   : > { %2115 = dma.hbm_to_vmem [thread:$0]  (!%p2785_p5), %s661_s22, 16, %s663_s11, [#allocation21]  }
  0x37   : > { %2594 = dma.done.wait (%p2116_p2), [#allocation4], 16  }
  0x38   : > { %2596 = vsyncadd (%p2116_p2), [#allocation4], 4294967280 }
  0x39   : > { %2598 = dma.done.wait (%p2116_p2), [#allocation6], 32  }
  0x3a   : > { %2600 = vsyncadd (%p2116_p2), [#allocation6], 4294967264 }
  0x3b   : > { %2602 = dma.done.wait (%p2116_p2), [#allocation9], 32  }
  0x3c   : > { %2604 = vsyncadd (%p2116_p2), [#allocation9], 4294967264 }
  0x3d   : > { %2606 = dma.done.wait (%p2116_p2), [#allocation12], 32  }
  0x3e   : > { %2608 = vsyncadd (%p2116_p2), [#allocation12], 4294967264 }
  0x3f   : > { %2610 = dma.done.wait (%p2116_p2), [#allocation15], 32  }
  0x40   : > { %2612 = vsyncadd (%p2116_p2), [#allocation15], 4294967264 }
  0x41   : > { %2614 = dma.done.wait (%p2116_p2), [#allocation18], 32  }
  0x42   : > { %2616 = vsyncadd (%p2116_p2), [#allocation18], 4294967264 }
  0x43   : > { %2618 = dma.done.wait (%p2116_p2), [#allocation21], 16  }
  0x44   : > { %2620 = vsyncadd (%p2116_p2), [#allocation21], 4294967280  ;;  %p807_p6 = scmp.lt.s32.totalorder %s2766_s2, 1  ;;  %s3103_s26 = sld [smem:[#allocation30_spill]]  ;;  %vm868_vm0 = vcmask 64512   ;;  %vm845_vm1 = vcmask 261120  }
  0x45   : > { %s3104_s7 = sld [smem:[#allocation31_spill]]  ;;  %s2637_s11 = smov 112   ;;  %v2175_v7 = vld [vmem:[#allocation3] ss:$0 sm:$0xff]  ;;  %vm889_vm2 = vcmask 130048   ;;  %vm984_vm3 = vcmask 130112  }
  0x46   : > { %s3109_s2 = smov (!%p807_p6, %s2766_s2), 1  ;;  %s3105_s22 = sld [smem:[#allocation29_spill]]  ;;  %vm1045_vm4 = vcmask 195712   ;;  %vm1106_vm5 = vcmask 261312   ;;  %vm1267_vm10 = vcmask 1043456  }
  0x47   : > { %s2015_s25 = sshll.u32 %s3109_s2, 3  ;;  %s3088_s4 = sshll.u32 %s3109_s2, 2 }
  0x48   : > { %s2639_s21 = smov 120   ;;  %s2640_s30 = smov 88  }
  0x49   : > { %s2643_s24 = smov 72   ;;  %s2644_s23 = smov 8  }
  0x4a   : > { %s815_s27 = scalar_lea.vmem %s3103_s26, %s2015_s25  ;;  %s2638_s25 = smov 104  }
  0x4b   : > { %v2018_v0 = vld [vmem:[%s3104_s7 + $0x8] sm:$0xff]  ;;  %v2017_v1 = vld [vmem:[%s3104_s7] sm:$0xff]  ;;  %s2641_s26 = smov 96   ;;  %s2645_s3 = smov 24  }
  0x4c   : > { %v2885_v2 = vld [vmem:[%s815_s27] sm:$0xff]  ;;  %855 = vmatpush.bf16.msra.mxu0 %v2018_v0  ;;  %s810_s28 = scalar_lea.vmem %s3105_s22, %s3088_s4  ;;  %s2642_s27 = smov 80  }
  0x4d   : > { %v873_v3 = vsel %vm868_vm0, %v2885_v2, 0  ;;  %v2894_v4 = vld [vmem:[%s810_s28] sm:$0xf]  ;;  %988 = vrot.lane.b32.xlu2 %v2885_v2, %s2637_s11  ;;  %1049 = vrot.lane.b32.xlu1 %v2885_v2, %s2638_s25  ;;  %s2646_s5 = smov 16   ;;  %s3106_s22 = sld [smem:[#allocation33_spill]] }
  0x4e   : > { %882 = vmatpush.bf16.xpose.msra.mxu1 %v873_v3  ;;  %927 = vrot.lane.b32.xlu0 %v2885_v2, %s2639_s21 }
  0x50   : > { %856 = vmatpush.bf16.msra.mxu0 %v2017_v1 }
  0x53   : > { %1938 = vmatmul.msk.bf16.vlgmr.msra.gmra.mxu0 %vm845_vm1, %v2894_v4 }
  0xa7   : > { %v989_v5 = vpop.permute.xlu2 %988 }
  0xa8   : > { %v994_v6 = vsel %vm868_vm0, %v989_v5, 0 }
  0xa9   : > { %1003 = vmatpush.bf16.xpose.msrb.mxu0 %v994_v6 }
  0xbf   : > { %v1050_v16 = vpop.permute.xlu1 %1049 }
  0xc0   : > { %v928_v14 = vpop.permute.xlu0 %927  ;;  %v1055_v18 = vsel %vm868_vm0, %v1050_v16, 0 }
  0xc1   : > { %v933_v15 = vsel %vm868_vm0, %v928_v14, 0 }
  0xc2   : > { %942 = vmatpush.bf16.xpose.msra.mxu3 %v933_v15 }
  0xca   : > { %1064 = vmatpush.bf16.xpose.msrb.mxu3 %v1055_v18 }
  0xd0   : > { %v858_v8 = vpop.f32.mrf.mxu0 }
  0xd1   : > { %v859_v9 = vadd.f32 %v2175_v7, %v858_v8 }
  0xd3   : > { %v862_v10 = vpack.c.bf16 %v859_v9, %v859_v9 }
  0xd5   : > { %v923_v11 = vunpack.c.l.b16 %v862_v10  ;;  %1943 = vmatmul.msk.bf16.vlgmr.msra.gmra.mxu1 %vm868_vm0, %v862_v10 }
  0xd7   : > { %v924_v12 = vpack.c.b16 %v923_v11, %v923_v11 }
  0xd8   : > { %v860_v13 = vpop.f32.mrf.mxu0 }
  0xd9   : > { %986 = vrot.lane.b32.xlu2 %v924_v12, %s2637_s11  ;;  %1047 = vrot.lane.b32.xlu1 %v924_v12, %s2638_s25 }
  0xda   : > { %925 = vrot.lane.b32.xlu0 %v924_v12, %s2639_s21 }
 0x133   : > { %v987_v17 = vpop.permute.xlu2 %986 }
 0x134   : > { %1947 = vmatmul.msk.bf16.vlgmr.msrb.gmra.mxu0 %vm868_vm0, %v987_v17 }
 0x14b   : > { %v1048_v24 = vpop.permute.xlu1 %1047 }
 0x14c   : > { %v926_v19 = vpop.permute.xlu0 %925 }
 0x14d   : > { %1945 = vmatmul.msk.bf16.vlgmr.msra.gmra.mxu3 %vm868_vm0, %v926_v19 }
 0x152   : > { %v884_v20 = vpop.f32.mrf.mxu1 }
 0x153   : > { %v888_v21 = vmul.f32 0.35355338, %v884_v20 }
 0x155   : > { %v890_v22 = vsel %vm889_vm2, %v888_v21, -inf }
 0x156   : > { %891 = vmax.xlane.f32.xlu0 %v890_v22 }
 0x15a   : > { %v886_v23 = vpop.f32.mrf.mxu1 }
 0x15b   : > { %v2020_v23 = vld [vmem:[%s3106_s22 + $0x8] sm:$0xff] }
 0x15c   : > { %1135 = vmatpush.bf16.msra.mxu0 %v2020_v23 }
 0x15d   : > { %1949 = vmatmul.msk.bf16.vlgmr.msrb.gmra.mxu3 %vm868_vm0, %v1048_v24  ;;  %v2019_v24 = vld [vmem:[%s3106_s22] sm:$0xff] }
 0x160   : > { %1136 = vmatpush.bf16.msra.mxu0 %v2019_v24 }
 0x1b1   : > { %v1005_v25 = vpop.f32.mrf.mxu0 }
 0x1b2   : > { %v1009_v39 = vmul.f32 0.35355338, %v1005_v25 }
 0x1b4   : > { %v1010_v41 = vsel %vm889_vm2, %v1009_v39, -inf }
 0x1b9   : > { %v1007_v26 = vpop.f32.mrf.mxu0 }
 0x1c9   : > { %v892_v27 = vpop.xlane.xlu0 %891 }
 0x1ca   : > { %v893_v28 = vsub.f32 %v888_v21, %v892_v27 }
 0x1cc   : > { %v894_v29 = vmul.f32 1.442695, %v893_v28 }
 0x1ce   : > { %2187 = vpow2.f32 %v894_v29  ;;  %v822_v29 = vunpack.c.l.bf16 %v2894_v4 }
 0x1d0   : > { %v944_v30 = vpop.f32.mrf.mxu3 }
 0x1d1   : > { %v948_v31 = vmul.f32 0.35355338, %v944_v30  ;;  %v2176_v30 = vld [vmem:[#allocation5] ss:$0 sm:$0xff] }
 0x1d3   : > { %v949_v32 = vsel %vm889_vm2, %v948_v31, -inf }
 0x1d4   : > { %v2188_v33 = vpop.eup %2187  ;;  %950 = vmax.xlane.f32.xlu1 %v949_v32 }
 0x1d5   : > { %v896_v34 = vsel %vm889_vm2, %v2188_v33, 0.0 }
 0x1d6   : > { %897 = vadd.xlane.f32.xlu0 %v896_v34 }
 0x1d8   : > { %v946_v35 = vpop.f32.mrf.mxu3 }
 0x1e0   : > { %v1066_v36 = vpop.f32.mrf.mxu3 }
 0x1e1   : > { %v1070_v37 = vmul.f32 0.35355338, %v1066_v36  ;;  %v2647_v36 = vmov 32.0  }
 0x1e3   : > { %v1071_v38 = vsel %vm889_vm2, %v1070_v37, -inf }
 0x1e4   : > { %1072 = vmax.xlane.f32.xlu2 %v1071_v38 }
 0x1e8   : > { %v1068_v40 = vpop.f32.mrf.mxu3 }
 0x1ea   : > { %961 = vrot.lane.b32.xlu0 %v2885_v2, %s2640_s30 }
 0x1ec   : > { %1011 = vmax.xlane.f32.xlu2 %v1010_v41 }
 0x1ed   : > { %902 = vrot.lane.b32.xlu1 %v2885_v2, %s2641_s26 }
 0x1f2   : > { %1022 = vrot.lane.b32.xlu0 %v2885_v2, %s2642_s27 }
 0x1f5   : > { %1083 = vrot.lane.b32.xlu1 %v2885_v2, %s2643_s24 }
 0x247   : > { %v951_v42 = vpop.xlane.xlu1 %950 }
 0x248   : > { %v952_v43 = vsub.f32 %v948_v31, %v951_v42 }
 0x249   : > { %v898_v45 = vpop.xlane.xlu0 %897 }
 0x24a   : > { %v953_v44 = vmul.f32 1.442695, %v952_v43 }
 0x24c   : > { %2189 = vpow2.f32 %v953_v44 }
 0x24d   : > { %2191 = vrcp.f32 %v898_v45 }
 0x252   : > { %v2190_v46 = vpop.eup %2189 }
 0x253   : > { %v955_v47 = vsel %vm889_vm2, %v2190_v46, 0.0  ;;  %v2192_v50 = vpop.eup %2191 }
 0x254   : > { %956 = vadd.xlane.f32.xlu2 %v955_v47  ;;  %v900_v52 = vmul.f32 %v2192_v50, %v2188_v33  ;;  %v2022_v47 = vld [vmem:[%s3073_s8 + $0x8] sm:$0xff] }
 0x256   : > { %v901_v56 = vpack.c.bf16 %v900_v52, %v900_v52 }
 0x257   : > { %v1073_v48 = vpop.xlane.xlu2 %1072 }
 0x258   : > { %v1074_v49 = vsub.f32 %v1070_v37, %v1073_v48  ;;  %v2021_v48 = vld [vmem:[%s3073_s8] sm:$0xff] }
 0x25a   : > { %v1075_v51 = vmul.f32 1.442695, %v1074_v49 }
 0x25c   : > { %2193 = vpow2.f32 %v1075_v51  ;;  %v962_v62 = vpop.permute.xlu0 %961 }
 0x25f   : > { %v903_v53 = vpop.permute.xlu1 %902  ;;  %v1012_v54 = vpop.xlane.xlu2 %1011 }
 0x260   : > { %v1013_v55 = vsub.f32 %v1009_v39, %v1012_v54  ;;  %915 = vmatpush.bf16.msra.mxu2 %v903_v53 }
 0x262   : > { %v2194_v57 = vpop.eup %2193  ;;  %v1014_v58 = vmul.f32 1.442695, %v1013_v55 }
 0x263   : > { %1944 = vmatmul.msk.bf16.vlgmr.msra.gmra.mxu2 %vm889_vm2, %v901_v56  ;;  %v1077_v59 = vsel %vm889_vm2, %v2194_v57, 0.0 }
 0x264   : > { %2195 = vpow2.f32 %v1014_v58  ;;  %1078 = vadd.xlane.f32.xlu2 %v1077_v59  ;;  %974 = vmatpush.bf16.msrb.mxu2 %v962_v62  ;;  %v1023_v1 = vpop.permute.xlu0 %1022  ;;  %v2177_v58 = vld [vmem:[#allocation7] ss:$0 sm:$0xff] }
 0x265   : > { %1035 = vmatpush.bf16.msrb.mxu1 %v1023_v1  ;;  %v2179_v1 = vld [vmem:[#allocation10] ss:$0 sm:$0xff] }
 0x267   : > { %v1084_v63 = vpop.permute.xlu1 %1083 }
 0x268   : > { %1096 = vmatpush.bf16.msra.mxu2 %v1084_v63 }
 0x269   : > { %1217 = vmatpush.bf16.msra.mxu1 %v2022_v47 }
 0x26a   : > { %v2196_v60 = vpop.eup %2195 }
 0x26b   : > { %v1016_v61 = vsel %vm889_vm2, %v2196_v60, 0.0 }
 0x26c   : > { %1017 = vadd.xlane.f32.xlu2 %v1016_v61 }
 0x26d   : > { %1218 = vmatpush.bf16.msra.mxu1 %v2021_v48 }
 0x2c7   : > { %v957_v0 = vpop.xlane.xlu2 %956 }
 0x2c8   : > { %2197 = vrcp.f32 %v957_v0 }
 0x2ce   : > { %v2198_v2 = vpop.eup %2197 }
 0x2cf   : > { %v959_v3 = vmul.f32 %v2198_v2, %v2190_v46 }
 0x2d1   : > { %v960_v5 = vpack.c.bf16 %v959_v3, %v959_v3 }
 0x2d3   : > { %1946 = vmatmul.msk.bf16.vlgmr.msrb.gmra.mxu2 %vm889_vm2, %v960_v5 }
 0x2d7   : > { %v1079_v6 = vpop.xlane.xlu2 %1078 }
 0x2d8   : > { %2199 = vrcp.f32 %v1079_v6 }
 0x2de   : > { %v2200_v7 = vpop.eup %2199 }
 0x2df   : > { %v1081_v8 = vmul.f32 %v2200_v7, %v2194_v57  ;;  %v1018_v9 = vpop.xlane.xlu2 %1017 }
 0x2e0   : > { %2201 = vrcp.f32 %v1018_v9 }
 0x2e1   : > { %v1082_v10 = vpack.c.bf16 %v1081_v8, %v1081_v8  ;;  %2203 = vrcp.f32 %v2647_v36 }
 0x2e3   : > { %1950 = vmatmul.msk.bf16.vlgmr.msra.gmra.mxu2 %vm889_vm2, %v1082_v10 }
 0x2e6   : > { %v2202_v11 = vpop.eup %2201  ;;  %v917_v12 = vpop.f32.mrf.mxu2 }
 0x2e7   : > { %v1020_v13 = vmul.f32 %v2202_v11, %v2196_v60  ;;  %921 = vst.msk [vmem:[#allocation2] sm:$0xff] %vm868_vm0, %v917_v12  ;;  %v2204_v37 = vpop.eup %2203  ;;  %v2178_v60 = vld [vmem:[#allocation8] ss:$0 sm:$0xff] }
 0x2e8   : > { %v1154_v38 = vmul.f32 32.0, %v2204_v37  ;;  %vm1158_vm6 = vweird.f32 %v2204_v37 }
 0x2e9   : > { %v1021_v14 = vpack.c.bf16 %v1020_v13, %v1020_v13 }
 0x2ea   : > { %v1155_v39 = vsub.f32 1.0, %v1154_v38 }
 0x2eb   : > { %1948 = vmatmul.msk.bf16.vlgmr.msrb.gmra.mxu1 %vm889_vm2, %v1021_v14 }
 0x2ec   : > { %v1156_v40 = vmul.f32 %v2204_v37, %v1155_v39 }
 0x2ee   : > { %v919_v15 = vpop.f32.mrf.mxu2  ;;  %v1157_v41 = vadd.f32 %v2204_v37, %v1156_v40 }
 0x2f0   : > { %v2950_v42 = vsel %vm1158_vm6, %v2204_v37, %v1157_v41 }
 0x356   : > { %v976_v16 = vpop.f32.mrf.mxu2 }
 0x357   : > { %981 = vrot.lane.b32.xlu2 %v976_v16, %s2644_s23 }
 0x35e   : > { %v978_v17 = vpop.f32.mrf.mxu2 }
 0x366   : > { %v1098_v18 = vpop.f32.mrf.mxu2 }
 0x367   : > { %1103 = vrot.lane.b32.xlu0 %v1098_v18, %s2645_s3 }
 0x368   : > { %v1037_v19 = vpop.f32.mrf.mxu1 }
 0x369   : > { %1042 = vrot.lane.b32.xlu1 %v1037_v19, %s2646_s5 }
 0x36e   : > { %v1100_v20 = vpop.f32.mrf.mxu2 }
 0x370   : > { %v1039_v21 = vpop.f32.mrf.mxu1 }
 0x3b1   : > { %v982_v22 = vpop.permute.xlu2 %981 }
 0x3b2   : > { %985 = vst.msk [vmem:[#allocation2] sm:$0xff] %vm984_vm3, %v982_v22 }
 0x3d9   : > { %v1104_v26 = vpop.permute.xlu0 %1103 }
 0x3db   : > { %v1043_v25 = vpop.permute.xlu1 %1042 }
 0x3dc   : > { %1046 = vst.msk [vmem:[#allocation2] sm:$0xff] %vm1045_vm4, %v1043_v25 }
 0x3dd   : > { %1107 = vst.msk [vmem:[#allocation2] sm:$0xff] %vm1106_vm5, %v1104_v26 }
 0x3e4   : > { %v1108_v27 = vld [vmem:[#allocation2] sm:$0xff] }
 0x3e5   : > { %v1109_v28 = vpack.c.bf16 %v1108_v27, %v1108_v27 }
 0x3e7   : > { %1959 = vmatmul.msk.bf16.vlgmr.msra.gmra.mxu0 %vm845_vm1, %v1109_v28 }
 0x464   : > { %v1138_v31 = vpop.f32.mrf.mxu0 }
 0x465   : > { %v1142_v32 = vadd.f32 %v1138_v31, %v822_v29 }
 0x467   : > { %v1147_v33 = vadd.f32 %v2176_v30, %v1142_v32 }
 0x469   : > { %v1150_v34 = vsel %vm845_vm1, %v1147_v33, 0.0 }
 0x46a   : > { %1151 = vadd.xlane.f32.xlu1 %v1150_v34 }
 0x46c   : > { %v1140_v35 = vpop.f32.mrf.mxu0 }
 0x4dd   : > { %v1152_v43 = vpop.xlane.xlu1 %1151 }
 0x4de   : > { %v1160_v4 = vmul.f32 %v2950_v42, %v1152_v43 }
 0x4e0   : > { %v1161_v44 = vsub.f32 %v1147_v33, %v1160_v4 }
 0x4e2   : > { %v1162_v45 = vmul.f32 %v1161_v44, %v1161_v44 }
 0x4e4   : > { %v1163_v46 = vsel %vm845_vm1, %v1162_v45, 0.0 }
 0x4e5   : > { %1164 = vadd.xlane.f32.xlu0 %v1163_v46 }
 0x558   : > { %v1165_v49 = vpop.xlane.xlu0 %1164 }
 0x559   : > { %v1166_v50 = vmul.f32 %v1165_v49, %v2950_v42 }
 0x55b   : > { %v1167_v51 = vadd.f32 1e-05, %v1166_v50 }
 0x55d   : > { %2205 = vrsqrt.f32 %v1167_v51  ;;  %vm1174_vm8 = vweird.f32 %v1167_v51 }
 0x563   : > { %v2206_v52 = vpop.eup %2205 }
 0x564   : > { %v1169_v53 = vmul.f32 %v2206_v52, %v1167_v51  ;;  %vm1175_vm7 = vweird.f32 %v2206_v52 }
 0x565   : > { %vm1176_vm9 = vmor %vm1174_vm8, %vm1175_vm7 }
 0x566   : > { %v1170_v54 = vmul.f32 %v2206_v52, %v1169_v53 }
 0x568   : > { %v1171_v55 = vmul.f32 0.5, %v1170_v54 }
 0x56a   : > { %v1172_v56 = vsub.f32 1.5, %v1171_v55 }
 0x56c   : > { %v1173_v57 = vmul.f32 %v2206_v52, %v1172_v56 }
 0x56e   : > { %v1177_v59 = vsel %vm1176_vm9, %v2206_v52, %v1173_v57 }
 0x56f   : > { %v1178_v61 = vmul.f32 %v1177_v59, %v1161_v44 }
 0x571   : > { %v1182_v62 = vmul.f32 %v2177_v58, %v1178_v61 }
 0x573   : > { %v2961_v63 = vadd.f32 %v2178_v60, %v1182_v62 }
 0x575   : > { %v1187_v0 = vpack.c.bf16 %v2961_v63, %v2961_v63 }
 0x577   : > { %1968 = vmatmul.msk.bf16.vlgmr.msra.gmra.mxu1 %vm845_vm1, %v1187_v0 }
 0x5f4   : > { %v1220_v2 = vpop.f32.mrf.mxu1 }
 0x5f5   : > { %v1221_v3 = vadd.f32 %v2179_v1, %v1220_v2 }
 0x5f7   : > { %v1224_v5 = vpack.c.bf16 %v1221_v3, %v1221_v3 }
 0x5f9   : > { %v1226_v6 = vunpack.c.l.b16 %v1224_v5 }
 0x5fb   : > { %v2966_v7 = vpack.c.b16 %v1226_v6, %v1226_v6 }
 0x5fc   : > { %v1222_v8 = vpop.f32.mrf.mxu1 }
 0x5fd   : > { %1411 = vrot.lane.b32.xlu0 %v2966_v7, %s2643_s24  ;;  %1347 = vrot.lane.b32.xlu1 %v2966_v7, %s2637_s11  ;;  %s2648_s11 = smov 64   ;;  %s3107_s24 = sshll.u32 %s3109_s2, 2 }
 0x5fe   : > { %1228 = vrot.lane.b32.xlu2 %v2966_v7, %s2641_s26 }
 0x606   : > { %1287 = vrot.lane.b32.xlu2 %v2966_v7, %s2640_s30  ;;  %s2651_s30 = smov 48  }
 0x60e   : > { %1349 = vrot.lane.b32.xlu2 %v2966_v7, %s2642_s27 }
 0x616   : > { %1285 = vrot.lane.b32.xlu2 %v2966_v7, %s2639_s21  ;;  %s2650_s21 = smov 56  }
 0x61e   : > { %1409 = vrot.lane.b32.xlu2 %v2966_v7, %s2638_s25  ;;  %s2649_s25 = smov 40  }
 0x658   : > { %v1229_v9 = vpop.permute.xlu2 %1228 }
 0x659   : > { %v1234_v10 = vsel %vm868_vm0, %v1229_v9, 0 }
 0x65a   : > { %1243 = vmatpush.bf16.xpose.msra.mxu3 %v1234_v10 }
 0x660   : > { %v1288_v11 = vpop.permute.xlu2 %1287 }
 0x661   : > { %v1293_v12 = vsel %vm868_vm0, %v1288_v11, 0  ;;  %1969 = vmatmul.msk.bf16.vlgmr.msra.gmra.mxu3 %vm868_vm0, %v1224_v5 }
 0x662   : > { %1302 = vmatpush.bf16.xpose.msrb.mxu0 %v1293_v12 }
 0x668   : > { %v1350_v13 = vpop.permute.xlu2 %1349 }
 0x669   : > { %v1355_v14 = vsel %vm868_vm0, %v1350_v13, 0 }
 0x66a   : > { %1364 = vmatpush.bf16.xpose.msrb.mxu3 %v1355_v14 }
 0x66f   : > { %v1412_v15 = vpop.permute.xlu0 %1411  ;;  %v1348_v16 = vpop.permute.xlu1 %1347 }
 0x670   : > { %v1417_v17 = vsel %vm868_vm0, %v1412_v15, 0  ;;  %v1286_v18 = vpop.permute.xlu2 %1285 }
 0x671   : > { %1971 = vmatmul.msk.bf16.vlgmr.msrb.gmra.mxu0 %vm868_vm0, %v1286_v18  ;;  %1973 = vmatmul.msk.bf16.vlgmr.msrb.gmra.mxu3 %vm868_vm0, %v1348_v16 }
 0x672   : > { %1426 = vmatpush.bf16.xpose.msra.mxu0 %v1417_v17 }
 0x678   : > { %v1410_v19 = vpop.permute.xlu2 %1409 }
 0x681   : > { %1975 = vmatmul.msk.bf16.vlgmr.msra.gmra.mxu0 %vm868_vm0, %v1410_v19 }
 0x6e4   : > { %v1245_v20 = vpop.f32.mrf.mxu3 }
 0x6e5   : > { %v1249_v21 = vmul.f32 0.35355338, %v1245_v20 }
 0x6e7   : > { %v1250_v22 = vsel %vm868_vm0, %v1249_v21, -inf }
 0x6e8   : > { %1251 = vmax.xlane.f32.xlu2 %v1250_v22 }
 0x6ec   : > { %v1247_v23 = vpop.f32.mrf.mxu3 }
 0x6ee   : > { %v1304_v24 = vpop.f32.mrf.mxu0 }
 0x6ef   : > { %v1308_v25 = vmul.f32 0.35355338, %v1304_v24 }
 0x6f1   : > { %v1309_v26 = vsel %vm868_vm0, %v1308_v25, -inf }
 0x6f2   : > { %1310 = vmax.xlane.f32.xlu0 %v1309_v26 }
 0x6f4   : > { %v1366_v27 = vpop.f32.mrf.mxu3 }
 0x6f5   : > { %v1370_v28 = vmul.f32 0.35355338, %v1366_v27  ;;  %v2024_v27 = vld [vmem:[%s3075_s10 + $0x8] sm:$0xff] }
 0x6f6   : > { %v1306_v29 = vpop.f32.mrf.mxu0  ;;  %1498 = vmatpush.bf16.msra.mxu3 %v2024_v27 }
 0x6f7   : > { %v1371_v30 = vsel %vm868_vm0, %v1370_v28, -inf }
 0x6f8   : > { %1372 = vmax.xlane.f32.xlu1 %v1371_v30 }
 0x6fc   : > { %v1368_v31 = vpop.f32.mrf.mxu3 }
 0x6fe   : > { %v1428_v32 = vpop.f32.mrf.mxu0 }
 0x6ff   : > { %v1432_v33 = vmul.f32 0.35355338, %v1428_v32 }
 0x701   : > { %v1433_v34 = vsel %vm868_vm0, %v1432_v33, -inf }
 0x702   : > { %1434 = vmax.xlane.f32.xlu2 %v1433_v34 }
 0x706   : > { %v1430_v35 = vpop.f32.mrf.mxu0 }
 0x711   : > { %1262 = vrot.lane.b32.xlu1 %v2966_v7, %s2648_s11 }
 0x719   : > { %1445 = vrot.lane.b32.xlu1 %v2966_v7, %s2649_s25 }
 0x75b   : > { %v1252_v36 = vpop.xlane.xlu2 %1251 }
 0x75c   : > { %v1253_v37 = vsub.f32 %v1249_v21, %v1252_v36 }
 0x75e   : > { %v1254_v38 = vmul.f32 1.442695, %v1253_v37 }
 0x760   : > { %2207 = vpow2.f32 %v1254_v38 }
 0x765   : > { %v1311_v39 = vpop.xlane.xlu0 %1310 }
 0x766   : > { %v2208_v40 = vpop.eup %2207  ;;  %v1312_v41 = vsub.f32 %v1308_v25, %v1311_v39 }
 0x767   : > { %v1256_v43 = vsel %vm868_vm0, %v2208_v40, 0.0 }
 0x768   : > { %v1313_v4 = vmul.f32 1.442695, %v1312_v41  ;;  %1257 = vadd.xlane.f32.xlu2 %v1256_v43 }
 0x76a   : > { %2209 = vpow2.f32 %v1313_v4 }
 0x76b   : > { %v1373_v46 = vpop.xlane.xlu1 %1372 }
 0x76c   : > { %v1374_v49 = vsub.f32 %v1370_v28, %v1373_v46  ;;  %v2023_v28 = vld [vmem:[%s3075_s10] sm:$0xff] }
 0x76d   : > { %1499 = vmatpush.bf16.msra.mxu3 %v2023_v28 }
 0x76e   : > { %v1375_v51 = vmul.f32 1.442695, %v1374_v49 }
 0x770   : > { %v2210_v44 = vpop.eup %2209 }
 0x771   : > { %v1315_v45 = vsel %vm868_vm0, %v2210_v44, 0.0 }
 0x772   : > { %1316 = vadd.xlane.f32.xlu0 %v1315_v45 }
 0x775   : > { %v1435_v47 = vpop.xlane.xlu2 %1434 }
 0x776   : > { %v1436_v48 = vsub.f32 %v1432_v33, %v1435_v47  ;;  %v2180_v33 = vld [vmem:[#allocation11] ss:$0 sm:$0xff] }
 0x778   : > { %v1437_v50 = vmul.f32 1.442695, %v1436_v48 }
 0x77a   : > { %2211 = vpow2.f32 %v1437_v50 }
 0x77b   : > { %2213 = vpow2.f32 %v1375_v51 }
 0x780   : > { %v2212_v52 = vpop.eup %2211  ;;  %1321 = vrot.lane.b32.xlu2 %v2966_v7, %s2650_s21 }
 0x781   : > { %v1439_v53 = vsel %vm868_vm0, %v2212_v52, 0.0  ;;  %v2214_v56 = vpop.eup %2213 }
 0x782   : > { %1440 = vadd.xlane.f32.xlu0 %v1439_v53  ;;  %v1377_v57 = vsel %vm868_vm0, %v2214_v56, 0.0 }
 0x783   : > { %v1263_v54 = vpop.permute.xlu1 %1262 }
 0x784   : > { %v1269_v55 = vsel %vm1267_vm10, %v1263_v54, 0  ;;  %v2181_v54 = vld [vmem:[#allocation13] ss:$0 sm:$0xff] }
 0x785   : > { %1278 = vmatpush.bf16.msrb.mxu2 %v1269_v55 }
 0x78a   : > { %1378 = vadd.xlane.f32.xlu0 %v1377_v57 }
 0x78b   : > { %v1446_v60 = vpop.permute.xlu1 %1445 }
 0x78c   : > { %v1451_v1 = vsel %vm1267_vm10, %v1446_v60, 0 }
 0x79e   : > { %1383 = vrot.lane.b32.xlu0 %v2966_v7, %s2651_s30 }
 0x7db   : > { %v1258_v58 = vpop.xlane.xlu2 %1257 }
 0x7dc   : > { %2215 = vrcp.f32 %v1258_v58 }
 0x7e2   : > { %v2216_v59 = vpop.eup %2215 }
 0x7e3   : > { %v1260_v61 = vmul.f32 %v2216_v59, %v2208_v40  ;;  %v1322_v62 = vpop.permute.xlu2 %1321 }
 0x7e4   : > { %v1327_v0 = vsel %vm1267_vm10, %v1322_v62, 0 }
 0x7e5   : > { %v1261_v2 = vpack.c.bf16 %v1260_v61, %v1260_v61  ;;  %v1317_v3 = vpop.xlane.xlu0 %1316  ;;  %1336 = vmatpush.bf16.msrb.mxu1 %v1327_v0  ;;  %v2183_v61 = vld [vmem:[#allocation16] ss:$0 sm:$0xff] }
 0x7e6   : > { %2217 = vrcp.f32 %v1317_v3 }
 0x7e7   : > { %1970 = vmatmul.msk.bf16.vlgmr.msrb.gmra.mxu2 %vm868_vm0, %v1261_v2 }
 0x7e9   : > { %1460 = vmatpush.bf16.msra.mxu1 %v1451_v1 }
 0x7ec   : > { %v2218_v5 = vpop.eup %2217 }
 0x7ed   : > { %v1319_v6 = vmul.f32 %v2218_v5, %v2210_v44  ;;  %v2026_v44 = vld [vmem:[%s3079_s14 + $0x8] sm:$0xff] }
 0x7ef   : > { %v1320_v7 = vpack.c.bf16 %v1319_v6, %v1319_v6  ;;  %v2030_v6 = vld [vmem:[%s3081_s16 + $0x18] sm:$0xff] }
 0x7f0   : > { %1665 = vmatpush.bf16.msrb.mxu0 %v2030_v6  ;;  %v2186_v6 = vld [vmem:[#allocation20] ss:$0 sm:$0xff] }
 0x7f1   : > { %1972 = vmatmul.msk.bf16.vlgmr.msrb.gmra.mxu1 %vm868_vm0, %v1320_v7 }
 0x7f5   : > { %v1441_v8 = vpop.xlane.xlu0 %1440 }
 0x7f6   : > { %2219 = vrcp.f32 %v1441_v8 }
 0x7fc   : > { %v2220_v9 = vpop.eup %2219 }
 0x7fd   : > { %v1443_v10 = vmul.f32 %v2220_v9, %v2212_v52  ;;  %v1379_v12 = vpop.xlane.xlu0 %1378 }
 0x7fe   : > { %2221 = vrcp.f32 %v1379_v12 }
 0x7ff   : > { %v1444_v11 = vpack.c.bf16 %v1443_v10, %v1443_v10 }
 0x801   : > { %1976 = vmatmul.msk.bf16.vlgmr.msra.gmra.mxu1 %vm868_vm0, %v1444_v11  ;;  %v2029_v11 = vld [vmem:[%s3081_s16 + $0x10] sm:$0xff] }
 0x802   : > { %1666 = vmatpush.bf16.msrb.mxu0 %v2029_v11 }
 0x804   : > { %v2222_v13 = vpop.eup %2221 }
 0x805   : > { %v1381_v14 = vmul.f32 %v2222_v13, %v2214_v56  ;;  %v2182_v56 = vld [vmem:[#allocation14] ss:$0 sm:$0xff] }
 0x807   : > { %v1382_v17 = vpack.c.bf16 %v1381_v14, %v1381_v14 }
 0x810   : > { %v1384_v15 = vpop.permute.xlu0 %1383 }
 0x811   : > { %v1389_v16 = vsel %vm1267_vm10, %v1384_v15, 0 }
 0x812   : > { %1398 = vmatpush.bf16.msra.mxu2 %v1389_v16  ;;  %v2028_v16 = vld [vmem:[%s3081_s16 + $0x8] sm:$0xff] }
 0x813   : > { %1667 = vmatpush.bf16.msrb.mxu0 %v2028_v16 }
 0x815   : > { %1974 = vmatmul.msk.bf16.vlgmr.msra.gmra.mxu2 %vm868_vm0, %v1382_v17 }
 0x816   : > { %1573 = vmatpush.bf16.msrb.mxu2 %v2026_v44 }
 0x86a   : > { %v1280_v18 = vpop.f32.mrf.mxu2 }
 0x86b   : > { %1284 = vst.msk [vmem:[#allocation2] sm:$0xff] %vm868_vm0, %v1280_v18 }
 0x86e   : > { %v1338_v19 = vpop.f32.mrf.mxu1 }
 0x86f   : > { %1343 = vrot.lane.b32.xlu2 %v1338_v19, %s2644_s23 }
 0x872   : > { %v1282_v20 = vpop.f32.mrf.mxu2 }
 0x873   : > { %v2027_v20 = vld [vmem:[%s3081_s16] sm:$0xff] }
 0x874   : > { %1668 = vmatpush.bf16.msrb.mxu0 %v2027_v20 }
 0x876   : > { %v1340_v21 = vpop.f32.mrf.mxu1 }
 0x87e   : > { %v1462_v22 = vpop.f32.mrf.mxu1 }
 0x87f   : > { %1467 = vrot.lane.b32.xlu2 %v1462_v22, %s2645_s3 }
 0x886   : > { %v1464_v23 = vpop.f32.mrf.mxu1 }
 0x898   : > { %v1400_v24 = vpop.f32.mrf.mxu2 }
 0x899   : > { %1405 = vrot.lane.b32.xlu1 %v1400_v24, %s2646_s5  ;;  %s819_s5 = scalar_lea.vmem %s3085_s20, %s3107_s24 }
 0x8a0   : > { %v1402_v25 = vpop.f32.mrf.mxu2 }
 0x8c9   : > { %v1344_v26 = vpop.permute.xlu2 %1343 }
 0x8ca   : > { %1346 = vst.msk [vmem:[#allocation2] sm:$0xff] %vm984_vm3, %v1344_v26  ;;  %vm1657_vm3 = vcmask 523264  }
 0x8d9   : > { %v1468_v30 = vpop.permute.xlu2 %1467 }
 0x90b   : > { %v1406_v29 = vpop.permute.xlu1 %1405 }
 0x90c   : > { %1408 = vst.msk [vmem:[#allocation2] sm:$0xff] %vm1045_vm4, %v1406_v29 }
 0x90d   : > { %1470 = vst.msk [vmem:[#allocation2] sm:$0xff] %vm1106_vm5, %v1468_v30 }
 0x914   : > { %v1471_v31 = vld [vmem:[#allocation2] sm:$0xff] }
 0x915   : > { %v1472_v32 = vpack.c.bf16 %v1471_v31, %v1471_v31 }
 0x917   : > { %1985 = vmatmul.msk.bf16.vlgmr.msra.gmra.mxu3 %vm845_vm1, %v1472_v32 }
 0x99a   : > { %v1501_v34 = vpop.f32.mrf.mxu3 }
 0x99b   : > { %v1505_v35 = vadd.f32 %v1501_v34, %v2961_v63  ;;  %v2025_v63 = vld [vmem:[%s3079_s14] sm:$0xff] }
 0x99c   : > { %1574 = vmatpush.bf16.msrb.mxu2 %v2025_v63 }
 0x99d   : > { %v1510_v36 = vadd.f32 %v2180_v33, %v1505_v35 }
 0x99f   : > { %v1513_v37 = vsel %vm845_vm1, %v1510_v36, 0.0 }
 0x9a0   : > { %1514 = vadd.xlane.f32.xlu1 %v1513_v37 }
 0x9a2   : > { %v1503_v38 = vpop.f32.mrf.mxu3 }
 0xa13   : > { %v1515_v39 = vpop.xlane.xlu1 %1514 }
 0xa14   : > { %v1516_v40 = vmul.f32 %v1515_v39, %v2950_v42 }
 0xa16   : > { %v1517_v41 = vsub.f32 %v1510_v36, %v1516_v40 }
 0xa18   : > { %v1518_v43 = vmul.f32 %v1517_v41, %v1517_v41 }
 0xa1a   : > { %v1519_v4 = vsel %vm845_vm1, %v1518_v43, 0.0 }
 0xa1b   : > { %1520 = vadd.xlane.f32.xlu0 %v1519_v4 }
 0xa8e   : > { %v1521_v45 = vpop.xlane.xlu0 %1520 }
 0xa8f   : > { %v1522_v46 = vmul.f32 %v1521_v45, %v2950_v42 }
 0xa91   : > { %v1523_v47 = vadd.f32 1e-05, %v1522_v46  ;;  %v2184_v46 = vld [vmem:[#allocation17] ss:$0 sm:$0xff] }
 0xa93   : > { %2223 = vrsqrt.f32 %v1523_v47  ;;  %vm1530_vm12 = vweird.f32 %v1523_v47 }
 0xa99   : > { %v2224_v48 = vpop.eup %2223 }
 0xa9a   : > { %v1525_v49 = vmul.f32 %v2224_v48, %v1523_v47  ;;  %vm1531_vm11 = vweird.f32 %v2224_v48 }
 0xa9b   : > { %vm1532_vm13 = vmor %vm1530_vm12, %vm1531_vm11 }
 0xa9c   : > { %v1526_v50 = vmul.f32 %v2224_v48, %v1525_v49 }
 0xa9e   : > { %v1527_v51 = vmul.f32 0.5, %v1526_v50 }
 0xaa0   : > { %v1528_v52 = vsub.f32 1.5, %v1527_v51 }
 0xaa2   : > { %v1529_v53 = vmul.f32 %v2224_v48, %v1528_v52 }
 0xaa4   : > { %v1533_v55 = vsel %vm1532_vm13, %v2224_v48, %v1529_v53 }
 0xaa5   : > { %v1534_v57 = vmul.f32 %v1533_v55, %v1517_v41 }
 0xaa7   : > { %v1538_v58 = vmul.f32 %v2181_v54, %v1534_v57 }
 0xaa9   : > { %v3035_v59 = vadd.f32 %v2182_v56, %v1538_v58 }
 0xaab   : > { %v1543_v60 = vpack.c.bf16 %v3035_v59, %v3035_v59 }
 0xaad   : > { %1994 = vmatmul.msk.bf16.vlgmr.msrb.gmra.mxu2 %vm845_vm1, %v1543_v60 }
 0xb30   : > { %v1576_v62 = vpop.f32.mrf.mxu2 }
 0xb31   : > { %v1577_v0 = vadd.f32 %v2183_v61, %v1576_v62 }
 0xb33   : > { %v1581_v1 = vmul.f32 0.70710677, %v1577_v0  ;;  %v1580_v4 = vmul.f32 0.5, %v1577_v0 }
 0xb35   : > { %v1582_v2 = vmul.f32 %v1581_v1, %v1581_v1 }
 0xb37   : > { %v1583_v3 = vmin.f32 %v1582_v2, 16.0 }
 0xb38   : > { %v1578_v5 = vpop.f32.mrf.mxu2 }
 0xb39   : > { %v1584_v7 = vmul.f32 2.1237322e-06, %v1583_v3  ;;  %v1595_v8 = vmul.f32 3.8918573e-05, %v1583_v3 }
 0xb3b   : > { %v1585_v9 = vadd.f32 0.00028619796, %v1584_v7  ;;  %v1596_v10 = vadd.f32 0.001143296, %v1595_v8 }
 0xb3d   : > { %v1586_v12 = vmul.f32 %v1585_v9, %v1583_v3  ;;  %v1597_v13 = vmul.f32 %v1596_v10, %v1583_v3 }
 0xb3f   : > { %v1598_v14 = vadd.f32 0.014752088, %v1597_v13  ;;  %v1587_v15 = vadd.f32 0.0036580483, %v1586_v12 }
 0xb41   : > { %v1599_v17 = vmul.f32 %v1598_v14, %v1583_v3  ;;  %v1588_v19 = vmul.f32 %v1587_v15, %v1583_v3 }
 0xb43   : > { %v1600_v18 = vadd.f32 0.112945676, %v1599_v17  ;;  %v1589_v23 = vadd.f32 0.05243302, %v1588_v19 }
 0xb45   : > { %v1601_v21 = vmul.f32 %v1600_v18, %v1583_v3  ;;  %v1590_v26 = vmul.f32 %v1589_v23, %v1583_v3 }
 0xb47   : > { %v1602_v22 = vadd.f32 0.4994258, %v1601_v21  ;;  %v1591_v27 = vadd.f32 0.18741608, %v1590_v26 }
 0xb49   : > { %v1603_v24 = vmul.f32 %v1602_v22, %v1583_v3  ;;  %v1592_v29 = vmul.f32 %v1591_v27, %v1583_v3  ;;  %v2185_v3 = vld [vmem:[#allocation19] ss:$0 sm:$0xff] }
 0xb4b   : > { %v1604_v25 = vadd.f32 1.0, %v1603_v24  ;;  %v1593_v33 = vadd.f32 1.1283791, %v1592_v29 }
 0xb4d   : > { %2225 = vrcp.f32 %v1604_v25  ;;  %v1616_v32 = vand.u32 2147483648, %v1604_v25  ;;  %v1614_v35 = vand.u32 2147483647, %v1604_v25  ;;  %vm1610_vm15 = vweird.f32 %v1604_v25 }
 0xb4e   : > { %v1594_v38 = vmul.f32 %v1593_v33, %v1581_v1 }
 0xb4f   : > { %v1617_v37 = vor.u32 1.1754944e-38, %v1616_v32  ;;  %vm1615_vm2 = vcmp.eq.f32.partialorder %v1614_v35, 8.507059e+37 }
 0xb53   : > { %v2226_v28 = vpop.eup %2225 }
 0xb54   : > { %v1606_v30 = vmul.f32 %v2226_v28, %v1604_v25  ;;  %vm1611_vm14 = vweird.f32 %v2226_v28 }
 0xb55   : > { %vm1612_vm0 = vmor %vm1610_vm15, %vm1611_vm14 }
 0xb56   : > { %v1607_v31 = vsub.f32 1.0, %v1606_v30 }
 0xb58   : > { %v1608_v34 = vmul.f32 %v2226_v28, %v1607_v31 }
 0xb5a   : > { %v1609_v36 = vadd.f32 %v2226_v28, %v1608_v34 }
 0xb5c   : > { %v1613_v39 = vsel %vm1612_vm0, %v2226_v28, %v1609_v36 }
 0xb5d   : > { %v1618_v40 = vsel %vm1615_vm2, %v1617_v37, %v1613_v39 }
 0xb5e   : > { %v1619_v41 = vmul.f32 %v1618_v40, %v1594_v38 }
 0xb60   : > { %v1995_v43 = vclamps-f32 %v1619_v41, 1.0 }
 0xb62   : > { %v1622_v44 = vadd.f32 1.0, %v1995_v43 }
 0xb64   : > { %v1623_v63 = vmul.f32 %v1622_v44, %v1580_v4 }
 0xb66   : > { %v1624_v45 = vpack.c.bf16 %v1623_v63, %v1623_v63 }
 0xb68   : > { %2012 = vmatmul.msk.bf16.vlgmr.msrb.gmra.mxu0 %vm1657_vm3, %v1624_v45 }
 0xbe5   : > { %v1670_v47 = vpop.f32.mrf.mxu0 }
 0xbe6   : > { %v1674_v48 = vadd.f32 %v1670_v47, %v3035_v59 }
 0xbe8   : > { %v1679_v49 = vadd.f32 %v2184_v46, %v1674_v48 }
 0xbea   : > { %v1682_v50 = vsel %vm845_vm1, %v1679_v49, 0.0 }
 0xbeb   : > { %1683 = vadd.xlane.f32.xlu2 %v1682_v50 }
 0xbed   : > { %v1672_v51 = vpop.f32.mrf.mxu0 }
 0xc5e   : > { %v1684_v52 = vpop.xlane.xlu2 %1683 }
 0xc5f   : > { %v1685_v53 = vmul.f32 %v1684_v52, %v2950_v42 }
 0xc61   : > { %v1686_v54 = vsub.f32 %v1679_v49, %v1685_v53 }
 0xc63   : > { %v1687_v55 = vmul.f32 %v1686_v54, %v1686_v54 }
 0xc65   : > { %v1688_v56 = vsel %vm845_vm1, %v1687_v55, 0.0  ;;  %vm1713_vm1 = vcmask 257024  }
 0xc66   : > { %1689 = vadd.xlane.f32.xlu1 %v1688_v56 }
 0xcd9   : > { %v1690_v57 = vpop.xlane.xlu1 %1689 }
 0xcda   : > { %v1691_v58 = vmul.f32 %v1690_v57, %v2950_v42 }
 0xcdc   : > { %v1692_v60 = vadd.f32 1e-05, %v1691_v58 }
 0xcde   : > { %2227 = vrsqrt.f32 %v1692_v60  ;;  %vm1699_vm5 = vweird.f32 %v1692_v60 }
 0xce4   : > { %v2228_v59 = vpop.eup %2227 }
 0xce5   : > { %v1694_v61 = vmul.f32 %v2228_v59, %v1692_v60  ;;  %vm1700_vm4 = vweird.f32 %v2228_v59 }
 0xce6   : > { %vm1701_vm6 = vmor %vm1699_vm5, %vm1700_vm4 }
 0xce7   : > { %v1695_v62 = vmul.f32 %v2228_v59, %v1694_v61 }
 0xce9   : > { %v1696_v0 = vmul.f32 0.5, %v1695_v62 }
 0xceb   : > { %v1697_v1 = vsub.f32 1.5, %v1696_v0 }
 0xced   : > { %v1698_v2 = vmul.f32 %v2228_v59, %v1697_v1 }
 0xcef   : > { %v1702_v5 = vsel %vm1701_vm6, %v2228_v59, %v1698_v2 }
 0xcf0   : > { %v1703_v7 = vmul.f32 %v1702_v5, %v1686_v54 }
 0xcf2   : > { %v1707_v8 = vmul.f32 %v2185_v3, %v1703_v7 }
 0xcf4   : > { %v1711_v9 = vadd.f32 %v2186_v6, %v1707_v8 }
 0xcf6   : > { %v1712_v42 = vpack.c.bf16 %v1711_v9, %v1711_v9 }
 0xcf8   : > { %1714 = vst.msk [vmem:[%s819_s5] sm:$0xf] %vm1713_vm1, %v1712_v42 }
 0xcf9 PF: > { %s37_s1 = sadd.s32 1, %s2623_s1  }
 0xcfa   : > { %p34_p7 = scmp.ge.s32.totalorder %s37_s1, 4  }
 0xcfc   :  { %36 = sbr.rel (!%p34_p7) target bundleno = 16 (0x10), region = 182 }
 0xd01   :  { %1734 = vsyncpa [#allocation4], 1 }
 0xd02   :  { %1736 = vsyncpa [#allocation4 + $0x1], 1 }
 0xd03   :  { %1737 = vsyncpa [#allocation6], 1 }
 0xd04   :  { %1738 = vsyncpa [#allocation9], 1 }
 0xd05   :  { %1739 = vsyncpa [#allocation12], 1 }
 0xd06   :  { %1740 = vsyncpa [#allocation15], 1 }
 0xd07   :  { %1741 = vsyncpa [#allocation18], 1 }
 0xd08   :  { %1742 = vsyncpa [#allocation21], 1 }

</bundles_post_ra>
